<compile_context>
chip_gen: v7x
topology: tpu7x:2x2x1
jax: 0.10.0
libtpu: 0.0.40
codegen_flags: <defaults>
</compile_context>

<pallas_src>
import functools

import jax
import jax.numpy as jnp
from jax import lax
from jax.experimental import pallas as pl
from jax.experimental.pallas import tpu as pltpu

EPS = 1e-5
MM_DTYPE = jnp.bfloat16       # MXU operand dtype (accumulation stays f32)
ACT_DTYPE = jnp.bfloat16      # inter-stage activation dtype in HBM


def _vmem_limit_bytes():
    """Generation-aware scoped-VMEM limit with headroom under physical VMEM."""
    cap = 128 * 1024 * 1024
    try:
        cap = int(getattr(pltpu.get_tpu_info(), "vmem_capacity_bytes", cap))
    except Exception:
        pass
    # v5e/v6e (128 MiB physical) -> 96 MiB; v7x (64 MiB physical) -> 48 MiB.
    return max(32 * 1024 * 1024, min((cap * 3) // 4, 96 * 1024 * 1024))


# ----------------------------------------------------------------------------
# Kernels
# ----------------------------------------------------------------------------
def _conv1_kernel(x_ref, w_ref, y_ref, ps_ref):
    """1x1 conv over a (TR, Cin) row slab + per-tile (sum, sumsq) partials."""
    x = x_ref[...].astype(w_ref.dtype)
    y = jnp.dot(x, w_ref[...], preferred_element_type=jnp.float32)
    y_ref[...] = y.astype(y_ref.dtype)                    # bf16 to HBM
    s = jnp.sum(y, axis=0, keepdims=True)                 # stats from f32 acc
    ss = jnp.sum(y * y, axis=0, keepdims=True)
    ps_ref[...] = jnp.concatenate([s, ss], axis=-1).reshape(ps_ref.shape)


def _bn_relu_conv3x3_kernel(y1_ref, sc_ref, sh_ref, w_ref,
                            y2_ref, ps_ref, pad_ref):
    """bn1 (fused scale/shift, f32) + ReLU + 3x3 conv for NB images per step."""
    NB, H, W, P = y1_ref.shape
    sc = sc_ref[...].reshape(1, 1, 1, P)
    sh = sh_ref[...].reshape(1, 1, 1, P)
    a1 = jnp.maximum(y1_ref[...].astype(jnp.float32) * sc + sh, 0.0)

    # Re-zero only the 1-pixel halo of the (bf16, persistent) padded scratch;
    # the interior is fully overwritten below.  Cheap filler under the memory
    # stall, so left as-is on purpose.
    zr = jnp.zeros((NB, 1, W + 2, P), pad_ref.dtype)
    zc = jnp.zeros((NB, H + 2, 1, P), pad_ref.dtype)
    pad_ref[:, 0:1, :, :] = zr
    pad_ref[:, H + 1:H + 2, :, :] = zr
    pad_ref[:, :, 0:1, :] = zc
    pad_ref[:, :, W + 1:W + 2, :] = zc
    pad_ref[:, 1:H + 1, 1:W + 1, :] = a1.astype(pad_ref.dtype)

    padv = pad_ref[...]
    M = NB * H * W
    if P >= 128:
        # K=P already fills the MXU contraction dim: 9 accumulating matmuls on
        # shifted views, no (M, 9P) im2col materialization.
        y2 = jnp.zeros((M, P), jnp.float32)
        for t in range(9):
            dy, dx = t // 3, t % 3
            tap = padv[:, dy:dy + H, dx:dx + W, :].reshape(M, P)
            y2 = y2 + jnp.dot(tap, w_ref[t * P:(t + 1) * P, :],
                              preferred_element_type=jnp.float32)
    else:
        # Small P: a single (M, 9P) x (9P, P) MXU matmul (bf16 im2col slab).
        taps = [padv[:, dy:dy + H, dx:dx + W, :]
                for dy in range(3) for dx in range(3)]
        patches = jnp.concatenate(taps, axis=-1).reshape(M, 9 * P)
        y2 = jnp.dot(patches, w_ref[...], preferred_element_type=jnp.float32)

    y2_ref[...] = y2.astype(y2_ref.dtype).reshape(NB, H, W, P)
    s = jnp.sum(y2, axis=0, keepdims=True)
    ss = jnp.sum(y2 * y2, axis=0, keepdims=True)
    ps_ref[...] = jnp.concatenate([s, ss], axis=-1).reshape(ps_ref.shape)


def _bn_relu_conv1x1_kernel(y2_ref, sc_ref, sh_ref, w_ref, y3_ref, ps_ref,
                            *, rows_valid=None):
    """bn2 (fused scale/shift, f32) + ReLU + 1x1 conv (P -> 4P) on a row slab.

    `rows_valid` (static) masks zero-padded tail rows out of the BN3 stats
    (padded rows would otherwise contribute relu(shift) @ w3).
    """
    a2 = jnp.maximum(
        y2_ref[...].astype(jnp.float32) * sc_ref[...] + sh_ref[...], 0.0)
    if rows_valid is not None:
        base = pl.program_id(0) * y2_ref.shape[0]
        ridx = base + lax.broadcasted_iota(jnp.int32, a2.shape, 0)
        a2 = jnp.where(ridx < rows_valid, a2, 0.0)
    y3 = jnp.dot(a2.astype(w_ref.dtype), w_ref[...],
                 preferred_element_type=jnp.float32)
    y3_ref[...] = y3.astype(y3_ref.dtype)
    s = jnp.sum(y3, axis=0, keepdims=True)
    ss = jnp.sum(y3 * y3, axis=0, keepdims=True)
    ps_ref[...] = jnp.concatenate([s, ss], axis=-1).reshape(ps_ref.shape)


def _bn_add_relu_kernel(y3_ref, x_ref, sc_ref, sh_ref, out_ref):
    """bn3 (fused scale/shift) + residual add + final ReLU on a row slab."""
    z = y3_ref[...].astype(jnp.float32) * sc_ref[...] + sh_ref[...]
    out_ref[...] = jnp.maximum(z + x_ref[...], 0.0)


# ----------------------------------------------------------------------------
# Host-side glue
# ----------------------------------------------------------------------------
def _scale_shift(partials, count, gamma, beta):
    """Fold per-tile (sum, sumsq) partials into a fused BN scale/shift (f32)."""
    tot = jnp.sum(partials.astype(jnp.float32).reshape(partials.shape[0], -1),
                  axis=0)                                  # (2C,)
    c = tot.shape[0] // 2
    mean = tot[:c] / count
    # TODO(synk): E[y^2]-E[y]^2 in f32 cancels if |mean| >> std in a real model;
    # switch to mean-shifted per-tile partials if that ever matters.
    var = jnp.maximum(tot[c:] / count - mean * mean, 0.0)   # biased variance
    inv = lax.rsqrt(var + EPS)
    scale = gamma.reshape(-1).astype(jnp.float32) * inv
    shift = beta.reshape(-1).astype(jnp.float32) - mean * scale
    return scale.reshape(1, -1), shift.reshape(1, -1)


def _choose_row_tile(rows):
    """Biggest row slab <= 1024; ragged rows are zero-padded, not divisor-hunted."""
    for t in (1024, 512, 256, 128, 64, 32, 16):
        if rows >= t:
            return t
    return 16


def _choose_img_block(n, h, w, p):
    """Images per stage-2 step: keep the MXU M-dim healthy for small feature
    maps while bounding the per-step VMEM working set."""
    best = 1
    for nb in range(1, n + 1):
        if n % nb == 0 and nb * h * w * p <= 448 * 1024 and nb * h * w <= 8192:
            best = nb
    return best


def _pad_rows(a, rows_padded):
    r = a.shape[0]
    return a if rows_padded == r else jnp.pad(a, ((0, rows_padded - r), (0, 0)))


def bottleneck_forward_nhwc(x_nhwc, params, *, row_tile=None):
    x = x_nhwc.astype(jnp.float32)
    N, H, W, Cin = x.shape
    P = params["w1"].shape[1]
    C4 = 4 * P
    assert Cin == C4, "residual path requires inplanes == planes * expansion"

    R = N * H * W
    TR = row_tile if row_tile is not None else _choose_row_tile(R)
    T = pl.cdiv(R, TR)
    RP = T * TR                       # rows zero-padded up to a tile multiple
    NB = _choose_img_block(N, H, W, P)

    w1 = params["w1"].astype(MM_DTYPE)                       # (Cin, P)
    w2 = params["w2"].reshape(9 * P, P).astype(MM_DTYPE)     # (9P, P) im2col
    w3 = params["w3"].astype(MM_DTYPE)                       # (P, 4P)

    cparams = pltpu.CompilerParams(
        dimension_semantics=("parallel",),
        vmem_limit_bytes=_vmem_limit_bytes())

    x2d = _pad_rows(x.reshape(R, Cin), RP)

    # ---- stage 1: conv1 (1x1) + bn1 partial stats ---------------------------
    y1, ps1 = pl.pallas_call(
        _conv1_kernel,
        grid=(T,),
        in_specs=[pl.BlockSpec((TR, Cin), lambda i: (i, 0)),
                  pl.BlockSpec((Cin, P), lambda i: (0, 0))],
        out_specs=(pl.BlockSpec((TR, P), lambda i: (i, 0)),
                   pl.BlockSpec((1, 1, 2 * P), lambda i: (i, 0, 0))),
        out_shape=(jax.ShapeDtypeStruct((RP, P), ACT_DTYPE),
                   jax.ShapeDtypeStruct((T, 1, 2 * P), jnp.float32)),
        compiler_params=cparams,
    )(x2d, w1)
    sc1, sh1 = _scale_shift(ps1, R, params["g1"], params["b1"])

    # ---- stage 2: bn1 + relu + conv2 (3x3) + bn2 partial stats --------------
    y2, ps2 = pl.pallas_call(
        _bn_relu_conv3x3_kernel,
        grid=(N // NB,),
        in_specs=[pl.BlockSpec((NB, H, W, P), lambda n: (n, 0, 0, 0)),
                  pl.BlockSpec((1, P), lambda n: (0, 0)),
                  pl.BlockSpec((1, P), lambda n: (0, 0)),
                  pl.BlockSpec((9 * P, P), lambda n: (0, 0))],
        out_specs=(pl.BlockSpec((NB, H, W, P), lambda n: (n, 0, 0, 0)),
                   pl.BlockSpec((1, 1, 2 * P), lambda n: (n, 0, 0))),
        out_shape=(jax.ShapeDtypeStruct((N, H, W, P), ACT_DTYPE),
                   jax.ShapeDtypeStruct((N // NB, 1, 2 * P), jnp.float32)),
        scratch_shapes=[pltpu.VMEM((NB, H + 2, W + 2, P), ACT_DTYPE)],
        compiler_params=cparams,
    )(y1[:R].reshape(N, H, W, P), sc1, sh1, w2)
    sc2, sh2 = _scale_shift(ps2, R, params["g2"], params["b2"])

    # ---- stage 3: bn2 + relu + conv3 (1x1, P -> 4P) + bn3 partial stats -----
    stage3 = functools.partial(_bn_relu_conv1x1_kernel,
                               rows_valid=(R if RP != R else None))
    y3, ps3 = pl.pallas_call(
        stage3,
        grid=(T,),
        in_specs=[pl.BlockSpec((TR, P), lambda i: (i, 0)),
                  pl.BlockSpec((1, P), lambda i: (0, 0)),
                  pl.BlockSpec((1, P), lambda i: (0, 0)),
                  pl.BlockSpec((P, C4), lambda i: (0, 0))],
        out_specs=(pl.BlockSpec((TR, C4), lambda i: (i, 0)),
                   pl.BlockSpec((1, 1, 2 * C4), lambda i: (i, 0, 0))),
        out_shape=(jax.ShapeDtypeStruct((RP, C4), ACT_DTYPE),
                   jax.ShapeDtypeStruct((T, 1, 2 * C4), jnp.float32)),
        compiler_params=cparams,
    )(_pad_rows(y2.reshape(R, P), RP), sc2, sh2, w3)
    sc3, sh3 = _scale_shift(ps3, R, params["g3"], params["b3"])

    # ---- stage 4: bn3 + residual add + final relu ---------------------------
    out2d = pl.pallas_call(
        _bn_add_relu_kernel,
        grid=(T,),
        in_specs=[pl.BlockSpec((TR, C4), lambda i: (i, 0)),
                  pl.BlockSpec((TR, C4), lambda i: (i, 0)),
                  pl.BlockSpec((1, C4), lambda i: (0, 0)),
                  pl.BlockSpec((1, C4), lambda i: (0, 0))],
        out_specs=pl.BlockSpec((TR, C4), lambda i: (i, 0)),
        out_shape=jax.ShapeDtypeStruct((RP, C4), jnp.float32),
        compiler_params=cparams,
    )(y3, x2d, sc3, sh3)

    return out2d[:R].reshape(N, H, W, C4)


def bottleneck_forward(x_nchw, params, *, row_tile=None):
    # Layout adapter for the NCHW PyTorch interface.  In an NHWC end-to-end
    # model call bottleneck_forward_nhwc directly and skip both transposes.
    x = jnp.transpose(x_nchw, (0, 2, 3, 1))
    out = bottleneck_forward_nhwc(x, params, row_tile=row_tile)
    return jnp.transpose(out, (0, 3, 1, 2))


# ----------------------------------------------------------------------------
# Synthetic parameters + pure-JAX reference (mirrors the PyTorch forward)
# ----------------------------------------------------------------------------
def init_params(key, inplanes, planes):
    """Deterministic synthetic parameters (shapes match the PyTorch module)."""
    ks = jax.random.split(key, 9)

    def u(k, shape, fan_in):
        bound = 1.0 / (fan_in ** 0.5)
        return jax.random.uniform(k, shape, jnp.float32, -bound, bound)

    return {
        # conv1x1(inplanes, planes): weight (P, Cin, 1, 1) stored as (Cin, P)
        "w1": u(ks[0], (inplanes, planes), inplanes),
        # conv3x3(planes, planes): weight (P, P, 3, 3) stored as (9, Cin, Cout)
        "w2": u(ks[1], (9, planes, planes), planes * 9),
        # conv1x1(planes, 4*planes): stored as (P, 4P)
        "w3": u(ks[2], (planes, 4 * planes), planes),
        # BatchNorm affine params (non-trivial so the test is meaningful)
        "g1": 1.0 + 0.1 * jax.random.normal(ks[3], (1, planes), jnp.float32),
        "b1": 0.1 * jax.random.normal(ks[4], (1, planes), jnp.float32),
        "g2": 1.0 + 0.1 * jax.random.normal(ks[5], (1, planes), jnp.float32),
        "b2": 0.1 * jax.random.normal(ks[6], (1, planes), jnp.float32),
        "g3": 1.0 + 0.1 * jax.random.normal(ks[7], (1, 4 * planes), jnp.float32),
        "b3": 0.1 * jax.random.normal(ks[8], (1, 4 * planes), jnp.float32),
    }


def bottleneck_ref(x_nchw, params):
    """Pure-JAX f32 reference mirroring the PyTorch forward (training-mode BN)."""
    x = jnp.transpose(x_nchw, (0, 2, 3, 1)).astype(jnp.float32)
    N, H, W, Cin = x.shape
    P = params["w1"].shape[1]

    def bn_relu(y, g, b, relu):
        mean = jnp.mean(y, axis=(0, 1, 2), keepdims=True)
        var = jnp.mean((y - mean) ** 2, axis=(0, 1, 2), keepdims=True)
        z = (y - mean) / jnp.sqrt(var + EPS) * g.reshape(1, 1, 1, -1) \
            + b.reshape(1, 1, 1, -1)
        return jnp.maximum(z, 0.0) if relu else z

    y1 = jnp.einsum("nhwc,cp->nhwp", x, params["w1"])
    a1 = bn_relu(y1, params["g1"], params["b1"], True)

    ap = jnp.pad(a1, ((0, 0), (1, 1), (1, 1), (0, 0)))
    y2 = jnp.zeros((N, H, W, P), jnp.float32)
    for dy in range(3):
        for dx in range(3):
            y2 = y2 + jnp.einsum("nhwc,cp->nhwp",
                                 ap[:, dy:dy + H, dx:dx + W, :],
                                 params["w2"][dy * 3 + dx])
    a2 = bn_relu(y2, params["g2"], params["b2"], True)

    y3 = jnp.einsum("nhwc,cp->nhwp", a2, params["w3"])
    z3 = bn_relu(y3, params["g3"], params["b3"], False)
    out = jnp.maximum(z3 + x, 0.0)
    return jnp.transpose(out, (0, 3, 1, 2))


if __name__ == "__main__":
    key = jax.random.PRNGKey(0)
    kx, kp = jax.random.split(key)

    # Bottleneck(inplanes=16, planes=4) => expansion 4, residual shapes match.
    inplanes, planes = 16, 4
    N, H, W = 2, 16, 16

    x = jax.random.normal(kx, (N, inplanes, H, W), jnp.float32)
    params = init_params(kp, inplanes, planes)

    # row_tile=128 -> a 4-step pipelined grid for the row-tiled stages at this
    # toy size (real shapes default to 512-1024 row slabs).
    fwd = jax.jit(lambda xx: bottleneck_forward(xx, params, row_tile=128))
    out = jax.block_until_ready(fwd(x))
    assert out.shape == (N, inplanes, H, W)

    ref = bottleneck_ref(x, params)
    # bf16 MXU operands AND bf16 inter-stage activations in HBM (f32 MXU
    # accumulation, f32 BN math / residual): deviation from the all-f32
    # reference is dominated by intentional bf16 rounding, so the tolerance is
    # loose by design.
    if not jnp.allclose(out, ref, atol=1e-1, rtol=1e-1):
        max_err = float(jnp.max(jnp.abs(out - ref)))
        raise AssertionError(f"mismatch vs pure-JAX reference, max abs err={max_err}")

    print("KERNEL_OK")
</pallas_src>

<mosaic_0001>
module attributes {stable_mosaic.version = 11 : i64} {
  func.func @_conv1_kernel(%arg0: i32, %arg1: memref<128x16xf32, #tpu.memory_space<vmem>>, %arg2: memref<16x4xbf16, #tpu.memory_space<vmem>>, %arg3: memref<128x4xbf16, #tpu.memory_space<vmem>>, %arg4: memref<1x1x8xf32, #tpu.memory_space<vmem>>) attributes {dimension_semantics = [#tpu.dimension_semantics<parallel>], iteration_bounds = array<i64: 4>, scalar_prefetch = 0 : i64, scratch_operands = 0 : i64, tpu.core_type = #tpu.core_type<tc>, window_params = [{transform_indices = @transform_0, window_bounds = array<i64: 128, 16>}, {pipeline_mode = #tpu.pipeline_mode<synchronous>, transform_indices = @transform_1, window_bounds = array<i64: 16, 4>}, {transform_indices = @transform_2, window_bounds = array<i64: 128, 4>}, {transform_indices = @transform_3, window_bounds = array<i64: 1, 1, 8>}]} {
    %c0 = arith.constant 0 : index
    %c0_0 = arith.constant 0 : index
    %0 = vector.load %arg1[%c0, %c0_0] : memref<128x16xf32, #tpu.memory_space<vmem>>, vector<128x16xf32>
    %1 = arith.truncf %0 : vector<128x16xf32> to vector<128x16xbf16>
    %c0_1 = arith.constant 0 : index
    %c0_2 = arith.constant 0 : index
    %2 = vector.load %arg2[%c0_1, %c0_2] : memref<16x4xbf16, #tpu.memory_space<vmem>>, vector<16x4xbf16>
    %cst = arith.constant dense<0.000000e+00> : vector<128x4xf32>
    %3 = tpu.matmul %1, %2, %cst {dimension_numbers = #tpu.dot_dimension_numbers<[1], [0], [0], [1], [0, 0, 1, 1], [], []>} : vector<128x16xbf16>, vector<16x4xbf16>, vector<128x4xf32> -> vector<128x4xf32>
    %4 = arith.truncf %3 : vector<128x4xf32> to vector<128x4xbf16>
    %c0_3 = arith.constant 0 : index
    %c0_4 = arith.constant 0 : index
    %5 = vector.load %arg3[%c0_3, %c0_4] : memref<128x4xbf16, #tpu.memory_space<vmem>>, vector<128x4xbf16>
    tpu.vector_store %arg3[%c0_3, %c0_4], %4 {strides = array<i32>} : memref<128x4xbf16, #tpu.memory_space<vmem>>, vector<128x4xbf16>,
    %cst_5 = arith.constant dense<0.000000e+00> : vector<4xf32>
    %6 = vector.multi_reduction <add>, %3, %cst_5 [0] : vector<128x4xf32> to vector<4xf32>
    %7 = vector.shape_cast %6 : vector<4xf32> to vector<1x4xf32>
    %8 = arith.mulf %3, %3 : vector<128x4xf32>
    %cst_6 = arith.constant dense<0.000000e+00> : vector<4xf32>
    %9 = vector.multi_reduction <add>, %8, %cst_6 [0] : vector<128x4xf32> to vector<4xf32>
    %10 = vector.shape_cast %9 : vector<4xf32> to vector<1x4xf32>
    %11 = tpu.concatenate %7, %10 in 1 : vector<1x4xf32>, vector<1x4xf32> -> vector<1x8xf32>
    %12 = vector.shape_cast %11 : vector<1x8xf32> to vector<1x1x8xf32>
    %c0_7 = arith.constant 0 : index
    %c0_8 = arith.constant 0 : index
    %c0_9 = arith.constant 0 : index
    %13 = vector.load %arg4[%c0_7, %c0_8, %c0_9] : memref<1x1x8xf32, #tpu.memory_space<vmem>>, vector<1x1x8xf32>
    tpu.vector_store %arg4[%c0_7, %c0_8, %c0_9], %12 {strides = array<i32>} : memref<1x1x8xf32, #tpu.memory_space<vmem>>, vector<1x1x8xf32>,
    return
  }
  func.func @transform_0(%arg0: i32) -> (i32, i32) {
    %c0_i32 = arith.constant 0 : i32
    %c0_i32_0 = arith.constant 0 : i32
    return %arg0, %c0_i32 : i32, i32
  }
  func.func @transform_1(%arg0: i32) -> (i32, i32) {
    %c0_i32 = arith.constant 0 : i32
    %c0_i32_0 = arith.constant 0 : i32
    %c0_i32_1 = arith.constant 0 : i32
    return %c0_i32, %c0_i32_0 : i32, i32
  }
  func.func @transform_2(%arg0: i32) -> (i32, i32) {
    %c0_i32 = arith.constant 0 : i32
    %c0_i32_0 = arith.constant 0 : i32
    return %arg0, %c0_i32 : i32, i32
  }
  func.func @transform_3(%arg0: i32) -> (i32, i32, i32) {
    %c0_i32 = arith.constant 0 : i32
    %c0_i32_0 = arith.constant 0 : i32
    %c0_i32_1 = arith.constant 0 : i32
    return %arg0, %c0_i32, %c0_i32_0 : i32, i32, i32
  }
}

module attributes {stable_mosaic.version = 11 : i64} {
  func.func @_bn_add_relu_kernel(%arg0: i32, %arg1: memref<128x16xbf16, #tpu.memory_space<vmem>>, %arg2: memref<128x16xf32, #tpu.memory_space<vmem>>, %arg3: memref<1x16xf32, #tpu.memory_space<vmem>>, %arg4: memref<1x16xf32, #tpu.memory_space<vmem>>, %arg5: memref<128x16xf32, #tpu.memory_space<vmem>>) attributes {dimension_semantics = [#tpu.dimension_semantics<parallel>], iteration_bounds = array<i64: 4>, scalar_prefetch = 0 : i64, scratch_operands = 0 : i64, tpu.core_type = #tpu.core_type<tc>, window_params = [{transform_indices = @transform_0, window_bounds = array<i64: 128, 16>}, {transform_indices = @transform_1, window_bounds = array<i64: 128, 16>}, {pipeline_mode = #tpu.pipeline_mode<synchronous>, transform_indices = @transform_2, window_bounds = array<i64: 1, 16>}, {pipeline_mode = #tpu.pipeline_mode<synchronous>, transform_indices = @transform_3, window_bounds = array<i64: 1, 16>}, {transform_indices = @transform_4, window_bounds = array<i64: 128, 16>}]} {
    %c0 = arith.constant 0 : index
    %c0_0 = arith.constant 0 : index
    %0 = vector.load %arg1[%c0, %c0_0] : memref<128x16xbf16, #tpu.memory_space<vmem>>, vector<128x16xbf16>
    %1 = arith.extf %0 : vector<128x16xbf16> to vector<128x16xf32>
    %c0_1 = arith.constant 0 : index
    %c0_2 = arith.constant 0 : index
    %2 = vector.load %arg3[%c0_1, %c0_2] : memref<1x16xf32, #tpu.memory_space<vmem>>, vector<1x16xf32>
    %3 = vector.broadcast %2 : vector<1x16xf32> to vector<128x16xf32>
    %4 = arith.mulf %1, %3 : vector<128x16xf32>
    %c0_3 = arith.constant 0 : index
    %c0_4 = arith.constant 0 : index
    %5 = vector.load %arg4[%c0_3, %c0_4] : memref<1x16xf32, #tpu.memory_space<vmem>>, vector<1x16xf32>
    %6 = vector.broadcast %5 : vector<1x16xf32> to vector<128x16xf32>
    %7 = arith.addf %4, %6 : vector<128x16xf32>
    %c0_5 = arith.constant 0 : index
    %c0_6 = arith.constant 0 : index
    %8 = vector.load %arg2[%c0_5, %c0_6] : memref<128x16xf32, #tpu.memory_space<vmem>>, vector<128x16xf32>
    %9 = arith.addf %7, %8 : vector<128x16xf32>
    %cst = arith.constant 0.000000e+00 : f32
    %10 = vector.broadcast %cst : f32 to vector<128x16xf32>
    %11 = arith.maximumf %9, %10 : vector<128x16xf32>
    %c0_7 = arith.constant 0 : index
    %c0_8 = arith.constant 0 : index
    %12 = vector.load %arg5[%c0_7, %c0_8] : memref<128x16xf32, #tpu.memory_space<vmem>>, vector<128x16xf32>
    tpu.vector_store %arg5[%c0_7, %c0_8], %11 {strides = array<i32>} : memref<128x16xf32, #tpu.memory_space<vmem>>, vector<128x16xf32>,
    return
  }
  func.func @transform_0(%arg0: i32) -> (i32, i32) {
    %c0_i32 = arith.constant 0 : i32
    %c0_i32_0 = arith.constant 0 : i32
    return %arg0, %c0_i32 : i32, i32
  }
  func.func @transform_1(%arg0: i32) -> (i32, i32) {
    %c0_i32 = arith.constant 0 : i32
    %c0_i32_0 = arith.constant 0 : i32
    return %arg0, %c0_i32 : i32, i32
  }
  func.func @transform_2(%arg0: i32) -> (i32, i32) {
    %c0_i32 = arith.constant 0 : i32
    %c0_i32_0 = arith.constant 0 : i32
    %c0_i32_1 = arith.constant 0 : i32
    return %c0_i32, %c0_i32_0 : i32, i32
  }
  func.func @transform_3(%arg0: i32) -> (i32, i32) {
    %c0_i32 = arith.constant 0 : i32
    %c0_i32_0 = arith.constant 0 : i32
    %c0_i32_1 = arith.constant 0 : i32
    return %c0_i32, %c0_i32_0 : i32, i32
  }
  func.func @transform_4(%arg0: i32) -> (i32, i32) {
    %c0_i32 = arith.constant 0 : i32
    %c0_i32_0 = arith.constant 0 : i32
    return %arg0, %c0_i32 : i32, i32
  }
}

module attributes {stable_mosaic.version = 11 : i64} {
  func.func @_bn_relu_conv3x3_kernel(%arg0: i32, %arg1: memref<2x16x16x4xbf16, #tpu.memory_space<vmem>>, %arg2: memref<1x4xf32, #tpu.memory_space<vmem>>, %arg3: memref<1x4xf32, #tpu.memory_space<vmem>>, %arg4: memref<36x4xbf16, #tpu.memory_space<vmem>>, %arg5: memref<2x16x16x4xbf16, #tpu.memory_space<vmem>>, %arg6: memref<1x1x8xf32, #tpu.memory_space<vmem>>, %arg7: memref<2x18x18x4xbf16, #tpu.memory_space<vmem>>) attributes {dimension_semantics = [#tpu.dimension_semantics<parallel>], iteration_bounds = array<i64: 1>, scalar_prefetch = 0 : i64, scratch_operands = 1 : i64, tpu.core_type = #tpu.core_type<tc>, window_params = [{transform_indices = @transform_0, window_bounds = array<i64: 2, 16, 16, 4>}, {pipeline_mode = #tpu.pipeline_mode<synchronous>, transform_indices = @transform_1, window_bounds = array<i64: 1, 4>}, {pipeline_mode = #tpu.pipeline_mode<synchronous>, transform_indices = @transform_2, window_bounds = array<i64: 1, 4>}, {pipeline_mode = #tpu.pipeline_mode<synchronous>, transform_indices = @transform_3, window_bounds = array<i64: 36, 4>}, {transform_indices = @transform_4, window_bounds = array<i64: 2, 16, 16, 4>}, {transform_indices = @transform_5, window_bounds = array<i64: 1, 1, 8>}]} {
    %c0 = arith.constant 0 : index
    %c0_0 = arith.constant 0 : index
    %0 = vector.load %arg2[%c0, %c0_0] : memref<1x4xf32, #tpu.memory_space<vmem>>, vector<1x4xf32>
    %1 = vector.shape_cast %0 : vector<1x4xf32> to vector<1x1x1x4xf32>
    %c0_1 = arith.constant 0 : index
    %c0_2 = arith.constant 0 : index
    %2 = vector.load %arg3[%c0_1, %c0_2] : memref<1x4xf32, #tpu.memory_space<vmem>>, vector<1x4xf32>
    %3 = vector.shape_cast %2 : vector<1x4xf32> to vector<1x1x1x4xf32>
    %c0_3 = arith.constant 0 : index
    %c0_4 = arith.constant 0 : index
    %c0_5 = arith.constant 0 : index
    %c0_6 = arith.constant 0 : index
    %4 = vector.load %arg1[%c0_3, %c0_4, %c0_5, %c0_6] : memref<2x16x16x4xbf16, #tpu.memory_space<vmem>>, vector<2x16x16x4xbf16>
    %5 = arith.extf %4 : vector<2x16x16x4xbf16> to vector<2x16x16x4xf32>
    %6 = vector.broadcast %1 : vector<1x1x1x4xf32> to vector<2x16x16x4xf32>
    %7 = arith.mulf %5, %6 : vector<2x16x16x4xf32>
    %8 = vector.broadcast %3 : vector<1x1x1x4xf32> to vector<2x16x16x4xf32>
    %9 = arith.addf %7, %8 : vector<2x16x16x4xf32>
    %cst = arith.constant 0.000000e+00 : f32
    %10 = vector.broadcast %cst : f32 to vector<2x16x16x4xf32>
    %11 = arith.maximumf %9, %10 : vector<2x16x16x4xf32>
    %cst_7 = arith.constant 0.000000e+00 : bf16
    %12 = vector.broadcast %cst_7 : bf16 to vector<2x1x18x4xbf16>
    %cst_8 = arith.constant 0.000000e+00 : bf16
    %13 = vector.broadcast %cst_8 : bf16 to vector<2x18x1x4xbf16>
    %c0_9 = arith.constant 0 : index
    %c0_10 = arith.constant 0 : index
    %c0_11 = arith.constant 0 : index
    %c0_12 = arith.constant 0 : index
    %14 = vector.load %arg7[%c0_9, %c0_10, %c0_11, %c0_12] : memref<2x18x18x4xbf16, #tpu.memory_space<vmem>>, vector<2x1x18x4xbf16>
    tpu.vector_store %arg7[%c0_9, %c0_10, %c0_11, %c0_12], %12 {strides = array<i32>} : memref<2x18x18x4xbf16, #tpu.memory_space<vmem>>, vector<2x1x18x4xbf16>,
    %c0_13 = arith.constant 0 : index
    %c17 = arith.constant 17 : index
    %c0_14 = arith.constant 0 : index
    %c0_15 = arith.constant 0 : index
    %15 = vector.load %arg7[%c0_13, %c17, %c0_14, %c0_15] : memref<2x18x18x4xbf16, #tpu.memory_space<vmem>>, vector<2x1x18x4xbf16>
    tpu.vector_store %arg7[%c0_13, %c17, %c0_14, %c0_15], %12 {strides = array<i32>} : memref<2x18x18x4xbf16, #tpu.memory_space<vmem>>, vector<2x1x18x4xbf16>,
    %c0_16 = arith.constant 0 : index
    %c0_17 = arith.constant 0 : index
    %c0_18 = arith.constant 0 : index
    %c0_19 = arith.constant 0 : index
    %16 = vector.load %arg7[%c0_16, %c0_17, %c0_18, %c0_19] : memref<2x18x18x4xbf16, #tpu.memory_space<vmem>>, vector<2x18x1x4xbf16>
    tpu.vector_store %arg7[%c0_16, %c0_17, %c0_18, %c0_19], %13 {strides = array<i32>} : memref<2x18x18x4xbf16, #tpu.memory_space<vmem>>, vector<2x18x1x4xbf16>,
    %c0_20 = arith.constant 0 : index
    %c0_21 = arith.constant 0 : index
    %c17_22 = arith.constant 17 : index
    %c0_23 = arith.constant 0 : index
    %17 = vector.load %arg7[%c0_20, %c0_21, %c17_22, %c0_23] : memref<2x18x18x4xbf16, #tpu.memory_space<vmem>>, vector<2x18x1x4xbf16>
    tpu.vector_store %arg7[%c0_20, %c0_21, %c17_22, %c0_23], %13 {strides = array<i32>} : memref<2x18x18x4xbf16, #tpu.memory_space<vmem>>, vector<2x18x1x4xbf16>,
    %18 = arith.truncf %11 : vector<2x16x16x4xf32> to vector<2x16x16x4xbf16>
    %c0_24 = arith.constant 0 : index
    %c1 = arith.constant 1 : index
    %c1_25 = arith.constant 1 : index
    %c0_26 = arith.constant 0 : index
    %19 = vector.load %arg7[%c0_24, %c1, %c1_25, %c0_26] : memref<2x18x18x4xbf16, #tpu.memory_space<vmem>>, vector<2x16x16x4xbf16>
    tpu.vector_store %arg7[%c0_24, %c1, %c1_25, %c0_26], %18 {strides = array<i32>} : memref<2x18x18x4xbf16, #tpu.memory_space<vmem>>, vector<2x16x16x4xbf16>,
    %c0_27 = arith.constant 0 : index
    %c0_28 = arith.constant 0 : index
    %c0_29 = arith.constant 0 : index
    %c0_30 = arith.constant 0 : index
    %20 = vector.load %arg7[%c0_27, %c0_28, %c0_29, %c0_30] : memref<2x18x18x4xbf16, #tpu.memory_space<vmem>>, vector<2x18x18x4xbf16>
    %21 = vector.extract_strided_slice %20 {offsets = [0, 0, 0, 0], sizes = [2, 16, 16, 4], strides = [1, 1, 1, 1]} : vector<2x18x18x4xbf16> to vector<2x16x16x4xbf16>
    %22 = vector.extract_strided_slice %20 {offsets = [0, 0, 1, 0], sizes = [2, 16, 16, 4], strides = [1, 1, 1, 1]} : vector<2x18x18x4xbf16> to vector<2x16x16x4xbf16>
    %23 = vector.extract_strided_slice %20 {offsets = [0, 0, 2, 0], sizes = [2, 16, 16, 4], strides = [1, 1, 1, 1]} : vector<2x18x18x4xbf16> to vector<2x16x16x4xbf16>
    %24 = vector.extract_strided_slice %20 {offsets = [0, 1, 0, 0], sizes = [2, 16, 16, 4], strides = [1, 1, 1, 1]} : vector<2x18x18x4xbf16> to vector<2x16x16x4xbf16>
    %25 = vector.extract_strided_slice %20 {offsets = [0, 1, 1, 0], sizes = [2, 16, 16, 4], strides = [1, 1, 1, 1]} : vector<2x18x18x4xbf16> to vector<2x16x16x4xbf16>
    %26 = vector.extract_strided_slice %20 {offsets = [0, 1, 2, 0], sizes = [2, 16, 16, 4], strides = [1, 1, 1, 1]} : vector<2x18x18x4xbf16> to vector<2x16x16x4xbf16>
    %27 = vector.extract_strided_slice %20 {offsets = [0, 2, 0, 0], sizes = [2, 16, 16, 4], strides = [1, 1, 1, 1]} : vector<2x18x18x4xbf16> to vector<2x16x16x4xbf16>
    %28 = vector.extract_strided_slice %20 {offsets = [0, 2, 1, 0], sizes = [2, 16, 16, 4], strides = [1, 1, 1, 1]} : vector<2x18x18x4xbf16> to vector<2x16x16x4xbf16>
    %29 = vector.extract_strided_slice %20 {offsets = [0, 2, 2, 0], sizes = [2, 16, 16, 4], strides = [1, 1, 1, 1]} : vector<2x18x18x4xbf16> to vector<2x16x16x4xbf16>
    %30 = tpu.concatenate %21, %22, %23, %24, %25, %26, %27, %28, %29 in 3 : vector<2x16x16x4xbf16>, vector<2x16x16x4xbf16>, vector<2x16x16x4xbf16>, vector<2x16x16x4xbf16>, vector<2x16x16x4xbf16>, vector<2x16x16x4xbf16>, vector<2x16x16x4xbf16>, vector<2x16x16x4xbf16>, vector<2x16x16x4xbf16> -> vector<2x16x16x36xbf16>
    %31 = vector.shape_cast %30 : vector<2x16x16x36xbf16> to vector<512x36xbf16>
    %c0_31 = arith.constant 0 : index
    %c0_32 = arith.constant 0 : index
    %32 = vector.load %arg4[%c0_31, %c0_32] : memref<36x4xbf16, #tpu.memory_space<vmem>>, vector<36x4xbf16>
    %cst_33 = arith.constant dense<0.000000e+00> : vector<512x4xf32>
    %33 = tpu.matmul %31, %32, %cst_33 {dimension_numbers = #tpu.dot_dimension_numbers<[1], [0], [0], [1], [0, 0, 1, 1], [], []>} : vector<512x36xbf16>, vector<36x4xbf16>, vector<512x4xf32> -> vector<512x4xf32>
    %34 = arith.truncf %33 : vector<512x4xf32> to vector<512x4xbf16>
    %35 = vector.shape_cast %34 : vector<512x4xbf16> to vector<2x16x16x4xbf16>
    %c0_34 = arith.constant 0 : index
    %c0_35 = arith.constant 0 : index
    %c0_36 = arith.constant 0 : index
    %c0_37 = arith.constant 0 : index
    %36 = vector.load %arg5[%c0_34, %c0_35, %c0_36, %c0_37] : memref<2x16x16x4xbf16, #tpu.memory_space<vmem>>, vector<2x16x16x4xbf16>
    tpu.vector_store %arg5[%c0_34, %c0_35, %c0_36, %c0_37], %35 {strides = array<i32>} : memref<2x16x16x4xbf16, #tpu.memory_space<vmem>>, vector<2x16x16x4xbf16>,
    %cst_38 = arith.constant dense<0.000000e+00> : vector<4xf32>
    %37 = vector.multi_reduction <add>, %33, %cst_38 [0] : vector<512x4xf32> to vector<4xf32>
    %38 = vector.shape_cast %37 : vector<4xf32> to vector<1x4xf32>
    %39 = arith.mulf %33, %33 : vector<512x4xf32>
    %cst_39 = arith.constant dense<0.000000e+00> : vector<4xf32>
    %40 = vector.multi_reduction <add>, %39, %cst_39 [0] : vector<512x4xf32> to vector<4xf32>
    %41 = vector.shape_cast %40 : vector<4xf32> to vector<1x4xf32>
    %42 = tpu.concatenate %38, %41 in 1 : vector<1x4xf32>, vector<1x4xf32> -> vector<1x8xf32>
    %43 = vector.shape_cast %42 : vector<1x8xf32> to vector<1x1x8xf32>
    %c0_40 = arith.constant 0 : index
    %c0_41 = arith.constant 0 : index
    %c0_42 = arith.constant 0 : index
    %44 = vector.load %arg6[%c0_40, %c0_41, %c0_42] : memref<1x1x8xf32, #tpu.memory_space<vmem>>, vector<1x1x8xf32>
    tpu.vector_store %arg6[%c0_40, %c0_41, %c0_42], %43 {strides = array<i32>} : memref<1x1x8xf32, #tpu.memory_space<vmem>>, vector<1x1x8xf32>,
    return
  }
  func.func @transform_0(%arg0: i32) -> (i32, i32, i32, i32) {
    %c0_i32 = arith.constant 0 : i32
    %c0_i32_0 = arith.constant 0 : i32
    %c0_i32_1 = arith.constant 0 : i32
    %c0_i32_2 = arith.constant 0 : i32
    return %arg0, %c0_i32, %c0_i32_0, %c0_i32_1 : i32, i32, i32, i32
  }
  func.func @transform_1(%arg0: i32) -> (i32, i32) {
    %c0_i32 = arith.constant 0 : i32
    %c0_i32_0 = arith.constant 0 : i32
    %c0_i32_1 = arith.constant 0 : i32
    return %c0_i32, %c0_i32_0 : i32, i32
  }
  func.func @transform_2(%arg0: i32) -> (i32, i32) {
    %c0_i32 = arith.constant 0 : i32
    %c0_i32_0 = arith.constant 0 : i32
    %c0_i32_1 = arith.constant 0 : i32
    return %c0_i32, %c0_i32_0 : i32, i32
  }
  func.func @transform_3(%arg0: i32) -> (i32, i32) {
    %c0_i32 = arith.constant 0 : i32
    %c0_i32_0 = arith.constant 0 : i32
    %c0_i32_1 = arith.constant 0 : i32
    return %c0_i32, %c0_i32_0 : i32, i32
  }
  func.func @transform_4(%arg0: i32) -> (i32, i32, i32, i32) {
    %c0_i32 = arith.constant 0 : i32
    %c0_i32_0 = arith.constant 0 : i32
    %c0_i32_1 = arith.constant 0 : i32
    %c0_i32_2 = arith.constant 0 : i32
    return %arg0, %c0_i32, %c0_i32_0, %c0_i32_1 : i32, i32, i32, i32
  }
  func.func @transform_5(%arg0: i32) -> (i32, i32, i32) {
    %c0_i32 = arith.constant 0 : i32
    %c0_i32_0 = arith.constant 0 : i32
    %c0_i32_1 = arith.constant 0 : i32
    return %arg0, %c0_i32, %c0_i32_0 : i32, i32, i32
  }
}

module attributes {stable_mosaic.version = 11 : i64} {
  func.func @_bn_relu_conv1x1_kernel(%arg0: i32, %arg1: memref<128x4xbf16, #tpu.memory_space<vmem>>, %arg2: memref<1x4xf32, #tpu.memory_space<vmem>>, %arg3: memref<1x4xf32, #tpu.memory_space<vmem>>, %arg4: memref<4x16xbf16, #tpu.memory_space<vmem>>, %arg5: memref<128x16xbf16, #tpu.memory_space<vmem>>, %arg6: memref<1x1x32xf32, #tpu.memory_space<vmem>>) attributes {dimension_semantics = [#tpu.dimension_semantics<parallel>], iteration_bounds = array<i64: 4>, scalar_prefetch = 0 : i64, scratch_operands = 0 : i64, tpu.core_type = #tpu.core_type<tc>, window_params = [{transform_indices = @transform_0, window_bounds = array<i64: 128, 4>}, {pipeline_mode = #tpu.pipeline_mode<synchronous>, transform_indices = @transform_1, window_bounds = array<i64: 1, 4>}, {pipeline_mode = #tpu.pipeline_mode<synchronous>, transform_indices = @transform_2, window_bounds = array<i64: 1, 4>}, {pipeline_mode = #tpu.pipeline_mode<synchronous>, transform_indices = @transform_3, window_bounds = array<i64: 4, 16>}, {transform_indices = @transform_4, window_bounds = array<i64: 128, 16>}, {transform_indices = @transform_5, window_bounds = array<i64: 1, 1, 32>}]} {
    %c0 = arith.constant 0 : index
    %c0_0 = arith.constant 0 : index
    %0 = vector.load %arg1[%c0, %c0_0] : memref<128x4xbf16, #tpu.memory_space<vmem>>, vector<128x4xbf16>
    %1 = arith.extf %0 : vector<128x4xbf16> to vector<128x4xf32>
    %c0_1 = arith.constant 0 : index
    %c0_2 = arith.constant 0 : index
    %2 = vector.load %arg2[%c0_1, %c0_2] : memref<1x4xf32, #tpu.memory_space<vmem>>, vector<1x4xf32>
    %3 = vector.broadcast %2 : vector<1x4xf32> to vector<128x4xf32>
    %4 = arith.mulf %1, %3 : vector<128x4xf32>
    %c0_3 = arith.constant 0 : index
    %c0_4 = arith.constant 0 : index
    %5 = vector.load %arg3[%c0_3, %c0_4] : memref<1x4xf32, #tpu.memory_space<vmem>>, vector<1x4xf32>
    %6 = vector.broadcast %5 : vector<1x4xf32> to vector<128x4xf32>
    %7 = arith.addf %4, %6 : vector<128x4xf32>
    %cst = arith.constant 0.000000e+00 : f32
    %8 = vector.broadcast %cst : f32 to vector<128x4xf32>
    %9 = arith.maximumf %7, %8 : vector<128x4xf32>
    %10 = arith.truncf %9 : vector<128x4xf32> to vector<128x4xbf16>
    %c0_5 = arith.constant 0 : index
    %c0_6 = arith.constant 0 : index
    %11 = vector.load %arg4[%c0_5, %c0_6] : memref<4x16xbf16, #tpu.memory_space<vmem>>, vector<4x16xbf16>
    %cst_7 = arith.constant dense<0.000000e+00> : vector<128x16xf32>
    %12 = tpu.matmul %10, %11, %cst_7 {dimension_numbers = #tpu.dot_dimension_numbers<[1], [0], [0], [1], [0, 0, 1, 1], [], []>} : vector<128x4xbf16>, vector<4x16xbf16>, vector<128x16xf32> -> vector<128x16xf32>
    %13 = arith.truncf %12 : vector<128x16xf32> to vector<128x16xbf16>
    %c0_8 = arith.constant 0 : index
    %c0_9 = arith.constant 0 : index
    %14 = vector.load %arg5[%c0_8, %c0_9] : memref<128x16xbf16, #tpu.memory_space<vmem>>, vector<128x16xbf16>
    tpu.vector_store %arg5[%c0_8, %c0_9], %13 {strides = array<i32>} : memref<128x16xbf16, #tpu.memory_space<vmem>>, vector<128x16xbf16>,
    %cst_10 = arith.constant dense<0.000000e+00> : vector<16xf32>
    %15 = vector.multi_reduction <add>, %12, %cst_10 [0] : vector<128x16xf32> to vector<16xf32>
    %16 = vector.shape_cast %15 : vector<16xf32> to vector<1x16xf32>
    %17 = arith.mulf %12, %12 : vector<128x16xf32>
    %cst_11 = arith.constant dense<0.000000e+00> : vector<16xf32>
    %18 = vector.multi_reduction <add>, %17, %cst_11 [0] : vector<128x16xf32> to vector<16xf32>
    %19 = vector.shape_cast %18 : vector<16xf32> to vector<1x16xf32>
    %20 = tpu.concatenate %16, %19 in 1 : vector<1x16xf32>, vector<1x16xf32> -> vector<1x32xf32>
    %21 = vector.shape_cast %20 : vector<1x32xf32> to vector<1x1x32xf32>
    %c0_12 = arith.constant 0 : index
    %c0_13 = arith.constant 0 : index
    %c0_14 = arith.constant 0 : index
    %22 = vector.load %arg6[%c0_12, %c0_13, %c0_14] : memref<1x1x32xf32, #tpu.memory_space<vmem>>, vector<1x1x32xf32>
    tpu.vector_store %arg6[%c0_12, %c0_13, %c0_14], %21 {strides = array<i32>} : memref<1x1x32xf32, #tpu.memory_space<vmem>>, vector<1x1x32xf32>,
    return
  }
  func.func @transform_0(%arg0: i32) -> (i32, i32) {
    %c0_i32 = arith.constant 0 : i32
    %c0_i32_0 = arith.constant 0 : i32
    return %arg0, %c0_i32 : i32, i32
  }
  func.func @transform_1(%arg0: i32) -> (i32, i32) {
    %c0_i32 = arith.constant 0 : i32
    %c0_i32_0 = arith.constant 0 : i32
    %c0_i32_1 = arith.constant 0 : i32
    return %c0_i32, %c0_i32_0 : i32, i32
  }
  func.func @transform_2(%arg0: i32) -> (i32, i32) {
    %c0_i32 = arith.constant 0 : i32
    %c0_i32_0 = arith.constant 0 : i32
    %c0_i32_1 = arith.constant 0 : i32
    return %c0_i32, %c0_i32_0 : i32, i32
  }
  func.func @transform_3(%arg0: i32) -> (i32, i32) {
    %c0_i32 = arith.constant 0 : i32
    %c0_i32_0 = arith.constant 0 : i32
    %c0_i32_1 = arith.constant 0 : i32
    return %c0_i32, %c0_i32_0 : i32, i32
  }
  func.func @transform_4(%arg0: i32) -> (i32, i32) {
    %c0_i32 = arith.constant 0 : i32
    %c0_i32_0 = arith.constant 0 : i32
    return %arg0, %c0_i32 : i32, i32
  }
  func.func @transform_5(%arg0: i32) -> (i32, i32, i32) {
    %c0_i32 = arith.constant 0 : i32
    %c0_i32_0 = arith.constant 0 : i32
    %c0_i32_1 = arith.constant 0 : i32
    return %arg0, %c0_i32, %c0_i32_0 : i32, i32, i32
  }
}

</mosaic_0001>

<bundles_post_ra>
// kernel: _lambda_.4
= control target key start
LH: loop header
LB: loop body
LE: loop exit
PB: predicated region body
PF: predicated region fallthrough
CT: control target
= control target key end

     0   :  { %9 = vsyncpa [#allocation3], 0  ;;  %s1402_s0 = inlined_call_operand.hbm [shape: f32[512,16], index: 0, kind: input, shape index: {}]   ;;  %s1403_s1 = inlined_call_operand.hbm [shape: bf16[16,4], index: 1, kind: input, shape index: {}]   ;;  %s1404_s2 = inlined_call_operand.hbm [shape: bf16[512,4], index: 2, kind: output, shape index: {0}]   ;;  %s1405_s3 = inlined_call_operand.hbm [shape: f32[4,1,8], index: 3, kind: output, shape index: {1}]  }
   0x1   :  { %11 = vsyncpa [#allocation3 + $0x1], 0 }
   0x2   :  { %12 = vsyncpa [#allocation6], 0 }
   0x3   :  { %13 = vsyncpa [#allocation4], 0 }
   0x4   :  { %15 = vsyncpa [#allocation4 + $0x1], 0 }
   0x5   :  { %16 = vsyncpa [#allocation9], 0 }
   0x6   :  { %18 = vsyncpa [#allocation9 + $0x1], 0  ;;  %s1042_s12 = smov 0   ;;  %s1044_s13 = smov 0  }
   0x7   :  { %s1046_s14 = smov 0   ;;  %s1048_s15 = smov 0  }
   0x8 LB: > { %s1063_s16 = sadd.s32 4294967295, %s1010_s15   ;;  %s692_s17 = sadd.s32 4294967294, %s1010_s15   ;;  %s1010_s15 = sphi %s1048_s15, %s1424_s15   ;;  %s1006_s14 = sphi %s1046_s14, %s1423_s14   ;;  %s1002_s13 = sphi %s1044_s13, %s1422_s13   ;;  %s998_s12 = sphi %s1042_s12, %s1421_s12  }
   0x9   : > { %p44_p0 = scmp.ne.s32.totalorder %s1002_s13, %s998_s12  ;;  %p1406_p1 = scmp.eq.s32.totalorder %s1063_s16, 0 }
   0xa   : > { %p95_p3 = scmp.eq.s32.totalorder %s692_s17, 3  ;;  %p693_p5 = scmp.ge.s32.totalorder %s1010_s15, 1 }
   0xb   : > { %p1072_p4 = por %p1406_p1, %p44_p0  ;;  %p128_p7 = scmp.lt.s32.totalorder %s1010_s15, 5 }
   0xc   : > { %p1077_p6 = por %p95_p3, %p44_p0  ;;  %s1012_s21 = smov [#allocation5]  }
   0xd   : > { %s1409_s18 = scalar_select %p1072_p4, 1, 0 }
   0xe   : > { %s1410_s19 = scalar_select %p1077_p6, 1, 0 }
   0xf   : > { %p1082_p8 = pnand %p693_p5, %p128_p7  ;;  %s140_s22 = sshll.u32 %s1012_s21, 4  ;;  %s141_s22 = int_to_ptr.vmem [resolvable:$true] %s140_s22 }
  0x10   : > { %s1095_s24 = sadd.s32 1, %s1010_s15   ;;  %s31_s25 = sadd.s32 1, %s1006_s14 }
  0x11   : > { %s1411_s20 = scalar_select %p1082_p8, 1, 0 }
  0x12   : > { %p791_p9 = pneg %p1082_p8  ;;  %s28_s26 = ssub.s32 %s1010_s15, %s1095_s24 }
  0x13   : > { %s850_s29 = scalar_lea.hbm %s1403_s1, 128 }
  0x14   : > { %p1090_p10 = pnand %p791_p9, %p1406_p1  ;;  %p851_p11 = scmp.ne.s32.totalorder %s1403_s1, %s850_s29 }
  0x15   : > { %p857_p3 = scmp.lt.u32.totalorder %s850_s29, %s1403_s1 }
  0x16   : > { %p852_p12 = pneg %p1090_p10 }
  0x18   : > { %p853_p13 = pnand %p852_p12, %p851_p11 }
  0x1a   : > { %p854_p0 = pneg %p853_p13 }
  0x1c   : > { %p859_p5 = pnand %p857_p3, %p854_p0 }
  0x1e   : > { %862 = shalt.err (!%p859_p5)
}
  0x1f   : > { %s863_s7 = scalar_lea.vmem %s141_s22, 128  ;;  %p871_p2 = scmp.lt.s32.totalorder %s141_s22, %s141_s22 }
  0x20   : > { %p864_p7 = scmp.ne.s32.totalorder %s141_s22, %s863_s7  ;;  %p872_p6 = scmp.lt.s32.totalorder %s863_s7, %s863_s7 }
  0x22   : > { %p866_p9 = pnand %p864_p7, %p852_p12  ;;  %p873_p4 = por %p872_p6, %p871_p2 }
  0x24   : > { %p867_p1 = pneg %p866_p9 }
  0x26   : > { %p874_p8 = pnand %p873_p4, %p867_p1 }
  0x28   : > { %877 = shalt.err (!%p874_p8)
}
  0x29   : > { %s1013_s8 = smov 64   ;;  %s1014_s9 = smov 4  }
  0x2a   : > { %794 = dma.hbm_to_vmem [thread:$0]  (!%p1090_p10), %s1403_s1, 128, %s141_s22, [#allocation6], %s1013_s8, %s1013_s8, %s1014_s9  }
  0x2b   : > { %p29_p11 = scmp.eq.s32.totalorder %s28_s26, 0  ;;  %p38_p2 = scmp.ne.s32.totalorder %s1006_s14, %s1002_s13 }
  0x2c   : > { %p39_p1 = scmp.eq.s32.totalorder %s1010_s15, 0  ;;  %p807_p4 = scmp.lt.s32.totalorder %s1010_s15, 4 }
  0x2d   : > { %s1121_s17 = scalar_select %p29_p11, %s1006_s14, %s31_s25  }
  0x2e   : > { %p40_p6 = por %p39_p1, %p38_p2  ;;  %p1413_p8 = scmp.eq.s32.totalorder %s1063_s16, 3 }
  0x2f   : > { %s154_s27 = sand.u32 1, %s1006_s14   ;;  %s734_s28 = sshll.u32 %s1010_s15, 11 }
  0x30   : > { %p1125_p12 = por %p1413_p8, %p38_p2  ;;  %s696_s29 = sshll.u32 %s154_s27, 7 }
  0x31   : > { %s1134_s4 = scalar_lea.hbm %s1402_s0, %s734_s28  ;;  %s158_s22 = scalar_lea.vmem [#allocation2], %s696_s29 }
  0x32   : > { %s165_s25 = sshll.u32 %s158_s22, 4  ;;  %p1136_p10 = pnand %p807_p4, %p40_p6  ;;  %s1140_s25 = int_to_ptr.vmem [resolvable:$true] %s165_s25 }
  0x33   : > { %s1142_s5 = scalar_lea.sflag [#allocation3], %s154_s27  ;;  %s878_s6 = scalar_lea.hbm %s1134_s4, 2048 }
  0x34   : > { %p879_p13 = scmp.ne.s32.totalorder %s1134_s4, %s878_s6  ;;  %p880_p0 = pneg %p1136_p10 }
  0x35   : > { %s883_s9 = scalar_lea.hbm %s1402_s0, 8192  ;;  %p884_p7 = scmp.lt.u32.totalorder %s1134_s4, %s1402_s0 }
  0x36   : > { %p881_p3 = pnand %p880_p0, %p879_p13  ;;  %p885_p9 = scmp.lt.u32.totalorder %s883_s9, %s878_s6 }
  0x37   : > { %p887_p2 = scmp.lt.u32.totalorder %s878_s6, %s1134_s4 }
  0x38   : > { %p882_p5 = pneg %p881_p3  ;;  %p886_p11 = por %p885_p9, %p884_p7 }
  0x3a   : > { %p888_p1 = por %p887_p2, %p886_p11 }
  0x3c   : > { %p889_p4 = pnand %p888_p1, %p882_p5 }
  0x3e   : > { %892 = shalt.err (!%p889_p4)
}
  0x3f   : > { %s893_s27 = scalar_lea.vmem %s1140_s25, 2048  ;;  %s1015_s28 = smov [#allocation2]  }
  0x40   : > { %p894_p6 = scmp.ne.s32.totalorder %s1140_s25, %s893_s27  ;;  %s898_s29 = sshll.u32 %s1015_s28, 4  ;;  %s899_s29 = int_to_ptr.vmem [resolvable:$false] %s898_s29 }
  0x41   : > { %s900_s23 = scalar_lea.vmem %s899_s29, 4096  ;;  %p901_p3 = scmp.lt.s32.totalorder %s1140_s25, %s899_s29 }
  0x42   : > { %p896_p8 = pnand %p894_p6, %p880_p0  ;;  %p902_p7 = scmp.lt.s32.totalorder %s900_s23, %s893_s27 }
  0x44   : > { %p897_p13 = pneg %p896_p8  ;;  %p903_p9 = por %p902_p7, %p901_p3 }
  0x46   : > { %p904_p11 = pnand %p903_p9, %p897_p13 }
  0x48   : > { %907 = shalt.err (!%p904_p11)
}
  0x49   : > { %s1016_s30 = smov 128   ;;  %s1017_s22 = smov 8  }
  0x4a   : > { %798 = dma.hbm_to_vmem [thread:$0]  (!%p1136_p10), %s1134_s4, 2048, %s1140_s25, %s1142_s5, %s1016_s30, %s1016_s30, %s1017_s22  }
  0x4b   : > { %p1416_p0 = scmp.ne.s32.totalorder %s1411_s20, 0 }
  0x4c   : > { %s1173_s6 = sand.u32 (!%p1416_p0), 1, %s1002_s13   ;;  %p1417_p5 = scmp.ne.s32.totalorder (!%p1416_p0), %s1409_s18, 0 }
  0x4d   : > { %177 = sbr.rel (%p1416_p0) target bundleno = 494 (0x1ee), region = 28  ;;  %s700_s7 = sshll.u32 (!%p1416_p0), %s1173_s6, 7 }
  0x4e   : > { %s180_s8 = scalar_lea.sflag (!%p1416_p0), [#allocation3], %s1173_s6  ;;  %s1177_s9 = scalar_lea.vmem (!%p1416_p0), [#allocation2], %s700_s7 }
  0x54   : > { %981 = dma.done.wait (%p1417_p5), %s180_s8, 2048  }
  0x55   : > { %983 = vsyncadd (%p1417_p5), %s180_s8, 4294965248  ;;  %p1418_p10 = scmp.eq.s32.totalorder %s1063_s16, 0 }
  0x57   : > { %985 = dma.done.wait (%p1418_p10), [#allocation6], 128   ;;  %p1419_p2 = pmov %p1418_p10 }
  0x58   : > { %v849_v0 = vld [vmem:[#allocation5] sm:$0xff]   ;;  %v218_v2 = vld [vmem:[%s1177_s9 + $0x8] sm:$0xff]  ;;  %vm249_vm0 = vcmask 130048   ;;  %v219_v3 = vld [vmem:[%s1177_s9 + $0x10] sm:$0xff]  ;;  %s702_s18 = sshll.u32 %s1173_s6, 6  ;;  %vm435_vm1 = vcmask 27648  }
  0x59   : > { %987 = vsyncadd (%p1419_p2), [#allocation6], 4294967168  ;;  %v217_v1 = vld [vmem:[%s1177_s9] sm:$0xff]  ;;  %761 = vmatprep.subr.bf16.mxu0 %v849_v0  ;;  %v220_v5 = vld [vmem:[%s1177_s9 + $0x18] sm:$0xff]  ;;  %779 = vmatprep.subr.bf16.mxu1 %v849_v0  ;;  %vm452_vm2 = vcmask 31744   ;;  %s1214_s20 = scalar_lea.vmem [#allocation7], %s702_s18 }
  0x5a   : > { %v233_v4 = vpack.c.bf16 %v218_v2, %v217_v1  ;;  %v221_v6 = vld [vmem:[%s1177_s9 + $0x20] sm:$0xff]  ;;  %v222_v7 = vld [vmem:[%s1177_s9 + $0x28] sm:$0xff]  ;;  %762 = vmatpush3.bf16.msra.mxu0 %v849_v0  ;;  %v234_v8 = vpack.c.bf16 %v220_v5, %v219_v3  ;;  %780 = vmatpush3.bf16.msra.mxu1 %v849_v0  ;;  %v227_v12 = vld [vmem:[%s1177_s9 + $0x50] sm:$0xff]  ;;  %s751_s4 = sshll.u32 %s1063_s16, 10  ;;  %s568_s10 = sshll.u32 %s1214_s20, 4  ;;  %s1327_s10 = int_to_ptr.vmem [resolvable:$true] %s568_s10 }
  0x5b   : > { %v235_v9 = vpack.c.bf16 %v222_v7, %v221_v6  ;;  %v225_v10 = vld [vmem:[%s1177_s9 + $0x40] sm:$0xff]  ;;  %v226_v11 = vld [vmem:[%s1177_s9 + $0x48] sm:$0xff]  ;;  %v228_v13 = vld [vmem:[%s1177_s9 + $0x58] sm:$0xff]  ;;  %s1324_s5 = scalar_lea.hbm %s1404_s2, %s751_s4  ;;  %s551_s11 = scalar_lea.sflag [#allocation4], %s1173_s6 }
  0x5c   : > { %763 = vmatprep.mubr.msk.bf16.mxu0 %vm249_vm0, %v233_v4  ;;  %v237_v14 = vpack.c.bf16 %v226_v11, %v225_v10  ;;  %v238_v15 = vpack.c.bf16 %v228_v13, %v227_v12  ;;  %v229_v16 = vld [vmem:[%s1177_s9 + $0x60] sm:$0xff]  ;;  %v230_v17 = vld [vmem:[%s1177_s9 + $0x68] sm:$0xff]  ;;  %v223_v19 = vld [vmem:[%s1177_s9 + $0x30] sm:$0xff]  ;;  %s908_s27 = scalar_lea.vmem %s1327_s10, 1024  ;;  %s1018_s28 = smov [#allocation7]  }
  0x5d   : > { %764 = vmatmul.mubr.msk.bf16.vlgmr.msra.gmra.mrb[0].mxu0 %vm249_vm0, %v234_v8  ;;  %v239_v18 = vpack.c.bf16 %v230_v17, %v229_v16  ;;  %v224_v20 = vld [vmem:[%s1177_s9 + $0x38] sm:$0xff]  ;;  %v231_v21 = vld [vmem:[%s1177_s9 + $0x70] sm:$0xff]  ;;  %p909_p1 = scmp.ne.s32.totalorder %s1327_s10, %s908_s27  ;;  %s912_s29 = sshll.u32 %s1018_s28, 4  ;;  %s913_s29 = int_to_ptr.vmem [resolvable:$false] %s912_s29 }
  0x5e   : > { %767 = vmatprep.mubr.msk.bf16.mxu0 %vm249_vm0, %v235_v9  ;;  %771 = vmatprep.mubr.msk.bf16.mxu1 %vm249_vm0, %v237_v14  ;;  %v232_v22 = vld [vmem:[%s1177_s9 + $0x78] sm:$0xff]  ;;  %v236_v23 = vpack.c.bf16 %v224_v20, %v223_v19  ;;  %s914_s23 = scalar_lea.vmem %s913_s29, 2048  ;;  %p915_p8 = scmp.lt.s32.totalorder %s1327_s10, %s913_s29 }
  0x5f   : > { %772 = vmatmul.mubr.msk.bf16.vlgmr.msra.gmra.mrb[0].mxu1 %vm249_vm0, %v238_v15  ;;  %v240_v24 = vpack.c.bf16 %v232_v22, %v231_v21  ;;  %p910_p4 = pnand %p909_p1, %p1125_p12  ;;  %p916_p13 = scmp.lt.s32.totalorder %s914_s23, %s908_s27 }
  0x60   : > { %775 = vmatprep.mubr.msk.bf16.mxu1 %vm249_vm0, %v239_v18 }
  0x61   : > { %p911_p6 = pneg %p910_p4  ;;  %p917_p3 = por %p916_p13, %p915_p8 }
  0x63   : > { %p918_p7 = pnand %p917_p3, %p911_p6 }
  0x65   : > { %768 = vmatmul.mubr.msk.bf16.gmra.mrb[4].mxu0 %vm249_vm0, %v236_v23 }
  0x67   : > { %776 = vmatmul.mubr.msk.bf16.gmra.mrb[4].mxu1 %vm249_vm0, %v240_v24 }
 0x130   : > { %v765_v25 = vpop.f32.mrb[0].mxu0 }
 0x131   : > { %v737_v26 = vpack.c.bf16 %v765_v25, %v765_v25  ;;  %v308_v27 = vpop.f32.mrb[1].mxu0  ;;  %v492_v32 = vmul.f32 %v765_v25, %v765_v25  ;;  %v456_v45 = vsel %vm452_vm2, %v765_v25, 0.0 }
 0x132   : > { %v735_v28 = vpack.c.bf16 %v308_v27, %v308_v27  ;;  %v490_v29 = vmul.f32 %v308_v27, %v308_v27  ;;  %v766_v30 = vpop.f32.mrb[2].mxu0  ;;  %v1212_v31 = vpop.f32.mrb[0].mxu1  ;;  %v453_v36 = vsel %vm452_vm2, %v308_v27, 0.0 }
 0x133   : > { %438 = vst.msk [vmem:[%s1214_s20 + $0x8] sm:$0xf] %vm435_vm1, %v737_v26  ;;  %v738_v33 = vpack.c.bf16 %v766_v30, %v766_v30  ;;  %v311_v34 = vpop.f32.mrb[3].mxu0  ;;  %v1218_v35 = vpop.f32.mrb[1].mxu1  ;;  %v493_v41 = vmul.f32 %v766_v30, %v766_v30  ;;  %v745_v43 = vpack.c.bf16 %v1212_v31, %v1212_v31  ;;  %v509_v52 = vsel %vm452_vm2, %v492_v32, 0.0 }
 0x134   : > { %436 = vst.msk [vmem:[%s1214_s20] sm:$0xf] %vm435_vm1, %v735_v28  ;;  %v736_v37 = vpack.c.bf16 %v311_v34, %v311_v34  ;;  %v454_v38 = vsel %vm452_vm2, %v311_v34, 0.0  ;;  %v491_v39 = vmul.f32 %v311_v34, %v311_v34  ;;  %v1224_v40 = vpop.f32.mrb[2].mxu1  ;;  %v506_v46 = vsel %vm452_vm2, %v490_v29, 0.0 }
 0x135   : > { %439 = vst.msk [vmem:[%s1214_s20 + $0xc] sm:$0xf] %vm435_vm1, %v738_v33  ;;  %v455_v42 = vadd.f32 %v454_v38, %v453_v36  ;;  %v1230_v44 = vpop.f32.mrb[3].mxu1  ;;  %v743_v48 = vpack.c.bf16 %v1218_v35, %v1218_v35  ;;  %446 = vst.msk [vmem:[%s1214_s20 + $0x28] sm:$0xf] %vm435_vm1, %v745_v43  ;;  %v746_v51 = vpack.c.bf16 %v1224_v40, %v1224_v40  ;;  %v458_v55 = vsel %vm452_vm2, %v766_v30, 0.0 }
 0x136   : > { %437 = vst.msk [vmem:[%s1214_s20 + $0x4] sm:$0xf] %vm435_vm1, %v736_v37  ;;  %v507_v47 = vsel %vm452_vm2, %v491_v39, 0.0  ;;  %v744_v54 = vpack.c.bf16 %v1230_v44, %v1230_v44  ;;  %v511_v56 = vsel %vm452_vm2, %v493_v41, 0.0  ;;  %v498_v16 = vmul.f32 %v1218_v35, %v1218_v35 }
 0x137   : > { %v457_v49 = vadd.f32 %v456_v45, %v455_v42  ;;  %v508_v50 = vadd.f32 %v507_v47, %v506_v46  ;;  %444 = vst.msk [vmem:[%s1214_s20 + $0x20] sm:$0xf] %vm435_vm1, %v743_v48  ;;  %447 = vst.msk [vmem:[%s1214_s20 + $0x2c] sm:$0xf] %vm435_vm1, %v746_v51  ;;  %v468_v26 = vsel %vm452_vm2, %v1218_v35, 0.0  ;;  %v499_v33 = vmul.f32 %v1230_v44, %v1230_v44 }
 0x138   : > { %v769_v53 = vpop.f32.mrb[4].mxu0  ;;  %445 = vst.msk [vmem:[%s1214_s20 + $0x24] sm:$0xf] %vm435_vm1, %v744_v54  ;;  %v521_v32 = vsel %vm452_vm2, %v498_v16, 0.0  ;;  %v500_v37 = vmul.f32 %v1212_v31, %v1212_v31  ;;  %v470_v38 = vsel %vm452_vm2, %v1230_v44, 0.0  ;;  %v472_v42 = vsel %vm452_vm2, %v1212_v31, 0.0 }
 0x139   : > { %v510_v57 = vadd.f32 %v509_v52, %v508_v50  ;;  %v741_v58 = vpack.c.bf16 %v769_v53, %v769_v53  ;;  %v324_v59 = vpop.f32.mrb[5].mxu0  ;;  %v459_v61 = vadd.f32 %v458_v55, %v457_v49  ;;  %v496_v10 = vmul.f32 %v769_v53, %v769_v53 }
 0x13a   : > { %v739_v60 = vpack.c.bf16 %v324_v59, %v324_v59  ;;  %v460_v62 = vsel %vm452_vm2, %v324_v59, 0.0  ;;  %v494_v63 = vmul.f32 %v324_v59, %v324_v59  ;;  %v770_v0 = vpop.f32.mrb[6].mxu0  ;;  %v1255_v1 = vpop.f32.mrb[4].mxu1  ;;  %v464_v17 = vsel %vm452_vm2, %v769_v53, 0.0 }
 0x13b   : > { %442 = vst.msk [vmem:[%s1214_s20 + $0x18] sm:$0xf] %vm435_vm1, %v741_v58  ;;  %v512_v2 = vadd.f32 %v511_v56, %v510_v57  ;;  %v742_v3 = vpack.c.bf16 %v770_v0, %v770_v0  ;;  %v327_v4 = vpop.f32.mrb[7].mxu0  ;;  %v356_v5 = vpop.f32.mrb[5].mxu1  ;;  %v461_v6 = vadd.f32 %v460_v62, %v459_v61  ;;  %v497_v18 = vmul.f32 %v770_v0, %v770_v0 }
 0x13c   : > { %440 = vst.msk [vmem:[%s1214_s20 + $0x10] sm:$0xf] %vm435_vm1, %v739_v60  ;;  %v513_v7 = vsel %vm452_vm2, %v494_v63, 0.0  ;;  %v740_v8 = vpack.c.bf16 %v327_v4, %v327_v4  ;;  %v1262_v9 = vpop.f32.mrb[6].mxu1  ;;  %v462_v12 = vsel %vm452_vm2, %v327_v4, 0.0  ;;  %v495_v13 = vmul.f32 %v327_v4, %v327_v4 }
 0x13d   : > { %v514_v11 = vadd.f32 %v513_v7, %v512_v2  ;;  %443 = vst.msk [vmem:[%s1214_s20 + $0x1c] sm:$0xf] %vm435_vm1, %v742_v3  ;;  %v359_v14 = vpop.f32.mrb[7].mxu1  ;;  %v463_v15 = vadd.f32 %v462_v12, %v461_v6  ;;  %v749_v20 = vpack.c.bf16 %v1255_v1, %v1255_v1  ;;  %v747_v23 = vpack.c.bf16 %v356_v5, %v356_v5 }
 0x13e   : > { %441 = vst.msk [vmem:[%s1214_s20 + $0x14] sm:$0xf] %vm435_vm1, %v740_v8  ;;  %v515_v19 = vsel %vm452_vm2, %v495_v13, 0.0  ;;  %v517_v24 = vsel %vm452_vm2, %v496_v10, 0.0  ;;  %v466_v25 = vsel %vm452_vm2, %v770_v0, 0.0  ;;  %v750_v27 = vpack.c.bf16 %v1262_v9, %v1262_v9 }
 0x13f   : > { %v465_v21 = vadd.f32 %v464_v17, %v463_v15  ;;  %v516_v22 = vadd.f32 %v515_v19, %v514_v11  ;;  %450 = vst.msk [vmem:[%s1214_s20 + $0x38] sm:$0xf] %vm435_vm1, %v749_v20  ;;  %448 = vst.msk [vmem:[%s1214_s20 + $0x30] sm:$0xf] %vm435_vm1, %v747_v23  ;;  %v519_v30 = vsel %vm452_vm2, %v497_v18, 0.0  ;;  %v748_v34 = vpack.c.bf16 %v359_v14, %v359_v14 }
 0x140   : > { %451 = vst.msk [vmem:[%s1214_s20 + $0x3c] sm:$0xf] %vm435_vm1, %v750_v27  ;;  %v501_v43 = vmul.f32 %v1224_v40, %v1224_v40  ;;  %v523_v45 = vsel %vm452_vm2, %v499_v33, 0.0  ;;  %v502_v46 = vmul.f32 %v356_v5, %v356_v5  ;;  %v525_v49 = vsel %vm452_vm2, %v500_v37, 0.0 }
 0x141   : > { %v518_v28 = vadd.f32 %v517_v24, %v516_v22  ;;  %v467_v29 = vadd.f32 %v466_v25, %v465_v21  ;;  %449 = vst.msk [vmem:[%s1214_s20 + $0x34] sm:$0xf] %vm435_vm1, %v748_v34  ;;  %v474_v44 = vsel %vm452_vm2, %v1224_v40, 0.0  ;;  %v476_v50 = vsel %vm452_vm2, %v356_v5, 0.0 }
 0x142   : > { %v527_v53 = vsel %vm452_vm2, %v501_v43, 0.0  ;;  %v529_v31 = vsel %vm452_vm2, %v502_v46, 0.0  ;;  %v503_v54 = vmul.f32 %v359_v14, %v359_v14  ;;  %v504_v57 = vmul.f32 %v1255_v1, %v1255_v1 }
 0x143   : > { %v469_v35 = vadd.f32 %v468_v26, %v467_v29  ;;  %v520_v36 = vadd.f32 %v519_v30, %v518_v28  ;;  %v478_v58 = vsel %vm452_vm2, %v359_v14, 0.0  ;;  %v480_v60 = vsel %vm452_vm2, %v1255_v1, 0.0 }
 0x144   : > { %v505_v61 = vmul.f32 %v1262_v9, %v1262_v9  ;;  %v531_v62 = vsel %vm452_vm2, %v503_v54, 0.0  ;;  %v533_v2 = vsel %vm452_vm2, %v504_v57, 0.0  ;;  %v482_v3 = vsel %vm452_vm2, %v1262_v9, 0.0 }
 0x145   : > { %v522_v39 = vadd.f32 %v521_v32, %v520_v36  ;;  %v471_v41 = vadd.f32 %v470_v38, %v469_v35 }
 0x146   : > { %v535_v6 = vsel %vm452_vm2, %v505_v61, 0.0 }
 0x147   : > { %v473_v47 = vadd.f32 %v472_v42, %v471_v41  ;;  %v524_v48 = vadd.f32 %v523_v45, %v522_v39 }
 0x149   : > { %v526_v51 = vadd.f32 %v525_v49, %v524_v48  ;;  %v475_v52 = vadd.f32 %v474_v44, %v473_v47 }
 0x14b   : > { %v477_v55 = vadd.f32 %v476_v50, %v475_v52  ;;  %v528_v56 = vadd.f32 %v527_v53, %v526_v51 }
 0x14d   : > { %v530_v59 = vadd.f32 %v529_v31, %v528_v56  ;;  %v479_v40 = vadd.f32 %v478_v58, %v477_v55 }
 0x14f   : > { %v481_v63 = vadd.f32 %v480_v60, %v479_v40  ;;  %v532_v0 = vadd.f32 %v531_v62, %v530_v59 }
 0x151   : > { %v483_v4 = vadd.f32 %v482_v3, %v481_v63  ;;  %v534_v5 = vadd.f32 %v533_v2, %v532_v0 }
 0x153   : > { %v536_v7 = vadd.f32 %v535_v6, %v534_v5 }
 0x155   : > { %v537_v1 = vrot.slane %v536_v7, 4 }
 0x157   : > { %v538_v8 = vadd.f32 %v537_v1, %v536_v7 }
 0x158   : > { %921 = shalt.err (!%p918_p7)
}
 0x159   : > { %s922_s30 = scalar_lea.hbm %s1324_s5, 1024  ;;  %s926_s8 = scalar_lea.hbm %s1404_s2, 4096 }
 0x15a   : > { %p923_p9 = scmp.ne.s32.totalorder %s1324_s5, %s922_s30  ;;  %p927_p5 = scmp.lt.u32.totalorder %s1324_s5, %s1404_s2 }
 0x15b   : > { %p928_p10 = scmp.lt.u32.totalorder %s926_s8, %s922_s30  ;;  %p930_p1 = scmp.lt.u32.totalorder %s922_s30, %s1324_s5 }
 0x15c   : > { %p924_p11 = pnand %p923_p9, %p1125_p12 }
 0x15d   : > { %p929_p2 = por %p928_p10, %p927_p5 }
 0x15e   : > { %p925_p0 = pneg %p924_p11 }
 0x15f   : > { %p931_p4 = por %p930_p1, %p929_p2 }
 0x161   : > { %p932_p6 = pnand %p931_p4, %p925_p0 }
 0x163   : > { %935 = shalt.err (!%p932_p6)
}
 0x164   : > { %s1019_s20 = smov 64   ;;  %s1020_s4 = smov 4   ;;  %v539_v9 = vrot.slane %v538_v8, 2  ;;  %v484_v13 = vrot.slane %v483_v4, 4  ;;  %vm548_vm3 = vcmask 57344  }
 0x165   : > { %787 = dma.vmem_to_hbm [thread:$0]  (%p1125_p12), %s1327_s10, 1024, %s1324_s5, %s551_s11, %s1019_s20, %s1019_s20, %s1020_s4  }
 0x166   : > { %v540_v10 = vadd.f32 %v539_v9, %v538_v8  ;;  %v485_v14 = vadd.f32 %v484_v13, %v483_v4  ;;  %s731_s25 = sshll.u32 %s1063_s16, 4  ;;  %s213_s26 = scalar_lea.vmem [#allocation8], %s1173_s6 }
 0x167   : > { %s584_s27 = sshll.u32 %s213_s26, 4  ;;  %s1358_s10 = scalar_lea.hbm %s1405_s3, %s731_s25  ;;  %s1360_s27 = int_to_ptr.vmem [resolvable:$true] %s584_s27 }
 0x168   : > { %v541_v11 = vrot.slane %v540_v10, 1  ;;  %v486_v15 = vrot.slane %v485_v14, 2  ;;  %s556_s11 = scalar_lea.sflag [#allocation9], %s1173_s6  ;;  %s936_s16 = scalar_lea.vmem %s1360_s27, 16 }
 0x169   : > { %p937_p8 = scmp.ne.s32.totalorder %s1360_s27, %s936_s16  ;;  %s1021_s29 = smov [#allocation8]  }
 0x16a   : > { %v542_v12 = vadd.f32 %v541_v11, %v540_v10  ;;  %v487_v16 = vadd.f32 %v486_v15, %v485_v14  ;;  %s940_s23 = sshll.u32 %s1021_s29, 4  ;;  %s941_s23 = int_to_ptr.vmem [resolvable:$false] %s940_s23 }
 0x16b   : > { %p938_p13 = pnand %p937_p8, %p1125_p12  ;;  %s942_s30 = scalar_lea.vmem %s941_s23, 32 }
 0x16c   : > { %544 = vrot.lane.b32.xlu0 %v542_v12, %s1020_s4  ;;  %v488_v17 = vrot.slane %v487_v16, 1  ;;  %p943_p7 = scmp.lt.s32.totalorder %s1360_s27, %s941_s23  ;;  %p944_p9 = scmp.lt.s32.totalorder %s942_s30, %s936_s16 }
 0x16d   : > { %p939_p3 = pneg %p938_p13 }
 0x16e   : > { %v489_v18 = vadd.f32 %v488_v17, %v487_v16  ;;  %p945_p11 = por %p944_p9, %p943_p7 }
 0x170   : > { %p946_p0 = pnand %p945_p11, %p939_p3 }
 0x1de   : > { %v545_v19 = vpop.permute.xlu0 %544 }
 0x1df   : > { %v547_v20 = vsel %vm452_vm2, %v489_v18, %v545_v19 }
 0x1e0   : > { %549 = vst.msk [vmem:[%s213_s26] sm:$0x1] %vm548_vm3, %v547_v20 }
 0x1e1   : > { %949 = shalt.err (!%p946_p0)
}
 0x1e2   : > { %s950_s6 = scalar_lea.hbm %s1358_s10, 16  ;;  %s954_s8 = scalar_lea.hbm %s1405_s3, 64 }
 0x1e3   : > { %p951_p5 = scmp.ne.s32.totalorder %s1358_s10, %s950_s6  ;;  %p955_p1 = scmp.lt.u32.totalorder %s1358_s10, %s1405_s3 }
 0x1e4   : > { %p956_p4 = scmp.lt.u32.totalorder %s954_s8, %s950_s6  ;;  %p958_p8 = scmp.lt.u32.totalorder %s950_s6, %s1358_s10 }
 0x1e5   : > { %p952_p10 = pnand %p951_p5, %p1125_p12 }
 0x1e6   : > { %p957_p6 = por %p956_p4, %p955_p1 }
 0x1e7   : > { %p953_p2 = pneg %p952_p10 }
 0x1e8   : > { %p959_p13 = por %p958_p8, %p957_p6 }
 0x1ea   : > { %p960_p3 = pnand %p959_p13, %p953_p2 }
 0x1ec   : > { %963 = shalt.err (!%p960_p3)
}
 0x1ed   : > { %788 = dma.vmem_to_hbm [thread:$0]  (%p1125_p12), %s1360_s27, 16, %s1358_s10, %s556_s11  }
 0x1ee PF: > { %p809_p7 = scmp.ge.s32.totalorder %s1010_s15, 2  ;;  %s596_s20 = sand.u32 1, %s998_s12  }
 0x1ef   : > { %p1420_p9 = scmp.ne.s32.totalorder %s1410_s19, 0  ;;  %s597_s4 = scalar_lea.sflag [#allocation4], %s596_s20 }
 0x1f1   : > { %p800_p11 = pnand %p809_p7, %p1420_p9 }
 0x1f3   : > { %989 = dma.done.wait (!%p800_p11), %s597_s4, 1024  }
 0x1f4   : > { %991 = vsyncadd (!%p800_p11), %s597_s4, 4294966272  ;;  %s606_s25 = scalar_lea.sflag [#allocation9], %s596_s20 }
 0x1f5   : > { %993 = dma.done.wait (!%p800_p11), %s606_s25, 16  }
 0x1f6   : > { %995 = vsyncadd (!%p800_p11), %s606_s25, 4294967280  ;;  %p21_p12 = scmp.ge.s32.totalorder %s1095_s24, 6   ;;  %s1421_s12 = smov %s1002_s13 }
 0x1f7   : > { %s1422_s13 = smov %s1006_s14  ;;  %s1423_s14 = smov %s1121_s17 }
 0x1f8   : > { %s1424_s15 = smov %s1095_s24  ;;  %23 = sbr.rel (!%p21_p12) target bundleno = 8 (0x8), region = 94 }
 0x1ff   :  { %610 = vsyncpa [#allocation3], 1 }
 0x200   :  { %612 = vsyncpa [#allocation3 + $0x1], 1 }
 0x201   :  { %613 = vsyncpa [#allocation6], 1 }
 0x202   :  { %614 = vsyncpa [#allocation4], 1 }
 0x203   :  { %616 = vsyncpa [#allocation4 + $0x1], 1 }
 0x204   :  { %617 = vsyncpa [#allocation9], 1 }
 0x205   :  { %619 = vsyncpa [#allocation9 + $0x1], 1 }

// kernel: _lambda_.7
= control target key start
LH: loop header
LB: loop body
LE: loop exit
PB: predicated region body
PF: predicated region fallthrough
CT: control target
= control target key end

     0   :  { %s1316_s0 = inlined_call_operand.hbm [shape: bf16[512,16], index: 0, kind: input, shape index: {}]   ;;  %s1317_s1 = inlined_call_operand.hbm [shape: f32[512,16], index: 1, kind: input, shape index: {}]   ;;  %s1318_s2 = inlined_call_operand.hbm [shape: f32[1,16], index: 2, kind: input, shape index: {}]   ;;  %s1319_s3 = inlined_call_operand.hbm [shape: f32[1,16], index: 3, kind: input, shape index: {}]   ;;  %s1320_s4 = inlined_call_operand.hbm [shape: f32[512,16], index: 4, kind: output, shape index: {}]  }
   0x1   :  { %1326 = sst [smem:[#allocation16_spill]] %s1316_s0 }
   0x2   :  { %1327 = sst [smem:[#allocation17_spill]] %s1318_s2 }
   0x3   :  { %9 = vsyncpa [#allocation3], 0 }
   0x4   :  { %11 = vsyncpa [#allocation3 + $0x1], 0 }
   0x5   :  { %12 = vsyncpa [#allocation6], 0 }
   0x6   :  { %14 = vsyncpa [#allocation6 + $0x1], 0 }
   0x7   :  { %15 = vsyncpa [#allocation9], 0 }
   0x8   :  { %16 = vsyncpa [#allocation4], 0 }
   0x9   :  { %18 = vsyncpa [#allocation4 + $0x1], 0  ;;  %s932_s15 = smov 0   ;;  %s934_s16 = smov 0  }
   0xa   :  { %s936_s17 = smov 0   ;;  %s938_s18 = smov 0  }
   0xb LB: > { %s953_s19 = sadd.s32 4294967295, %s894_s18   ;;  %s556_s20 = sadd.s32 4294967294, %s894_s18   ;;  %s894_s18 = sphi %s938_s18, %s1349_s18   ;;  %s890_s17 = sphi %s936_s17, %s1348_s17   ;;  %s886_s16 = sphi %s934_s16, %s1347_s16   ;;  %s882_s15 = sphi %s932_s15, %s1346_s15  }
   0xc   : > { %s957_s21 = sadd.s32 1, %s894_s18   ;;  %s31_s22 = sadd.s32 1, %s890_s17 }
   0xd   : > { %s28_s23 = ssub.s32 %s894_s18, %s957_s21  ;;  %p38_p0 = scmp.ne.s32.totalorder %s890_s17, %s886_s16 }
   0xe   : > { %p29_p1 = scmp.eq.s32.totalorder %s28_s23, 0  ;;  %p39_p2 = scmp.eq.s32.totalorder %s894_s18, 0 }
   0xf   : > { %p44_p3 = scmp.ne.s32.totalorder %s886_s16, %s882_s15  ;;  %p1321_p4 = scmp.eq.s32.totalorder %s953_s19, 0 }
  0x10   : > { %s969_s24 = scalar_select %p29_p1, %s890_s17, %s31_s22  }
  0x11   : > { %p971_p5 = por %p39_p2, %p38_p0  ;;  %p977_p6 = por %p1321_p4, %p44_p3 }
  0x12   : > { %p136_p7 = scmp.eq.s32.totalorder %s953_s19, 3  ;;  %p142_p8 = scmp.eq.s32.totalorder %s556_s20, 3 }
  0x13   : > { %s1329_s26 = scalar_select %p977_p6, 1, 0 }
  0x14   : > { %p557_p9 = scmp.ge.s32.totalorder %s894_s18, 1  ;;  %p149_p10 = scmp.lt.s32.totalorder %s894_s18, 5 }
  0x15   : > { %p984_p11 = por %p136_p7, %p38_p0  ;;  %p988_p12 = por %p142_p8, %p44_p3 }
  0x16   : > { %p992_p13 = pnand %p557_p9, %p149_p10  ;;  %s896_s30 = smov [#allocation7]  }
  0x17   : > { %s1330_s27 = scalar_select %p984_p11, 1, 0 }
  0x18   : > { %s1331_s28 = scalar_select %p988_p12, 1, 0 }
  0x19   : > { %s1332_s29 = scalar_select %p992_p13, 1, 0 }
  0x1a   : > { %p636_p1 = pneg %p992_p13  ;;  %s162_s5 = sshll.u32 %s896_s30, 4  ;;  %s163_s5 = int_to_ptr.vmem [resolvable:$true] %s162_s5 }
  0x1b   : > { %p656_p2 = scmp.lt.s32.totalorder %s894_s18, 4  ;;  %s897_s8 = smov [#allocation8]  }
  0x1c   : > { %p1001_p0 = pnand %p636_p1, %p1321_p4  ;;  %s173_s9 = sshll.u32 %s897_s8, 4  ;;  %s1011_s9 = int_to_ptr.vmem [resolvable:$true] %s173_s9 }
  0x1d   : > { %p1007_p3 = pnand %p656_p2, %p971_p5  ;;  %s1335_s2 = sld [smem:[#allocation17_spill]] }
  0x1e   : > { %p702_p8 = pneg %p1001_p0 }
  0x1f   : > { %s1334_s7 = scalar_select %p1007_p3, 1, 0 }
  0x23   : > { %s700_s12 = scalar_lea.hbm %s1335_s2, 16 }
  0x24   : > { %p701_p7 = scmp.ne.s32.totalorder %s1335_s2, %s700_s12  ;;  %p707_p10 = scmp.lt.u32.totalorder %s700_s12, %s1335_s2 }
  0x26   : > { %p703_p5 = pnand %p702_p8, %p701_p7 }
  0x28   : > { %p704_p9 = pneg %p703_p5 }
  0x2a   : > { %p709_p1 = pnand %p707_p10, %p704_p9 }
  0x2c   : > { %712 = shalt.err (!%p709_p1)
}
  0x2d   : > { %s713_s23 = scalar_lea.vmem %s163_s5, 16  ;;  %s720_s25 = scalar_lea.vmem %s163_s5, 32 }
  0x2e   : > { %p714_p2 = scmp.ne.s32.totalorder %s163_s5, %s713_s23  ;;  %p721_p11 = scmp.lt.s32.totalorder %s163_s5, %s163_s5 }
  0x2f   : > { %p722_p6 = scmp.lt.s32.totalorder %s720_s25, %s713_s23 }
  0x30   : > { %p716_p4 = pnand %p714_p2, %p702_p8 }
  0x31   : > { %p723_p13 = por %p722_p6, %p721_p11 }
  0x32   : > { %p717_p12 = pneg %p716_p4 }
  0x34   : > { %p724_p3 = pnand %p723_p13, %p717_p12 }
  0x36   : > { %727 = shalt.err (!%p724_p3)
}
  0x37   : > { %639 = dma.hbm_to_vmem [thread:$0]  (!%p1001_p0), %s1335_s2, 16, %s163_s5, [#allocation6]  }
  0x38   : > { %s1036_s10 = sand.u32 1, %s890_s17   ;;  %s728_s13 = scalar_lea.hbm %s1319_s3, 16 }
  0x39   : > { %p729_p4 = scmp.ne.s32.totalorder %s1319_s3, %s728_s13  ;;  %p735_p12 = scmp.lt.u32.totalorder %s728_s13, %s1319_s3 }
  0x3b   : > { %p731_p6 = pnand %p729_p4, %p702_p8 }
  0x3d   : > { %p732_p11 = pneg %p731_p6 }
  0x3f   : > { %p737_p13 = pnand %p735_p12, %p732_p11 }
  0x41   : > { %740 = shalt.err (!%p737_p13)
}
  0x42   : > { %s741_s5 = scalar_lea.vmem %s1011_s9, 16  ;;  %s748_s25 = scalar_lea.vmem %s1011_s9, 32 }
  0x43   : > { %p742_p3 = scmp.ne.s32.totalorder %s1011_s9, %s741_s5  ;;  %p749_p9 = scmp.lt.s32.totalorder %s1011_s9, %s1011_s9 }
  0x44   : > { %p750_p10 = scmp.lt.s32.totalorder %s748_s25, %s741_s5 }
  0x45   : > { %p744_p7 = pnand %p742_p3, %p702_p8 }
  0x46   : > { %p751_p1 = por %p750_p10, %p749_p9 }
  0x47   : > { %p745_p5 = pneg %p744_p7 }
  0x49   : > { %p752_p2 = pnand %p751_p1, %p745_p5 }
  0x4b   : > { %755 = shalt.err (!%p752_p2)
}
  0x4c   : > { %642 = dma.hbm_to_vmem [thread:$0]  (!%p1001_p0), %s1319_s3, 16, %s1011_s9, [#allocation9]  }
  0x4d   : > { %s561_s11 = sshll.u32 %s1036_s10, 6  ;;  %s580_s12 = sshll.u32 %s894_s18, 10 }
  0x4e   : > { %s1336_s0 = sld [smem:[#allocation16_spill]]  ;;  %s188_s6 = scalar_lea.vmem [#allocation2], %s561_s11 }
  0x4f   : > { %s195_s22 = sshll.u32 %s188_s6, 4  ;;  %s205_s23 = sand.u32 1, %s894_s18   ;;  %s1071_s22 = int_to_ptr.vmem [resolvable:$true] %s195_s22 }
  0x50   : > { %s185_s5 = scalar_lea.sflag [#allocation3], %s1036_s10  ;;  %p1337_p0 = scmp.ne.s32.totalorder %s1334_s7, 0 }
  0x52   : > { %p758_p4 = pneg %p1337_p0 }
  0x54   : > { %s1069_s20 = scalar_lea.hbm %s1336_s0, %s580_s12  ;;  %s761_s8 = scalar_lea.hbm %s1336_s0, 4096 }
  0x55   : > { %s756_s25 = scalar_lea.hbm %s1069_s20, 1024  ;;  %p762_p12 = scmp.lt.u32.totalorder %s1069_s20, %s1336_s0 }
  0x56   : > { %p757_p8 = scmp.ne.s32.totalorder %s1069_s20, %s756_s25  ;;  %p763_p13 = scmp.lt.u32.totalorder %s761_s8, %s756_s25 }
  0x57   : > { %p765_p7 = scmp.lt.u32.totalorder %s756_s25, %s1069_s20 }
  0x58   : > { %p759_p6 = pnand %p758_p4, %p757_p8  ;;  %p764_p3 = por %p763_p13, %p762_p12 }
  0x5a   : > { %p760_p11 = pneg %p759_p6  ;;  %p766_p5 = por %p765_p7, %p764_p3 }
  0x5c   : > { %p767_p9 = pnand %p766_p5, %p760_p11 }
  0x5e   : > { %770 = shalt.err (!%p767_p9)
}
  0x5f   : > { %s771_s11 = scalar_lea.vmem %s1071_s22, 1024  ;;  %s898_s14 = smov [#allocation2]  }
  0x60   : > { %p772_p10 = scmp.ne.s32.totalorder %s1071_s22, %s771_s11  ;;  %s776_s6 = sshll.u32 %s898_s14, 4  ;;  %s777_s6 = int_to_ptr.vmem [resolvable:$false] %s776_s6 }
  0x61   : > { %s778_s9 = scalar_lea.vmem %s777_s6, 2048  ;;  %p779_p8 = scmp.lt.s32.totalorder %s1071_s22, %s777_s6 }
  0x62   : > { %p774_p1 = pnand %p772_p10, %p758_p4  ;;  %p780_p6 = scmp.lt.s32.totalorder %s778_s9, %s771_s11 }
  0x64   : > { %p775_p2 = pneg %p774_p1  ;;  %p781_p12 = por %p780_p6, %p779_p8 }
  0x66   : > { %p782_p13 = pnand %p781_p12, %p775_p2 }
  0x68   : > { %785 = shalt.err (!%p782_p13)
}
  0x69   : > { %s899_s25 = smov 64   ;;  %s900_s30 = smov 4  }
  0x6a   : > { %646 = dma.hbm_to_vmem [thread:$0]  (!%p1337_p0), %s1069_s20, 1024, %s1071_s22, %s185_s5, %s899_s25, %s899_s25, %s900_s30  }
  0x6b   : > { %s564_s8 = sshll.u32 %s1036_s10, 7  ;;  %s581_s12 = sshll.u32 %s894_s18, 11 }
  0x6c   : > { %s1107_s14 = scalar_lea.hbm %s1317_s1, %s581_s12  ;;  %s209_s6 = scalar_lea.vmem [#allocation5], %s564_s8 }
  0x6d   : > { %s216_s9 = sshll.u32 %s209_s6, 4  ;;  %s1113_s0 = scalar_lea.sflag [#allocation6], %s205_s23  ;;  %s1109_s9 = int_to_ptr.vmem [resolvable:$true] %s216_s9 }
  0x6e   : > { %s786_s2 = scalar_lea.hbm %s1107_s14, 2048  ;;  %s791_s22 = scalar_lea.hbm %s1317_s1, 8192 }
  0x6f   : > { %p787_p11 = scmp.ne.s32.totalorder %s1107_s14, %s786_s2  ;;  %p792_p5 = scmp.lt.u32.totalorder %s1107_s14, %s1317_s1 }
  0x70   : > { %p793_p9 = scmp.lt.u32.totalorder %s791_s22, %s786_s2  ;;  %p795_p1 = scmp.lt.u32.totalorder %s786_s2, %s1107_s14 }
  0x71   : > { %p789_p3 = pnand %p787_p11, %p758_p4 }
  0x72   : > { %p794_p10 = por %p793_p9, %p792_p5 }
  0x73   : > { %p790_p7 = pneg %p789_p3 }
  0x74   : > { %p796_p2 = por %p795_p1, %p794_p10 }
  0x76   : > { %p797_p8 = pnand %p796_p2, %p790_p7 }
  0x78   : > { %800 = shalt.err (!%p797_p8)
}
  0x79   : > { %s801_s23 = scalar_lea.vmem %s1109_s9, 2048  ;;  %s901_s30 = smov [#allocation5]  }
  0x7a   : > { %p802_p6 = scmp.ne.s32.totalorder %s1109_s9, %s801_s23  ;;  %s806_s8 = sshll.u32 %s901_s30, 4  ;;  %s807_s8 = int_to_ptr.vmem [resolvable:$false] %s806_s8 }
  0x7b   : > { %s808_s12 = scalar_lea.vmem %s807_s8, 4096  ;;  %p809_p11 = scmp.lt.s32.totalorder %s1109_s9, %s807_s8 }
  0x7c   : > { %p804_p12 = pnand %p802_p6, %p758_p4  ;;  %p810_p3 = scmp.lt.s32.totalorder %s808_s12, %s801_s23 }
  0x7e   : > { %p805_p13 = pneg %p804_p12  ;;  %p811_p5 = por %p810_p3, %p809_p11 }
  0x80   : > { %p812_p9 = pnand %p811_p5, %p805_p13 }
  0x82   : > { %815 = shalt.err (!%p812_p9)
}
  0x83   : > { %s902_s2 = smov 128   ;;  %s903_s13 = smov 8  }
  0x84   : > { %649 = dma.hbm_to_vmem [thread:$0]  (!%p1337_p0), %s1107_s14, 2048, %s1109_s9, %s1113_s0, %s902_s2, %s902_s2, %s903_s13  }
  0x85   : > { %p1338_p4 = scmp.ne.s32.totalorder %s1332_s29, 0 }
  0x86   : > { %s1142_s11 = sand.u32 (!%p1338_p4), 1, %s886_s16   ;;  %p1339_p7 = scmp.ne.s32.totalorder (!%p1338_p4), %s1329_s26, 0 }
  0x87   : > { %228 = sbr.rel (%p1338_p4) target bundleno = 191 (0xbf), region = 36  ;;  %s568_s6 = sshll.u32 (!%p1338_p4), %s1142_s11, 6 }
  0x88   : > { %s231_s10 = scalar_lea.sflag (!%p1338_p4), [#allocation3], %s1142_s11  ;;  %s1146_s20 = scalar_lea.vmem (!%p1338_p4), [#allocation2], %s568_s6 }
  0x8e   : > { %861 = dma.done.wait (%p1339_p7), %s231_s10, 1024  }
  0x8f   : > { %863 = vsyncadd (%p1339_p7), %s231_s10, 4294966272  ;;  %s239_s0 = sand.u32 1, %s953_s19   ;;  %s569_s29 = sshll.u32 %s1142_s11, 7 }
  0x90   : > { %s240_s7 = scalar_lea.sflag [#allocation6], %s239_s0  ;;  %s1156_s14 = scalar_lea.vmem [#allocation5], %s569_s29 }
  0x91   : > { %865 = dma.done.wait (%p1339_p7), %s240_s7, 2048  }
  0x92   : > { %867 = vsyncadd (%p1339_p7), %s240_s7, 4294965248  ;;  %p1340_p0 = scmp.eq.s32.totalorder %s953_s19, 0 }
  0x94   : > { %869 = dma.done.wait (%p1340_p0), [#allocation6], 16   ;;  %p1341_p10 = pmov %p1340_p0 }
  0x95   : > { %p1342_p1 = pmov %p1340_p0 }
  0x96   : > { %871 = vsyncadd (%p1341_p10), [#allocation6], 4294967280 }
  0x97   : > { %873 = dma.done.wait (%p1342_p1), [#allocation9], 16   ;;  %p1343_p2 = pmov %p1340_p0 }
  0x98   : > { %v584_v0 = vld [vmem:[%s1146_s20] sm:$0xff]   ;;  %v615_v4 = vld [vmem:[%s1146_s20 + $0x8] sm:$0xff]   ;;  %vm410_vm0 = vcmask 130048   ;;  %v616_v8 = vld [vmem:[%s1146_s20 + $0x10] sm:$0xff]   ;;  %s1207_s26 = scalar_lea.vmem [#allocation10], %s569_s29  ;;  %s582_s9 = sshll.u32 %s953_s19, 11 }
  0x99   : > { %875 = vsyncadd (%p1343_p2), [#allocation9], 4294967280  ;;  %v1171_v1 = vld [vmem:[#allocation7] ss:$0 sm:$0xff]  ;;  %v585_v2 = vunpack.c.l.bf16 %v584_v0  ;;  %v586_v3 = vunpack.c.h.bf16 %v584_v0  ;;  %v1174_v5 = vld [vmem:[#allocation8] ss:$0 sm:$0xff]  ;;  %v589_v6 = vunpack.c.l.bf16 %v615_v4  ;;  %v590_v7 = vunpack.c.h.bf16 %v615_v4  ;;  %s1259_s25 = scalar_lea.hbm %s1320_s4, %s582_s9 }
  0x9a   : > { %v593_v11 = vunpack.c.l.bf16 %v616_v8  ;;  %v594_v12 = vunpack.c.h.bf16 %v616_v8  ;;  %v617_v13 = vld [vmem:[%s1146_s20 + $0x18] sm:$0xff]   ;;  %v362_v14 = vld [vmem:[%s1156_s14] sm:$0xff]  ;;  %v363_v15 = vld [vmem:[%s1156_s14 + $0x8] sm:$0xff]  ;;  %s441_s22 = sshll.u32 %s1207_s26, 4  ;;  %s428_s23 = scalar_lea.sflag [#allocation4], %s1142_s11  ;;  %s1261_s22 = int_to_ptr.vmem [resolvable:$true] %s441_s22 }
  0x9b   : > { %v323_v9 = vmul.f32 %v585_v2, %v1171_v1  ;;  %v324_v10 = vmul.f32 %v586_v3, %v1171_v1  ;;  %v325_v16 = vmul.f32 %v589_v6, %v1171_v1  ;;  %v326_v17 = vmul.f32 %v590_v7, %v1171_v1  ;;  %v364_v22 = vld [vmem:[%s1156_s14 + $0x10] sm:$0xff]  ;;  %v365_v23 = vld [vmem:[%s1156_s14 + $0x18] sm:$0xff]  ;;  %v366_v28 = vld [vmem:[%s1156_s14 + $0x20] sm:$0xff]  ;;  %s816_s30 = scalar_lea.vmem %s1261_s22, 2048  ;;  %p1344_p6 = scmp.ne.s32.totalorder %s1330_s27, 0 }
  0x9c   : > { %v597_v18 = vunpack.c.l.bf16 %v617_v13  ;;  %v598_v19 = vunpack.c.h.bf16 %v617_v13  ;;  %v327_v24 = vmul.f32 %v593_v11, %v1171_v1  ;;  %v328_v25 = vmul.f32 %v594_v12, %v1171_v1  ;;  %v367_v29 = vld [vmem:[%s1156_s14 + $0x28] sm:$0xff]  ;;  %v368_v36 = vld [vmem:[%s1156_s14 + $0x30] sm:$0xff]  ;;  %v369_v37 = vld [vmem:[%s1156_s14 + $0x38] sm:$0xff]  ;;  %p817_p8 = scmp.ne.s32.totalorder %s1261_s22, %s816_s30  ;;  %s904_s8 = smov [#allocation10]  }
  0x9d   : > { %v346_v20 = vadd.f32 %v1174_v5, %v323_v9  ;;  %v347_v21 = vadd.f32 %v1174_v5, %v324_v10  ;;  %v348_v26 = vadd.f32 %v1174_v5, %v325_v16  ;;  %v349_v27 = vadd.f32 %v1174_v5, %v326_v17  ;;  %v618_v42 = vld [vmem:[%s1146_s20 + $0x20] sm:$0xff]   ;;  %v619_v47 = vld [vmem:[%s1146_s20 + $0x28] sm:$0xff]   ;;  %v620_v52 = vld [vmem:[%s1146_s20 + $0x30] sm:$0xff]   ;;  %s820_s12 = sshll.u32 %s904_s8, 4  ;;  %s821_s12 = int_to_ptr.vmem [resolvable:$false] %s820_s12 }
  0x9e   : > { %v329_v30 = vmul.f32 %v597_v18, %v1171_v1  ;;  %v330_v31 = vmul.f32 %v598_v19, %v1171_v1  ;;  %v350_v34 = vadd.f32 %v1174_v5, %v327_v24  ;;  %v351_v35 = vadd.f32 %v1174_v5, %v328_v25  ;;  %v621_v57 = vld [vmem:[%s1146_s20 + $0x38] sm:$0xff]   ;;  %v370_v3 = vld [vmem:[%s1156_s14 + $0x40] sm:$0xff]  ;;  %v371_v4 = vld [vmem:[%s1156_s14 + $0x48] sm:$0xff]  ;;  %p818_p12 = pnand %p817_p8, %p1344_p6  ;;  %s822_s2 = scalar_lea.vmem %s821_s12, 4096 }
  0x9f   : > { %v378_v32 = vadd.f32 %v362_v14, %v346_v20  ;;  %v379_v33 = vadd.f32 %v363_v15, %v347_v21  ;;  %v380_v38 = vadd.f32 %v364_v22, %v348_v26  ;;  %v381_v39 = vadd.f32 %v365_v23, %v349_v27  ;;  %v372_v12 = vld [vmem:[%s1156_s14 + $0x50] sm:$0xff]  ;;  %v373_v13 = vld [vmem:[%s1156_s14 + $0x58] sm:$0xff]  ;;  %v374_v18 = vld [vmem:[%s1156_s14 + $0x60] sm:$0xff]  ;;  %p823_p11 = scmp.lt.s32.totalorder %s1261_s22, %s821_s12  ;;  %p824_p3 = scmp.lt.s32.totalorder %s822_s2, %s816_s30 }
  0xa0   : > { %v352_v40 = vadd.f32 %v1174_v5, %v329_v30  ;;  %v353_v41 = vadd.f32 %v1174_v5, %v330_v31  ;;  %v382_v45 = vadd.f32 %v366_v28, %v350_v34  ;;  %v383_v46 = vadd.f32 %v367_v29, %v351_v35  ;;  %v375_v19 = vld [vmem:[%s1156_s14 + $0x68] sm:$0xff]  ;;  %v376_v26 = vld [vmem:[%s1156_s14 + $0x70] sm:$0xff]  ;;  %v377_v27 = vld [vmem:[%s1156_s14 + $0x78] sm:$0xff]  ;;  %p819_p13 = pneg %p818_p12 }
  0xa1   : > { %v394_v43 = vmax.f32 %v378_v32, 0.0  ;;  %v395_v44 = vmax.f32 %v379_v33, 0.0  ;;  %v396_v48 = vmax.f32 %v380_v38, 0.0  ;;  %v397_v49 = vmax.f32 %v381_v39, 0.0  ;;  %p825_p5 = por %p824_p3, %p823_p11 }
  0xa2   : > { %v384_v50 = vadd.f32 %v368_v36, %v352_v40  ;;  %v385_v51 = vadd.f32 %v369_v37, %v353_v41  ;;  %v398_v53 = vmax.f32 %v382_v45, 0.0  ;;  %v399_v54 = vmax.f32 %v383_v46, 0.0 }
  0xa3   : > { %411 = vst.msk [vmem:[%s1207_s26] sm:$0xff] %vm410_vm0, %v394_v43  ;;  %412 = vst.msk [vmem:[%s1207_s26 + $0x8] sm:$0xff] %vm410_vm0, %v395_v44  ;;  %v601_v55 = vunpack.c.l.bf16 %v618_v42  ;;  %v602_v56 = vunpack.c.h.bf16 %v618_v42  ;;  %v605_v60 = vunpack.c.l.bf16 %v619_v47  ;;  %v606_v61 = vunpack.c.h.bf16 %v619_v47  ;;  %p826_p9 = pnand %p825_p5, %p819_p13 }
  0xa4   : > { %413 = vst.msk [vmem:[%s1207_s26 + $0x10] sm:$0xff] %vm410_vm0, %v396_v48  ;;  %414 = vst.msk [vmem:[%s1207_s26 + $0x18] sm:$0xff] %vm410_vm0, %v397_v49  ;;  %v400_v58 = vmax.f32 %v384_v50, 0.0  ;;  %v401_v59 = vmax.f32 %v385_v51, 0.0  ;;  %v609_v0 = vunpack.c.l.bf16 %v620_v52  ;;  %v610_v2 = vunpack.c.h.bf16 %v620_v52 }
  0xa5   : > { %415 = vst.msk [vmem:[%s1207_s26 + $0x20] sm:$0xff] %vm410_vm0, %v398_v53  ;;  %416 = vst.msk [vmem:[%s1207_s26 + $0x28] sm:$0xff] %vm410_vm0, %v399_v54  ;;  %v331_v62 = vmul.f32 %v601_v55, %v1171_v1  ;;  %v332_v63 = vmul.f32 %v602_v56, %v1171_v1  ;;  %v333_v6 = vmul.f32 %v605_v60, %v1171_v1  ;;  %v613_v8 = vunpack.c.l.bf16 %v621_v57 }
  0xa6   : > { %417 = vst.msk [vmem:[%s1207_s26 + $0x30] sm:$0xff] %vm410_vm0, %v400_v58  ;;  %418 = vst.msk [vmem:[%s1207_s26 + $0x38] sm:$0xff] %vm410_vm0, %v401_v59  ;;  %v334_v7 = vmul.f32 %v606_v61, %v1171_v1  ;;  %v614_v9 = vunpack.c.h.bf16 %v621_v57  ;;  %v335_v14 = vmul.f32 %v609_v0, %v1171_v1  ;;  %v336_v15 = vmul.f32 %v610_v2, %v1171_v1 }
  0xa7   : > { %v354_v10 = vadd.f32 %v1174_v5, %v331_v62  ;;  %v355_v11 = vadd.f32 %v1174_v5, %v332_v63  ;;  %v356_v16 = vadd.f32 %v1174_v5, %v333_v6  ;;  %v337_v20 = vmul.f32 %v613_v8, %v1171_v1 }
  0xa8   : > { %v357_v17 = vadd.f32 %v1174_v5, %v334_v7  ;;  %v338_v21 = vmul.f32 %v614_v9, %v1171_v1  ;;  %v358_v24 = vadd.f32 %v1174_v5, %v335_v14  ;;  %v359_v25 = vadd.f32 %v1174_v5, %v336_v15 }
  0xa9   : > { %v386_v22 = vadd.f32 %v370_v3, %v354_v10  ;;  %v387_v23 = vadd.f32 %v371_v4, %v355_v11  ;;  %v388_v28 = vadd.f32 %v372_v12, %v356_v16  ;;  %v360_v30 = vadd.f32 %v1174_v5, %v337_v20 }
  0xaa   : > { %v389_v29 = vadd.f32 %v373_v13, %v357_v17  ;;  %v361_v31 = vadd.f32 %v1174_v5, %v338_v21  ;;  %v390_v33 = vadd.f32 %v374_v18, %v358_v24  ;;  %v391_v34 = vadd.f32 %v375_v19, %v359_v25 }
  0xab   : > { %v402_v1 = vmax.f32 %v386_v22, 0.0  ;;  %v403_v32 = vmax.f32 %v387_v23, 0.0  ;;  %v404_v35 = vmax.f32 %v388_v28, 0.0  ;;  %v392_v37 = vadd.f32 %v376_v26, %v360_v30 }
  0xac   : > { %v405_v36 = vmax.f32 %v389_v29, 0.0  ;;  %v393_v38 = vadd.f32 %v377_v27, %v361_v31  ;;  %v406_v5 = vmax.f32 %v390_v33, 0.0  ;;  %v407_v39 = vmax.f32 %v391_v34, 0.0 }
  0xad   : > { %419 = vst.msk [vmem:[%s1207_s26 + $0x40] sm:$0xff] %vm410_vm0, %v402_v1  ;;  %420 = vst.msk [vmem:[%s1207_s26 + $0x48] sm:$0xff] %vm410_vm0, %v403_v32  ;;  %v408_v40 = vmax.f32 %v392_v37, 0.0 }
  0xae   : > { %421 = vst.msk [vmem:[%s1207_s26 + $0x50] sm:$0xff] %vm410_vm0, %v404_v35  ;;  %422 = vst.msk [vmem:[%s1207_s26 + $0x58] sm:$0xff] %vm410_vm0, %v405_v36  ;;  %v409_v41 = vmax.f32 %v393_v38, 0.0 }
  0xaf   : > { %423 = vst.msk [vmem:[%s1207_s26 + $0x60] sm:$0xff] %vm410_vm0, %v406_v5  ;;  %424 = vst.msk [vmem:[%s1207_s26 + $0x68] sm:$0xff] %vm410_vm0, %v407_v39 }
  0xb0   : > { %425 = vst.msk [vmem:[%s1207_s26 + $0x70] sm:$0xff] %vm410_vm0, %v408_v40  ;;  %426 = vst.msk [vmem:[%s1207_s26 + $0x78] sm:$0xff] %vm410_vm0, %v409_v41 }
  0xb1   : > { %829 = shalt.err (!%p826_p9)
}
  0xb2   : > { %s830_s13 = scalar_lea.hbm %s1259_s25, 2048  ;;  %s834_s20 = scalar_lea.hbm %s1320_s4, 8192 }
  0xb3   : > { %p831_p4 = scmp.ne.s32.totalorder %s1259_s25, %s830_s13  ;;  %p835_p10 = scmp.lt.u32.totalorder %s1259_s25, %s1320_s4 }
  0xb4   : > { %p836_p1 = scmp.lt.u32.totalorder %s834_s20, %s830_s13  ;;  %p838_p8 = scmp.lt.u32.totalorder %s830_s13, %s1259_s25 }
  0xb5   : > { %p832_p7 = pnand %p831_p4, %p1344_p6 }
  0xb6   : > { %p837_p2 = por %p836_p1, %p835_p10 }
  0xb7   : > { %p833_p0 = pneg %p832_p7 }
  0xb8   : > { %p839_p12 = por %p838_p8, %p837_p2 }
  0xba   : > { %p840_p13 = pnand %p839_p12, %p833_p0 }
  0xbc   : > { %843 = shalt.err (!%p840_p13)
}
  0xbd   : > { %s905_s7 = smov 128   ;;  %s906_s14 = smov 8  }
  0xbe   : > { %634 = dma.vmem_to_hbm [thread:$0]  (%p1344_p6), %s1261_s22, 2048, %s1259_s25, %s428_s23, %s905_s7, %s905_s7, %s906_s14  }
  0xbf PF: > { %p659_p11 = scmp.ge.s32.totalorder %s894_s18, 2  ;;  %s456_s26 = sand.u32 1, %s882_s15  }
  0xc0   : > { %p1345_p3 = scmp.ne.s32.totalorder %s1331_s28, 0  ;;  %s457_s9 = scalar_lea.sflag [#allocation4], %s456_s26 }
  0xc2   : > { %p651_p5 = pnand %p659_p11, %p1345_p3 }
  0xc4   : > { %877 = dma.done.wait (!%p651_p5), %s457_s9, 2048  }
  0xc5   : > { %879 = vsyncadd (!%p651_p5), %s457_s9, 4294965248  ;;  %p21_p9 = scmp.ge.s32.totalorder %s957_s21, 6   ;;  %s1346_s15 = smov %s886_s16 }
  0xc6   : > { %s1347_s16 = smov %s890_s17  ;;  %s1348_s17 = smov %s969_s24 }
  0xc7   : > { %s1349_s18 = smov %s957_s21  ;;  %23 = sbr.rel (!%p21_p9) target bundleno = 11 (0xb), region = 102 }
  0xce   :  { %462 = vsyncpa [#allocation3], 1 }
  0xcf   :  { %464 = vsyncpa [#allocation3 + $0x1], 1 }
  0xd0   :  { %465 = vsyncpa [#allocation6], 1 }
  0xd1   :  { %467 = vsyncpa [#allocation6 + $0x1], 1 }
  0xd2   :  { %468 = vsyncpa [#allocation9], 1 }
  0xd3   :  { %469 = vsyncpa [#allocation4], 1 }
  0xd4   :  { %471 = vsyncpa [#allocation4 + $0x1], 1 }

// kernel: _lambda_.6
= control target key start
LH: loop header
LB: loop body
LE: loop exit
PB: predicated region body
PF: predicated region fallthrough
CT: control target
= control target key end

     0   :  { %11 = vsyncpa [#allocation3], 0  ;;  %s1760_s0 = inlined_call_operand.hbm [shape: bf16[512,4], index: 0, kind: input, shape index: {}]   ;;  %s1761_s1 = inlined_call_operand.hbm [shape: f32[1,4], index: 1, kind: input, shape index: {}]   ;;  %s1762_s2 = inlined_call_operand.hbm [shape: f32[1,4], index: 2, kind: input, shape index: {}]   ;;  %s1763_s3 = inlined_call_operand.hbm [shape: bf16[4,16], index: 3, kind: input, shape index: {}]   ;;  %s1764_s4 = inlined_call_operand.hbm [shape: bf16[512,16], index: 4, kind: output, shape index: {0}]   ;;  %s1765_s5 = inlined_call_operand.hbm [shape: f32[4,1,32], index: 5, kind: output, shape index: {1}]  }
   0x1   :  { %13 = vsyncpa [#allocation3 + $0x1], 0 }
   0x2   :  { %14 = vsyncpa [#allocation6], 0 }
   0x3   :  { %15 = vsyncpa [#allocation9], 0 }
   0x4   :  { %16 = vsyncpa [#allocation4], 0 }
   0x5   :  { %18 = vsyncpa [#allocation4 + $0x1], 0 }
   0x6   :  { %19 = vsyncpa [#allocation12], 0 }
   0x7   :  { %21 = vsyncpa [#allocation12 + $0x1], 0  ;;  %s1348_s18 = smov 0   ;;  %s1350_s19 = smov 0  }
   0x8   :  { %s1352_s20 = smov 0   ;;  %s1354_s21 = smov 0  }
   0x9 LB: > { %s1369_s22 = sadd.s32 4294967295, %s1305_s21   ;;  %s863_s23 = sadd.s32 4294967294, %s1305_s21   ;;  %s1305_s21 = sphi %s1354_s21, %s1787_s21   ;;  %s1301_s20 = sphi %s1352_s20, %s1786_s20   ;;  %s1297_s19 = sphi %s1350_s19, %s1785_s19   ;;  %s1293_s18 = sphi %s1348_s18, %s1784_s18  }
   0xa   : > { %p47_p0 = scmp.ne.s32.totalorder %s1297_s19, %s1293_s18  ;;  %p1766_p1 = scmp.eq.s32.totalorder %s1369_s22, 0 }
   0xb   : > { %p140_p3 = scmp.eq.s32.totalorder %s863_s23, 3  ;;  %p864_p5 = scmp.ge.s32.totalorder %s1305_s21, 1 }
   0xc   : > { %p1378_p4 = por %p1766_p1, %p47_p0  ;;  %p173_p7 = scmp.lt.s32.totalorder %s1305_s21, 5 }
   0xd   : > { %p1383_p6 = por %p140_p3, %p47_p0  ;;  %s1307_s27 = smov [#allocation5]  }
   0xe   : > { %s1769_s24 = scalar_select %p1378_p4, 1, 0 }
   0xf   : > { %s1770_s25 = scalar_select %p1383_p6, 1, 0 }
  0x10   : > { %p1388_p8 = pnand %p864_p5, %p173_p7  ;;  %s186_s28 = sshll.u32 %s1307_s27, 4  ;;  %s187_s28 = int_to_ptr.vmem [resolvable:$true] %s186_s28 }
  0x11   : > { %s1308_s29 = smov [#allocation7]   ;;  %s1309_s7 = smov [#allocation8]  }
  0x12   : > { %s1771_s26 = scalar_select %p1388_p8, 1, 0 }
  0x13   : > { %p1016_p9 = pneg %p1388_p8  ;;  %s197_s30 = sshll.u32 %s1308_s29, 4  ;;  %s1400_s30 = int_to_ptr.vmem [resolvable:$true] %s197_s30 }
  0x14   : > { %s208_s8 = sshll.u32 %s1309_s7, 4  ;;  %s1085_s11 = scalar_lea.hbm %s1761_s1, 16  ;;  %s1402_s8 = int_to_ptr.vmem [resolvable:$true] %s208_s8 }
  0x15   : > { %p1396_p10 = pnand %p1016_p9, %p1766_p1  ;;  %p1086_p11 = scmp.ne.s32.totalorder %s1761_s1, %s1085_s11 }
  0x16   : > { %p1092_p3 = scmp.lt.u32.totalorder %s1085_s11, %s1761_s1 }
  0x17   : > { %p1412_p12 = pneg %p1396_p10 }
  0x19   : > { %p1088_p13 = pnand %p1412_p12, %p1086_p11 }
  0x1b   : > { %p1089_p0 = pneg %p1088_p13 }
  0x1d   : > { %p1094_p5 = pnand %p1092_p3, %p1089_p0 }
  0x1f   : > { %1097 = shalt.err (!%p1094_p5)
}
  0x20   : > { %s1098_s17 = scalar_lea.vmem %s187_s28, 16  ;;  %s1105_s23 = scalar_lea.vmem %s187_s28, 32 }
  0x21   : > { %p1099_p7 = scmp.ne.s32.totalorder %s187_s28, %s1098_s17  ;;  %p1106_p2 = scmp.lt.s32.totalorder %s187_s28, %s187_s28 }
  0x22   : > { %p1107_p6 = scmp.lt.s32.totalorder %s1105_s23, %s1098_s17 }
  0x23   : > { %p1101_p9 = pnand %p1099_p7, %p1412_p12 }
  0x24   : > { %p1108_p4 = por %p1107_p6, %p1106_p2 }
  0x25   : > { %p1102_p1 = pneg %p1101_p9 }
  0x27   : > { %p1109_p8 = pnand %p1108_p4, %p1102_p1 }
  0x29   : > { %1112 = shalt.err (!%p1109_p8)
}
  0x2a   : > { %1019 = dma.hbm_to_vmem [thread:$0]  (!%p1396_p10), %s1761_s1, 16, %s187_s28, [#allocation6]  }
  0x2b   : > { %s1113_s10 = scalar_lea.hbm %s1762_s2, 16 }
  0x2c   : > { %p1114_p11 = scmp.ne.s32.totalorder %s1762_s2, %s1113_s10  ;;  %p1120_p1 = scmp.lt.u32.totalorder %s1113_s10, %s1762_s2 }
  0x2e   : > { %p1116_p13 = pnand %p1114_p11, %p1412_p12 }
  0x30   : > { %p1117_p2 = pneg %p1116_p13 }
  0x32   : > { %p1122_p4 = pnand %p1120_p1, %p1117_p2 }
  0x34   : > { %1125 = shalt.err (!%p1122_p4)
}
  0x35   : > { %s1126_s28 = scalar_lea.vmem %s1400_s30, 16  ;;  %s1133_s16 = scalar_lea.vmem %s1400_s30, 32 }
  0x36   : > { %p1127_p6 = scmp.ne.s32.totalorder %s1400_s30, %s1126_s28  ;;  %p1134_p3 = scmp.lt.s32.totalorder %s1400_s30, %s1400_s30 }
  0x37   : > { %p1135_p5 = scmp.lt.s32.totalorder %s1133_s16, %s1126_s28 }
  0x38   : > { %p1129_p8 = pnand %p1127_p6, %p1412_p12 }
  0x39   : > { %p1136_p7 = por %p1135_p5, %p1134_p3 }
  0x3a   : > { %p1130_p0 = pneg %p1129_p8 }
  0x3c   : > { %p1137_p9 = pnand %p1136_p7, %p1130_p0 }
  0x3e   : > { %1140 = shalt.err (!%p1137_p9)
}
  0x3f   : > { %1022 = dma.hbm_to_vmem [thread:$0]  (!%p1396_p10), %s1762_s2, 16, %s1400_s30, [#allocation6]  }
  0x40   : > { %s1141_s7 = scalar_lea.hbm %s1763_s3, 32 }
  0x41   : > { %p1142_p11 = scmp.ne.s32.totalorder %s1763_s3, %s1141_s7  ;;  %p1148_p1 = scmp.lt.u32.totalorder %s1141_s7, %s1763_s3 }
  0x43   : > { %p1144_p13 = pnand %p1142_p11, %p1412_p12 }
  0x45   : > { %p1145_p2 = pneg %p1144_p13 }
  0x47   : > { %p1150_p4 = pnand %p1148_p1, %p1145_p2 }
  0x49   : > { %1153 = shalt.err (!%p1150_p4)
}
  0x4a   : > { %s1154_s30 = scalar_lea.vmem %s1402_s8, 32  ;;  %p1162_p3 = scmp.lt.s32.totalorder %s1402_s8, %s1402_s8 }
  0x4b   : > { %p1155_p6 = scmp.ne.s32.totalorder %s1402_s8, %s1154_s30  ;;  %p1163_p5 = scmp.lt.s32.totalorder %s1154_s30, %s1154_s30 }
  0x4d   : > { %p1157_p8 = pnand %p1155_p6, %p1412_p12  ;;  %p1164_p7 = por %p1163_p5, %p1162_p3 }
  0x4f   : > { %p1158_p0 = pneg %p1157_p8 }
  0x51   : > { %p1165_p9 = pnand %p1164_p7, %p1158_p0 }
  0x53   : > { %1168 = shalt.err (!%p1165_p9)
}
  0x54   : > { %1025 = dma.hbm_to_vmem [thread:$0]  (!%p1396_p10), %s1763_s3, 32, %s1402_s8, [#allocation9]  }
  0x55   : > { %s1476_s14 = sadd.s32 1, %s1305_s21   ;;  %s34_s28 = sadd.s32 1, %s1301_s20 }
  0x56   : > { %s31_s6 = ssub.s32 %s1305_s21, %s1476_s14  ;;  %p41_p11 = scmp.ne.s32.totalorder %s1301_s20, %s1297_s19 }
  0x57   : > { %p32_p12 = scmp.eq.s32.totalorder %s31_s6, 0  ;;  %p42_p13 = scmp.eq.s32.totalorder %s1305_s21, 0 }
  0x58   : > { %p1040_p2 = scmp.lt.s32.totalorder %s1305_s21, 4  ;;  %p1774_p4 = scmp.eq.s32.totalorder %s1369_s22, 3 }
  0x59   : > { %s1486_s16 = scalar_select %p32_p12, %s1301_s20, %s34_s28  }
  0x5a   : > { %p43_p1 = por %p42_p13, %p41_p11  ;;  %p1490_p6 = por %p1774_p4, %p41_p11 }
  0x5b   : > { %s219_s23 = sand.u32 1, %s1301_s20   ;;  %s910_s27 = sshll.u32 %s1305_s21, 10 }
  0x5c   : > { %s869_s8 = sshll.u32 %s219_s23, 6  ;;  %s1499_s9 = scalar_lea.hbm %s1760_s0, %s910_s27 }
  0x5d   : > { %s223_s10 = scalar_lea.vmem [#allocation2], %s869_s8  ;;  %p1501_p10 = pnand %p1040_p2, %p43_p1 }
  0x5e   : > { %s230_s11 = sshll.u32 %s223_s10, 4  ;;  %s1507_s30 = scalar_lea.sflag [#allocation3], %s219_s23  ;;  %s1505_s11 = int_to_ptr.vmem [resolvable:$true] %s230_s11 }
  0x5f   : > { %s1169_s13 = scalar_lea.hbm %s1499_s9, 1024  ;;  %p1171_p0 = pneg %p1501_p10 }
  0x60   : > { %p1170_p8 = scmp.ne.s32.totalorder %s1499_s9, %s1169_s13  ;;  %s1174_s28 = scalar_lea.hbm %s1760_s0, 4096 }
  0x61   : > { %p1175_p7 = scmp.lt.u32.totalorder %s1499_s9, %s1760_s0  ;;  %p1176_p9 = scmp.lt.u32.totalorder %s1174_s28, %s1169_s13 }
  0x62   : > { %p1172_p3 = pnand %p1171_p0, %p1170_p8  ;;  %p1178_p11 = scmp.lt.u32.totalorder %s1169_s13, %s1499_s9 }
  0x63   : > { %p1177_p12 = por %p1176_p9, %p1175_p7 }
  0x64   : > { %p1173_p5 = pneg %p1172_p3 }
  0x65   : > { %p1179_p13 = por %p1178_p11, %p1177_p12 }
  0x67   : > { %p1180_p2 = pnand %p1179_p13, %p1173_p5 }
  0x69   : > { %1183 = shalt.err (!%p1180_p2)
}
  0x6a   : > { %s1184_s23 = scalar_lea.vmem %s1505_s11, 1024  ;;  %s1310_s29 = smov [#allocation2]  }
  0x6b   : > { %p1185_p1 = scmp.ne.s32.totalorder %s1505_s11, %s1184_s23  ;;  %s1189_s7 = sshll.u32 %s1310_s29, 4  ;;  %s1190_s7 = int_to_ptr.vmem [resolvable:$false] %s1189_s7 }
  0x6c   : > { %s1191_s10 = scalar_lea.vmem %s1190_s7, 2048  ;;  %p1192_p3 = scmp.lt.s32.totalorder %s1505_s11, %s1190_s7 }
  0x6d   : > { %p1187_p4 = pnand %p1185_p1, %p1171_p0  ;;  %p1193_p7 = scmp.lt.s32.totalorder %s1191_s10, %s1184_s23 }
  0x6f   : > { %p1188_p8 = pneg %p1187_p4  ;;  %p1194_p9 = por %p1193_p7, %p1192_p3 }
  0x71   : > { %p1195_p12 = pnand %p1194_p9, %p1188_p8 }
  0x73   : > { %1198 = shalt.err (!%p1195_p12)
}
  0x74   : > { %s1311_s13 = smov 64   ;;  %s1312_s15 = smov 4  }
  0x75   : > { %1029 = dma.hbm_to_vmem [thread:$0]  (!%p1501_p10), %s1499_s9, 1024, %s1505_s11, %s1507_s30, %s1311_s13, %s1311_s13, %s1312_s15  }
  0x76   : > { %p1777_p0 = scmp.ne.s32.totalorder %s1771_s26, 0 }
  0x77   : > { %s1538_s6 = sand.u32 (!%p1777_p0), 1, %s1297_s19   ;;  %p1778_p5 = scmp.ne.s32.totalorder (!%p1777_p0), %s1769_s24, 0 }
  0x78   : > { %242 = sbr.rel (%p1777_p0) target bundleno = 548 (0x224), region = 36  ;;  %s873_s28 = sshll.u32 (!%p1777_p0), %s1538_s6, 6 }
  0x79   : > { %s245_s27 = scalar_lea.sflag (!%p1777_p0), [#allocation3], %s1538_s6  ;;  %s1544_s8 = scalar_lea.vmem (!%p1777_p0), [#allocation2], %s873_s28 }
  0x7f   : > { %1272 = dma.done.wait (%p1778_p5), %s245_s27, 1024  }
  0x80   : > { %1274 = vsyncadd (%p1778_p5), %s245_s27, 4294966272  ;;  %p1779_p10 = scmp.eq.s32.totalorder %s1369_s22, 0 }
  0x82   : > { %1276 = dma.done.wait (%p1779_p10), [#allocation6], 32   ;;  %p1780_p11 = pmov %p1779_p10 }
  0x83   : > { %p1781_p13 = pmov %p1779_p10 }
  0x84   : > { %1278 = vsyncadd (%p1780_p11), [#allocation6], 4294967264 }
  0x85   : > { %1280 = dma.done.wait (%p1781_p13), [#allocation9], 32   ;;  %p1782_p2 = pmov %p1779_p10 }
  0x86   : > { %vm422_vm0 = vcmask 1041408   ;;  %v396_v0 = vld [vmem:[#allocation8] sm:$0x3]  ;;  %v1559_v2 = vld [vmem:[#allocation5] ss:$0 sm:$0xff]  ;;  %vm397_vm1 = vcmask 31744  }
  0x87   : > { %1282 = vsyncadd (%p1782_p2), [#allocation9], 4294967264  ;;  %v929_v1 = vld [vmem:[%s1544_s8] sm:$0xff]   ;;  %996 = vmatprep.subr.msk.bf16.mxu0 %vm422_vm0, %v396_v0  ;;  %v424_v3 = vsel %vm422_vm0, %v396_v0, 0  ;;  %v960_v6 = vld [vmem:[%s1544_s8 + $0x8] sm:$0xff]   ;;  %997 = vmatprep.subr.msk.bf16.mxu1 %vm422_vm0, %v396_v0  ;;  %vm587_vm2 = vcmask 125952  }
  0x88   : > { %v930_v4 = vunpack.c.l.bf16 %v929_v1  ;;  %v931_v5 = vunpack.c.h.bf16 %v929_v1  ;;  %v961_v7 = vld [vmem:[%s1544_s8 + $0x10] sm:$0xff]   ;;  %977 = vmatpush3.bf16.msra.mxu0 %v424_v3  ;;  %v1563_v8 = vld [vmem:[#allocation7] ss:$0 sm:$0xff]  ;;  %v934_v9 = vunpack.c.l.bf16 %v960_v6  ;;  %v935_v10 = vunpack.c.h.bf16 %v960_v6  ;;  %v962_v13 = vld [vmem:[%s1544_s8 + $0x18] sm:$0xff]   ;;  %995 = vmatpush3.bf16.msra.mxu1 %v424_v3  ;;  %s1612_s24 = scalar_lea.vmem [#allocation10], %s873_s28  ;;  %s927_s26 = sshll.u32 %s1369_s22, 10 }
  0x89   : > { %v938_v11 = vunpack.c.l.bf16 %v961_v7  ;;  %v939_v12 = vunpack.c.h.bf16 %v961_v7  ;;  %v942_v16 = vunpack.c.l.bf16 %v962_v13  ;;  %v943_v17 = vunpack.c.h.bf16 %v962_v13  ;;  %v963_v30 = vld [vmem:[%s1544_s8 + $0x20] sm:$0xff]   ;;  %v964_v35 = vld [vmem:[%s1544_s8 + $0x28] sm:$0xff]   ;;  %v965_v40 = vld [vmem:[%s1544_s8 + $0x30] sm:$0xff]   ;;  %s1682_s12 = scalar_lea.hbm %s1764_s4, %s927_s26  ;;  %s720_s30 = sshll.u32 %s1612_s24, 4  ;;  %s1685_s30 = int_to_ptr.vmem [resolvable:$true] %s720_s30 }
  0x8a   : > { %v333_v14 = vmul.f32 %v930_v4, %v1559_v2  ;;  %v334_v15 = vmul.f32 %v931_v5, %v1559_v2  ;;  %v335_v18 = vmul.f32 %v934_v9, %v1559_v2  ;;  %v336_v19 = vmul.f32 %v935_v10, %v1559_v2  ;;  %v966_v44 = vld [vmem:[%s1544_s8 + $0x38] sm:$0xff]   ;;  %s703_s23 = scalar_lea.sflag [#allocation4], %s1538_s6  ;;  %s1199_s29 = scalar_lea.vmem %s1685_s30, 1024 }
  0x8b   : > { %v337_v20 = vmul.f32 %v938_v11, %v1559_v2  ;;  %v338_v21 = vmul.f32 %v939_v12, %v1559_v2  ;;  %v339_v24 = vmul.f32 %v942_v16, %v1559_v2  ;;  %v340_v25 = vmul.f32 %v943_v17, %v1559_v2  ;;  %p1200_p1 = scmp.ne.s32.totalorder %s1685_s30, %s1199_s29  ;;  %s1313_s7 = smov [#allocation10]  }
  0x8c   : > { %v356_v22 = vadd.f32 %v1563_v8, %v333_v14  ;;  %v357_v23 = vadd.f32 %v1563_v8, %v334_v15  ;;  %v358_v26 = vadd.f32 %v1563_v8, %v335_v18  ;;  %v359_v27 = vadd.f32 %v1563_v8, %v336_v19  ;;  %s1203_s10 = sshll.u32 %s1313_s7, 4  ;;  %s1204_s10 = int_to_ptr.vmem [resolvable:$false] %s1203_s10 }
  0x8d   : > { %v360_v28 = vadd.f32 %v1563_v8, %v337_v20  ;;  %v361_v29 = vadd.f32 %v1563_v8, %v338_v21  ;;  %v362_v33 = vadd.f32 %v1563_v8, %v339_v24  ;;  %v363_v34 = vadd.f32 %v1563_v8, %v340_v25  ;;  %p1201_p4 = pnand %p1200_p1, %p1490_p6  ;;  %s1205_s13 = scalar_lea.vmem %s1204_s10, 2048 }
  0x8e   : > { %v372_v31 = vmax.f32 %v356_v22, 0.0  ;;  %v373_v32 = vmax.f32 %v357_v23, 0.0  ;;  %v374_v36 = vmax.f32 %v358_v26, 0.0  ;;  %v375_v37 = vmax.f32 %v359_v27, 0.0  ;;  %p1206_p3 = scmp.lt.s32.totalorder %s1685_s30, %s1204_s10  ;;  %p1207_p7 = scmp.lt.s32.totalorder %s1205_s13, %s1199_s29 }
  0x8f   : > { %v376_v38 = vmax.f32 %v360_v28, 0.0  ;;  %v377_v39 = vmax.f32 %v361_v29, 0.0  ;;  %v378_v42 = vmax.f32 %v362_v33, 0.0  ;;  %v946_v43 = vunpack.c.l.bf16 %v963_v30  ;;  %p1202_p8 = pneg %p1201_p4 }
  0x90   : > { %v388_v41 = vpack.c.bf16 %v373_v32, %v372_v31  ;;  %v389_v45 = vpack.c.bf16 %v375_v37, %v374_v36  ;;  %v947_v47 = vunpack.c.h.bf16 %v963_v30  ;;  %v950_v48 = vunpack.c.l.bf16 %v964_v35  ;;  %p1208_p9 = por %p1207_p7, %p1206_p3 }
  0x91   : > { %v390_v46 = vpack.c.bf16 %v377_v39, %v376_v38  ;;  %v379_v49 = vmax.f32 %v363_v34, 0.0  ;;  %v341_v50 = vmul.f32 %v946_v43, %v1559_v2  ;;  %v951_v51 = vunpack.c.h.bf16 %v964_v35 }
  0x92   : > { %978 = vmatprep.mubr.msk.bf16.mxu0 %vm397_vm1, %v388_v41  ;;  %v954_v52 = vunpack.c.l.bf16 %v965_v40  ;;  %v342_v53 = vmul.f32 %v947_v47, %v1559_v2  ;;  %v343_v54 = vmul.f32 %v950_v48, %v1559_v2  ;;  %v955_v55 = vunpack.c.h.bf16 %v965_v40  ;;  %p1209_p12 = pnand %p1208_p9, %p1202_p8 }
  0x93   : > { %979 = vmatmul.mubr.msk.bf16.vlgmr.msra.gmra.mrb[0].mxu0 %vm397_vm1, %v389_v45  ;;  %v958_v56 = vunpack.c.l.bf16 %v966_v44  ;;  %v364_v57 = vadd.f32 %v1563_v8, %v341_v50  ;;  %v344_v58 = vmul.f32 %v951_v51, %v1559_v2  ;;  %v959_v60 = vunpack.c.h.bf16 %v966_v44 }
  0x94   : > { %982 = vmatprep.mubr.msk.bf16.mxu0 %vm397_vm1, %v390_v46  ;;  %v345_v59 = vmul.f32 %v954_v52, %v1559_v2  ;;  %v365_v61 = vadd.f32 %v1563_v8, %v342_v53  ;;  %v366_v62 = vadd.f32 %v1563_v8, %v343_v54  ;;  %v346_v63 = vmul.f32 %v955_v55, %v1559_v2 }
  0x95   : > { %v347_v0 = vmul.f32 %v958_v56, %v1559_v2  ;;  %v380_v1 = vmax.f32 %v364_v57, 0.0  ;;  %v367_v3 = vadd.f32 %v1563_v8, %v344_v58  ;;  %v348_v5 = vmul.f32 %v959_v60, %v1559_v2 }
  0x96   : > { %v368_v4 = vadd.f32 %v1563_v8, %v345_v59  ;;  %v391_v6 = vpack.c.bf16 %v379_v49, %v378_v42  ;;  %v381_v7 = vmax.f32 %v365_v61, 0.0  ;;  %v382_v9 = vmax.f32 %v366_v62, 0.0 }
  0x97   : > { %v369_v10 = vadd.f32 %v1563_v8, %v346_v63  ;;  %v383_v11 = vmax.f32 %v367_v3, 0.0  ;;  %v370_v13 = vadd.f32 %v1563_v8, %v347_v0  ;;  %v371_v14 = vadd.f32 %v1563_v8, %v348_v5 }
  0x98   : > { %v384_v12 = vmax.f32 %v368_v4, 0.0  ;;  %v392_v15 = vpack.c.bf16 %v381_v7, %v380_v1  ;;  %vm604_vm3 = vcmask 130048  }
  0x99   : > { %v385_v16 = vmax.f32 %v369_v10, 0.0  ;;  %v393_v17 = vpack.c.bf16 %v383_v11, %v382_v9  ;;  %v386_v18 = vmax.f32 %v370_v13, 0.0  ;;  %v387_v19 = vmax.f32 %v371_v14, 0.0 }
  0x9a   : > { %986 = vmatprep.mubr.msk.bf16.mxu1 %vm397_vm1, %v392_v15 }
  0x9b   : > { %983 = vmatmul.mubr.msk.bf16.gmra.mrb[4].mxu0 %vm397_vm1, %v391_v6  ;;  %v394_v2 = vpack.c.bf16 %v385_v16, %v384_v12  ;;  %987 = vmatmul.mubr.msk.bf16.vlgmr.msra.gmra.mrb[0].mxu1 %vm397_vm1, %v393_v17  ;;  %v395_v20 = vpack.c.bf16 %v387_v19, %v386_v18 }
  0x9d   : > { %990 = vmatprep.mubr.msk.bf16.mxu1 %vm397_vm1, %v394_v2 }
  0xa3   : > { %991 = vmatmul.mubr.msk.bf16.gmra.mrb[4].mxu1 %vm397_vm1, %v395_v20 }
 0x166   : > { %v980_v21 = vpop.f32.mrb[0].mxu0 }
 0x167   : > { %v913_v8 = vpack.c.bf16 %v980_v21, %v980_v21  ;;  %v460_v22 = vpop.f32.mrb[1].mxu0  ;;  %v644_v26 = vmul.f32 %v980_v21, %v980_v21  ;;  %v608_v35 = vsel %vm604_vm3, %v980_v21, 0.0 }
 0x168   : > { %v911_v23 = vpack.c.bf16 %v460_v22, %v460_v22  ;;  %v642_v24 = vmul.f32 %v460_v22, %v460_v22  ;;  %v981_v25 = vpop.f32.mrb[2].mxu0  ;;  %v605_v29 = vsel %vm604_vm3, %v460_v22, 0.0 }
 0x169   : > { %590 = vst.msk [vmem:[%s1612_s24 + $0x8] sm:$0xf] %vm587_vm2, %v913_v8  ;;  %v914_v27 = vpack.c.bf16 %v981_v25, %v981_v25  ;;  %v463_v28 = vpop.f32.mrb[3].mxu0  ;;  %v645_v33 = vmul.f32 %v981_v25, %v981_v25  ;;  %v661_v40 = vsel %vm604_vm3, %v644_v26, 0.0  ;;  %v610_v42 = vsel %vm604_vm3, %v981_v25, 0.0 }
 0x16a   : > { %588 = vst.msk [vmem:[%s1612_s24] sm:$0xf] %vm587_vm2, %v911_v23  ;;  %v912_v30 = vpack.c.bf16 %v463_v28, %v463_v28  ;;  %v606_v31 = vsel %vm604_vm3, %v463_v28, 0.0  ;;  %v643_v32 = vmul.f32 %v463_v28, %v463_v28  ;;  %v658_v36 = vsel %vm604_vm3, %v642_v24, 0.0 }
 0x16b   : > { %591 = vst.msk [vmem:[%s1612_s24 + $0xc] sm:$0xf] %vm587_vm2, %v914_v27  ;;  %v607_v34 = vadd.f32 %v606_v31, %v605_v29  ;;  %v663_v43 = vsel %vm604_vm3, %v645_v33, 0.0 }
 0x16c   : > { %589 = vst.msk [vmem:[%s1612_s24 + $0x4] sm:$0xf] %vm587_vm2, %v912_v30  ;;  %v659_v37 = vsel %vm604_vm3, %v643_v32, 0.0 }
 0x16d   : > { %v609_v38 = vadd.f32 %v608_v35, %v607_v34  ;;  %v660_v39 = vadd.f32 %v659_v37, %v658_v36 }
 0x16e   : > { %v984_v41 = vpop.f32.mrb[4].mxu0  ;;  %v988_v47 = vpop.f32.mrb[0].mxu1 }
 0x16f   : > { %v662_v44 = vadd.f32 %v661_v40, %v660_v39  ;;  %v917_v45 = vpack.c.bf16 %v984_v41, %v984_v41  ;;  %v476_v46 = vpop.f32.mrb[5].mxu0  ;;  %v611_v49 = vadd.f32 %v610_v42, %v609_v38  ;;  %v492_v53 = vpop.f32.mrb[1].mxu1  ;;  %v648_v58 = vmul.f32 %v984_v41, %v984_v41 }
 0x170   : > { %v915_v48 = vpack.c.bf16 %v476_v46, %v476_v46  ;;  %v612_v50 = vsel %vm604_vm3, %v476_v46, 0.0  ;;  %v646_v51 = vmul.f32 %v476_v46, %v476_v46  ;;  %v985_v52 = vpop.f32.mrb[6].mxu0  ;;  %v989_v57 = vpop.f32.mrb[2].mxu1  ;;  %v921_v3 = vpack.c.bf16 %v988_v47, %v988_v47 }
 0x171   : > { %594 = vst.msk [vmem:[%s1612_s24 + $0x18] sm:$0xf] %vm587_vm2, %v917_v45  ;;  %v664_v54 = vadd.f32 %v663_v43, %v662_v44  ;;  %v918_v55 = vpack.c.bf16 %v985_v52, %v985_v52  ;;  %v479_v56 = vpop.f32.mrb[7].mxu0  ;;  %v613_v59 = vadd.f32 %v612_v50, %v611_v49  ;;  %v495_v62 = vpop.f32.mrb[3].mxu1  ;;  %v616_v4 = vsel %vm604_vm3, %v984_v41, 0.0 }
 0x172   : > { %592 = vst.msk [vmem:[%s1612_s24 + $0x10] sm:$0xf] %vm587_vm2, %v915_v48  ;;  %v665_v60 = vsel %vm604_vm3, %v646_v51, 0.0  ;;  %v916_v61 = vpack.c.bf16 %v479_v56, %v479_v56  ;;  %v614_v0 = vsel %vm604_vm3, %v479_v56, 0.0  ;;  %v647_v1 = vmul.f32 %v479_v56, %v479_v56  ;;  %598 = vst.msk [vmem:[%s1612_s24 + $0x28] sm:$0xf] %vm587_vm2, %v921_v3 }
 0x173   : > { %v666_v63 = vadd.f32 %v665_v60, %v664_v54  ;;  %595 = vst.msk [vmem:[%s1612_s24 + $0x1c] sm:$0xf] %vm587_vm2, %v918_v55  ;;  %v615_v5 = vadd.f32 %v614_v0, %v613_v59  ;;  %v649_v6 = vmul.f32 %v985_v52, %v985_v52  ;;  %v919_v9 = vpack.c.bf16 %v492_v53, %v492_v53 }
 0x174   : > { %593 = vst.msk [vmem:[%s1612_s24 + $0x14] sm:$0xf] %vm587_vm2, %v916_v61  ;;  %v667_v7 = vsel %vm604_vm3, %v647_v1, 0.0  ;;  %v650_v10 = vmul.f32 %v492_v53, %v492_v53  ;;  %v922_v13 = vpack.c.bf16 %v989_v57, %v989_v57  ;;  %v669_v14 = vsel %vm604_vm3, %v648_v58, 0.0 }
 0x175   : > { %v617_v11 = vadd.f32 %v616_v4, %v615_v5  ;;  %v668_v12 = vadd.f32 %v667_v7, %v666_v63  ;;  %v618_v15 = vsel %vm604_vm3, %v985_v52, 0.0  ;;  %596 = vst.msk [vmem:[%s1612_s24 + $0x20] sm:$0xf] %vm587_vm2, %v919_v9  ;;  %v620_v16 = vsel %vm604_vm3, %v492_v53, 0.0 }
 0x176   : > { %v920_v17 = vpack.c.bf16 %v495_v62, %v495_v62  ;;  %v992_v2 = vpop.f32.mrb[4].mxu1  ;;  %599 = vst.msk [vmem:[%s1612_s24 + $0x2c] sm:$0xf] %vm587_vm2, %v922_v13  ;;  %v671_v21 = vsel %vm604_vm3, %v649_v6, 0.0  ;;  %v673_v8 = vsel %vm604_vm3, %v650_v10, 0.0  ;;  %v651_v22 = vmul.f32 %v495_v62, %v495_v62 }
 0x177   : > { %v670_v18 = vadd.f32 %v669_v14, %v668_v12  ;;  %v619_v19 = vadd.f32 %v618_v15, %v617_v11  ;;  %v508_v20 = vpop.f32.mrb[5].mxu1  ;;  %v925_v23 = vpack.c.bf16 %v992_v2, %v992_v2  ;;  %v652_v29 = vmul.f32 %v988_v47, %v988_v47 }
 0x178   : > { %597 = vst.msk [vmem:[%s1612_s24 + $0x24] sm:$0xf] %vm587_vm2, %v920_v17  ;;  %v993_v24 = vpop.f32.mrb[6].mxu1  ;;  %v923_v27 = vpack.c.bf16 %v508_v20, %v508_v20  ;;  %v622_v30 = vsel %vm604_vm3, %v495_v62, 0.0  ;;  %v624_v32 = vsel %vm604_vm3, %v988_v47, 0.0  ;;  %v653_v35 = vmul.f32 %v989_v57, %v989_v57 }
 0x179   : > { %v621_v25 = vadd.f32 %v620_v16, %v619_v19  ;;  %v672_v26 = vadd.f32 %v671_v21, %v670_v18  ;;  %v511_v28 = vpop.f32.mrb[7].mxu1  ;;  %602 = vst.msk [vmem:[%s1612_s24 + $0x38] sm:$0xf] %vm587_vm2, %v925_v23  ;;  %v926_v31 = vpack.c.bf16 %v993_v24, %v993_v24  ;;  %v675_v36 = vsel %vm604_vm3, %v651_v22, 0.0 }
 0x17a   : > { %600 = vst.msk [vmem:[%s1612_s24 + $0x30] sm:$0xf] %vm587_vm2, %v923_v27  ;;  %v654_v37 = vmul.f32 %v508_v20, %v508_v20  ;;  %v924_v38 = vpack.c.bf16 %v511_v28, %v511_v28  ;;  %v677_v41 = vsel %vm604_vm3, %v652_v29, 0.0  ;;  %v626_v42 = vsel %vm604_vm3, %v989_v57, 0.0 }
 0x17b   : > { %v674_v33 = vadd.f32 %v673_v8, %v672_v26  ;;  %v623_v34 = vadd.f32 %v622_v30, %v621_v25  ;;  %603 = vst.msk [vmem:[%s1612_s24 + $0x3c] sm:$0xf] %vm587_vm2, %v926_v31  ;;  %v628_v43 = vsel %vm604_vm3, %v508_v20, 0.0  ;;  %v679_v46 = vsel %vm604_vm3, %v653_v35, 0.0 }
 0x17c   : > { %601 = vst.msk [vmem:[%s1612_s24 + $0x34] sm:$0xf] %vm587_vm2, %v924_v38  ;;  %v681_v47 = vsel %vm604_vm3, %v654_v37, 0.0  ;;  %v655_v48 = vmul.f32 %v511_v28, %v511_v28  ;;  %v656_v51 = vmul.f32 %v992_v2, %v992_v2  ;;  %v630_v52 = vsel %vm604_vm3, %v511_v28, 0.0 }
 0x17d   : > { %v625_v39 = vadd.f32 %v624_v32, %v623_v34  ;;  %v676_v40 = vadd.f32 %v675_v36, %v674_v33  ;;  %v632_v55 = vsel %vm604_vm3, %v992_v2, 0.0  ;;  %v657_v56 = vmul.f32 %v993_v24, %v993_v24 }
 0x17e   : > { %v683_v57 = vsel %vm604_vm3, %v655_v48, 0.0  ;;  %v685_v60 = vsel %vm604_vm3, %v656_v51, 0.0  ;;  %v634_v61 = vsel %vm604_vm3, %v993_v24, 0.0 }
 0x17f   : > { %v678_v44 = vadd.f32 %v677_v41, %v676_v40  ;;  %v627_v45 = vadd.f32 %v626_v42, %v625_v39  ;;  %v687_v0 = vsel %vm604_vm3, %v657_v56, 0.0 }
 0x181   : > { %v629_v49 = vadd.f32 %v628_v43, %v627_v45  ;;  %v680_v50 = vadd.f32 %v679_v46, %v678_v44 }
 0x183   : > { %v682_v53 = vadd.f32 %v681_v47, %v680_v50  ;;  %v631_v54 = vadd.f32 %v630_v52, %v629_v49 }
 0x185   : > { %v633_v58 = vadd.f32 %v632_v55, %v631_v54  ;;  %v684_v59 = vadd.f32 %v683_v57, %v682_v53 }
 0x187   : > { %v635_v62 = vadd.f32 %v634_v61, %v633_v58  ;;  %v686_v63 = vadd.f32 %v685_v60, %v684_v59 }
 0x189   : > { %v688_v1 = vadd.f32 %v687_v0, %v686_v63 }
 0x18b   : > { %v689_v3 = vrot.slane %v688_v1, 4 }
 0x18d   : > { %v690_v4 = vadd.f32 %v689_v3, %v688_v1 }
 0x18e   : > { %1212 = shalt.err (!%p1209_p12)
}
 0x18f   : > { %s1213_s15 = scalar_lea.hbm %s1682_s12, 1024  ;;  %s1217_s8 = scalar_lea.hbm %s1764_s4, 4096 }
 0x190   : > { %p1214_p0 = scmp.ne.s32.totalorder %s1682_s12, %s1213_s15  ;;  %p1218_p11 = scmp.lt.u32.totalorder %s1682_s12, %s1764_s4 }
 0x191   : > { %p1219_p13 = scmp.lt.u32.totalorder %s1217_s8, %s1213_s15  ;;  %p1221_p1 = scmp.lt.u32.totalorder %s1213_s15, %s1682_s12 }
 0x192   : > { %p1215_p5 = pnand %p1214_p0, %p1490_p6 }
 0x193   : > { %p1220_p2 = por %p1219_p13, %p1218_p11 }
 0x194   : > { %p1216_p10 = pneg %p1215_p5 }
 0x195   : > { %p1222_p4 = por %p1221_p1, %p1220_p2 }
 0x197   : > { %p1223_p8 = pnand %p1222_p4, %p1216_p10 }
 0x199   : > { %1226 = shalt.err (!%p1223_p8)
}
 0x19a   : > { %s1314_s9 = smov 64   ;;  %s1315_s11 = smov 4   ;;  %v691_v5 = vrot.slane %v690_v4, 2  ;;  %v636_v10 = vrot.slane %v635_v62, 4  ;;  %vm700_vm4 = vcmask 253952  }
 0x19b   : > { %1012 = dma.vmem_to_hbm [thread:$0]  (%p1490_p6), %s1685_s30, 1024, %s1682_s12, %s703_s23, %s1314_s9, %s1314_s9, %s1315_s11  }
 0x19c   : > { %v692_v6 = vadd.f32 %v691_v5, %v690_v4  ;;  %s1316_s29 = smov 16   ;;  %v637_v11 = vadd.f32 %v636_v10, %v635_v62  ;;  %s907_s7 = sshll.u32 %s1369_s22, 4 }
 0x19d   : > { %s290_s10 = scalar_lea.vmem [#allocation11], %s1538_s6  ;;  %s1716_s23 = scalar_lea.hbm %s1765_s5, %s907_s7 }
 0x19e   : > { %v693_v7 = vrot.slane %v692_v6, 1  ;;  %v638_v12 = vrot.slane %v637_v11, 2  ;;  %s736_s13 = sshll.u32 %s290_s10, 4  ;;  %s708_s15 = scalar_lea.sflag [#allocation12], %s1538_s6  ;;  %s1718_s13 = int_to_ptr.vmem [resolvable:$true] %s736_s13 }
 0x19f   : > { %s1227_s22 = scalar_lea.vmem %s1718_s13, 16  ;;  %s1317_s28 = smov [#allocation11]  }
 0x1a0   : > { %v694_v9 = vadd.f32 %v693_v7, %v692_v6  ;;  %v639_v13 = vadd.f32 %v638_v12, %v637_v11  ;;  %p1228_p3 = scmp.ne.s32.totalorder %s1718_s13, %s1227_s22  ;;  %s1231_s27 = sshll.u32 %s1317_s28, 4  ;;  %s1232_s27 = int_to_ptr.vmem [resolvable:$false] %s1231_s27 }
 0x1a1   : > { %s1233_s8 = scalar_lea.vmem %s1232_s27, 32  ;;  %p1234_p12 = scmp.lt.s32.totalorder %s1718_s13, %s1232_s27 }
 0x1a2   : > { %696 = vrot.lane.b32.xlu0 %v694_v9, %s1316_s29  ;;  %v640_v14 = vrot.slane %v639_v13, 1  ;;  %p1229_p7 = pnand %p1228_p3, %p1490_p6  ;;  %p1235_p0 = scmp.lt.s32.totalorder %s1233_s8, %s1227_s22 }
 0x1a4   : > { %v641_v15 = vadd.f32 %v640_v14, %v639_v13  ;;  %p1230_p9 = pneg %p1229_p7  ;;  %p1236_p5 = por %p1235_p0, %p1234_p12 }
 0x1a6   : > { %p1237_p10 = pnand %p1236_p5, %p1230_p9 }
 0x214   : > { %v697_v16 = vpop.permute.xlu0 %696 }
 0x215   : > { %v699_v17 = vsel %vm604_vm3, %v641_v15, %v697_v16 }
 0x216   : > { %701 = vst.msk [vmem:[%s290_s10] sm:$0x1] %vm700_vm4, %v699_v17 }
 0x217   : > { %1240 = shalt.err (!%p1237_p10)
}
 0x218   : > { %s1241_s6 = scalar_lea.hbm %s1716_s23, 16  ;;  %s1245_s9 = scalar_lea.hbm %s1765_s5, 64 }
 0x219   : > { %p1242_p11 = scmp.ne.s32.totalorder %s1716_s23, %s1241_s6  ;;  %p1246_p1 = scmp.lt.u32.totalorder %s1716_s23, %s1765_s5 }
 0x21a   : > { %p1247_p4 = scmp.lt.u32.totalorder %s1245_s9, %s1241_s6  ;;  %p1249_p3 = scmp.lt.u32.totalorder %s1241_s6, %s1716_s23 }
 0x21b   : > { %p1243_p13 = pnand %p1242_p11, %p1490_p6 }
 0x21c   : > { %p1248_p8 = por %p1247_p4, %p1246_p1 }
 0x21d   : > { %p1244_p2 = pneg %p1243_p13 }
 0x21e   : > { %p1250_p7 = por %p1249_p3, %p1248_p8 }
 0x220   : > { %p1251_p9 = pnand %p1250_p7, %p1244_p2 }
 0x222   : > { %1254 = shalt.err (!%p1251_p9)
}
 0x223   : > { %1013 = dma.vmem_to_hbm [thread:$0]  (%p1490_p6), %s1718_s13, 16, %s1716_s23, %s708_s15  }
 0x224 PF: > { %p1044_p12 = scmp.ge.s32.totalorder %s1305_s21, 2  ;;  %s748_s7 = sand.u32 1, %s1293_s18  }
 0x225   : > { %p1783_p0 = scmp.ne.s32.totalorder %s1770_s25, 0  ;;  %s749_s10 = scalar_lea.sflag [#allocation4], %s748_s7 }
 0x227   : > { %p1031_p5 = pnand %p1044_p12, %p1783_p0 }
 0x229   : > { %1284 = dma.done.wait (!%p1031_p5), %s749_s10, 1024  }
 0x22a   : > { %1286 = vsyncadd (!%p1031_p5), %s749_s10, 4294966272  ;;  %s758_s12 = scalar_lea.sflag [#allocation12], %s748_s7 }
 0x22b   : > { %1288 = dma.done.wait (!%p1031_p5), %s758_s12, 16  }
 0x22c   : > { %1290 = vsyncadd (!%p1031_p5), %s758_s12, 4294967280  ;;  %p24_p6 = scmp.ge.s32.totalorder %s1476_s14, 6   ;;  %s1784_s18 = smov %s1297_s19 }
 0x22d   : > { %s1785_s19 = smov %s1301_s20  ;;  %s1786_s20 = smov %s1486_s16 }
 0x22e   : > { %s1787_s21 = smov %s1476_s14  ;;  %26 = sbr.rel (!%p24_p6) target bundleno = 9 (0x9), region = 110 }
 0x235   :  { %762 = vsyncpa [#allocation3], 1 }
 0x236   :  { %764 = vsyncpa [#allocation3 + $0x1], 1 }
 0x237   :  { %765 = vsyncpa [#allocation6], 1 }
 0x238   :  { %766 = vsyncpa [#allocation9], 1 }
 0x239   :  { %767 = vsyncpa [#allocation4], 1 }
 0x23a   :  { %769 = vsyncpa [#allocation4 + $0x1], 1 }
 0x23b   :  { %770 = vsyncpa [#allocation12], 1 }
 0x23c   :  { %772 = vsyncpa [#allocation12 + $0x1], 1 }

// kernel: _lambda_.5
= control target key start
LH: loop header
LB: loop body
LE: loop exit
PB: predicated region body
PF: predicated region fallthrough
CT: control target
= control target key end

     0   :  { %11 = vsyncpa [#allocation4], 0  ;;  %s7745_s0 = inlined_call_operand.hbm [shape: bf16[2,16,16,4], index: 0, kind: input, shape index: {}]   ;;  %s7746_s1 = inlined_call_operand.hbm [shape: f32[1,4], index: 1, kind: input, shape index: {}]   ;;  %s7747_s2 = inlined_call_operand.hbm [shape: f32[1,4], index: 2, kind: input, shape index: {}]   ;;  %s7748_s3 = inlined_call_operand.hbm [shape: bf16[36,4], index: 3, kind: input, shape index: {}]   ;;  %s7749_s4 = inlined_call_operand.hbm [shape: bf16[2,16,16,4], index: 4, kind: output, shape index: {0}]   ;;  %s7750_s5 = inlined_call_operand.hbm [shape: f32[1,1,8], index: 5, kind: output, shape index: {1}]  }
   0x1   :  { %12 = vsyncpa [#allocation7], 0 }
   0x2   :  { %13 = vsyncpa [#allocation10], 0 }
   0x3   :  { %14 = vsyncpa [#allocation5], 0 }
   0x4   :  { %15 = vsyncpa [#allocation13], 0  ;;  %s5663_s18 = smov [#allocation6]   ;;  %s5664_s20 = smov [#allocation3]  }
   0x5   :  { %s34_s19 = sshll.u32 %s5663_s18, 4  ;;  %s21_s21 = sshll.u32 %s5664_s20, 4  ;;  %s35_s19 = int_to_ptr.vmem [resolvable:$true] %s34_s19  ;;  %s5709_s21 = int_to_ptr.vmem [resolvable:$true] %s21_s21 }
   0x6   :  { %s5521_s24 = scalar_lea.hbm %s7746_s1, 16 }
   0x7   :  { %p5522_p0 = scmp.ne.s32.totalorder %s7746_s1, %s5521_s24  ;;  %p5525_p1 = scmp.lt.u32.totalorder %s5521_s24, %s7746_s1 }
   0x9   :  { %p5527_p2 = pnand %p5525_p1, %p5522_p0 }
   0xb   :  { %5530 = shalt.err (!%p5527_p2)
}
   0xc   :  { %s5531_s29 = scalar_lea.vmem %s35_s19, 16  ;;  %s5535_s30 = scalar_lea.vmem %s35_s19, 32 }
   0xd   :  { %p5532_p3 = scmp.ne.s32.totalorder %s35_s19, %s5531_s29  ;;  %p5536_p4 = scmp.lt.s32.totalorder %s35_s19, %s35_s19 }
   0xe   :  { %p5537_p5 = scmp.lt.s32.totalorder %s5535_s30, %s5531_s29 }
  0x10   :  { %p5538_p6 = por %p5537_p5, %p5536_p4 }
  0x12   :  { %p5539_p7 = pnand %p5538_p6, %p5532_p3 }
  0x14   :  { %5542 = shalt.err (!%p5539_p7)
}
  0x15   :  { %37 = dma.hbm_to_vmem [thread:$0]  %s7746_s1, 16, %s35_s19, [#allocation7]  }
  0x16   :  { %s5543_s10 = scalar_lea.hbm %s7745_s0, 4096 }
  0x17   :  { %p5544_p8 = scmp.ne.s32.totalorder %s7745_s0, %s5543_s10  ;;  %p5547_p9 = scmp.lt.u32.totalorder %s5543_s10, %s7745_s0 }
  0x19   :  { %p5549_p10 = pnand %p5547_p9, %p5544_p8 }
  0x1b   :  { %5552 = shalt.err (!%p5549_p10)
}
  0x1c   :  { %s5553_s15 = scalar_lea.vmem %s5709_s21, 4096  ;;  %p5558_p12 = scmp.lt.s32.totalorder %s5709_s21, %s5709_s21 }
  0x1d   :  { %p5554_p11 = scmp.ne.s32.totalorder %s5709_s21, %s5553_s15  ;;  %p5559_p13 = scmp.lt.s32.totalorder %s5553_s15, %s5553_s15 }
  0x1f   :  { %p5560_p0 = por %p5559_p13, %p5558_p12 }
  0x21   :  { %p5561_p1 = pnand %p5560_p0, %p5554_p11 }
  0x23   :  { %5564 = shalt.err (!%p5561_p1)
}
  0x24   :  { %s5665_s1 = smov 64   ;;  %s5666_s16 = smov 4  }
  0x25   :  { %27 = dma.hbm_to_vmem [thread:$0]  %s7745_s0, 4096, %s5709_s21, [#allocation4], %s5665_s1, %s5665_s1, %s5666_s16  }
  0x26   :  { %s5667_s19 = smov [#allocation8]   ;;  %s5668_s22 = smov [#allocation9]  }
  0x27   :  { %s44_s20 = sshll.u32 %s5667_s19, 4  ;;  %s53_s23 = sshll.u32 %s5668_s22, 4  ;;  %s45_s20 = int_to_ptr.vmem [resolvable:$true] %s44_s20  ;;  %s5743_s23 = int_to_ptr.vmem [resolvable:$true] %s53_s23 }
  0x28   :  { %s5565_s26 = scalar_lea.hbm %s7747_s2, 16 }
  0x29   :  { %p5566_p2 = scmp.ne.s32.totalorder %s7747_s2, %s5565_s26  ;;  %p5569_p3 = scmp.lt.u32.totalorder %s5565_s26, %s7747_s2 }
  0x2b   :  { %p5571_p4 = pnand %p5569_p3, %p5566_p2 }
  0x2d   :  { %5574 = shalt.err (!%p5571_p4)
}
  0x2e   :  { %s5575_s0 = scalar_lea.vmem %s45_s20, 16  ;;  %s5579_s21 = scalar_lea.vmem %s45_s20, 32 }
  0x2f   :  { %p5576_p5 = scmp.ne.s32.totalorder %s45_s20, %s5575_s0  ;;  %p5580_p6 = scmp.lt.s32.totalorder %s45_s20, %s45_s20 }
  0x30   :  { %p5581_p7 = scmp.lt.s32.totalorder %s5579_s21, %s5575_s0 }
  0x32   :  { %p5582_p8 = por %p5581_p7, %p5580_p6 }
  0x34   :  { %p5583_p9 = pnand %p5582_p8, %p5576_p5 }
  0x36   :  { %5586 = shalt.err (!%p5583_p9)
}
  0x37   :  { %47 = dma.hbm_to_vmem [thread:$0]  %s7747_s2, 16, %s45_s20, [#allocation7]  }
  0x38   :  { %s5587_s10 = scalar_lea.hbm %s7748_s3, 320 }
  0x39   :  { %p5588_p10 = scmp.ne.s32.totalorder %s7748_s3, %s5587_s10  ;;  %p5591_p11 = scmp.lt.u32.totalorder %s5587_s10, %s7748_s3 }
  0x3b   :  { %p5593_p12 = pnand %p5591_p11, %p5588_p10 }
  0x3d   :  { %5596 = shalt.err (!%p5593_p12)
}
  0x3e   :  { %s5597_s15 = scalar_lea.vmem %s5743_s23, 320  ;;  %p5602_p0 = scmp.lt.s32.totalorder %s5743_s23, %s5743_s23 }
  0x3f   :  { %p5598_p13 = scmp.ne.s32.totalorder %s5743_s23, %s5597_s15  ;;  %p5603_p1 = scmp.lt.s32.totalorder %s5597_s15, %s5597_s15 }
  0x41   :  { %p5604_p2 = por %p5603_p1, %p5602_p0 }
  0x43   :  { %p5605_p3 = pnand %p5604_p2, %p5598_p13 }
  0x45   :  { %5608 = shalt.err (!%p5605_p3)
}
  0x46   :  { %59 = dma.hbm_to_vmem [thread:$0]  %s7748_s3, 320, %s5743_s23, [#allocation10], %s5665_s1, %s5665_s1, %s5666_s16  }
  0x47   :  { %5653 = dma.done.wait [#allocation4], 4096  }
  0x48   :  { %5654 = vsyncadd [#allocation4], 4294963200 }
  0x49   :  { %5655 = dma.done.wait [#allocation7], 32  }
  0x4a   :  { %5656 = vsyncadd [#allocation7], 4294967264 }
  0x4b   :  { %5657 = dma.done.wait [#allocation10], 320  }
  0x4c   :  { %5658 = vsyncadd [#allocation10], 4294966976  ;;  %vm407_vm0 = vcmask 27648   ;;  %vm410_vm1 = vcmask 24576   ;;  %v5669_v0 = vmov 0   ;;  %v5235_v5 = vld [vmem:[#allocation3 + $0x8] sm:$0xff]  }
  0x4d   :  { %408 = vst.msk [vmem:[#allocation2] sm:$0xf] %vm407_vm0, %v5669_v0  ;;  %409 = vst.msk [vmem:[#allocation2 + $0x4] sm:$0xf] %vm407_vm0, %v5669_v0  ;;  %vm423_vm2 = vsmask.f32 256  ;;  %v5113_v8 = vunpack.c.l.bf16 %v5235_v5  ;;  %v5114_v9 = vunpack.c.h.bf16 %v5235_v5 }
  0x4e   :  { %411 = vst.msk [vmem:[#allocation2 + $0x8] sm:$0x1] %vm410_vm1, %v5669_v0  ;;  %414 = vst.msk [vmem:[#allocation2 + $0xe0] sm:$0x1] %vm410_vm1, %v5669_v0  ;;  %vm533_vm3 = vsmask.f32 7938 }
  0x4f   :  { %412 = vst.msk [vmem:[#allocation2 + $0xd8] sm:$0xf] %vm407_vm0, %v5669_v0  ;;  %413 = vst.msk [vmem:[#allocation2 + $0xdc] sm:$0xf] %vm407_vm0, %v5669_v0  ;;  %v5801_v3 = vld [vmem:[#allocation6] ss:$0 sm:$0xff] }
  0x50   :  { %416 = vst.msk [vmem:[#allocation2 + $0xcc] sm:$0xf] %vm407_vm0, %v5669_v0  ;;  %417 = vst.msk [vmem:[#allocation2 + $0xd0] sm:$0xf] %vm407_vm0, %v5669_v0  ;;  %v5803_v4 = vld [vmem:[#allocation8] ss:$0 sm:$0xff]  ;;  %v211_v15 = vmul.f32 %v5113_v8, %v5801_v3  ;;  %v212_v16 = vmul.f32 %v5114_v9, %v5801_v3 }
  0x51   :  { %418 = vst.msk [vmem:[#allocation2 + $0xd4] sm:$0x1] %vm410_vm1, %v5669_v0  ;;  %421 = vst.msk [vmem:[#allocation2 + $0x1ac] sm:$0x1] %vm410_vm1, %v5669_v0  ;;  %v431_v12 = vld [vmem:[#allocation2 + $0x18] sm:$0x1] }
  0x52   :  { %419 = vst.msk [vmem:[#allocation2 + $0x1a4] sm:$0xf] %vm407_vm0, %v5669_v0  ;;  %420 = vst.msk [vmem:[#allocation2 + $0x1a8] sm:$0xf] %vm407_vm0, %v5669_v0  ;;  %v5108_v13 = vld [vmem:[#allocation3] sm:$0xff]   ;;  %v5237_v14 = vld [vmem:[#allocation3 + $0x18] sm:$0xff]   ;;  %v281_v27 = vadd.f32 %v5803_v4, %v211_v15  ;;  %v282_v28 = vadd.f32 %v5803_v4, %v212_v16 }
  0x53   :  { %vm5791_vm4 = vmand %vm410_vm1, %vm423_vm2  ;;  %v5109_v18 = vunpack.c.l.bf16 %v5108_v13  ;;  %v428_v19 = vld [vmem:[#allocation2 + $0xc] sm:$0x1]  ;;  %v538_v20 = vld [vmem:[#allocation2 + $0x14] sm:$0x1]  ;;  %vm2517_vm6 = vcmask 1046528   ;;  %v5110_v21 = vunpack.c.h.bf16 %v5108_v13  ;;  %v5121_v25 = vunpack.c.l.bf16 %v5237_v14  ;;  %s5670_s3 = smov 8  }
  0x54   :  { %vm5797_vm5 = vmand %vm410_vm1, %vm533_vm3  ;;  %v425_v6 = vld [vmem:[#allocation2] sm:$0x1]  ;;  %v432_v17 = vsel %vm5791_vm4, 0, %v431_v12  ;;  %vm835_vm7 = vsmask.f32 4368  ;;  %v429_v22 = vsel %vm5791_vm4, 0, %v428_v19  ;;  %v5122_v34 = vunpack.c.h.bf16 %v5237_v14 }
  0x55   :  { %v535_v7 = vld [vmem:[#allocation2 + $0x8] sm:$0x1]  ;;  %v426_v10 = vsel %vm5791_vm4, 0, %v425_v6  ;;  %433 = vst [vmem:[#allocation2 + $0x18] sm:$0x1] %v432_v17  ;;  %v539_v23 = vsel %vm5797_vm5, 0, %v538_v20  ;;  %v209_v29 = vmul.f32 %v5109_v18, %v5801_v3  ;;  %v210_v33 = vmul.f32 %v5110_v21, %v5801_v3  ;;  %vm5843_vm9 = vmand %vm407_vm0, %vm533_vm3 }
  0x56   :  { %v536_v11 = vsel %vm5797_vm5, 0, %v535_v7  ;;  %427 = vst [vmem:[#allocation2] sm:$0x1] %v426_v10  ;;  %v541_v24 = vld [vmem:[#allocation2 + $0x20] sm:$0x1]  ;;  %v215_v35 = vmul.f32 %v5121_v25, %v5801_v3  ;;  %v345_v37 = vmax.f32 %v281_v27, 0.0  ;;  %v216_v43 = vmul.f32 %v5122_v34, %v5801_v3  ;;  %vm5850_vm10 = vmor %vm423_vm2, %vm835_vm7 }
  0x57   :  { %537 = vst [vmem:[#allocation2 + $0x8] sm:$0x1] %v536_v11  ;;  %v437_v26 = vld [vmem:[#allocation2 + $0x30] sm:$0x1]  ;;  %430 = vst [vmem:[#allocation2 + $0xc] sm:$0x1] %v429_v22  ;;  %v279_v39 = vadd.f32 %v5803_v4, %v209_v29  ;;  %v280_v42 = vadd.f32 %v5803_v4, %v210_v33 }
  0x58   :  { %540 = vst [vmem:[#allocation2 + $0x14] sm:$0x1] %v539_v23  ;;  %v542_v30 = vsel %vm5797_vm5, 0, %v541_v24  ;;  %v547_v31 = vld [vmem:[#allocation2 + $0x38] sm:$0x1]  ;;  %v5822_v32 = vld [vmem:[#allocation3 + $0x10] sm:$0xff]   ;;  %v285_v44 = vadd.f32 %v5803_v4, %v215_v35  ;;  %v4981_v46 = vpack.c.bf16 %v345_v37, %v345_v37  ;;  %v286_v52 = vadd.f32 %v5803_v4, %v216_v43 }
  0x59   :  { %543 = vst [vmem:[#allocation2 + $0x20] sm:$0x1] %v542_v30  ;;  %v438_v36 = vsel %vm5791_vm4, 0, %v437_v26  ;;  %vm2068_vm8 = vsmask.f32 7424  ;;  %v346_v38 = vmax.f32 %v282_v28, 0.0  ;;  %v5117_v45 = vunpack.c.l.bf16 %v5822_v32 }
  0x5a   :  { %439 = vst [vmem:[#allocation2 + $0x30] sm:$0x1] %v438_v36  ;;  %v548_v40 = vsel %vm5797_vm5, 0, %v547_v31  ;;  %v5831_v41 = vld [vmem:[#allocation3 + $0x28] sm:$0xff]   ;;  %v343_v48 = vmax.f32 %v279_v39, 0.0  ;;  %v5118_v49 = vunpack.c.h.bf16 %v5822_v32  ;;  %v344_v51 = vmax.f32 %v280_v42, 0.0 }
  0x5b   :  { %549 = vst [vmem:[#allocation2 + $0x38] sm:$0x1] %v548_v40  ;;  %v4982_v47 = vpack.c.bf16 %v346_v38, %v346_v38  ;;  %v213_v53 = vmul.f32 %v5117_v45, %v5801_v3  ;;  %v5129_v54 = vunpack.c.l.bf16 %v5831_v41  ;;  %v855_v56 = vshrl.u32 %v4981_v46, 16  ;;  %v434_v24 = vld [vmem:[#allocation2 + $0x24] sm:$0x1]  ;;  %s5671_s18 = smov 12  }
  0x5c   :  { %v858_v57 = vshll.u32 %v4981_v46, 16  ;;  %v4979_v59 = vpack.c.bf16 %v343_v48, %v343_v48  ;;  %v1487_v10 = vld [vmem:[#allocation2 + $0x18] sm:$0xf]  ;;  %v4980_v11 = vpack.c.bf16 %v344_v51, %v344_v51  ;;  %v349_v29 = vmax.f32 %v285_v44, 0.0  ;;  %v544_v38 = vld [vmem:[#allocation2 + $0x2c] sm:$0x1] }
  0x5d   :  { %v5395_v50 = vld [vmem:[#allocation2] sm:$0xff]   ;;  %v863_v58 = vshrl.u32 %v4982_v47, 16  ;;  %v866_v63 = vshll.u32 %v4982_v47, 16  ;;  %v857_v6 = vrot.slane %v855_v56, 7  ;;  %v350_v36 = vmax.f32 %v286_v52, 0.0  ;;  %s5672_s19 = smov 16  }
  0x5e   :  { %v5396_v55 = vld [vmem:[#allocation2 + $0x8] ss:$0 sps:$4 sm:$0x11]   ;;  %v2518_v60 = vrot.slane %v5395_v50, 1  ;;  %v2070_v61 = vshrl.u32 %v5395_v50, 16  ;;  %v2072_v62 = vshll.u32 %v5395_v50, 16  ;;  %v4985_v37 = vpack.c.bf16 %v349_v29, %v349_v29 }
  0x5f   :  { %v2519_v0 = vrot.slane %v5396_v55, 1  ;;  %v2077_v5 = vshll.u32 %v5396_v55, 16  ;;  %v865_v7 = vrot.slane %v863_v58, 7  ;;  %v838_v12 = vshrl.u32 %v4979_v59, 16  ;;  %v1480_v27 = vld [vmem:[#allocation2 + $0xc] sm:$0xf] }
  0x60   :  { %v2074_v8 = vrot.slane %v2072_v62, 1  ;;  %v841_v13 = vshll.u32 %v4979_v59, 16  ;;  %v860_v17 = vor.u32 %v858_v57, %v857_v6  ;;  %v861_v18 = vrot.slane %v857_v6, 4  ;;  %v1491_v23 = vld [vmem:[#allocation2 + $0x20] sm:$0x1]  ;;  %s5673_s20 = smov 20  }
  0x61   :  { %v2520_v14 = vsel %vm2517_vm6, %v2518_v60, %v2519_v0  ;;  %v2079_v15 = vrot.slane %v2077_v5, 1  ;;  %v868_v20 = vor.u32 %v866_v63, %v865_v7  ;;  %v840_v21 = vrot.slane %v838_v12, 7  ;;  %v1484_v40 = vld [vmem:[#allocation2 + $0x14] sm:$0x1]  ;;  %v1501_v59 = vld [vmem:[#allocation2 + $0x30] sm:$0xf] }
  0x62   :  { %2614 = vrot.lane.b32.xlu0 %v2520_v14, %s5670_s3  ;;  %v2075_v19 = vor.u32 %v2074_v8, %v2070_v61  ;;  %v846_v22 = vshrl.u32 %v4980_v11, 16  ;;  %v1488_v25 = vsel %vm5843_vm9, %v860_v17, %v1487_v10  ;;  %v849_v26 = vshll.u32 %v4980_v11, 16  ;;  %v1505_v6 = vld [vmem:[#allocation2 + $0x38] sm:$0x1]  ;;  %v5883_v14 = vld [vmem:[#allocation3 + $0x20] sm:$0xff]   ;;  %s5674_s22 = smov 24  }
  0x63   :  { %v870_v28 = vrot.slane %v865_v7, 4  ;;  %v869_v31 = vsel %vm5850_vm10, %v861_v18, %v868_v20  ;;  %1489 = vst [vmem:[#allocation2 + $0x18] sm:$0xf] %v1488_v25  ;;  %v843_v32 = vor.u32 %v841_v13, %v840_v21  ;;  %v844_v33 = vrot.slane %v840_v21, 4  ;;  %s5675_s23 = smov 28   ;;  %s5676_s24 = smov 32  }
  0x64   :  { %v2080_v30 = vsel %vm2068_vm8, %v2075_v19, %v2079_v15  ;;  %1490 = vst.msk [vmem:[#allocation2 + $0x1c] sm:$0xf] %vm407_vm0, %v869_v31  ;;  %v848_v34 = vrot.slane %v846_v22, 7  ;;  %v214_v42 = vmul.f32 %v5118_v49, %v5801_v3  ;;  %v283_v43 = vadd.f32 %v5803_v4, %v213_v53  ;;  %s5677_s25 = smov [#allocation11]  }
  0x65   :  { %v1492_v35 = vsel %vm5791_vm4, %v870_v28, %v1491_v23  ;;  %v1481_v39 = vsel %vm5843_vm9, %v843_v32, %v1480_v27  ;;  %v435_v44 = vsel %vm5791_vm4, 0, %v434_v24  ;;  %v4986_v47 = vpack.c.bf16 %v350_v36, %v350_v36  ;;  %v443_v32 = vld [vmem:[#allocation2 + $0x48] sm:$0x1]  ;;  %v553_v36 = vld [vmem:[#allocation2 + $0x50] sm:$0x1]  ;;  %s4714_s26 = sshll.u32 %s5677_s25, 4  ;;  %s4715_s26 = int_to_ptr.vmem [resolvable:$true] %s4714_s26 }
  0x66   :  { %2453 = vrot.lane.b32.xlu0 %v2080_v30, %s5666_s16  ;;  %1493 = vst [vmem:[#allocation2 + $0x20] sm:$0x1] %v1492_v35  ;;  %v851_v45 = vor.u32 %v849_v26, %v848_v34  ;;  %1482 = vst [vmem:[#allocation2 + $0xc] sm:$0xf] %v1481_v39  ;;  %v853_v46 = vrot.slane %v848_v34, 4  ;;  %v889_v48 = vshrl.u32 %v4985_v37, 16  ;;  %v284_v51 = vadd.f32 %v5803_v4, %v214_v42  ;;  %p5614_p5 = scmp.lt.s32.totalorder %s4715_s26, %s4715_s26 }
  0x67   :  { %436 = vst [vmem:[#allocation2 + $0x24] sm:$0x1] %v435_v44  ;;  %v892_v50 = vshll.u32 %v4985_v37, 16  ;;  %v347_v52 = vmax.f32 %v283_v43, 0.0  ;;  %v545_v55 = vsel %vm5797_vm5, 0, %v544_v38  ;;  %v897_v57 = vshrl.u32 %v4986_v47, 16 }
  0x68   :  { %v852_v49 = vsel %vm5850_vm10, %v844_v33, %v851_v45  ;;  %v1485_v53 = vsel %vm5791_vm4, %v853_v46, %v1484_v40  ;;  %v891_v56 = vrot.slane %v889_v48, 7  ;;  %546 = vst [vmem:[#allocation2 + $0x2c] sm:$0x1] %v545_v55  ;;  %v900_v58 = vshll.u32 %v4986_v47, 16  ;;  %s5609_s27 = scalar_lea.vmem %s4715_s26, 4096 }
  0x69   :  { %1483 = vst.msk [vmem:[#allocation2 + $0x10] sm:$0xf] %vm407_vm0, %v852_v49  ;;  %1486 = vst [vmem:[#allocation2 + $0x14] sm:$0x1] %v1485_v53  ;;  %v348_v60 = vmax.f32 %v284_v51, 0.0  ;;  %v4983_v61 = vpack.c.bf16 %v347_v52, %v347_v52  ;;  %v5130_v62 = vunpack.c.h.bf16 %v5831_v41  ;;  %v899_v5 = vrot.slane %v897_v57, 7  ;;  %p5610_p4 = scmp.ne.s32.totalorder %s4715_s26, %s5609_s27  ;;  %p5615_p6 = scmp.lt.s32.totalorder %s5609_s27, %s5609_s27 }
  0x6a   :  { %v894_v63 = vor.u32 %v892_v50, %v891_v56  ;;  %v895_v0 = vrot.slane %v891_v56, 4  ;;  %v219_v7 = vmul.f32 %v5129_v54, %v5801_v3  ;;  %v5125_v37 = vunpack.c.l.bf16 %v5883_v14  ;;  %v440_v51 = vld [vmem:[#allocation2 + $0x3c] sm:$0x1] }
  0x6b   :  { %v5397_v8 = vld [vmem:[#allocation2 + $0x18] sm:$0xff]   ;;  %v4984_v10 = vpack.c.bf16 %v348_v60, %v348_v60  ;;  %v872_v11 = vshrl.u32 %v4983_v61, 16  ;;  %v875_v12 = vshll.u32 %v4983_v61, 16  ;;  %v220_v13 = vmul.f32 %v5130_v62, %v5801_v3  ;;  %v5910_v60 = vld [vmem:[#allocation3 + $0x38] sm:$0xff]   ;;  %p5616_p7 = por %p5615_p6, %p5614_p5 }
  0x6c   :  { %v902_v17 = vor.u32 %v900_v58, %v899_v5  ;;  %v904_v18 = vrot.slane %v899_v5, 4  ;;  %v1502_v19 = vsel %vm5843_vm9, %v894_v63, %v1501_v59  ;;  %v289_v20 = vadd.f32 %v5803_v4, %v219_v7  ;;  %2690 = vrot.lane.b32.xlu1 %v5397_v8, %s5671_s18  ;;  %v550_v5 = vld [vmem:[#allocation2 + $0x44] sm:$0x1] }
  0x6d   :  { %v5400_v15 = vld [vmem:[#allocation2 + $0x20] ss:$0 sps:$4 sm:$0x11]   ;;  %v2094_v41 = vshrl.u32 %v5397_v8, 16  ;;  %v2096_v54 = vshll.u32 %v5397_v8, 16  ;;  %v874_v21 = vrot.slane %v872_v11, 7  ;;  %v290_v35 = vadd.f32 %v5803_v4, %v220_v13  ;;  %p5617_p8 = pnand %p5616_p7, %p5610_p4 }
  0x6e   :  { %1503 = vst [vmem:[#allocation2 + $0x30] sm:$0xf] %v1502_v19  ;;  %v880_v22 = vshrl.u32 %v4984_v10, 16  ;;  %v2101_v23 = vshll.u32 %v5400_v15, 16  ;;  %v903_v24 = vsel %vm5850_vm10, %v895_v0, %v902_v17  ;;  %v1506_v25 = vsel %vm5791_vm4, %v904_v18, %v1505_v6  ;;  %v1494_v27 = vld [vmem:[#allocation2 + $0x24] sm:$0xf] }
  0x6f   :  { %v883_v26 = vshll.u32 %v4984_v10, 16  ;;  %v2098_v28 = vrot.slane %v2096_v54, 1  ;;  %1504 = vst.msk [vmem:[#allocation2 + $0x34] sm:$0xf] %vm407_vm0, %v903_v24  ;;  %1507 = vst [vmem:[#allocation2 + $0x38] sm:$0x1] %v1506_v25  ;;  %v877_v29 = vor.u32 %v875_v12, %v874_v21  ;;  %v5126_v38 = vunpack.c.h.bf16 %v5883_v14 }
  0x70   :  { %v878_v30 = vrot.slane %v874_v21, 4  ;;  %v882_v31 = vrot.slane %v880_v22, 7  ;;  %v5398_v33 = vld [vmem:[#allocation2 + $0xc] sm:$0xff]   ;;  %v2103_v34 = vrot.slane %v2101_v23, 1  ;;  %v353_v50 = vmax.f32 %v289_v20, 0.0 }
  0x71   :  { %v5399_v39 = vld [vmem:[#allocation2 + $0x14] ss:$0 sps:$4 sm:$0x11]   ;;  %v2099_v40 = vor.u32 %v2098_v28, %v2094_v41  ;;  %v1495_v44 = vsel %vm5843_vm9, %v877_v29, %v1494_v27  ;;  %v1498_v45 = vld [vmem:[#allocation2 + $0x2c] sm:$0x1]  ;;  %2688 = vrot.lane.b32.xlu0 %v5398_v33, %s5671_s18  ;;  %v2521_v46 = vrot.slane %v5398_v33, 1  ;;  %v217_v10 = vmul.f32 %v5125_v37, %v5801_v3 }
  0x72   :  { %v885_v42 = vor.u32 %v883_v26, %v882_v31  ;;  %v887_v43 = vrot.slane %v882_v31, 4  ;;  %v2082_v47 = vshrl.u32 %v5398_v33, 16  ;;  %v2084_v48 = vshll.u32 %v5398_v33, 16  ;;  %1496 = vst [vmem:[#allocation2 + $0x24] sm:$0xf] %v1495_v44 }
  0x73   :  { %v2522_v52 = vrot.slane %v5399_v39, 1  ;;  %v2089_v55 = vshll.u32 %v5399_v39, 16  ;;  %v5901_v49 = vsel %vm2068_vm8, %v2099_v40, %v2103_v34  ;;  %v354_v58 = vmax.f32 %v290_v35, 0.0 }
  0x74   :  { %v886_v53 = vsel %vm5850_vm10, %v878_v30, %v885_v42  ;;  %v2086_v56 = vrot.slane %v2084_v48, 1  ;;  %v1499_v57 = vsel %vm5791_vm4, %v887_v43, %v1498_v45  ;;  %v444_v59 = vsel %vm5791_vm4, 0, %v443_v32 }
  0x75   :  { %1497 = vst.msk [vmem:[#allocation2 + $0x28] sm:$0xf] %vm407_vm0, %v886_v53  ;;  %v5913_v61 = vsel %vm2517_vm6, %v2521_v46, %v2522_v52  ;;  %v2091_v62 = vrot.slane %v2089_v55, 1  ;;  %1500 = vst [vmem:[#allocation2 + $0x2c] sm:$0x1] %v1499_v57  ;;  %v554_v63 = vsel %vm5797_vm5, 0, %v553_v36  ;;  %v4989_v0 = vpack.c.bf16 %v353_v50, %v353_v50 }
  0x76   :  { %445 = vst [vmem:[#allocation2 + $0x48] sm:$0x1] %v444_v59  ;;  %2616 = vrot.lane.b32.xlu1 %v5913_v61, %s5670_s3  ;;  %v2087_v6 = vor.u32 %v2086_v56, %v2082_v47  ;;  %v5401_v7 = vld [vmem:[#allocation2 + $0x30] sm:$0xff]   ;;  %555 = vst [vmem:[#allocation2 + $0x50] sm:$0x1] %v554_v63  ;;  %v4990_v8 = vpack.c.bf16 %v354_v58, %v354_v58  ;;  %v218_v11 = vmul.f32 %v5126_v38, %v5801_v3  ;;  %v5240_v57 = vld [vmem:[#allocation3 + $0x30] sm:$0xff]  }
  0x77   :  { %v5402_v12 = vld [vmem:[#allocation2 + $0x38] ss:$0 sps:$4 sm:$0x11]   ;;  %v923_v13 = vshrl.u32 %v4989_v0, 16  ;;  %v926_v14 = vshll.u32 %v4989_v0, 16  ;;  %v441_v15 = vsel %vm5791_vm4, 0, %v440_v51  ;;  %v5137_v17 = vunpack.c.l.bf16 %v5910_v60 }
  0x78   :  { %v5925_v18 = vsel %vm2068_vm8, %v2087_v6, %v2091_v62  ;;  %v2118_v19 = vshrl.u32 %v5401_v7, 16  ;;  %v2120_v20 = vshll.u32 %v5401_v7, 16  ;;  %v931_v41 = vshrl.u32 %v4990_v8, 16  ;;  %442 = vst [vmem:[#allocation2 + $0x3c] sm:$0x1] %v441_v15 }
  0x79   :  { %2455 = vrot.lane.b32.xlu0 %v5925_v18, %s5666_s16  ;;  %v2125_v54 = vshll.u32 %v5402_v12, 16  ;;  %v925_v21 = vrot.slane %v923_v13, 7  ;;  %v934_v22 = vshll.u32 %v4990_v8, 16  ;;  %v287_v23 = vadd.f32 %v5803_v4, %v217_v10  ;;  %v449_v50 = vld [vmem:[#allocation2 + $0x60] sm:$0x1] }
  0x7a   :  { %2457 = vrot.lane.b32.xlu1 %v5901_v49, %s5666_s16  ;;  %v2122_v24 = vrot.slane %v2120_v20, 1  ;;  %v933_v25 = vrot.slane %v931_v41, 7  ;;  %v288_v26 = vadd.f32 %v5803_v4, %v218_v11  ;;  %v551_v27 = vsel %vm5797_vm5, 0, %v550_v5  ;;  %v559_v56 = vld [vmem:[#allocation2 + $0x68] sm:$0x1]  ;;  %v5243_v20 = vld [vmem:[#allocation3 + $0x48] sm:$0xff]  }
  0x7b   :  { %v2127_v28 = vrot.slane %v2125_v54, 1  ;;  %v928_v30 = vor.u32 %v926_v14, %v925_v21  ;;  %v929_v31 = vrot.slane %v925_v21, 4  ;;  %v351_v32 = vmax.f32 %v287_v23, 0.0  ;;  %552 = vst [vmem:[#allocation2 + $0x44] sm:$0x1] %v551_v27 }
  0x7c   :  { %v5403_v29 = vld [vmem:[#allocation2 + $0x24] sm:$0xff]   ;;  %v2123_v33 = vor.u32 %v2122_v24, %v2118_v19  ;;  %v5404_v34 = vld [vmem:[#allocation2 + $0x2c] ss:$0 sps:$4 sm:$0x11]   ;;  %v936_v35 = vor.u32 %v934_v22, %v933_v25  ;;  %v938_v36 = vrot.slane %v933_v25, 4  ;;  %v5138_v37 = vunpack.c.h.bf16 %v5910_v60 }
  0x7d   :  { %v2106_v38 = vshrl.u32 %v5403_v29, 16  ;;  %v2108_v39 = vshll.u32 %v5403_v29, 16  ;;  %v1515_v40 = vld [vmem:[#allocation2 + $0x48] sm:$0xf]  ;;  %v1519_v42 = vld [vmem:[#allocation2 + $0x50] sm:$0x1]  ;;  %v4987_v43 = vpack.c.bf16 %v351_v32, %v351_v32  ;;  %v223_v44 = vmul.f32 %v5137_v17, %v5801_v3 }
  0x7e   :  { %v5938_v45 = vsel %vm2068_vm8, %v2123_v33, %v2127_v28  ;;  %v2113_v46 = vshll.u32 %v5404_v34, 16  ;;  %v937_v47 = vsel %vm5850_vm10, %v929_v31, %v936_v35  ;;  %v1516_v48 = vsel %vm5843_vm9, %v928_v30, %v1515_v40  ;;  %v446_v13 = vld [vmem:[#allocation2 + $0x54] sm:$0x1] }
  0x7f   :  { %2461 = vrot.lane.b32.xlu0 %v5938_v45, %s5666_s16  ;;  %v2110_v51 = vrot.slane %v2108_v39, 1  ;;  %1517 = vst [vmem:[#allocation2 + $0x48] sm:$0xf] %v1516_v48  ;;  %1518 = vst.msk [vmem:[#allocation2 + $0x4c] sm:$0xf] %vm407_vm0, %v937_v47  ;;  %v1520_v52 = vsel %vm5791_vm4, %v938_v36, %v1519_v42  ;;  %v352_v55 = vmax.f32 %v288_v26, 0.0  ;;  %v224_v60 = vmul.f32 %v5138_v37, %v5801_v3 }
  0x80   :  { %v906_v53 = vshrl.u32 %v4987_v43, 16  ;;  %v2115_v58 = vrot.slane %v2113_v46, 1  ;;  %1521 = vst [vmem:[#allocation2 + $0x50] sm:$0x1] %v1520_v52  ;;  %v909_v59 = vshll.u32 %v4987_v43, 16  ;;  %v293_v62 = vadd.f32 %v5803_v4, %v223_v44 }
  0x81   :  { %v2111_v63 = vor.u32 %v2110_v51, %v2106_v38  ;;  %v4988_v0 = vpack.c.bf16 %v352_v55, %v352_v55  ;;  %v450_v6 = vsel %vm5791_vm4, 0, %v449_v50  ;;  %v1508_v7 = vld [vmem:[#allocation2 + $0x3c] sm:$0xf]  ;;  %v294_v8 = vadd.f32 %v5803_v4, %v224_v60  ;;  %v455_v60 = vld [vmem:[#allocation2 + $0x78] sm:$0x1] }
  0x82   :  { %v908_v5 = vrot.slane %v906_v53, 7  ;;  %v357_v10 = vmax.f32 %v293_v62, 0.0  ;;  %451 = vst [vmem:[#allocation2 + $0x60] sm:$0x1] %v450_v6  ;;  %v560_v11 = vsel %vm5797_vm5, 0, %v559_v56  ;;  %v5133_v12 = vunpack.c.l.bf16 %v5240_v57 }
  0x83   :  { %v5957_v14 = vsel %vm2068_vm8, %v2111_v63, %v2115_v58  ;;  %v914_v19 = vshrl.u32 %v4988_v0, 16  ;;  %561 = vst [vmem:[#allocation2 + $0x68] sm:$0x1] %v560_v11  ;;  %v917_v41 = vshll.u32 %v4988_v0, 16  ;;  %v358_v54 = vmax.f32 %v294_v8, 0.0 }
  0x84   :  { %v911_v15 = vor.u32 %v909_v59, %v908_v5  ;;  %v912_v17 = vrot.slane %v908_v5, 4  ;;  %2459 = vrot.lane.b32.xlu1 %v5957_v14, %s5666_s16  ;;  %v4993_v21 = vpack.c.bf16 %v357_v10, %v357_v10  ;;  %v5134_v22 = vunpack.c.h.bf16 %v5240_v57  ;;  %v1512_v25 = vld [vmem:[#allocation2 + $0x44] sm:$0x1]  ;;  %v556_v50 = vld [vmem:[#allocation2 + $0x5c] sm:$0x1] }
  0x85   :  { %v916_v23 = vrot.slane %v914_v19, 7  ;;  %v221_v26 = vmul.f32 %v5133_v12, %v5801_v3  ;;  %v447_v27 = vsel %vm5791_vm4, 0, %v446_v13  ;;  %v4994_v29 = vpack.c.bf16 %v358_v54, %v358_v54  ;;  %v565_v12 = vld [vmem:[#allocation2 + $0x80] sm:$0x1] }
  0x86   :  { %v1509_v24 = vsel %vm5843_vm9, %v911_v15, %v1508_v7  ;;  %v5405_v28 = vld [vmem:[#allocation2 + $0x48] sm:$0xff]   ;;  %v957_v30 = vshrl.u32 %v4993_v21, 16  ;;  %v222_v31 = vmul.f32 %v5134_v22, %v5801_v3  ;;  %448 = vst [vmem:[#allocation2 + $0x54] sm:$0x1] %v447_v27  ;;  %v5145_v32 = vunpack.c.l.bf16 %v5243_v20 }
  0x87   :  { %1510 = vst [vmem:[#allocation2 + $0x3c] sm:$0xf] %v1509_v24  ;;  %v5406_v33 = vld [vmem:[#allocation2 + $0x50] ss:$0 sps:$4 sm:$0x11]   ;;  %v919_v34 = vor.u32 %v917_v41, %v916_v23  ;;  %v921_v35 = vrot.slane %v916_v23, 4  ;;  %v291_v36 = vadd.f32 %v5803_v4, %v221_v26  ;;  %v5146_v37 = vunpack.c.h.bf16 %v5243_v20 }
  0x88   :  { %v2142_v38 = vshrl.u32 %v5405_v28, 16  ;;  %v2144_v39 = vshll.u32 %v5405_v28, 16  ;;  %v959_v40 = vrot.slane %v957_v30, 7  ;;  %v960_v42 = vshll.u32 %v4993_v21, 16  ;;  %v5242_v20 = vld [vmem:[#allocation3 + $0x40] sm:$0xff]   ;;  %v5986_v41 = vld [vmem:[#allocation3 + $0x58] sm:$0xff]  }
  0x89   :  { %v2149_v43 = vshll.u32 %v5406_v33, 16  ;;  %v920_v44 = vsel %vm5850_vm10, %v912_v17, %v919_v34  ;;  %v1513_v46 = vsel %vm5791_vm4, %v921_v35, %v1512_v25  ;;  %v965_v47 = vshrl.u32 %v4994_v29, 16  ;;  %v1529_v48 = vld [vmem:[#allocation2 + $0x60] sm:$0xf] }
  0x8a   :  { %v2146_v51 = vrot.slane %v2144_v39, 1  ;;  %1511 = vst.msk [vmem:[#allocation2 + $0x40] sm:$0xf] %vm407_vm0, %v920_v44  ;;  %1514 = vst [vmem:[#allocation2 + $0x44] sm:$0x1] %v1513_v46  ;;  %v962_v52 = vor.u32 %v960_v42, %v959_v40  ;;  %v963_v55 = vrot.slane %v959_v40, 4  ;;  %v292_v58 = vadd.f32 %v5803_v4, %v222_v31 }
  0x8b   :  { %v968_v53 = vshll.u32 %v4994_v29, 16  ;;  %v2151_v56 = vrot.slane %v2149_v43, 1  ;;  %v967_v57 = vrot.slane %v965_v47, 7  ;;  %v355_v59 = vmax.f32 %v291_v36, 0.0  ;;  %v1533_v0 = vld [vmem:[#allocation2 + $0x68] sm:$0x1] }
  0x8c   :  { %v2147_v62 = vor.u32 %v2146_v51, %v2142_v38  ;;  %v1530_v63 = vsel %vm5843_vm9, %v962_v52, %v1529_v48  ;;  %v557_v5 = vsel %vm5797_vm5, 0, %v556_v50  ;;  %v227_v6 = vmul.f32 %v5145_v32, %v5801_v3 }
  0x8d   :  { %v970_v7 = vor.u32 %v968_v53, %v967_v57  ;;  %v972_v8 = vrot.slane %v967_v57, 4  ;;  %1531 = vst [vmem:[#allocation2 + $0x60] sm:$0xf] %v1530_v63  ;;  %v356_v10 = vmax.f32 %v292_v58, 0.0  ;;  %558 = vst [vmem:[#allocation2 + $0x5c] sm:$0x1] %v557_v5  ;;  %v4991_v11 = vpack.c.bf16 %v355_v59, %v355_v59 }
  0x8e   :  { %v5980_v13 = vsel %vm2068_vm8, %v2147_v62, %v2151_v56  ;;  %v228_v15 = vmul.f32 %v5146_v37, %v5801_v3  ;;  %v297_v17 = vadd.f32 %v5803_v4, %v227_v6  ;;  %v456_v19 = vsel %vm5791_vm4, 0, %v455_v60  ;;  %v1522_v25 = vld [vmem:[#allocation2 + $0x54] sm:$0xf] }
  0x8f   :  { %2465 = vrot.lane.b32.xlu0 %v5980_v13, %s5666_s16  ;;  %v971_v54 = vsel %vm5850_vm10, %v963_v55, %v970_v7  ;;  %v1534_v21 = vsel %vm5791_vm4, %v972_v8, %v1533_v0  ;;  %v4992_v22 = vpack.c.bf16 %v356_v10, %v356_v10  ;;  %v940_v23 = vshrl.u32 %v4991_v11, 16  ;;  %457 = vst [vmem:[#allocation2 + $0x78] sm:$0x1] %v456_v19 }
  0x90   :  { %1532 = vst.msk [vmem:[#allocation2 + $0x64] sm:$0xf] %vm407_vm0, %v971_v54  ;;  %1535 = vst [vmem:[#allocation2 + $0x68] sm:$0x1] %v1534_v21  ;;  %v943_v24 = vshll.u32 %v4991_v11, 16  ;;  %v298_v26 = vadd.f32 %v5803_v4, %v228_v15  ;;  %v361_v27 = vmax.f32 %v297_v17, 0.0  ;;  %v5141_v31 = vunpack.c.l.bf16 %v5242_v20 }
  0x91   :  { %v566_v28 = vsel %vm5797_vm5, 0, %v565_v12  ;;  %v5998_v29 = vld [vmem:[#allocation2 + $0x3c] sm:$0xff]   ;;  %v942_v30 = vrot.slane %v940_v23, 7  ;;  %v5142_v32 = vunpack.c.h.bf16 %v5242_v20  ;;  %v5153_v33 = vunpack.c.l.bf16 %v5986_v41  ;;  %v6001_v34 = vld [vmem:[#allocation2 + $0x44] ss:$0 sps:$4 sm:$0x11]  }
  0x92   :  { %567 = vst [vmem:[#allocation2 + $0x80] sm:$0x1] %v566_v28  ;;  %v948_v35 = vshrl.u32 %v4992_v22, 16  ;;  %v951_v36 = vshll.u32 %v4992_v22, 16  ;;  %v362_v37 = vmax.f32 %v298_v26, 0.0  ;;  %v4997_v38 = vpack.c.bf16 %v361_v27, %v361_v27 }
  0x93   :  { %v2130_v39 = vshrl.u32 %v5998_v29, 16  ;;  %v2132_v40 = vshll.u32 %v5998_v29, 16  ;;  %v945_v42 = vor.u32 %v943_v24, %v942_v30  ;;  %v946_v43 = vrot.slane %v942_v30, 4  ;;  %v452_v21 = vld [vmem:[#allocation2 + $0x6c] sm:$0x1] }
  0x94   :  { %v2137_v44 = vshll.u32 %v6001_v34, 16  ;;  %v950_v46 = vrot.slane %v948_v35, 7  ;;  %v4998_v47 = vpack.c.bf16 %v362_v37, %v362_v37  ;;  %v225_v48 = vmul.f32 %v5141_v31, %v5801_v3  ;;  %v1526_v52 = vld [vmem:[#allocation2 + $0x5c] sm:$0x1]  ;;  %v562_v26 = vld [vmem:[#allocation2 + $0x74] sm:$0x1] }
  0x95   :  { %v2134_v50 = vrot.slane %v2132_v40, 1  ;;  %v1523_v51 = vsel %vm5843_vm9, %v945_v42, %v1522_v25  ;;  %v991_v55 = vshrl.u32 %v4997_v38, 16  ;;  %v994_v53 = vshll.u32 %v4997_v38, 16  ;;  %v571_v35 = vld [vmem:[#allocation2 + $0x98] sm:$0x1] }
  0x96   :  { %v2139_v56 = vrot.slane %v2137_v44, 1  ;;  %v953_v57 = vor.u32 %v951_v36, %v950_v46  ;;  %v955_v58 = vrot.slane %v950_v46, 4  ;;  %1524 = vst [vmem:[#allocation2 + $0x54] sm:$0xf] %v1523_v51  ;;  %v999_v59 = vshrl.u32 %v4998_v47, 16  ;;  %v5244_v46 = vld [vmem:[#allocation3 + $0x50] sm:$0xff]  }
  0x97   :  { %v1543_v60 = vld [vmem:[#allocation2 + $0x78] sm:$0xf]  ;;  %v2135_v62 = vor.u32 %v2134_v50, %v2130_v39  ;;  %v5409_v63 = vld [vmem:[#allocation2 + $0x60] sm:$0xff]   ;;  %v993_v0 = vrot.slane %v991_v55, 7  ;;  %v226_v5 = vmul.f32 %v5142_v32, %v5801_v3  ;;  %v295_v6 = vadd.f32 %v5803_v4, %v225_v48  ;;  %v461_v32 = vld [vmem:[#allocation2 + $0x90] sm:$0x1] }
  0x98   :  { %v5410_v7 = vld [vmem:[#allocation2 + $0x68] ss:$0 sps:$4 sm:$0x11]   ;;  %v954_v8 = vsel %vm5850_vm10, %v946_v43, %v953_v57  ;;  %v1527_v10 = vsel %vm5791_vm4, %v955_v58, %v1526_v52  ;;  %v1001_v11 = vrot.slane %v999_v59, 7  ;;  %v1002_v12 = vshll.u32 %v4998_v47, 16  ;;  %v6041_v52 = vld [vmem:[#allocation3 + $0x68] sm:$0xff]  }
  0x99   :  { %v6016_v15 = vsel %vm2068_vm8, %v2135_v62, %v2139_v56  ;;  %v2166_v17 = vshrl.u32 %v5409_v63, 16  ;;  %v2168_v19 = vshll.u32 %v5409_v63, 16  ;;  %1525 = vst.msk [vmem:[#allocation2 + $0x58] sm:$0xf] %vm407_vm0, %v954_v8  ;;  %1528 = vst [vmem:[#allocation2 + $0x5c] sm:$0x1] %v1527_v10  ;;  %v996_v20 = vor.u32 %v994_v53, %v993_v0 }
  0x9a   :  { %v1547_v54 = vld [vmem:[#allocation2 + $0x80] sm:$0x1]  ;;  %2463 = vrot.lane.b32.xlu1 %v6016_v15, %s5666_s16  ;;  %v2173_v22 = vshll.u32 %v5410_v7, 16  ;;  %v997_v23 = vrot.slane %v993_v0, 4  ;;  %v1004_v24 = vor.u32 %v1002_v12, %v1001_v11  ;;  %v1006_v25 = vrot.slane %v1001_v11, 4 }
  0x9b   :  { %v2170_v27 = vrot.slane %v2168_v19, 1  ;;  %v1544_v28 = vsel %vm5843_vm9, %v996_v20, %v1543_v60  ;;  %v296_v30 = vadd.f32 %v5803_v4, %v226_v5  ;;  %v359_v31 = vmax.f32 %v295_v6, 0.0 }
  0x9c   :  { %v2175_v36 = vrot.slane %v2173_v22, 1  ;;  %v1005_v37 = vsel %vm5850_vm10, %v997_v23, %v1004_v24  ;;  %1545 = vst [vmem:[#allocation2 + $0x78] sm:$0xf] %v1544_v28  ;;  %v1548_v38 = vsel %vm5791_vm4, %v1006_v25, %v1547_v54  ;;  %v453_v39 = vsel %vm5791_vm4, 0, %v452_v21 }
  0x9d   :  { %v2171_v40 = vor.u32 %v2170_v27, %v2166_v17  ;;  %1546 = vst.msk [vmem:[#allocation2 + $0x7c] sm:$0xf] %vm407_vm0, %v1005_v37  ;;  %1549 = vst [vmem:[#allocation2 + $0x80] sm:$0x1] %v1548_v38  ;;  %v360_v42 = vmax.f32 %v296_v30, 0.0  ;;  %v563_v43 = vsel %vm5797_vm5, 0, %v562_v26  ;;  %v4995_v44 = vpack.c.bf16 %v359_v31, %v359_v31 }
  0x9e   :  { %454 = vst [vmem:[#allocation2 + $0x6c] sm:$0x1] %v453_v39  ;;  %564 = vst [vmem:[#allocation2 + $0x74] sm:$0x1] %v563_v43  ;;  %v5154_v47 = vunpack.c.h.bf16 %v5986_v41  ;;  %v231_v48 = vmul.f32 %v5153_v33, %v5801_v3  ;;  %v462_v50 = vsel %vm5791_vm4, 0, %v461_v32  ;;  %v572_v51 = vsel %vm5797_vm5, 0, %v571_v35 }
  0x9f   :  { %v6044_v55 = vsel %vm2068_vm8, %v2171_v40, %v2175_v36  ;;  %v4996_v53 = vpack.c.bf16 %v360_v42, %v360_v42  ;;  %v974_v56 = vshrl.u32 %v4995_v44, 16  ;;  %v977_v57 = vshll.u32 %v4995_v44, 16  ;;  %463 = vst [vmem:[#allocation2 + $0x90] sm:$0x1] %v462_v50  ;;  %573 = vst [vmem:[#allocation2 + $0x98] sm:$0x1] %v572_v51 }
  0xa0   :  { %2469 = vrot.lane.b32.xlu0 %v6044_v55, %s5666_s16  ;;  %v6048_v41 = vld [vmem:[#allocation2 + $0x54] sm:$0xff]   ;;  %v232_v33 = vmul.f32 %v5154_v47, %v5801_v3  ;;  %v301_v58 = vadd.f32 %v5803_v4, %v231_v48  ;;  %v5149_v59 = vunpack.c.l.bf16 %v5244_v46  ;;  %v5150_v60 = vunpack.c.h.bf16 %v5244_v46  ;;  %v6052_v62 = vld [vmem:[#allocation2 + $0x5c] ss:$0 sps:$4 sm:$0x11]   ;;  %v6061_v37 = vld [vmem:[#allocation8] ss:$0 sm:$0xff] }
  0xa1   :  { %v976_v63 = vrot.slane %v974_v56, 7  ;;  %v982_v0 = vshrl.u32 %v4996_v53, 16  ;;  %v985_v5 = vshll.u32 %v4996_v53, 16  ;;  %v5161_v6 = vunpack.c.l.bf16 %v6041_v52  ;;  %v458_v48 = vld [vmem:[#allocation2 + $0x84] sm:$0x1] }
  0xa2   :  { %v2154_v7 = vshrl.u32 %v6048_v41, 16  ;;  %v2156_v8 = vshll.u32 %v6048_v41, 16  ;;  %v302_v10 = vadd.f32 %v5803_v4, %v232_v33  ;;  %v365_v11 = vmax.f32 %v301_v58, 0.0  ;;  %v568_v50 = vld [vmem:[#allocation2 + $0x8c] sm:$0x1] }
  0xa3   :  { %v2161_v12 = vshll.u32 %v6052_v62, 16  ;;  %v979_v17 = vor.u32 %v977_v57, %v976_v63  ;;  %v980_v19 = vrot.slane %v976_v63, 4  ;;  %v984_v20 = vrot.slane %v982_v0, 7 }
  0xa4   :  { %v2158_v54 = vrot.slane %v2156_v8, 1  ;;  %v5413_v21 = vld [vmem:[#allocation2 + $0x78] sm:$0xff]   ;;  %v5001_v22 = vpack.c.bf16 %v365_v11, %v365_v11  ;;  %v229_v23 = vmul.f32 %v5149_v59, %v5801_v3  ;;  %v230_v24 = vmul.f32 %v5150_v60, %v5801_v3  ;;  %v5414_v26 = vld [vmem:[#allocation2 + $0x80] ss:$0 sps:$4 sm:$0x11]  }
  0xa5   :  { %v2163_v25 = vrot.slane %v2161_v12, 1  ;;  %v987_v27 = vor.u32 %v985_v5, %v984_v20  ;;  %v989_v28 = vrot.slane %v984_v20, 4  ;;  %v366_v30 = vmax.f32 %v302_v10, 0.0  ;;  %v1536_v35 = vld [vmem:[#allocation2 + $0x6c] sm:$0xf]  ;;  %v6084_v20 = vld [vmem:[#allocation3 + $0x70] sm:$0xff]  }
  0xa6   :  { %v2159_v31 = vor.u32 %v2158_v54, %v2154_v7  ;;  %v2190_v4 = vshrl.u32 %v5413_v21, 16  ;;  %v2192_v32 = vshll.u32 %v5413_v21, 16  ;;  %v1540_v36 = vld [vmem:[#allocation2 + $0x74] sm:$0x1]  ;;  %v299_v38 = vadd.f32 %v6061_v37, %v229_v23  ;;  %v1557_v63 = vld [vmem:[#allocation2 + $0x90] sm:$0xf] }
  0xa7   :  { %v2197_v39 = vshll.u32 %v5414_v26, 16  ;;  %v988_v40 = vsel %vm5850_vm10, %v980_v19, %v987_v27  ;;  %v1537_v3 = vsel %vm5843_vm9, %v979_v17, %v1536_v35  ;;  %v1541_v42 = vsel %vm5791_vm4, %v989_v28, %v1540_v36  ;;  %v5246_v19 = vld [vmem:[#allocation3 + $0x60] sm:$0xff]   ;;  %v1561_v54 = vld [vmem:[#allocation2 + $0x98] sm:$0x1] }
  0xa8   :  { %v6071_v43 = vsel %vm2068_vm8, %v2159_v31, %v2163_v25  ;;  %v2194_v44 = vrot.slane %v2192_v32, 1  ;;  %1538 = vst [vmem:[#allocation2 + $0x6c] sm:$0xf] %v1537_v3  ;;  %1539 = vst.msk [vmem:[#allocation2 + $0x70] sm:$0xf] %vm407_vm0, %v988_v40  ;;  %v5002_v46 = vpack.c.bf16 %v366_v30, %v366_v30  ;;  %v1025_v47 = vshrl.u32 %v5001_v22, 16 }
  0xa9   :  { %1542 = vst [vmem:[#allocation2 + $0x74] sm:$0x1] %v1541_v42  ;;  %2467 = vrot.lane.b32.xlu1 %v6071_v43, %s5666_s16  ;;  %v2199_v51 = vrot.slane %v2197_v39, 1  ;;  %v1028_v53 = vshll.u32 %v5001_v22, 16  ;;  %v300_v56 = vadd.f32 %v6061_v37, %v230_v24  ;;  %v363_v57 = vmax.f32 %v299_v38, 0.0 }
  0xaa   :  { %v2195_v33 = vor.u32 %v2194_v44, %v2190_v4  ;;  %v1027_v58 = vrot.slane %v1025_v47, 7  ;;  %v1033_v59 = vshrl.u32 %v5002_v46, 16  ;;  %v1036_v60 = vshll.u32 %v5002_v46, 16  ;;  %v6091_v28 = vld [vmem:[#allocation6] ss:$0 sm:$0xff] }
  0xab   :  { %v364_v0 = vmax.f32 %v300_v56, 0.0  ;;  %v459_v5 = vsel %vm5791_vm4, 0, %v458_v48  ;;  %v569_v7 = vsel %vm5797_vm5, 0, %v568_v50  ;;  %v4999_v8 = vpack.c.bf16 %v363_v57, %v363_v57  ;;  %v467_v31 = vld [vmem:[#allocation2 + $0xa8] sm:$0x1] }
  0xac   :  { %v6082_v10 = vsel %vm2068_vm8, %v2195_v33, %v2199_v51  ;;  %v1030_v11 = vor.u32 %v1028_v53, %v1027_v58  ;;  %v1031_v12 = vrot.slane %v1027_v58, 4  ;;  %v1035_v17 = vrot.slane %v1033_v59, 7  ;;  %460 = vst [vmem:[#allocation2 + $0x84] sm:$0x1] %v459_v5  ;;  %570 = vst [vmem:[#allocation2 + $0x8c] sm:$0x1] %v569_v7 }
  0xad   :  { %2473 = vrot.lane.b32.xlu0 %v6082_v10, %s5666_s16  ;;  %v5000_v21 = vpack.c.bf16 %v364_v0, %v364_v0  ;;  %v1008_v22 = vshrl.u32 %v4999_v8, 16  ;;  %v1011_v23 = vshll.u32 %v4999_v8, 16  ;;  %v5162_v24 = vunpack.c.h.bf16 %v6041_v52  ;;  %v577_v56 = vld [vmem:[#allocation2 + $0xb0] sm:$0x1] }
  0xae   :  { %v1038_v25 = vor.u32 %v1036_v60, %v1035_v17  ;;  %v1040_v26 = vrot.slane %v1035_v17, 4  ;;  %v1558_v27 = vsel %vm5843_vm9, %v1030_v11, %v1557_v63  ;;  %v235_v30 = vmul.f32 %v6091_v28, %v5161_v6  ;;  %v464_v63 = vld [vmem:[#allocation2 + $0x9c] sm:$0x1] }
  0xaf   :  { %1559 = vst [vmem:[#allocation2 + $0x90] sm:$0xf] %v1558_v27  ;;  %v236_v4 = vmul.f32 %v6091_v28, %v5162_v24  ;;  %v5157_v32 = vunpack.c.l.bf16 %v5246_v19  ;;  %v5158_v35 = vunpack.c.h.bf16 %v5246_v19  ;;  %v5165_v36 = vunpack.c.l.bf16 %v6084_v20  ;;  %v6098_v38 = vld [vmem:[#allocation2 + $0x6c] sm:$0xff]  }
  0xb0   :  { %v6100_v39 = vld [vmem:[#allocation2 + $0x74] ss:$0 sps:$4 sm:$0x11]   ;;  %v1039_v40 = vsel %vm5850_vm10, %v1031_v12, %v1038_v25  ;;  %v1562_v52 = vsel %vm5791_vm4, %v1040_v26, %v1561_v54  ;;  %v1010_v3 = vrot.slane %v1008_v22, 7  ;;  %v1016_v6 = vshrl.u32 %v5000_v21, 16 }
  0xb1   :  { %1560 = vst.msk [vmem:[#allocation2 + $0x94] sm:$0xf] %vm407_vm0, %v1039_v40  ;;  %1563 = vst [vmem:[#allocation2 + $0x98] sm:$0x1] %v1562_v52  ;;  %v1019_v42 = vshll.u32 %v5000_v21, 16  ;;  %v305_v44 = vadd.f32 %v6061_v37, %v235_v30  ;;  %v306_v46 = vadd.f32 %v6061_v37, %v236_v4  ;;  %v468_v47 = vsel %vm5791_vm4, 0, %v467_v31 }
  0xb2   :  { %v2178_v48 = vshrl.u32 %v6098_v38, 16  ;;  %v2180_v50 = vshll.u32 %v6098_v38, 16  ;;  %v2185_v51 = vshll.u32 %v6100_v39, 16  ;;  %v1013_v53 = vor.u32 %v1011_v23, %v1010_v3  ;;  %469 = vst [vmem:[#allocation2 + $0xa8] sm:$0x1] %v468_v47 }
  0xb3   :  { %v1014_v57 = vrot.slane %v1010_v3, 4  ;;  %v1018_v33 = vrot.slane %v1016_v6, 7  ;;  %v1550_v58 = vld [vmem:[#allocation2 + $0x84] sm:$0xf]  ;;  %v233_v59 = vmul.f32 %v6091_v28, %v5157_v32  ;;  %v234_v60 = vmul.f32 %v6091_v28, %v5158_v35  ;;  %v1554_v8 = vld [vmem:[#allocation2 + $0x8c] sm:$0x1] }
  0xb4   :  { %v2182_v0 = vrot.slane %v2180_v50, 1  ;;  %v2187_v5 = vrot.slane %v2185_v51, 1  ;;  %v1551_v7 = vsel %vm5843_vm9, %v1013_v53, %v1550_v58  ;;  %v369_v11 = vmax.f32 %v305_v44, 0.0  ;;  %v574_v31 = vld [vmem:[#allocation2 + $0xa4] sm:$0x1] }
  0xb5   :  { %v1021_v12 = vor.u32 %v1019_v42, %v1018_v33  ;;  %v1023_v17 = vrot.slane %v1018_v33, 4  ;;  %1552 = vst [vmem:[#allocation2 + $0x84] sm:$0xf] %v1551_v7  ;;  %v370_v19 = vmax.f32 %v306_v46, 0.0  ;;  %v578_v54 = vsel %vm5797_vm5, 0, %v577_v56 }
  0xb6   :  { %v2183_v21 = vor.u32 %v2182_v0, %v2178_v48  ;;  %579 = vst [vmem:[#allocation2 + $0xb0] sm:$0x1] %v578_v54  ;;  %v5005_v22 = vpack.c.bf16 %v369_v11, %v369_v11  ;;  %v303_v23 = vadd.f32 %v6061_v37, %v233_v59  ;;  %v304_v24 = vadd.f32 %v6061_v37, %v234_v60 }
  0xb7   :  { %v1022_v25 = vsel %vm5850_vm10, %v1014_v57, %v1021_v12  ;;  %v1555_v26 = vsel %vm5791_vm4, %v1023_v17, %v1554_v8  ;;  %v5006_v27 = vpack.c.bf16 %v370_v19, %v370_v19  ;;  %v465_v30 = vsel %vm5791_vm4, 0, %v464_v63 }
  0xb8   :  { %v6129_v4 = vsel %vm2068_vm8, %v2183_v21, %v2187_v5  ;;  %v5417_v32 = vld [vmem:[#allocation2 + $0x90] sm:$0xff]   ;;  %1553 = vst.msk [vmem:[#allocation2 + $0x88] sm:$0xf] %vm407_vm0, %v1022_v25  ;;  %1556 = vst [vmem:[#allocation2 + $0x8c] sm:$0x1] %v1555_v26  ;;  %v1059_v35 = vshrl.u32 %v5005_v22, 16  ;;  %v5166_v40 = vunpack.c.h.bf16 %v6084_v20  ;;  %v237_v44 = vmul.f32 %v6091_v28, %v5165_v36 }
  0xb9   :  { %466 = vst [vmem:[#allocation2 + $0x9c] sm:$0x1] %v465_v30  ;;  %2471 = vrot.lane.b32.xlu1 %v6129_v4, %s5666_s16  ;;  %v5418_v52 = vld [vmem:[#allocation2 + $0x98] ss:$0 sps:$4 sm:$0x11]   ;;  %v1062_v3 = vshll.u32 %v5005_v22, 16 }
  0xba   :  { %v1067_v6 = vshrl.u32 %v5006_v27, 16  ;;  %v1070_v42 = vshll.u32 %v5006_v27, 16  ;;  %v2214_v46 = vshrl.u32 %v5417_v32, 16  ;;  %v2216_v47 = vshll.u32 %v5417_v32, 16  ;;  %v1571_v56 = vld [vmem:[#allocation2 + $0xa8] sm:$0xf] }
  0xbb   :  { %v1061_v48 = vrot.slane %v1059_v35, 7  ;;  %v367_v50 = vmax.f32 %v303_v23, 0.0  ;;  %v2221_v51 = vshll.u32 %v5418_v52, 16  ;;  %v368_v57 = vmax.f32 %v304_v24, 0.0  ;;  %v470_v24 = vld [vmem:[#allocation2 + $0xb4] sm:$0x1] }
  0xbc   :  { %v1069_v53 = vrot.slane %v1067_v6, 7  ;;  %v575_v20 = vsel %vm5797_vm5, 0, %v574_v31  ;;  %v2218_v33 = vrot.slane %v2216_v47, 1  ;;  %v238_v23 = vmul.f32 %v6091_v28, %v5166_v40  ;;  %v580_v25 = vld [vmem:[#allocation2 + $0xbc] sm:$0x1] }
  0xbd   :  { %v1064_v58 = vor.u32 %v1062_v3, %v1061_v48  ;;  %v1065_v59 = vrot.slane %v1061_v48, 4  ;;  %576 = vst [vmem:[#allocation2 + $0xa4] sm:$0x1] %v575_v20  ;;  %v5003_v60 = vpack.c.bf16 %v367_v50, %v367_v50  ;;  %v2223_v63 = vrot.slane %v2221_v51, 1  ;;  %v1575_v36 = vld [vmem:[#allocation2 + $0xb0] sm:$0x1] }
  0xbe   :  { %v1072_v0 = vor.u32 %v1070_v42, %v1069_v53  ;;  %v1074_v5 = vrot.slane %v1069_v53, 4  ;;  %v5004_v7 = vpack.c.bf16 %v368_v57, %v368_v57  ;;  %v2219_v8 = vor.u32 %v2218_v33, %v2214_v46 }
  0xbf   :  { %v1572_v11 = vsel %vm5843_vm9, %v1064_v58, %v1571_v56  ;;  %v1042_v12 = vshrl.u32 %v5003_v60, 16  ;;  %v1045_v17 = vshll.u32 %v5003_v60, 16  ;;  %v6140_v19 = vld [vmem:[#allocation2 + $0x84] sm:$0xff]   ;;  %v6150_v27 = vld [vmem:[#allocation2 + $0x8c] ss:$0 sps:$4 sm:$0x11]   ;;  %v307_v32 = vadd.f32 %v6061_v37, %v237_v44 }
  0xc0   :  { %v1073_v54 = vsel %vm5850_vm10, %v1065_v59, %v1072_v0  ;;  %1573 = vst [vmem:[#allocation2 + $0xa8] sm:$0xf] %v1572_v11  ;;  %v1576_v21 = vsel %vm5791_vm4, %v1074_v5, %v1575_v36  ;;  %v1050_v22 = vshrl.u32 %v5004_v7, 16  ;;  %v6148_v26 = vsel %vm2068_vm8, %v2219_v8, %v2223_v63  ;;  %v1564_v3 = vld [vmem:[#allocation2 + $0x9c] sm:$0xf] }
  0xc1   :  { %1574 = vst.msk [vmem:[#allocation2 + $0xac] sm:$0xf] %vm407_vm0, %v1073_v54  ;;  %1577 = vst [vmem:[#allocation2 + $0xb0] sm:$0x1] %v1576_v21  ;;  %v1044_v30 = vrot.slane %v1042_v12, 7  ;;  %v1053_v31 = vshll.u32 %v5004_v7, 16  ;;  %2477 = vrot.lane.b32.xlu0 %v6148_v26, %s5666_s16  ;;  %v308_v6 = vadd.f32 %v6061_v37, %v238_v23 }
  0xc2   :  { %v2202_v35 = vshrl.u32 %v6140_v19, 16  ;;  %v2204_v40 = vshll.u32 %v6140_v19, 16  ;;  %v1052_v52 = vrot.slane %v1050_v22, 7  ;;  %v2209_v42 = vshll.u32 %v6150_v27, 16 }
  0xc3   :  { %v1047_v46 = vor.u32 %v1045_v17, %v1044_v30  ;;  %v1048_v47 = vrot.slane %v1044_v30, 4  ;;  %v371_v48 = vmax.f32 %v307_v32, 0.0  ;;  %v372_v56 = vmax.f32 %v308_v6, 0.0 }
  0xc4   :  { %v2206_v50 = vrot.slane %v2204_v40, 1  ;;  %v1055_v51 = vor.u32 %v1053_v31, %v1052_v52  ;;  %v1057_v53 = vrot.slane %v1052_v52, 4  ;;  %v1568_v44 = vld [vmem:[#allocation2 + $0xa4] sm:$0x1]  ;;  %v2211_v57 = vrot.slane %v2209_v42, 1 }
  0xc5   :  { %v1565_v20 = vsel %vm5843_vm9, %v1047_v46, %v1564_v3  ;;  %v471_v33 = vsel %vm5791_vm4, 0, %v470_v24  ;;  %v581_v58 = vsel %vm5797_vm5, 0, %v580_v25  ;;  %v5007_v0 = vpack.c.bf16 %v371_v48, %v371_v48 }
  0xc6   :  { %v2207_v59 = vor.u32 %v2206_v50, %v2202_v35  ;;  %v1056_v60 = vsel %vm5850_vm10, %v1048_v47, %v1055_v51  ;;  %1566 = vst [vmem:[#allocation2 + $0x9c] sm:$0xf] %v1565_v20  ;;  %v1569_v63 = vsel %vm5791_vm4, %v1057_v53, %v1568_v44  ;;  %472 = vst [vmem:[#allocation2 + $0xb4] sm:$0x1] %v471_v33  ;;  %vm3759_vm11 = vcmask 1041408  }
  0xc7   :  { %582 = vst [vmem:[#allocation2 + $0xbc] sm:$0x1] %v581_v58  ;;  %1567 = vst.msk [vmem:[#allocation2 + $0xa0] sm:$0xf] %vm407_vm0, %v1056_v60  ;;  %v5008_v5 = vpack.c.bf16 %v372_v56, %v372_v56  ;;  %v1076_v8 = vshrl.u32 %v5007_v0, 16  ;;  %v1079_v12 = vshll.u32 %v5007_v0, 16 }
  0xc8   :  { %1570 = vst [vmem:[#allocation2 + $0xa4] sm:$0x1] %v1569_v63  ;;  %v6172_v36 = vsel %vm2068_vm8, %v2207_v59, %v2211_v57  ;;  %v5421_v7 = vld [vmem:[#allocation2 + $0xa8] sm:$0xff]   ;;  %v5422_v11 = vld [vmem:[#allocation2 + $0xb0] ss:$0 sps:$4 sm:$0x11]  }
  0xc9   :  { %2475 = vrot.lane.b32.xlu1 %v6172_v36, %s5666_s16  ;;  %v1084_v17 = vshrl.u32 %v5008_v5, 16  ;;  %v1087_v54 = vshll.u32 %v5008_v5, 16  ;;  %v2238_v21 = vshrl.u32 %v5421_v7, 16  ;;  %v2240_v22 = vshll.u32 %v5421_v7, 16 }
  0xca   :  { %v1078_v23 = vrot.slane %v1076_v8, 7  ;;  %v2245_v24 = vshll.u32 %v5422_v11, 16  ;;  %v5427_v8 = vld [vmem:[#allocation9] sm:$0xff]   ;;  %vm3154_vm12 = vcmask 31744   ;;  %vm3219_vm13 = vcmask 64512  }
  0xcb   :  { %v1086_v25 = vrot.slane %v1084_v17, 7  ;;  %v2242_v30 = vrot.slane %v2240_v22, 1  ;;  %5301 = vmatprep.subr.bf16.mxu0 %v5427_v8  ;;  %5371 = vmatprep.subr.bf16.mxu1 %v5427_v8  ;;  %v6197_v17 = vld [vmem:[#allocation2 + $0x18] sm:$0xff]   ;;  %v5473_v22 = vld [vmem:[#allocation2 + $0x20] ss:$0 sps:$4 sm:$0x11]  }
  0xcc   :  { %v1081_v31 = vor.u32 %v1079_v12, %v1078_v23  ;;  %v1082_v32 = vrot.slane %v1078_v23, 4  ;;  %v2247_v35 = vrot.slane %v2245_v24, 1  ;;  %5302 = vmatpush3.bf16.msra.mxu0 %v5427_v8  ;;  %5374 = vmatpush3.bf16.msra.mxu1 %v5427_v8  ;;  %v2525_v23 = vrot.slane %v5473_v22, 1  ;;  %v5429_v24 = vld [vmem:[#allocation9 + $0x10] ss:$0 sps:$4 sm:$0x33]  }
  0xcd   :  { %v1089_v40 = vor.u32 %v1087_v54, %v1086_v25  ;;  %v1091_v52 = vrot.slane %v1086_v25, 4  ;;  %v1578_v3 = vld [vmem:[#allocation2 + $0xb4] sm:$0xf]  ;;  %v2243_v6 = vor.u32 %v2242_v30, %v2238_v21  ;;  %v5428_v54 = vld [vmem:[#allocation9 + $0x8] sm:$0xff]   ;;  %v3761_v30 = vsel %vm3759_vm11, %v5429_v24, 0 }
  0xce   :  { %v5423_v42 = vld [vmem:[#allocation2 + $0x9c] sm:$0xff]   ;;  %v1579_v46 = vsel %vm5843_vm9, %v1081_v31, %v1578_v3  ;;  %5303 = vmatprep.subr.bf16.mxu0 %v5428_v54  ;;  %5372 = vmatprep.subr.bf16.mxu1 %v5428_v54  ;;  %v6215_v31 = vld [vmem:[#allocation2 + $0x24] sm:$0xff]   ;;  %vm3284_vm14 = vcmask 97280   ;;  %vm3349_vm15 = vcmask 130048   ;;  %vm3414_vm1 = vcmask 162816  }
  0xcf   :  { %v5424_v47 = vld [vmem:[#allocation2 + $0xa4] ss:$0 sps:$4 sm:$0x11]   ;;  %v1090_v48 = vsel %vm5850_vm10, %v1082_v32, %v1089_v40  ;;  %1580 = vst [vmem:[#allocation2 + $0xb4] sm:$0xf] %v1579_v46  ;;  %v6181_v51 = vsel %vm2068_vm8, %v2243_v6, %v2247_v35  ;;  %v2226_v53 = vshrl.u32 %v5423_v42, 16 }
  0xd0   :  { %v1582_v50 = vld [vmem:[#allocation2 + $0xbc] sm:$0x1]  ;;  %v2228_v44 = vshll.u32 %v5423_v42, 16  ;;  %1581 = vst.msk [vmem:[#allocation2 + $0xb8] sm:$0xf] %vm407_vm0, %v1090_v48  ;;  %2481 = vrot.lane.b32.xlu0 %v6181_v51, %s5666_s16  ;;  %v2233_v57 = vshll.u32 %v5424_v47, 16  ;;  %5304 = vmatpush3.bf16.msra.mxu0 %v5428_v54 }
  0xd1   :  { %v1583_v56 = vsel %vm5791_vm4, %v1091_v52, %v1582_v50  ;;  %5375 = vmatpush3.bf16.msra.mxu1 %v5428_v54  ;;  %5377 = vmatprep.subr.msk.bf16.mxu0 %vm3759_vm11, %v5429_v24  ;;  %v5475_v32 = vld [vmem:[#allocation2 + $0x2c] ss:$0 sps:$4 sm:$0x11]   ;;  %v5476_v52 = vld [vmem:[#allocation2 + $0x30] sm:$0xff]   ;;  %v2533_v50 = vrot.slane %v5998_v29, 1  ;;  %vm3479_vm2 = vcmask 195584  }
  0xd2   :  { %1584 = vst [vmem:[#allocation2 + $0xbc] sm:$0x1] %v1583_v56  ;;  %v2230_v20 = vrot.slane %v2228_v44, 1  ;;  %v2235_v33 = vrot.slane %v2233_v57, 1  ;;  %5378 = vmatprep.subr.msk.bf16.mxu1 %vm3759_vm11, %v5429_v24  ;;  %v2528_v35 = vrot.slane %v5475_v32, 1  ;;  %v2530_v3 = vrot.slane %v5476_v52, 1 }
  0xd3   :  { %v5477_v6 = vld [vmem:[#allocation2 + $0x38] ss:$0 sps:$4 sm:$0x11]   ;;  %v5249_v46 = vld [vmem:[#allocation3 + $0x78] sm:$0xff]   ;;  %vm3544_vm3 = vcmask 228352   ;;  %vm3609_vm7 = vcmask 261120  }
  0xd4   :  { %v2231_v58 = vor.u32 %v2230_v20, %v2226_v53  ;;  %2782 = vrot.lane.b32.xlu0 %v5925_v18, %s5672_s19  ;;  %5306 = vmatpush3.bf16.msra.mxu0 %v3761_v30  ;;  %v2531_v42 = vrot.slane %v5477_v6, 1  ;;  %v5169_v47 = vunpack.c.l.bf16 %v5249_v46  ;;  %v5170_v48 = vunpack.c.h.bf16 %v5249_v46 }
  0xd5   :  { %5376 = vmatpush3.bf16.msra.mxu1 %v3761_v30  ;;  %v2534_v53 = vrot.slane %v6001_v34, 1  ;;  %vm3694_vm11 = vcmask 293888  }
  0xd6   :  { %v6191_v59 = vsel %vm2068_vm8, %v2231_v58, %v2235_v33  ;;  %v240_v44 = vmul.f32 %v6091_v28, %v5170_v48  ;;  %v473_v58 = vld [vmem:[#allocation2 + $0xc0] sm:$0x1] }
  0xd7   :  { %2479 = vrot.lane.b32.xlu1 %v6191_v59, %s5666_s16  ;;  %v5425_v60 = vld [vmem:[#allocation2 + $0xb4] sm:$0xff]   ;;  %v2535_v20 = vsel %vm2517_vm6, %v2533_v50, %v2534_v53 }
  0xd8   :  { %v2250_v0 = vshrl.u32 %v5425_v60, 16  ;;  %v2252_v5 = vshll.u32 %v5425_v60, 16  ;;  %2852 = vrot.lane.b32.xlu0 %v5913_v61, %s5673_s20  ;;  %v2524_v61 = vrot.slane %v6197_v17, 1  ;;  %v310_v57 = vadd.f32 %v6061_v37, %v240_v44  ;;  %v6257_v60 = vpop.permute.xlu0 %2614 }
  0xd9   :  { %v5426_v63 = vld [vmem:[#allocation2 + $0xbc] ss:$0 sps:$4 sm:$0x11]  }
  0xda   :  { %v2257_v7 = vshll.u32 %v5426_v63, 16  ;;  %v2254_v11 = vrot.slane %v2252_v5, 1  ;;  %v2526_v25 = vsel %vm2517_vm6, %v2524_v61, %v2525_v23  ;;  %v374_v33 = vmax.f32 %v310_v57, 0.0  ;;  %v583_v5 = vld [vmem:[#allocation2 + $0xc8] sm:$0x1] }
  0xdb   :  { %v5478_v61 = vld [vmem:[#allocation2 + $0x48] sm:$0xff]  }
  0xdc   :  { %v2259_v12 = vrot.slane %v2257_v7, 1  ;;  %v2255_v18 = vor.u32 %v2254_v11, %v2250_v0  ;;  %2926 = vrot.lane.b32.xlu0 %v6197_v17, %s5674_s22  ;;  %v5010_v0 = vpack.c.bf16 %v374_v33, %v374_v33  ;;  %v584_v7 = vsel %vm5797_vm5, 0, %v583_v5  ;;  %v6265_v22 = vpop.permute.xlu0 %2453  ;;  %v586_v5 = vld [vmem:[#allocation2 + $0xd4] sm:$0x1] }
  0xdd   :  { %585 = vst [vmem:[#allocation2 + $0xc8] sm:$0x1] %v584_v7 }
  0xde   :  { %v6202_v21 = vsel %vm2068_vm8, %v2255_v18, %v2259_v12  ;;  %v1101_v8 = vshrl.u32 %v5010_v0, 16  ;;  %v1104_v54 = vshll.u32 %v5010_v0, 16  ;;  %v6282_v53 = vpop.permute.xlu1 %2690  ;;  %v592_v0 = vld [vmem:[#allocation2 + $0xec] sm:$0x1] }
  0xdf   :  { %2483 = vrot.lane.b32.xlu1 %v6202_v21, %s5666_s16 }
  0xe0   :  { %3020 = vrot.lane.b32.xlu0 %v5901_v49, %s5675_s23  ;;  %v1103_v18 = vrot.slane %v1101_v8, 7 }
  0xe3   :  { %2784 = vrot.lane.b32.xlu1 %v5901_v49, %s5672_s19  ;;  %v2527_v49 = vrot.slane %v6215_v31, 1  ;;  %v6277_v46 = vpop.permute.xlu0 %2688 }
  0xe4   :  { %3090 = vrot.lane.b32.xlu0 %v2526_v25, %s5676_s24  ;;  %v1589_v6 = vld [vmem:[#allocation2 + $0xc8] sm:$0x1] }
  0xe5   :  { %v2529_v40 = vsel %vm2517_vm6, %v2527_v49, %v2528_v35  ;;  %v1108_v35 = vrot.slane %v1103_v18, 4 }
  0xe7   :  { %2854 = vrot.lane.b32.xlu1 %v2526_v25, %s5673_s20 }
  0xe8   :  { %2618 = vrot.lane.b32.xlu0 %v2526_v25, %s5670_s3  ;;  %v1106_v25 = vor.u32 %v1104_v54, %v1103_v18  ;;  %v2540_v18 = vrot.slane %v6052_v62, 1 }
  0xeb   :  { %2928 = vrot.lane.b32.xlu1 %v6215_v31, %s5674_s22 }
  0xec   :  { %2692 = vrot.lane.b32.xlu0 %v6215_v31, %s5671_s18 }
  0xef   :  { %3022 = vrot.lane.b32.xlu1 %v5957_v14, %s5675_s23 }
  0xf0   :  { %2786 = vrot.lane.b32.xlu0 %v5957_v14, %s5672_s19  ;;  %v2532_v14 = vsel %vm2517_vm6, %v2530_v3, %v2531_v42  ;;  %v1590_v42 = vsel %vm5791_vm4, %v1108_v35, %v1589_v6  ;;  %v589_v35 = vld [vmem:[#allocation2 + $0xe0] sm:$0x1] }
  0xf1   :  { %1591 = vst [vmem:[#allocation2 + $0xc8] sm:$0x1] %v1590_v42 }
  0xf3   :  { %3092 = vrot.lane.b32.xlu1 %v2529_v40, %s5676_s24 }
  0xf4   :  { %2856 = vrot.lane.b32.xlu0 %v2529_v40, %s5673_s20 }
  0xf7   :  { %2620 = vrot.lane.b32.xlu1 %v2529_v40, %s5670_s3  ;;  %v2536_v40 = vrot.slane %v5478_v61, 1 }
  0xf8   :  { %2930 = vrot.lane.b32.xlu0 %v5476_v52, %s5674_s22 }
  0xfb   :  { %2694 = vrot.lane.b32.xlu1 %v5476_v52, %s5671_s18  ;;  %v5479_v52 = vld [vmem:[#allocation2 + $0x50] ss:$0 sps:$4 sm:$0x11]  }
  0xfc   :  { %3024 = vrot.lane.b32.xlu0 %v5938_v45, %s5675_s23  ;;  %v2537_v3 = vrot.slane %v5479_v52, 1 }
  0xfe   :  { %v2538_v50 = vsel %vm2517_vm6, %v2536_v40, %v2537_v3 }
  0xff   :  { %2788 = vrot.lane.b32.xlu1 %v5938_v45, %s5672_s19  ;;  %v239_v45 = vmul.f32 %v6091_v28, %v5169_v47 }
 0x100   :  { %3094 = vrot.lane.b32.xlu0 %v2532_v14, %s5676_s24 }
 0x101   :  { %v309_v56 = vadd.f32 %v6061_v37, %v239_v45 }
 0x103   :  { %2858 = vrot.lane.b32.xlu1 %v2532_v14, %s5673_s20  ;;  %v373_v34 = vmax.f32 %v309_v56, 0.0  ;;  %v6287_v56 = vpop.permute.xlu0 %2455 }
 0x104   :  { %2622 = vrot.lane.b32.xlu0 %v2532_v14, %s5670_s3  ;;  %v5250_v14 = vld [vmem:[#allocation3 + $0x80] sm:$0xff]  }
 0x105   :  { %v5009_v63 = vpack.c.bf16 %v373_v34, %v373_v34  ;;  %v5173_v47 = vunpack.c.l.bf16 %v5250_v14  ;;  %v5174_v48 = vunpack.c.h.bf16 %v5250_v14  ;;  %v476_v34 = vld [vmem:[#allocation2 + $0xcc] sm:$0x1]  ;;  %v590_v14 = vsel %vm5797_vm5, 0, %v589_v35  ;;  %v5481_v35 = vld [vmem:[#allocation2 + $0x68] ss:$0 sps:$4 sm:$0x11]  }
 0x106   :  { %591 = vst [vmem:[#allocation2 + $0xe0] sm:$0x1] %v590_v14 }
 0x107   :  { %2932 = vrot.lane.b32.xlu1 %v5998_v29, %s5674_s22  ;;  %v1096_v12 = vshll.u32 %v5009_v63, 16  ;;  %v241_v45 = vmul.f32 %v6091_v28, %v5173_v47  ;;  %v242_v44 = vmul.f32 %v6091_v28, %v5174_v48  ;;  %v6307_v54 = vpop.permute.xlu0 %2461 }
 0x108   :  { %2696 = vrot.lane.b32.xlu0 %v5998_v29, %s5671_s18  ;;  %v474_v29 = vsel %vm5791_vm4, 0, %v473_v58 }
 0x109   :  { %475 = vst [vmem:[#allocation2 + $0xc0] sm:$0x1] %v474_v29  ;;  %v311_v57 = vadd.f32 %v6061_v37, %v241_v45  ;;  %v482_v29 = vld [vmem:[#allocation2 + $0xe4] sm:$0x1] }
 0x10a   :  { %v483_v7 = vsel %vm5791_vm4, 0, %v482_v29 }
 0x10b   :  { %3026 = vrot.lane.b32.xlu1 %v6016_v15, %s5675_s23  ;;  %v375_v33 = vmax.f32 %v311_v57, 0.0  ;;  %484 = vst [vmem:[#allocation2 + $0xe4] sm:$0x1] %v483_v7 }
 0x10c   :  { %2790 = vrot.lane.b32.xlu0 %v6016_v15, %s5672_s19  ;;  %v1093_v15 = vshrl.u32 %v5009_v63, 16  ;;  %v477_v63 = vsel %vm5791_vm4, 0, %v476_v34 }
 0x10d   :  { %478 = vst [vmem:[#allocation2 + $0xcc] sm:$0x1] %v477_v63  ;;  %v5011_v8 = vpack.c.bf16 %v375_v33, %v375_v33 }
 0x10e   :  { %v1095_v11 = vrot.slane %v1093_v15, 7  ;;  %v593_v15 = vsel %vm5797_vm5, 0, %v592_v0 }
 0x10f   :  { %3096 = vrot.lane.b32.xlu1 %v2535_v20, %s5676_s24  ;;  %594 = vst [vmem:[#allocation2 + $0xec] sm:$0x1] %v593_v15  ;;  %v485_v15 = vld [vmem:[#allocation2 + $0xf0] sm:$0x1] }
 0x110   :  { %2860 = vrot.lane.b32.xlu0 %v2535_v20, %s5673_s20  ;;  %v1098_v23 = vor.u32 %v1096_v12, %v1095_v11  ;;  %v1099_v24 = vrot.slane %v1095_v11, 4  ;;  %v1585_v30 = vld [vmem:[#allocation2 + $0xc0] sm:$0xf]  ;;  %v2539_v12 = vrot.slane %v6048_v41, 1 }
 0x112   :  { %v1107_v49 = vsel %vm5850_vm10, %v1099_v24, %v1106_v25  ;;  %v1586_v32 = vsel %vm5843_vm9, %v1098_v23, %v1585_v30  ;;  %v479_v23 = vld [vmem:[#allocation2 + $0xd8] sm:$0x1]  ;;  %v1110_v24 = vshrl.u32 %v5011_v8, 16  ;;  %v2541_v42 = vsel %vm2517_vm6, %v2539_v12, %v2540_v18 }
 0x113   :  { %2624 = vrot.lane.b32.xlu1 %v2535_v20, %s5670_s3  ;;  %1587 = vst [vmem:[#allocation2 + $0xc0] sm:$0xf] %v1586_v32  ;;  %1588 = vst.msk [vmem:[#allocation2 + $0xc4] sm:$0xf] %vm407_vm0, %v1107_v49  ;;  %v312_v20 = vadd.f32 %v6061_v37, %v242_v44  ;;  %v5251_v30 = vld [vmem:[#allocation3 + $0x88] sm:$0xff]   ;;  %v480_v49 = vsel %vm5791_vm4, 0, %v479_v23  ;;  %v6323_v44 = vpop.permute.xlu0 %2465 }
 0x114   :  { %2934 = vrot.lane.b32.xlu0 %v5478_v61, %s5674_s22  ;;  %v1113_v32 = vshll.u32 %v5011_v8, 16  ;;  %481 = vst [vmem:[#allocation2 + $0xd8] sm:$0x1] %v480_v49  ;;  %v1112_v40 = vrot.slane %v1110_v24, 7  ;;  %v5177_v3 = vunpack.c.l.bf16 %v5251_v30  ;;  %v5178_v6 = vunpack.c.h.bf16 %v5251_v30  ;;  %v595_v18 = vld [vmem:[#allocation2 + $0xf8] sm:$0x1] }
 0x115   :  { %v376_v58 = vmax.f32 %v312_v20, 0.0  ;;  %v5252_v30 = vld [vmem:[#allocation3 + $0x90] sm:$0xff]  }
 0x116   :  { %v1115_v47 = vor.u32 %v1113_v32, %v1112_v40  ;;  %v1116_v48 = vrot.slane %v1112_v40, 4  ;;  %v243_v45 = vmul.f32 %v6091_v28, %v5177_v3  ;;  %v244_v20 = vmul.f32 %v6091_v28, %v5178_v6  ;;  %v1596_v33 = vld [vmem:[#allocation2 + $0xec] sm:$0x1] }
 0x117   :  { %2698 = vrot.lane.b32.xlu1 %v5478_v61, %s5671_s18  ;;  %v5012_v11 = vpack.c.bf16 %v376_v58, %v376_v58  ;;  %v587_v61 = vsel %vm5797_vm5, 0, %v586_v5  ;;  %v6343_v23 = vpop.permute.xlu0 %2469  ;;  %v2543_v40 = vrot.slane %v5481_v35, 1  ;;  %v5181_v6 = vunpack.c.l.bf16 %v5252_v30 }
 0x118   :  { %3028 = vrot.lane.b32.xlu0 %v5980_v13, %s5675_s23  ;;  %588 = vst [vmem:[#allocation2 + $0xd4] sm:$0x1] %v587_v61  ;;  %v313_v58 = vadd.f32 %v6061_v37, %v243_v45  ;;  %v314_v5 = vadd.f32 %v6061_v37, %v244_v20  ;;  %v5480_v61 = vld [vmem:[#allocation2 + $0x60] sm:$0xff]   ;;  %v5182_v14 = vunpack.c.h.bf16 %v5252_v30  ;;  %v2545_v35 = vrot.slane %v6098_v38, 1 }
 0x119   :  { %v1118_v25 = vshrl.u32 %v5012_v11, 16  ;;  %v1121_v62 = vshll.u32 %v5012_v11, 16  ;;  %v486_v11 = vsel %vm5791_vm4, 0, %v485_v15 }
 0x11a   :  { %v377_v7 = vmax.f32 %v313_v58, 0.0  ;;  %v378_v8 = vmax.f32 %v314_v5, 0.0  ;;  %487 = vst [vmem:[#allocation2 + $0xf0] sm:$0x1] %v486_v11  ;;  %v488_v58 = vld [vmem:[#allocation2 + $0xfc] sm:$0x1] }
 0x11b   :  { %2792 = vrot.lane.b32.xlu1 %v5980_v13, %s5672_s19  ;;  %v6293_v13 = vpop.permute.xlu1 %2616  ;;  %v1120_v52 = vrot.slane %v1118_v25, 7  ;;  %v596_v25 = vsel %vm5797_vm5, 0, %v595_v18  ;;  %v598_v11 = vld [vmem:[#allocation2 + $0x104] sm:$0x1] }
 0x11c   :  { %3098 = vrot.lane.b32.xlu0 %v2538_v50, %s5676_s24  ;;  %v5013_v12 = vpack.c.bf16 %v377_v7, %v377_v7  ;;  %v5014_v49 = vpack.c.bf16 %v378_v8, %v378_v8  ;;  %597 = vst [vmem:[#allocation2 + $0xf8] sm:$0x1] %v596_v25  ;;  %v599_v18 = vsel %vm5797_vm5, 0, %v598_v11 }
 0x11d   :  { %v1125_v57 = vrot.slane %v1120_v52, 4  ;;  %600 = vst [vmem:[#allocation2 + $0x104] sm:$0x1] %v599_v18 }
 0x11e   :  { %v1127_v24 = vshrl.u32 %v5013_v12, 16  ;;  %v1130_v32 = vshll.u32 %v5013_v12, 16 }
 0x11f   :  { %2862 = vrot.lane.b32.xlu1 %v2538_v50, %s5673_s20  ;;  %v1597_v63 = vsel %vm5791_vm4, %v1125_v57, %v1596_v33  ;;  %v245_v33 = vmul.f32 %v6091_v28, %v5181_v6 }
 0x120   :  { %2626 = vrot.lane.b32.xlu0 %v2538_v50, %s5670_s3  ;;  %v1123_v50 = vor.u32 %v1121_v62, %v1120_v52  ;;  %1598 = vst [vmem:[#allocation2 + $0xec] sm:$0x1] %v1597_v63  ;;  %v2542_v62 = vrot.slane %v5480_v61, 1  ;;  %v1129_v3 = vrot.slane %v1127_v24, 7  ;;  %v246_v63 = vmul.f32 %v6091_v28, %v5182_v14 }
 0x121   :  { %v1599_v57 = vld [vmem:[#allocation2 + $0xf0] sm:$0xf]  ;;  %v315_v8 = vadd.f32 %v6061_v37, %v245_v33 }
 0x122   :  { %v1124_v34 = vsel %vm5850_vm10, %v1116_v48, %v1123_v50  ;;  %v1135_v48 = vshrl.u32 %v5014_v49, 16  ;;  %v1138_v50 = vshll.u32 %v5014_v49, 16  ;;  %v2544_v45 = vsel %vm2517_vm6, %v2542_v62, %v2543_v40 }
 0x123   :  { %2936 = vrot.lane.b32.xlu1 %v6048_v41, %s5674_s22  ;;  %1595 = vst.msk [vmem:[#allocation2 + $0xe8] sm:$0xf] %vm407_vm0, %v1124_v34  ;;  %v1133_v20 = vrot.slane %v1129_v3, 4  ;;  %v1603_v15 = vld [vmem:[#allocation2 + $0xf8] sm:$0x1]  ;;  %v316_v12 = vadd.f32 %v6061_v37, %v246_v63  ;;  %v379_v30 = vmax.f32 %v315_v8, 0.0 }
 0x124   :  { %2700 = vrot.lane.b32.xlu0 %v6048_v41, %s5671_s18  ;;  %v6315_v41 = vpop.permute.xlu1 %2457  ;;  %v1137_v34 = vrot.slane %v1135_v48, 7  ;;  %v2546_v40 = vrot.slane %v6100_v39, 1  ;;  %v1610_v33 = vld [vmem:[#allocation2 + $0x104] sm:$0x1] }
 0x125   :  { %v380_v49 = vmax.f32 %v316_v12, 0.0 }
 0x126   :  { %v1140_v5 = vor.u32 %v1138_v50, %v1137_v34  ;;  %v1142_v7 = vrot.slane %v1137_v34, 4 }
 0x127   :  { %3030 = vrot.lane.b32.xlu1 %v6071_v43, %s5675_s23  ;;  %v5016_v62 = vpack.c.bf16 %v380_v49, %v380_v49  ;;  %v5483_v49 = vld [vmem:[#allocation2 + $0x78] sm:$0xff]  }
 0x128   :  { %2794 = vrot.lane.b32.xlu0 %v6071_v43, %s5672_s19  ;;  %v1592_v43 = vld [vmem:[#allocation2 + $0xe4] sm:$0xf]  ;;  %v6336_v0 = vpop.permute.xlu1 %2459  ;;  %v1141_v24 = vsel %vm5850_vm10, %v1133_v20, %v1140_v5  ;;  %v1604_v25 = vsel %vm5791_vm4, %v1142_v7, %v1603_v15 }
 0x129   :  { %v1593_v29 = vsel %vm5843_vm9, %v1115_v47, %v1592_v43  ;;  %v6352_v47 = vpop.permute.xlu0 %2473  ;;  %1602 = vst.msk [vmem:[#allocation2 + $0xf4] sm:$0xf] %vm407_vm0, %v1141_v24  ;;  %1605 = vst [vmem:[#allocation2 + $0xf8] sm:$0x1] %v1604_v25  ;;  %v1155_v14 = vshll.u32 %v5016_v62, 16  ;;  %v5482_v25 = vld [vmem:[#allocation2] sm:$0xff]  }
 0x12a   :  { %1594 = vst [vmem:[#allocation2 + $0xe4] sm:$0xf] %v1593_v29 }
 0x12b   :  { %3100 = vrot.lane.b32.xlu1 %v2541_v42, %s5676_s24 }
 0x12c   :  { %2864 = vrot.lane.b32.xlu0 %v2541_v42, %s5673_s20  ;;  %v6348_v52 = vpop.permute.xlu1 %2463 }
 0x12f   :  { %2628 = vrot.lane.b32.xlu1 %v2541_v42, %s5670_s3  ;;  %v1132_v42 = vor.u32 %v1130_v32, %v1129_v3  ;;  %v5015_v32 = vpack.c.bf16 %v379_v30, %v379_v30  ;;  %v3156_v30 = vsel %vm3154_vm12, %v5482_v25, %v6265_v22 }
 0x130   :  { %2938 = vrot.lane.b32.xlu0 %v5480_v61, %s5674_s22  ;;  %v6361_v29 = vpop.permute.xlu1 %2467  ;;  %v3221_v22 = vsel %vm3219_vm13, %v3156_v30, %v6257_v60 }
 0x131   :  { %v1600_v43 = vsel %vm5843_vm9, %v1132_v42, %v1599_v57  ;;  %v1144_v3 = vshrl.u32 %v5015_v32, 16  ;;  %v1147_v6 = vshll.u32 %v5015_v32, 16  ;;  %v1152_v42 = vshrl.u32 %v5016_v62, 16  ;;  %v491_v32 = vld [vmem:[#allocation2 + $0x108] sm:$0x1] }
 0x132   :  { %1601 = vst [vmem:[#allocation2 + $0xf0] sm:$0xf] %v1600_v43  ;;  %v2547_v57 = vsel %vm2517_vm6, %v2545_v35, %v2546_v40  ;;  %v6413_v62 = vld [vmem:[#allocation8] ss:$0 sm:$0xff]  ;;  %v3286_v60 = vsel %vm3284_vm14, %v3221_v22, %v6277_v46 }
 0x133   :  { %2702 = vrot.lane.b32.xlu1 %v5480_v61, %s5671_s18  ;;  %v6372_v61 = vpop.permute.xlu0 %2477  ;;  %v1146_v50 = vrot.slane %v1144_v3, 7  ;;  %v492_v3 = vsel %vm5791_vm4, 0, %v491_v32 }
 0x134   :  { %3032 = vrot.lane.b32.xlu0 %v6044_v55, %s5675_s23  ;;  %v6381_v37 = vpop.permute.xlu1 %2471  ;;  %493 = vst [vmem:[#allocation2 + $0x108] sm:$0x1] %v492_v3 }
 0x135   :  { %v1150_v34 = vrot.slane %v1146_v50, 4 }
 0x137   :  { %2796 = vrot.lane.b32.xlu1 %v6044_v55, %s5672_s19  ;;  %v489_v55 = vsel %vm5791_vm4, 0, %v488_v58 }
 0x138   :  { %3102 = vrot.lane.b32.xlu0 %v2544_v45, %s5676_s24  ;;  %490 = vst [vmem:[#allocation2 + $0xfc] sm:$0x1] %v489_v55  ;;  %v5253_v55 = vld [vmem:[#allocation3 + $0x98] sm:$0xff]  }
 0x139   :  { %v5185_v15 = vunpack.c.l.bf16 %v5253_v55  ;;  %v5186_v8 = vunpack.c.h.bf16 %v5253_v55 }
 0x13b   :  { %2866 = vrot.lane.b32.xlu1 %v2544_v45, %s5673_s20  ;;  %v6394_v20 = vpop.permute.xlu1 %2475  ;;  %v247_v18 = vmul.f32 %v6091_v28, %v5185_v15  ;;  %v248_v24 = vmul.f32 %v6091_v28, %v5186_v8  ;;  %v2548_v28 = vrot.slane %v5483_v49, 1  ;;  %v1613_v3 = vld [vmem:[#allocation2 + $0x108] sm:$0xf] }
 0x13c   :  { %2630 = vrot.lane.b32.xlu0 %v2544_v45, %s5670_s3  ;;  %v1154_v45 = vrot.slane %v1152_v42, 7  ;;  %v601_v42 = vld [vmem:[#allocation2 + $0x110] sm:$0x1] }
 0x13d   :  { %v317_v35 = vadd.f32 %v6413_v62, %v247_v18  ;;  %v318_v40 = vadd.f32 %v6413_v62, %v248_v24 }
 0x13e   :  { %v1157_v43 = vor.u32 %v1155_v14, %v1154_v45  ;;  %v1159_v63 = vrot.slane %v1154_v45, 4  ;;  %v5485_v14 = vld [vmem:[#allocation2 + $0x80] ss:$0 sps:$4 sm:$0x11]  }
 0x13f   :  { %2940 = vrot.lane.b32.xlu1 %v6098_v38, %s5674_s22  ;;  %v1606_v39 = vld [vmem:[#allocation2 + $0xfc] sm:$0xf]  ;;  %v381_v45 = vmax.f32 %v317_v35, 0.0  ;;  %v6440_v35 = vld [vmem:[#allocation6] ss:$0 sm:$0xff] }
 0x140   :  { %2704 = vrot.lane.b32.xlu0 %v6098_v38, %s5671_s18  ;;  %v1149_v38 = vor.u32 %v1147_v6, %v1146_v50  ;;  %v1158_v5 = vsel %vm5850_vm10, %v1150_v34, %v1157_v43  ;;  %v2549_v50 = vrot.slane %v5485_v14, 1  ;;  %v602_v34 = vsel %vm5797_vm5, 0, %v601_v42  ;;  %v5254_v43 = vld [vmem:[#allocation3 + $0xa0] sm:$0xff]  }
 0x141   :  { %1609 = vst.msk [vmem:[#allocation2 + $0x100] sm:$0xf] %vm407_vm0, %v1158_v5  ;;  %603 = vst [vmem:[#allocation2 + $0x110] sm:$0x1] %v602_v34  ;;  %v5189_v55 = vunpack.c.l.bf16 %v5254_v43  ;;  %v5190_v25 = vunpack.c.h.bf16 %v5254_v43 }
 0x142   :  { %v6387_v48 = vpop.permute.xlu0 %2481  ;;  %v1607_v7 = vsel %vm5843_vm9, %v1149_v38, %v1606_v39  ;;  %v5017_v38 = vpack.c.bf16 %v381_v45, %v381_v45 }
 0x143   :  { %3034 = vrot.lane.b32.xlu1 %v6129_v4, %s5675_s23  ;;  %1608 = vst [vmem:[#allocation2 + $0xfc] sm:$0xf] %v1607_v7  ;;  %v2550_v7 = vsel %vm2517_vm6, %v2548_v28, %v2549_v50  ;;  %v250_v28 = vmul.f32 %v6440_v35, %v5190_v25  ;;  %v494_v50 = vld [vmem:[#allocation2 + $0x114] sm:$0x1] }
 0x144   :  { %2798 = vrot.lane.b32.xlu0 %v6129_v4, %s5672_s19  ;;  %v1611_v4 = vsel %vm5791_vm4, %v1159_v63, %v1610_v33  ;;  %v1161_v15 = vshrl.u32 %v5017_v38, 16  ;;  %v1164_v46 = vshll.u32 %v5017_v38, 16  ;;  %v495_v43 = vsel %vm5791_vm4, 0, %v494_v50 }
 0x145   :  { %1612 = vst [vmem:[#allocation2 + $0x104] sm:$0x1] %v1611_v4  ;;  %v320_v34 = vadd.f32 %v6413_v62, %v250_v28  ;;  %496 = vst [vmem:[#allocation2 + $0x114] sm:$0x1] %v495_v43 }
 0x146   :  { %v2783_v58 = vpop.permute.xlu0 %2782 }
 0x147   :  { %3104 = vrot.lane.b32.xlu1 %v2547_v57, %s5676_s24  ;;  %v3351_v5 = vsel %vm3349_vm15, %v3286_v60, %v2783_v58 }
 0x148   :  { %2868 = vrot.lane.b32.xlu0 %v2547_v57, %s5673_s20 }
 0x149   :  { %v6406_v12 = vpop.permute.xlu1 %2479 }
 0x14a   :  { %v2853_v11 = vpop.permute.xlu0 %2852 }
 0x14b   :  { %2632 = vrot.lane.b32.xlu1 %v2547_v57, %s5670_s3  ;;  %v382_v57 = vmax.f32 %v318_v40, 0.0  ;;  %v3416_v4 = vsel %vm3414_vm1, %v3351_v5, %v2853_v11  ;;  %v249_v11 = vmul.f32 %v6440_v35, %v5189_v55  ;;  %v604_v5 = vld [vmem:[#allocation2 + $0x11c] sm:$0x1] }
 0x14c   :  { %2942 = vrot.lane.b32.xlu0 %v5483_v49, %s5674_s22 }
 0x14d   :  { %v5018_v63 = vpack.c.bf16 %v382_v57, %v382_v57  ;;  %v1617_v57 = vld [vmem:[#allocation2 + $0x110] sm:$0x1]  ;;  %v319_v38 = vadd.f32 %v6413_v62, %v249_v11 }
 0x14e   :  { %v2927_v6 = vpop.permute.xlu0 %2926 }
 0x14f   :  { %2706 = vrot.lane.b32.xlu1 %v5483_v49, %s5671_s18  ;;  %v1169_v8 = vshrl.u32 %v5018_v63, 16  ;;  %v3481_v24 = vsel %vm3479_vm2, %v3416_v4, %v2927_v6  ;;  %v1172_v58 = vshll.u32 %v5018_v63, 16  ;;  %v1163_v49 = vrot.slane %v1161_v15, 7 }
 0x150   :  { %3036 = vrot.lane.b32.xlu0 %v6082_v10, %s5675_s23  ;;  %v383_v15 = vmax.f32 %v319_v38, 0.0 }
 0x151   :  { %v6424_v39 = vpop.permute.xlu1 %2483  ;;  %v1171_v32 = vrot.slane %v1169_v8, 7  ;;  %v1166_v6 = vor.u32 %v1164_v46, %v1163_v49  ;;  %v1167_v42 = vrot.slane %v1163_v49, 4  ;;  %v384_v46 = vmax.f32 %v320_v34, 0.0 }
 0x152   :  { %v3021_v33 = vpop.permute.xlu0 %3020  ;;  %v605_v8 = vsel %vm5797_vm5, 0, %v604_v5  ;;  %v5019_v25 = vpack.c.bf16 %v383_v15, %v383_v15 }
 0x153   :  { %2800 = vrot.lane.b32.xlu1 %v6082_v10, %s5672_s19  ;;  %v3546_v10 = vsel %vm3544_vm3, %v3481_v24, %v3021_v33  ;;  %v1174_v22 = vor.u32 %v1172_v58, %v1171_v32  ;;  %v1176_v14 = vrot.slane %v1171_v32, 4  ;;  %v1614_v63 = vsel %vm5843_vm9, %v1166_v6, %v1613_v3  ;;  %606 = vst [vmem:[#allocation2 + $0x11c] sm:$0x1] %v605_v8  ;;  %v5488_v8 = vld [vmem:[#allocation2 + $0x90] sm:$0xff]  }
 0x154   :  { %3106 = vrot.lane.b32.xlu0 %v2550_v7, %s5676_s24  ;;  %1615 = vst [vmem:[#allocation2 + $0x108] sm:$0xf] %v1614_v63  ;;  %v2551_v24 = vrot.slane %v6140_v19, 1  ;;  %v2552_v58 = vrot.slane %v6150_v27, 1  ;;  %v1178_v32 = vshrl.u32 %v5019_v25, 16  ;;  %v1181_v11 = vshll.u32 %v5019_v25, 16 }
 0x155   :  { %v6436_v18 = vpop.permute.xlu1 %2784  ;;  %v1175_v33 = vsel %vm5850_vm10, %v1167_v42, %v1174_v22  ;;  %v1618_v55 = vsel %vm5791_vm4, %v1176_v14, %v1617_v57  ;;  %v1620_v14 = vld [vmem:[#allocation2 + $0x114] sm:$0xf] }
 0x156   :  { %v3091_v30 = vpop.permute.xlu0 %3090  ;;  %1616 = vst.msk [vmem:[#allocation2 + $0x10c] sm:$0xf] %vm407_vm0, %v1175_v33  ;;  %1619 = vst [vmem:[#allocation2 + $0x110] sm:$0x1] %v1618_v55  ;;  %v2553_v3 = vsel %vm2517_vm6, %v2551_v24, %v2552_v58  ;;  %v1180_v6 = vrot.slane %v1178_v32, 7  ;;  %v5255_v55 = vld [vmem:[#allocation3 + $0xa8] sm:$0xff]  }
 0x157   :  { %2870 = vrot.lane.b32.xlu1 %v2550_v7, %s5673_s20  ;;  %v3611_v40 = vsel %vm3609_vm7, %v3546_v10, %v3091_v30  ;;  %v5020_v10 = vpack.c.bf16 %v384_v46, %v384_v46  ;;  %v5193_v15 = vunpack.c.l.bf16 %v5255_v55  ;;  %v5194_v46 = vunpack.c.h.bf16 %v5255_v55  ;;  %v5489_v32 = vld [vmem:[#allocation2 + $0x98] ss:$0 sps:$4 sm:$0x11]  }
 0x158   :  { %2634 = vrot.lane.b32.xlu0 %v2550_v7, %s5670_s3  ;;  %5307 = vmatprep.mubr.msk.bf16.mxu0 %vm3694_vm11, %v3611_v40  ;;  %v5487_v7 = vld [vmem:[#allocation2 + $0xc] sm:$0xff]   ;;  %v1183_v57 = vor.u32 %v1181_v11, %v1180_v6  ;;  %v1184_v38 = vrot.slane %v1180_v6, 4  ;;  %v2555_v11 = vrot.slane %v5489_v32, 1  ;;  %v5490_v32 = vld [vmem:[#allocation2 + $0x9c] sm:$0xff]  }
 0x159   :  { %v2855_v45 = vpop.permute.xlu1 %2854  ;;  %v3158_v4 = vsel %vm3154_vm12, %v5487_v7, %v6287_v56  ;;  %v1186_v40 = vshrl.u32 %v5020_v10, 16  ;;  %v251_v24 = vmul.f32 %v6440_v35, %v5193_v15 }
 0x15a   :  { %v6452_v60 = vpop.permute.xlu0 %2618  ;;  %v3223_v30 = vsel %vm3219_vm13, %v3158_v4, %v6293_v13  ;;  %v1624_v43 = vld [vmem:[#allocation2 + $0x11c] sm:$0x1] }
 0x15b   :  { %2944 = vrot.lane.b32.xlu1 %v6140_v19, %s5674_s22  ;;  %v3288_v27 = vsel %vm3284_vm14, %v3223_v30, %v6282_v53  ;;  %v1188_v42 = vrot.slane %v1186_v40, 7  ;;  %v2554_v30 = vrot.slane %v5488_v8, 1 }
 0x15c   :  { %2708 = vrot.lane.b32.xlu0 %v6140_v19, %s5671_s18  ;;  %v1189_v19 = vshll.u32 %v5020_v10, 16  ;;  %v3353_v13 = vsel %vm3349_vm15, %v3288_v27, %v6436_v18  ;;  %v321_v10 = vadd.f32 %v6413_v62, %v251_v24  ;;  %v497_v27 = vld [vmem:[#allocation2 + $0x120] sm:$0x1] }
 0x15d   :  { %v2929_v56 = vpop.permute.xlu1 %2928  ;;  %v3418_v50 = vsel %vm3414_vm1, %v3353_v13, %v2855_v45  ;;  %v1193_v53 = vrot.slane %v1188_v42, 4  ;;  %v1621_v45 = vsel %vm5843_vm9, %v1183_v57, %v1620_v14 }
 0x15e   :  { %v2693_v49 = vpop.permute.xlu0 %2692  ;;  %v1191_v34 = vor.u32 %v1189_v19, %v1188_v42  ;;  %1622 = vst [vmem:[#allocation2 + $0x114] sm:$0xf] %v1621_v45  ;;  %v385_v19 = vmax.f32 %v321_v10, 0.0  ;;  %v5256_v45 = vld [vmem:[#allocation3 + $0xb0] sm:$0xff]  }
 0x15f   :  { %3038 = vrot.lane.b32.xlu1 %v6172_v36, %s5675_s23  ;;  %v1625_v4 = vsel %vm5791_vm4, %v1193_v53, %v1624_v43  ;;  %v5198_v24 = vunpack.c.h.bf16 %v5256_v45 }
 0x160   :  { %2802 = vrot.lane.b32.xlu0 %v6172_v36, %s5672_s19  ;;  %v3483_v36 = vsel %vm3479_vm2, %v3418_v50, %v2929_v56  ;;  %v1192_v18 = vsel %vm5850_vm10, %v1184_v38, %v1191_v34  ;;  %1626 = vst [vmem:[#allocation2 + $0x11c] sm:$0x1] %v1625_v4  ;;  %v252_v56 = vmul.f32 %v6440_v35, %v5194_v46  ;;  %v498_v50 = vsel %vm5791_vm4, 0, %v497_v27  ;;  %v5491_v27 = vld [vmem:[#allocation2 + $0xa4] ss:$0 sps:$4 sm:$0x11]  }
 0x161   :  { %v3023_v28 = vpop.permute.xlu1 %3022  ;;  %1623 = vst.msk [vmem:[#allocation2 + $0x118] sm:$0xf] %vm407_vm0, %v1192_v18  ;;  %v5021_v57 = vpack.c.bf16 %v385_v19, %v385_v19  ;;  %499 = vst [vmem:[#allocation2 + $0x120] sm:$0x1] %v498_v50  ;;  %v2557_v19 = vrot.slane %v5490_v32, 1 }
 0x162   :  { %v2787_v22 = vpop.permute.xlu0 %2786  ;;  %v3548_v33 = vsel %vm3544_vm3, %v3483_v36, %v3023_v28  ;;  %v322_v40 = vadd.f32 %v6413_v62, %v252_v56 }
 0x163   :  { %3108 = vrot.lane.b32.xlu1 %v2553_v3, %s5676_s24  ;;  %v1198_v18 = vshll.u32 %v5021_v57, 16 }
 0x164   :  { %2872 = vrot.lane.b32.xlu0 %v2553_v3, %s5673_s20  ;;  %v386_v42 = vmax.f32 %v322_v40, 0.0 }
 0x165   :  { %v3093_v63 = vpop.permute.xlu1 %3092 }
 0x166   :  { %v3613_v5 = vsel %vm3609_vm7, %v3548_v33, %v3093_v63  ;;  %v2857_v7 = vpop.permute.xlu0 %2856  ;;  %v5022_v38 = vpack.c.bf16 %v386_v42, %v386_v42 }
 0x167   :  { %2636 = vrot.lane.b32.xlu1 %v2553_v3, %s5670_s3  ;;  %5308 = vmatmul.mubr.msk.bf16.vlgmr.msra.gmra.mrb[0].mxu0 %vm3694_vm11, %v3613_v5  ;;  %v3160_v3 = vsel %vm3154_vm12, %v6197_v17, %v6315_v41  ;;  %v2556_v41 = vsel %vm2517_vm6, %v2554_v30, %v2555_v11 }
 0x168   :  { %2946 = vrot.lane.b32.xlu0 %v5488_v8, %s5674_s22  ;;  %v3225_v28 = vsel %vm3219_vm13, %v3160_v3, %v6452_v60  ;;  %v607_v60 = vld [vmem:[#allocation2 + $0x128] sm:$0x1]  ;;  %v1206_v15 = vshll.u32 %v5022_v38, 16  ;;  %v1627_v10 = vld [vmem:[#allocation2 + $0x120] sm:$0xf]  ;;  %v254_v3 = vmul.f32 %v6440_v35, %v5198_v24 }
 0x169   :  { %v6499_v58 = vpop.permute.xlu1 %2620  ;;  %v3290_v13 = vsel %vm3284_vm14, %v3225_v28, %v2693_v49  ;;  %v1195_v49 = vshrl.u32 %v5021_v57, 16  ;;  %v608_v36 = vsel %vm5797_vm5, 0, %v607_v60  ;;  %v2558_v28 = vrot.slane %v5491_v27, 1 }
 0x16a   :  { %v2931_v25 = vpop.permute.xlu0 %2930  ;;  %v3355_v17 = vsel %vm3349_vm15, %v3290_v13, %v2787_v22  ;;  %v1203_v22 = vshrl.u32 %v5022_v38, 16  ;;  %609 = vst [vmem:[#allocation2 + $0x128] sm:$0x1] %v608_v36 }
 0x16b   :  { %2710 = vrot.lane.b32.xlu1 %v5488_v8, %s5671_s18  ;;  %v3420_v34 = vsel %vm3414_vm1, %v3355_v17, %v2857_v7  ;;  %v1197_v63 = vrot.slane %v1195_v49, 7  ;;  %v5197_v8 = vunpack.c.l.bf16 %v5256_v45  ;;  %v3162_v49 = vsel %vm3154_vm12, %v6215_v31, %v6336_v0 }
 0x16c   :  { %3040 = vrot.lane.b32.xlu0 %v6148_v26, %s5675_s23  ;;  %v3485_v43 = vsel %vm3479_vm2, %v3420_v34, %v2931_v25  ;;  %v1205_v4 = vrot.slane %v1203_v22, 7  ;;  %v610_v34 = vld [vmem:[#allocation2 + $0x134] sm:$0x1] }
 0x16d   :  { %v6512_v6 = vpop.permute.xlu1 %2694  ;;  %v1200_v5 = vor.u32 %v1198_v18, %v1197_v63  ;;  %v1201_v7 = vrot.slane %v1197_v63, 4  ;;  %v253_v40 = vmul.f32 %v6440_v35, %v5197_v8  ;;  %v611_v22 = vsel %vm5797_vm5, 0, %v610_v34 }
 0x16e   :  { %v3025_v14 = vpop.permute.xlu0 %3024  ;;  %v1208_v25 = vor.u32 %v1206_v15, %v1205_v4  ;;  %v1210_v30 = vrot.slane %v1205_v4, 4  ;;  %612 = vst [vmem:[#allocation2 + $0x134] sm:$0x1] %v611_v22 }
 0x16f   :  { %2804 = vrot.lane.b32.xlu1 %v6148_v26, %s5672_s19  ;;  %v3550_v26 = vsel %vm3544_vm3, %v3485_v43, %v3025_v14  ;;  %v1628_v11 = vsel %vm5843_vm9, %v1200_v5, %v1627_v10  ;;  %v500_v14 = vld [vmem:[#allocation2 + $0x12c] sm:$0x1]  ;;  %v323_v17 = vadd.f32 %v6413_v62, %v253_v40 }
 0x170   :  { %3110 = vrot.lane.b32.xlu0 %v2556_v41, %s5676_s24  ;;  %v1209_v42 = vsel %vm5850_vm10, %v1201_v7, %v1208_v25  ;;  %1629 = vst [vmem:[#allocation2 + $0x120] sm:$0xf] %v1628_v11  ;;  %v501_v38 = vsel %vm5791_vm4, 0, %v500_v14  ;;  %v5492_v40 = vld [vmem:[#allocation2 + $0xa8] sm:$0xff]  }
 0x171   :  { %v2789_v53 = vpop.permute.xlu1 %2788  ;;  %v1631_v13 = vld [vmem:[#allocation2 + $0x128] sm:$0x1]  ;;  %1630 = vst.msk [vmem:[#allocation2 + $0x124] sm:$0xf] %vm407_vm0, %v1209_v42  ;;  %502 = vst [vmem:[#allocation2 + $0x12c] sm:$0x1] %v501_v38 }
 0x172   :  { %v3095_v33 = vpop.permute.xlu0 %3094  ;;  %v1632_v57 = vsel %vm5791_vm4, %v1210_v30, %v1631_v13  ;;  %v387_v36 = vmax.f32 %v323_v17, 0.0  ;;  %v5257_v42 = vld [vmem:[#allocation3 + $0xb8] sm:$0xff]   ;;  %v5493_v17 = vld [vmem:[#allocation2 + $0xb0] ss:$0 sps:$4 sm:$0x11]  }
 0x173   :  { %2874 = vrot.lane.b32.xlu1 %v2556_v41, %s5673_s20  ;;  %v3615_v55 = vsel %vm3609_vm7, %v3550_v26, %v3095_v33  ;;  %1633 = vst [vmem:[#allocation2 + $0x128] sm:$0x1] %v1632_v57  ;;  %v3227_v26 = vsel %vm3219_vm13, %v3162_v49, %v6499_v58  ;;  %v2559_v33 = vsel %vm2517_vm6, %v2557_v19, %v2558_v28  ;;  %v2560_v57 = vrot.slane %v5492_v40, 1  ;;  %v5494_v49 = vld [vmem:[#allocation2 + $0x30] sm:$0xff]  }
 0x174   :  { %2638 = vrot.lane.b32.xlu0 %v2556_v41, %s5670_s3  ;;  %5311 = vmatprep.mubr.msk.bf16.mxu0 %vm3694_vm11, %v3615_v55  ;;  %v324_v41 = vadd.f32 %v6413_v62, %v254_v3  ;;  %v3292_v31 = vsel %vm3284_vm14, %v3227_v26, %v6512_v6  ;;  %v5023_v63 = vpack.c.bf16 %v387_v36, %v387_v36  ;;  %v5201_v38 = vunpack.c.l.bf16 %v5257_v42 }
 0x175   :  { %v2859_v46 = vpop.permute.xlu1 %2858  ;;  %v3357_v45 = vsel %vm3349_vm15, %v3292_v31, %v2789_v53  ;;  %v1638_v11 = vld [vmem:[#allocation2 + $0x134] sm:$0x1]  ;;  %v5202_v34 = vunpack.c.h.bf16 %v5257_v42  ;;  %v3164_v36 = vsel %vm3154_vm12, %v5494_v49, %v6307_v54 }
 0x176   :  { %v6531_v56 = vpop.permute.xlu0 %2622  ;;  %v388_v43 = vmax.f32 %v324_v41, 0.0  ;;  %v3422_v5 = vsel %vm3414_vm1, %v3357_v45, %v2859_v46  ;;  %v1212_v58 = vshrl.u32 %v5023_v63, 16  ;;  %v1215_v7 = vshll.u32 %v5023_v63, 16 }
 0x177   :  { %2948 = vrot.lane.b32.xlu1 %v5490_v32, %s5674_s22  ;;  %v2561_v41 = vrot.slane %v5493_v17, 1  ;;  %v255_v26 = vmul.f32 %v6440_v35, %v5201_v38  ;;  %v5497_v38 = vld [vmem:[#allocation2 + $0x3c] sm:$0xff]  }
 0x178   :  { %2712 = vrot.lane.b32.xlu0 %v5490_v32, %s5671_s18  ;;  %v5024_v18 = vpack.c.bf16 %v388_v43, %v388_v43  ;;  %v1214_v24 = vrot.slane %v1212_v58, 7  ;;  %v1634_v30 = vld [vmem:[#allocation2 + $0x12c] sm:$0xf]  ;;  %v3229_v43 = vsel %vm3219_vm13, %v3164_v36, %v6531_v56 }
 0x179   :  { %v2933_v50 = vpop.permute.xlu1 %2932  ;;  %v2562_v54 = vsel %vm2517_vm6, %v2560_v57, %v2561_v41 }
 0x17a   :  { %v6548_v60 = vpop.permute.xlu0 %2696  ;;  %v1220_v4 = vshrl.u32 %v5024_v18, 16  ;;  %v3487_v15 = vsel %vm3479_vm2, %v3422_v5, %v2933_v50  ;;  %v1217_v46 = vor.u32 %v1215_v7, %v1214_v24  ;;  %v1218_v32 = vrot.slane %v1214_v24, 4  ;;  %v503_v5 = vld [vmem:[#allocation2 + $0x138] sm:$0x1] }
 0x17b   :  { %3042 = vrot.lane.b32.xlu1 %v6191_v59, %s5675_s23  ;;  %v3294_v31 = vsel %vm3284_vm14, %v3229_v43, %v6548_v60 }
 0x17c   :  { %2806 = vrot.lane.b32.xlu0 %v6191_v59, %s5672_s19  ;;  %v1223_v59 = vshll.u32 %v5024_v18, 16  ;;  %v1222_v10 = vrot.slane %v1220_v4, 7  ;;  %v1635_v28 = vsel %vm5843_vm9, %v1217_v46, %v1634_v30  ;;  %v325_v18 = vadd.f32 %v6413_v62, %v255_v26  ;;  %v5495_v30 = vld [vmem:[#allocation2 + $0xb4] sm:$0xff]  }
 0x17d   :  { %v3027_v0 = vpop.permute.xlu1 %3026  ;;  %1636 = vst [vmem:[#allocation2 + $0x12c] sm:$0xf] %v1635_v28  ;;  %v2563_v46 = vrot.slane %v5495_v30, 1 }
 0x17e   :  { %v2791_v55 = vpop.permute.xlu0 %2790  ;;  %v3552_v6 = vsel %vm3544_vm3, %v3487_v15, %v3027_v0  ;;  %v1225_v3 = vor.u32 %v1223_v59, %v1222_v10  ;;  %v1227_v19 = vrot.slane %v1222_v10, 4  ;;  %v389_v7 = vmax.f32 %v325_v18, 0.0  ;;  %v6610_v59 = vld [vmem:[#allocation2 + $0xc0] sm:$0xff]  }
 0x17f   :  { %3112 = vrot.lane.b32.xlu1 %v2559_v33, %s5676_s24  ;;  %v3359_v63 = vsel %vm3349_vm15, %v3294_v31, %v2791_v55  ;;  %v2761_v42 = vshll.u32 %v6610_v59, 16  ;;  %v2759_v31 = vshrl.u32 %v6610_v59, 16 }
 0x180   :  { %2876 = vrot.lane.b32.xlu0 %v2559_v33, %s5673_s20  ;;  %v1226_v14 = vsel %vm5850_vm10, %v1218_v32, %v1225_v3  ;;  %v1639_v50 = vsel %vm5791_vm4, %v1227_v19, %v1638_v11  ;;  %v5496_v32 = vld [vmem:[#allocation2 + $0xbc] ss:$0 sps:$4 sm:$0x11]   ;;  %v5258_v19 = vld [vmem:[#allocation3 + $0xc0] sm:$0xff]  }
 0x181   :  { %v3097_v8 = vpop.permute.xlu1 %3096  ;;  %1637 = vst.msk [vmem:[#allocation2 + $0x130] sm:$0xf] %vm407_vm0, %v1226_v14  ;;  %1640 = vst [vmem:[#allocation2 + $0x134] sm:$0x1] %v1639_v50  ;;  %v2564_v11 = vrot.slane %v5496_v32, 1  ;;  %v5205_v41 = vunpack.c.l.bf16 %v5258_v19  ;;  %v5206_v26 = vunpack.c.h.bf16 %v5258_v19 }
 0x182   :  { %v3617_v25 = vsel %vm3609_vm7, %v3552_v6, %v3097_v8  ;;  %v2861_v53 = vpop.permute.xlu0 %2860  ;;  %v5025_v8 = vpack.c.bf16 %v389_v7, %v389_v7  ;;  %v6623_v50 = vld [vmem:[#allocation2 + $0xc8] ss:$0 sps:$4 sm:$0x11]  }
 0x183   :  { %2640 = vrot.lane.b32.xlu1 %v2559_v33, %s5670_s3  ;;  %5312 = vmatmul.mubr.msk.bf16.gmra.mrb[4].mxu0 %vm3694_vm11, %v3617_v25  ;;  %v256_v33 = vmul.f32 %v6440_v35, %v5202_v34  ;;  %v3424_v45 = vsel %vm3414_vm1, %v3359_v63, %v2861_v53  ;;  %v613_v25 = vld [vmem:[#allocation2 + $0x140] sm:$0x1]  ;;  %v3166_v34 = vsel %vm3154_vm12, %v5497_v38, %v6348_v52 }
 0x184   :  { %2950 = vrot.lane.b32.xlu0 %v5492_v40, %s5674_s22  ;;  %v614_v53 = vsel %vm5797_vm5, 0, %v613_v25  ;;  %v2565_v36 = vsel %vm2517_vm6, %v2563_v46, %v2564_v11  ;;  %v6659_v46 = vld [vmem:[#allocation2 + $0xcc] sm:$0xff]  }
 0x185   :  { %v6574_v27 = vpop.permute.xlu1 %2624  ;;  %v326_v56 = vadd.f32 %v6413_v62, %v256_v33  ;;  %615 = vst [vmem:[#allocation2 + $0x140] sm:$0x1] %v614_v53  ;;  %v616_v53 = vld [vmem:[#allocation2 + $0x14c] sm:$0x1] }
 0x186   :  { %v2935_v13 = vpop.permute.xlu0 %2934  ;;  %v3231_v18 = vsel %vm3219_vm13, %v3166_v34, %v6574_v27  ;;  %v258_v27 = vmul.f32 %v6440_v35, %v5206_v26  ;;  %v617_v11 = vsel %vm5797_vm5, 0, %v616_v53  ;;  %v6671_v34 = vld [vmem:[#allocation2 + $0xd4] ss:$0 sps:$4 sm:$0x11]  }
 0x187   :  { %2714 = vrot.lane.b32.xlu1 %v5492_v40, %s5671_s18  ;;  %v3489_v60 = vsel %vm3479_vm2, %v3424_v45, %v2935_v13  ;;  %v390_v55 = vmax.f32 %v326_v56, 0.0  ;;  %v1229_v40 = vshrl.u32 %v5025_v8, 16  ;;  %v1232_v13 = vshll.u32 %v5025_v8, 16  ;;  %618 = vst [vmem:[#allocation2 + $0x14c] sm:$0x1] %v617_v11 }
 0x188   :  { %3044 = vrot.lane.b32.xlu0 %v6181_v51, %s5675_s23  ;;  %v257_v45 = vmul.f32 %v6440_v35, %v5205_v41  ;;  %v328_v25 = vadd.f32 %v6413_v62, %v258_v27  ;;  %v2847_v41 = vrot.slane %v6623_v50, 1  ;;  %v3084_v27 = vrot.slane %v6659_v46, 1 }
 0x189   :  { %v6590_v22 = vpop.permute.xlu1 %2698  ;;  %v5026_v24 = vpack.c.bf16 %v390_v55, %v390_v55  ;;  %v1231_v57 = vrot.slane %v1229_v40, 7  ;;  %v3004_v53 = vshll.u32 %v6671_v34, 16 }
 0x18a   :  { %v3029_v0 = vpop.permute.xlu0 %3028  ;;  %v392_v40 = vmax.f32 %v328_v25, 0.0 }
 0x18b   :  { %2808 = vrot.lane.b32.xlu1 %v6181_v51, %s5672_s19  ;;  %v504_v51 = vsel %vm5791_vm4, 0, %v503_v5  ;;  %v3554_v4 = vsel %vm3544_vm3, %v3489_v60, %v3029_v0  ;;  %v1237_v3 = vshrl.u32 %v5026_v24, 16  ;;  %v1240_v14 = vshll.u32 %v5026_v24, 16 }
 0x18c   :  { %3114 = vrot.lane.b32.xlu0 %v2562_v54, %s5676_s24  ;;  %505 = vst [vmem:[#allocation2 + $0x138] sm:$0x1] %v504_v51  ;;  %v2763_v0 = vrot.slane %v2761_v42, 1  ;;  %v1234_v63 = vor.u32 %v1232_v13, %v1231_v57  ;;  %v3296_v5 = vsel %vm3284_vm14, %v3231_v18, %v6590_v22  ;;  %v2766_v60 = vshll.u32 %v6623_v50, 16  ;;  %v1645_v55 = vld [vmem:[#allocation2 + $0x140] sm:$0x1] }
 0x18d   :  { %v6604_v58 = vpop.permute.xlu1 %2792  ;;  %v1239_v17 = vrot.slane %v1237_v3, 7  ;;  %v506_v51 = vld [vmem:[#allocation2 + $0x144] sm:$0x1]  ;;  %v5028_v38 = vpack.c.bf16 %v392_v40, %v392_v40  ;;  %v5498_v18 = vld [vmem:[#allocation2 + $0x48] sm:$0xff]  }
 0x18e   :  { %v3099_v15 = vpop.permute.xlu0 %3098  ;;  %v3361_v8 = vsel %vm3349_vm15, %v3296_v5, %v6604_v58  ;;  %v2764_v42 = vor.u32 %v2763_v0, %v2759_v31  ;;  %v2768_v13 = vrot.slane %v2766_v60, 1 }
 0x18f   :  { %2878 = vrot.lane.b32.xlu1 %v2562_v54, %s5673_s20  ;;  %v3619_v6 = vsel %vm3609_vm7, %v3554_v4, %v3099_v15  ;;  %v1242_v56 = vor.u32 %v1240_v14, %v1239_v17  ;;  %v1244_v52 = vrot.slane %v1239_v17, 4  ;;  %v2846_v17 = vrot.slane %v6610_v59, 1 }
 0x190   :  { %2642 = vrot.lane.b32.xlu0 %v2562_v54, %s5670_s3  ;;  %5315 = vmatprep.mubr.msk.bf16.mxu0 %vm3694_vm11, %v3619_v6  ;;  %v1235_v54 = vrot.slane %v1231_v57, 4  ;;  %v327_v6 = vadd.f32 %v6413_v62, %v257_v45  ;;  %v1254_v31 = vshrl.u32 %v5028_v38, 16  ;;  %v1257_v0 = vshll.u32 %v5028_v38, 16 }
 0x191   :  { %v2863_v10 = vpop.permute.xlu1 %2862  ;;  %v1646_v22 = vsel %vm5791_vm4, %v1244_v52, %v1645_v55  ;;  %v2848_v52 = vsel %vm2517_vm6, %v2846_v17, %v2847_v41 }
 0x192   :  { %v6618_v28 = vpop.permute.xlu0 %2626  ;;  %v1243_v15 = vsel %vm5850_vm10, %v1235_v54, %v1242_v56  ;;  %1647 = vst [vmem:[#allocation2 + $0x140] sm:$0x1] %v1646_v22  ;;  %v391_v32 = vmax.f32 %v327_v6, 0.0  ;;  %v6678_v54 = vld [vmem:[#allocation2 + $0xd8] sm:$0xff]   ;;  %v2769_v56 = vsel %vm2068_vm8, %v2764_v42, %v2768_v13  ;;  %v1256_v5 = vrot.slane %v1254_v31, 7 }
 0x193   :  { %2952 = vrot.lane.b32.xlu1 %v5495_v30, %s5674_s22  ;;  %v1641_v43 = vld [vmem:[#allocation2 + $0x138] sm:$0xf]  ;;  %1644 = vst.msk [vmem:[#allocation2 + $0x13c] sm:$0xf] %vm407_vm0, %v1243_v15  ;;  %v1652_v15 = vld [vmem:[#allocation2 + $0x14c] sm:$0x1] }
 0x194   :  { %2716 = vrot.lane.b32.xlu0 %v5495_v30, %s5671_s18  ;;  %v1642_v7 = vsel %vm5843_vm9, %v1234_v63, %v1641_v43  ;;  %v3426_v30 = vsel %vm3414_vm1, %v3361_v8, %v2863_v10  ;;  %v5027_v10 = vpack.c.bf16 %v391_v32, %v391_v32  ;;  %v5435_v22 = vld [vmem:[#allocation2 + $0xe0] ss:$0 sps:$4 sm:$0x11]   ;;  %v1261_v8 = vrot.slane %v1256_v5, 4  ;;  %v5259_v42 = vld [vmem:[#allocation3 + $0xc8] sm:$0xff]  }
 0x195   :  { %v2937_v49 = vpop.permute.xlu1 %2936  ;;  %1643 = vst [vmem:[#allocation2 + $0x138] sm:$0xf] %v1642_v7  ;;  %v2997_v7 = vshrl.u32 %v6659_v46, 16  ;;  %v2262_v40 = vshrl.u32 %v6678_v54, 16  ;;  %v2269_v38 = vshll.u32 %v5435_v22, 16 }
 0x196   :  { %v6628_v33 = vpop.permute.xlu0 %2700  ;;  %v3491_v58 = vsel %vm3479_vm2, %v3426_v30, %v2937_v49  ;;  %v2999_v49 = vshll.u32 %v6659_v46, 16  ;;  %v1246_v43 = vshrl.u32 %v5027_v10, 16  ;;  %v1249_v26 = vshll.u32 %v5027_v10, 16 }
 0x197   :  { %3046 = vrot.lane.b32.xlu1 %v6202_v21, %s5675_s23  ;;  %v2264_v30 = vshll.u32 %v6678_v54, 16  ;;  %v5209_v10 = vunpack.c.l.bf16 %v5259_v42 }
 0x198   :  { %2810 = vrot.lane.b32.xlu0 %v6202_v21, %s5672_s19  ;;  %v507_v21 = vsel %vm5791_vm4, 0, %v506_v51  ;;  %v1248_v50 = vrot.slane %v1246_v43, 7  ;;  %v3001_v55 = vrot.slane %v2999_v49, 1  ;;  %v6688_v51 = vld [vmem:[#allocation2 + $0xe4] sm:$0xff]   ;;  %v2567_v43 = vrot.slane %v5435_v22, 1 }
 0x199   :  { %v3031_v4 = vpop.permute.xlu1 %3030  ;;  %508 = vst [vmem:[#allocation2 + $0x144] sm:$0x1] %v507_v21  ;;  %v1259_v21 = vor.u32 %v1257_v0, %v1256_v5 }
 0x19a   :  { %v6653_v24 = vpop.permute.xlu0 %2794  ;;  %v3556_v3 = vsel %vm3544_vm3, %v3491_v58, %v3031_v4  ;;  %v1251_v4 = vor.u32 %v1249_v26, %v1248_v50  ;;  %v1252_v6 = vrot.slane %v1248_v50, 4  ;;  %v259_v26 = vmul.f32 %v6440_v35, %v5209_v10 }
 0x19b   :  { %3116 = vrot.lane.b32.xlu1 %v2565_v36, %s5676_s24 }
 0x19c   :  { %2880 = vrot.lane.b32.xlu0 %v2565_v36, %s5673_s20 }
 0x19d   :  { %v3101_v19 = vpop.permute.xlu1 %3100 }
 0x19e   :  { %v3621_v14 = vsel %vm3609_vm7, %v3556_v3, %v3101_v19  ;;  %v2865_v57 = vpop.permute.xlu0 %2864  ;;  %v6703_v3 = vld [vmem:[#allocation2 + $0xec] ss:$0 sps:$4 sm:$0x11]   ;;  %v1653_v19 = vsel %vm5791_vm4, %v1261_v8, %v1652_v15 }
 0x19f   :  { %2644 = vrot.lane.b32.xlu1 %v2565_v36, %s5670_s3  ;;  %5316 = vmatmul.mubr.msk.bf16.gmra.mrb[8].mxu0 %vm3694_vm11, %v3621_v14  ;;  %v3168_v36 = vsel %vm3154_vm12, %v5498_v18, %v6323_v44  ;;  %v3085_v44 = vrot.slane %v6671_v34, 1  ;;  %1654 = vst [vmem:[#allocation2 + $0x14c] sm:$0x1] %v1653_v19  ;;  %v5210_v14 = vunpack.c.h.bf16 %v5259_v42  ;;  %v2566_v34 = vrot.slane %v6678_v54, 1  ;;  %v5499_v19 = vld [vmem:[#allocation2 + $0x54] sm:$0xff]  }
 0x1a0   :  { %2954 = vrot.lane.b32.xlu0 %v6610_v59, %s5674_s22  ;;  %v1648_v60 = vld [vmem:[#allocation2 + $0x144] sm:$0xf]  ;;  %v2274_v18 = vshrl.u32 %v6688_v51, 16 }
 0x1a1   :  { %v6676_v63 = vpop.permute.xlu1 %2628  ;;  %v1649_v32 = vsel %vm5843_vm9, %v1251_v4, %v1648_v60  ;;  %v3086_v41 = vsel %vm2517_vm6, %v3084_v27, %v3085_v44  ;;  %v260_v31 = vmul.f32 %v6440_v35, %v5210_v14  ;;  %v3002_v60 = vor.u32 %v3001_v55, %v2997_v7 }
 0x1a2   :  { %v2939_v45 = vpop.permute.xlu0 %2938  ;;  %1650 = vst [vmem:[#allocation2 + $0x144] sm:$0xf] %v1649_v32  ;;  %v3006_v27 = vrot.slane %v3004_v53, 1  ;;  %v2568_v15 = vsel %vm2517_vm6, %v2566_v34, %v2567_v43 }
 0x1a3   :  { %2718 = vrot.lane.b32.xlu1 %v6610_v59, %s5671_s18  ;;  %v3233_v59 = vsel %vm3219_vm13, %v3168_v36, %v6618_v28  ;;  %v1260_v28 = vsel %vm5850_vm10, %v1252_v6, %v1259_v21  ;;  %v2281_v36 = vshll.u32 %v6703_v3, 16  ;;  %v330_v5 = vadd.f32 %v6413_v62, %v260_v31  ;;  %v509_v6 = vld [vmem:[#allocation2 + $0x150] sm:$0x1] }
 0x1a4   :  { %3048 = vrot.lane.b32.xlu0 %v2769_v56, %s5675_s23  ;;  %v3298_v11 = vsel %vm3284_vm14, %v3233_v59, %v6628_v33  ;;  %v2276_v33 = vshll.u32 %v6688_v51, 16  ;;  %1651 = vst.msk [vmem:[#allocation2 + $0x148] sm:$0xf] %vm407_vm0, %v1260_v28  ;;  %v2271_v21 = vrot.slane %v2269_v38, 1  ;;  %v510_v59 = vsel %vm5791_vm4, 0, %v509_v6 }
 0x1a5   :  { %v6694_v25 = vpop.permute.xlu1 %2702  ;;  %v3363_v13 = vsel %vm3349_vm15, %v3298_v11, %v6653_v24  ;;  %v394_v22 = vmax.f32 %v330_v5, 0.0  ;;  %v2283_v7 = vrot.slane %v2281_v36, 1  ;;  %511 = vst [vmem:[#allocation2 + $0x150] sm:$0x1] %v510_v59  ;;  %v3007_v32 = vsel %vm2068_vm8, %v3002_v60, %v3006_v27  ;;  %v512_v59 = vld [vmem:[#allocation2 + $0x15c] sm:$0x1] }
 0x1a6   :  { %v3033_v58 = vpop.permute.xlu0 %3032  ;;  %v3428_v17 = vsel %vm3414_vm1, %v3363_v13, %v2865_v57  ;;  %v2266_v57 = vrot.slane %v2264_v30, 1  ;;  %v619_v30 = vld [vmem:[#allocation2 + $0x158] sm:$0x1]  ;;  %v6747_v13 = vld [vmem:[#allocation2 + $0xf0] sm:$0xff]  }
 0x1a7   :  { %2812 = vrot.lane.b32.xlu1 %v2769_v56, %s5672_s19  ;;  %v3493_v24 = vsel %vm3479_vm2, %v3428_v17, %v2939_v45  ;;  %v2278_v56 = vrot.slane %v2276_v33, 1  ;;  %v329_v45 = vadd.f32 %v6413_v62, %v259_v26  ;;  %v5030_v53 = vpack.c.bf16 %v394_v22, %v394_v22  ;;  %v5260_v33 = vld [vmem:[#allocation3 + $0xd0] sm:$0xff]  }
 0x1a8   :  { %3118 = vrot.lane.b32.xlu0 %v2848_v52, %s5676_s24  ;;  %v3558_v0 = vsel %vm3544_vm3, %v3493_v24, %v3033_v58  ;;  %v620_v11 = vsel %vm5797_vm5, 0, %v619_v30  ;;  %v2569_v17 = vrot.slane %v6688_v51, 1  ;;  %v2286_v30 = vshrl.u32 %v6747_v13, 16 }
 0x1a9   :  { %v6718_v49 = vpop.permute.xlu1 %2796  ;;  %v393_v44 = vmax.f32 %v329_v45, 0.0  ;;  %v2279_v62 = vor.u32 %v2278_v56, %v2274_v18  ;;  %v1271_v28 = vshrl.u32 %v5030_v53, 16  ;;  %621 = vst [vmem:[#allocation2 + $0x158] sm:$0x1] %v620_v11  ;;  %v1274_v31 = vshll.u32 %v5030_v53, 16 }
 0x1aa   :  { %v3103_v50 = vpop.permute.xlu0 %3102  ;;  %v6767_v56 = vld [vmem:[#allocation2 + $0xf8] ss:$0 sps:$4 sm:$0x11]   ;;  %v513_v53 = vsel %vm5791_vm4, 0, %v512_v59 }
 0x1ab   :  { %2882 = vrot.lane.b32.xlu1 %v2848_v52, %s5673_s20  ;;  %v3623_v54 = vsel %vm3609_vm7, %v3558_v0, %v3103_v50  ;;  %v2267_v52 = vor.u32 %v2266_v57, %v2262_v40  ;;  %v5029_v55 = vpack.c.bf16 %v393_v44, %v393_v44  ;;  %v2284_v14 = vsel %vm2068_vm8, %v2279_v62, %v2283_v7 }
 0x1ac   :  { %3120 = vrot.lane.b32.xlu0 %v3086_v41, %s5676_s24  ;;  %5319 = vmatprep.mubr.msk.bf16.mxu0 %vm3694_vm11, %v3623_v54  ;;  %v2570_v41 = vrot.slane %v6703_v3, 1  ;;  %v1273_v24 = vrot.slane %v1271_v28, 7  ;;  %v5213_v0 = vunpack.c.l.bf16 %v5260_v33  ;;  %v5214_v50 = vunpack.c.h.bf16 %v5260_v33  ;;  %514 = vst [vmem:[#allocation2 + $0x15c] sm:$0x1] %v513_v53 }
 0x1ad   :  { %v2867_v4 = vpop.permute.xlu1 %2866  ;;  %v1263_v40 = vshrl.u32 %v5029_v55, 16  ;;  %v2272_v10 = vsel %vm2068_vm8, %v2267_v52, %v2271_v21  ;;  %v1266_v34 = vshll.u32 %v5029_v55, 16  ;;  %v6780_v52 = vld [vmem:[#allocation8] ss:$0 sm:$0xff]  ;;  %v2293_v11 = vshll.u32 %v6767_v56, 16 }
 0x1ae   :  { %v6733_v8 = vpop.permute.xlu0 %2630  ;;  %v1278_v45 = vrot.slane %v1273_v24, 4  ;;  %v261_v5 = vmul.f32 %v6440_v35, %v5213_v0  ;;  %v2571_v7 = vsel %vm2517_vm6, %v2569_v17, %v2570_v41 }
 0x1af   :  { %2956 = vrot.lane.b32.xlu1 %v6659_v46, %s5674_s22  ;;  %v3170_v46 = vsel %vm3154_vm12, %v5499_v19, %v6361_v29  ;;  %v1265_v29 = vrot.slane %v1263_v40, 7  ;;  %v622_v40 = vld [vmem:[#allocation2 + $0x164] sm:$0x1]  ;;  %v2295_v41 = vrot.slane %v2293_v11, 1 }
 0x1b0   :  { %2646 = vrot.lane.b32.xlu0 %v2568_v15, %s5670_s3  ;;  %v3235_v38 = vsel %vm3219_vm13, %v3170_v46, %v6676_v63  ;;  %v2288_v63 = vshll.u32 %v6747_v13, 16  ;;  %v1659_v27 = vld [vmem:[#allocation2 + $0x158] sm:$0x1]  ;;  %v262_v15 = vmul.f32 %v6440_v35, %v5214_v50  ;;  %v331_v21 = vadd.f32 %v6780_v52, %v261_v5 }
 0x1b1   :  { %v2941_v58 = vpop.permute.xlu1 %2940  ;;  %v3300_v43 = vsel %vm3284_vm14, %v3235_v38, %v6694_v25  ;;  %v1268_v18 = vor.u32 %v1266_v34, %v1265_v29  ;;  %v1269_v36 = vrot.slane %v1265_v29, 4  ;;  %v1276_v25 = vor.u32 %v1274_v31, %v1273_v24  ;;  %v6799_v38 = vld [vmem:[#allocation2 + $0xfc] sm:$0xff]  }
 0x1b2   :  { %v6745_v42 = vpop.permute.xlu0 %2704  ;;  %v3365_v57 = vsel %vm3349_vm15, %v3300_v43, %v6718_v49  ;;  %v1660_v6 = vsel %vm5791_vm4, %v1278_v45, %v1659_v27  ;;  %v332_v55 = vadd.f32 %v6780_v52, %v262_v15  ;;  %v623_v19 = vsel %vm5797_vm5, 0, %v622_v40  ;;  %v5501_v24 = vld [vmem:[#allocation2 + $0x60] sm:$0xff]  }
 0x1b3   :  { %3050 = vrot.lane.b32.xlu1 %v3007_v32, %s5675_s23  ;;  %v3430_v54 = vsel %vm3414_vm1, %v3365_v57, %v2867_v4  ;;  %v1277_v22 = vsel %vm5850_vm10, %v1269_v36, %v1276_v25  ;;  %1661 = vst [vmem:[#allocation2 + $0x158] sm:$0x1] %v1660_v6  ;;  %v2290_v32 = vrot.slane %v2288_v63, 1  ;;  %624 = vst [vmem:[#allocation2 + $0x164] sm:$0x1] %v623_v19  ;;  %v2573_v36 = vrot.slane %v6767_v56, 1 }
 0x1b4   :  { %2720 = vrot.lane.b32.xlu0 %v6688_v51, %s5671_s18  ;;  %v1655_v51 = vld [vmem:[#allocation2 + $0x150] sm:$0xf]  ;;  %v3495_v60 = vsel %vm3479_vm2, %v3430_v54, %v2941_v58  ;;  %1658 = vst.msk [vmem:[#allocation2 + $0x154] sm:$0xf] %vm407_vm0, %v1277_v22  ;;  %v395_v58 = vmax.f32 %v331_v21, 0.0  ;;  %v396_v28 = vmax.f32 %v332_v55, 0.0  ;;  %v3172_v43 = vsel %vm3154_vm12, %v5501_v24, %v6343_v23 }
 0x1b5   :  { %v3035_v26 = vpop.permute.xlu1 %3034  ;;  %v1656_v49 = vsel %vm5843_vm9, %v1268_v18, %v1655_v51  ;;  %v2291_v17 = vor.u32 %v2290_v32, %v2286_v30  ;;  %v3237_v0 = vsel %vm3219_vm13, %v3172_v43, %v6733_v8  ;;  %v2572_v18 = vrot.slane %v6747_v13, 1  ;;  %v1662_v54 = vld [vmem:[#allocation2 + $0x15c] sm:$0xf]  ;;  %v5441_v45 = vld [vmem:[#allocation2 + $0x104] ss:$0 sps:$4 sm:$0x11]  }
 0x1b6   :  { %v6762_v3 = vpop.permute.xlu0 %2798  ;;  %v3560_v4 = vsel %vm3544_vm3, %v3495_v60, %v3035_v26  ;;  %1657 = vst [vmem:[#allocation2 + $0x150] sm:$0xf] %v1656_v49  ;;  %v5031_v33 = vpack.c.bf16 %v395_v58, %v395_v58  ;;  %v3302_v63 = vsel %vm3284_vm14, %v3237_v0, %v6745_v42  ;;  %v2300_v5 = vshll.u32 %v6799_v38, 16  ;;  %v6844_v19 = vld [vmem:[#allocation6] ss:$0 sm:$0xff] }
 0x1b7   :  { %2485 = vrot.lane.b32.xlu1 %v2272_v10, %s5666_s16  ;;  %v3367_v25 = vsel %vm3349_vm15, %v3302_v63, %v6762_v3  ;;  %v6818_v8 = vsel %vm2068_vm8, %v2291_v17, %v2295_v41  ;;  %v2298_v32 = vshrl.u32 %v6799_v38, 16  ;;  %v2305_v58 = vshll.u32 %v5441_v45, 16 }
 0x1b8   :  { %2814 = vrot.lane.b32.xlu0 %v2284_v14, %s5672_s19  ;;  %v1280_v29 = vshrl.u32 %v5031_v33, 16  ;;  %v1283_v34 = vshll.u32 %v5031_v33, 16  ;;  %v2302_v11 = vrot.slane %v2300_v5, 1 }
 0x1b9   :  { %v3105_v44 = vpop.permute.xlu1 %3104 }
 0x1ba   :  { %v3625_v62 = vsel %vm3609_vm7, %v3560_v4, %v3105_v44  ;;  %v2869_v35 = vpop.permute.xlu0 %2868  ;;  %v1282_v57 = vrot.slane %v1280_v29, 7  ;;  %v1666_v15 = vld [vmem:[#allocation2 + $0x164] sm:$0x1]  ;;  %v2576_v44 = vrot.slane %v5441_v45, 1  ;;  %v2303_v41 = vor.u32 %v2302_v11, %v2298_v32 }
 0x1bb   :  { %2487 = vrot.lane.b32.xlu1 %v2284_v14, %s5666_s16  ;;  %5320 = vmatmul.mubr.msk.bf16.gmra.mrb[12].mxu0 %vm3694_vm11, %v3625_v62  ;;  %v5032_v14 = vpack.c.bf16 %v396_v28, %v396_v28  ;;  %v3432_v60 = vsel %vm3414_vm1, %v3367_v25, %v2869_v35  ;;  %v2574_v35 = vsel %vm2517_vm6, %v2572_v18, %v2573_v36  ;;  %v2307_v29 = vrot.slane %v2305_v58, 1 }
 0x1bc   :  { %2884 = vrot.lane.b32.xlu0 %v2571_v7, %s5673_s20  ;;  %v1285_v42 = vor.u32 %v1283_v34, %v1282_v57  ;;  %v1286_v56 = vrot.slane %v1282_v57, 4 }
 0x1bd   :  { %v6796_v46 = vpop.permute.xlu1 %2632  ;;  %v1288_v26 = vshrl.u32 %v5032_v14, 16  ;;  %v1291_v31 = vshll.u32 %v5032_v14, 16  ;;  %v2308_v25 = vsel %vm2068_vm8, %v2303_v41, %v2307_v29 }
 0x1be   :  { %v2943_v10 = vpop.permute.xlu0 %2942  ;;  %v1663_v22 = vsel %vm5843_vm9, %v1285_v42, %v1662_v54 }
 0x1bf   :  { %2648 = vrot.lane.b32.xlu1 %v2571_v7, %s5670_s3  ;;  %v1290_v23 = vrot.slane %v1288_v26, 7  ;;  %v3497_v4 = vsel %vm3479_vm2, %v3432_v60, %v2943_v10  ;;  %1664 = vst [vmem:[#allocation2 + $0x15c] sm:$0xf] %v1663_v22  ;;  %v5261_v7 = vld [vmem:[#allocation3 + $0xd8] sm:$0xff]  }
 0x1c0   :  { %2958 = vrot.lane.b32.xlu0 %v6747_v13, %s5674_s22  ;;  %v5217_v53 = vunpack.c.l.bf16 %v5261_v7  ;;  %v5218_v30 = vunpack.c.h.bf16 %v5261_v7  ;;  %v515_v26 = vld [vmem:[#allocation2 + $0x168] sm:$0x1] }
 0x1c1   :  { %v6807_v50 = vpop.permute.xlu1 %2706  ;;  %v1293_v49 = vor.u32 %v1291_v31, %v1290_v23  ;;  %v1295_v27 = vrot.slane %v1290_v23, 4  ;;  %v5503_v31 = vld [vmem:[#allocation2 + $0x6c] sm:$0xff]   ;;  %v516_v36 = vsel %vm5791_vm4, 0, %v515_v26 }
 0x1c2   :  { %v3037_v51 = vpop.permute.xlu0 %3036  ;;  %v263_v33 = vmul.f32 %v6844_v19, %v5217_v53  ;;  %v264_v14 = vmul.f32 %v6844_v19, %v5218_v30  ;;  %v3174_v0 = vsel %vm3154_vm12, %v5503_v31, %v6381_v37  ;;  %v625_v23 = vld [vmem:[#allocation2 + $0x170] sm:$0x1]  ;;  %517 = vst [vmem:[#allocation2 + $0x168] sm:$0x1] %v516_v36  ;;  %v628_v36 = vld [vmem:[#allocation2 + $0x17c] sm:$0x1] }
 0x1c3   :  { %2722 = vrot.lane.b32.xlu1 %v6747_v13, %s5671_s18  ;;  %v2575_v13 = vrot.slane %v6799_v38, 1  ;;  %v3562_v6 = vsel %vm3544_vm3, %v3497_v4, %v3037_v51  ;;  %v1294_v59 = vsel %vm5850_vm10, %v1286_v56, %v1293_v49  ;;  %v1667_v62 = vsel %vm5791_vm4, %v1295_v27, %v1666_v15  ;;  %v6877_v15 = vld [vmem:[#allocation2 + $0x108] sm:$0xff]  }
 0x1c4   :  { %3052 = vrot.lane.b32.xlu0 %v6818_v8, %s5675_s23  ;;  %1665 = vst.msk [vmem:[#allocation2 + $0x160] sm:$0xf] %vm407_vm0, %v1294_v59  ;;  %1668 = vst [vmem:[#allocation2 + $0x164] sm:$0x1] %v1667_v62  ;;  %v333_v17 = vadd.f32 %v6780_v52, %v263_v33  ;;  %v334_v34 = vadd.f32 %v6780_v52, %v264_v14  ;;  %v3239_v18 = vsel %vm3219_vm13, %v3174_v0, %v6796_v46 }
 0x1c5   :  { %v2801_v3 = vpop.permute.xlu1 %2800  ;;  %v6842_v28 = vsel %vm2517_vm6, %v2575_v13, %v2576_v44  ;;  %v3304_v54 = vsel %vm3284_vm14, %v3239_v18, %v6807_v50  ;;  %v626_v46 = vsel %vm5797_vm5, 0, %v625_v23  ;;  %v5262_v50 = vld [vmem:[#allocation3 + $0xe0] sm:$0xff]   ;;  %v2312_v30 = vshll.u32 %v6877_v15, 16 }
 0x1c6   :  { %v3107_v21 = vpop.permute.xlu0 %3106  ;;  %v397_v43 = vmax.f32 %v333_v17, 0.0  ;;  %v398_v63 = vmax.f32 %v334_v34, 0.0  ;;  %v3369_v45 = vsel %vm3349_vm15, %v3304_v54, %v2801_v3  ;;  %627 = vst [vmem:[#allocation2 + $0x170] sm:$0x1] %v626_v46  ;;  %v5221_v62 = vunpack.c.l.bf16 %v5262_v50  ;;  %v518_v34 = vld [vmem:[#allocation2 + $0x174] sm:$0x1] }
 0x1c7   :  { %2816 = vrot.lane.b32.xlu1 %v6818_v8, %s5672_s19  ;;  %v3627_v55 = vsel %vm3609_vm7, %v3562_v6, %v3107_v21  ;;  %v5222_v53 = vunpack.c.h.bf16 %v5262_v50  ;;  %v519_v31 = vsel %vm5791_vm4, 0, %v518_v34  ;;  %v2310_v0 = vshrl.u32 %v6877_v15, 16 }
 0x1c8   :  { %3122 = vrot.lane.b32.xlu0 %v2574_v35, %s5676_s24  ;;  %5323 = vmatprep.mubr.msk.bf16.mxu0 %vm3694_vm11, %v3627_v55  ;;  %v5033_v51 = vpack.c.bf16 %v397_v43, %v397_v43  ;;  %v5034_v37 = vpack.c.bf16 %v398_v63, %v398_v63  ;;  %v6883_v55 = vld [vmem:[#allocation2 + $0x110] ss:$0 sps:$4 sm:$0x11]   ;;  %v265_v58 = vmul.f32 %v6844_v19, %v5221_v62  ;;  %v2314_v63 = vrot.slane %v2312_v30, 1 }
 0x1c9   :  { %v2871_v40 = vpop.permute.xlu1 %2870  ;;  %v1669_v32 = vld [vmem:[#allocation2 + $0x168] sm:$0xf]  ;;  %v266_v14 = vmul.f32 %v6844_v19, %v5222_v53  ;;  %v2317_v43 = vshll.u32 %v6883_v55, 16  ;;  %520 = vst [vmem:[#allocation2 + $0x174] sm:$0x1] %v519_v31 }
 0x1ca   :  { %v6847_v10 = vpop.permute.xlu0 %2634  ;;  %v1297_v42 = vshrl.u32 %v5033_v51, 16  ;;  %v3434_v60 = vsel %vm3414_vm1, %v3369_v45, %v2871_v40  ;;  %v1305_v49 = vshrl.u32 %v5034_v37, 16  ;;  %v1300_v13 = vshll.u32 %v5033_v51, 16  ;;  %v5504_v51 = vld [vmem:[#allocation2 + $0x78] sm:$0xff]  }
 0x1cb   :  { %2886 = vrot.lane.b32.xlu1 %v2574_v35, %s5673_s20  ;;  %v1308_v59 = vshll.u32 %v5034_v37, 16  ;;  %v335_v29 = vadd.f32 %v6780_v52, %v265_v58  ;;  %v336_v26 = vadd.f32 %v6780_v52, %v266_v14  ;;  %v3176_v23 = vsel %vm3154_vm12, %v5504_v51, %v6352_v47  ;;  %v5445_v30 = vld [vmem:[#allocation2 + $0x11c] ss:$0 sps:$4 sm:$0x11]  }
 0x1cc   :  { %3124 = vrot.lane.b32.xlu0 %v6842_v28, %s5676_s24  ;;  %v1299_v4 = vrot.slane %v1297_v42, 7  ;;  %v1307_v3 = vrot.slane %v1305_v49, 7  ;;  %v629_v37 = vsel %vm5797_vm5, 0, %v628_v36  ;;  %v2319_v42 = vrot.slane %v2317_v43, 1 }
 0x1cd   :  { %v2945_v24 = vpop.permute.xlu1 %2944  ;;  %v1673_v33 = vld [vmem:[#allocation2 + $0x170] sm:$0x1]  ;;  %v399_v18 = vmax.f32 %v335_v29, 0.0  ;;  %v400_v54 = vmax.f32 %v336_v26, 0.0  ;;  %630 = vst [vmem:[#allocation2 + $0x17c] sm:$0x1] %v629_v37  ;;  %v2315_v50 = vor.u32 %v2314_v63, %v2310_v0 }
 0x1ce   :  { %v6857_v57 = vpop.permute.xlu0 %2708  ;;  %v3499_v27 = vsel %vm3479_vm2, %v3434_v60, %v2945_v24  ;;  %v1302_v6 = vor.u32 %v1300_v13, %v1299_v4  ;;  %v1303_v21 = vrot.slane %v1299_v4, 4  ;;  %v1312_v11 = vrot.slane %v1307_v3, 4  ;;  %v6927_v13 = vld [vmem:[#allocation2 + $0x114] sm:$0xff]  }
 0x1cf   :  { %2960 = vrot.lane.b32.xlu1 %v6799_v38, %s5674_s22  ;;  %v5035_v45 = vpack.c.bf16 %v399_v18, %v399_v18  ;;  %v5036_v47 = vpack.c.bf16 %v400_v54, %v400_v54  ;;  %v2581_v14 = vrot.slane %v6927_v13, 1  ;;  %v2322_v0 = vshrl.u32 %v6927_v13, 16 }
 0x1d0   :  { %2650 = vrot.lane.b32.xlu0 %v2574_v35, %s5670_s3  ;;  %v1670_v40 = vsel %vm5843_vm9, %v1302_v6, %v1669_v32  ;;  %v1674_v41 = vsel %vm5791_vm4, %v1312_v11, %v1673_v33  ;;  %v1676_v62 = vld [vmem:[#allocation2 + $0x174] sm:$0xf]  ;;  %v2324_v32 = vshll.u32 %v6927_v13, 16  ;;  %v2329_v18 = vshll.u32 %v5445_v30, 16 }
 0x1d1   :  { %v3039_v5 = vpop.permute.xlu1 %3038  ;;  %1671 = vst [vmem:[#allocation2 + $0x168] sm:$0xf] %v1670_v40  ;;  %1675 = vst [vmem:[#allocation2 + $0x170] sm:$0x1] %v1674_v41  ;;  %v1317_v4 = vshll.u32 %v5035_v45, 16 }
 0x1d2   :  { %v6873_v56 = vpop.permute.xlu0 %2802  ;;  %v3564_v44 = vsel %vm3544_vm3, %v3499_v27, %v3039_v5  ;;  %v1314_v27 = vshrl.u32 %v5035_v45, 16  ;;  %v2326_v63 = vrot.slane %v2324_v32, 1  ;;  %v5264_v32 = vld [vmem:[#allocation3 + $0xf0] sm:$0xff]  }
 0x1d3   :  { %3054 = vrot.lane.b32.xlu1 %v2308_v25, %s5675_s23 }
 0x1d4   :  { %2724 = vrot.lane.b32.xlu0 %v6799_v38, %s5671_s18  ;;  %v1310_v38 = vor.u32 %v1308_v59, %v1307_v3  ;;  %v1316_v6 = vrot.slane %v1314_v27, 7 }
 0x1d5   :  { %v3109_v22 = vpop.permute.xlu1 %3108 }
 0x1d6   :  { %v3629_v7 = vsel %vm3609_vm7, %v3564_v44, %v3109_v22  ;;  %v2873_v35 = vpop.permute.xlu0 %2872  ;;  %v1325_v44 = vshll.u32 %v5036_v47, 16  ;;  %v1320_v11 = vrot.slane %v1316_v6, 4 }
 0x1d7   :  { %2489 = vrot.lane.b32.xlu1 %v6818_v8, %s5666_s16  ;;  %5324 = vmatmul.mubr.msk.bf16.gmra.mrb[16].mxu0 %vm3694_vm11, %v3629_v7  ;;  %v1311_v8 = vsel %vm5850_vm10, %v1303_v21, %v1310_v38  ;;  %v6935_v7 = vsel %vm2068_vm8, %v2315_v50, %v2319_v42  ;;  %v1319_v38 = vor.u32 %v1317_v4, %v1316_v6 }
 0x1d8   :  { %2818 = vrot.lane.b32.xlu0 %v2308_v25, %s5672_s19  ;;  %1672 = vst.msk [vmem:[#allocation2 + $0x16c] sm:$0xf] %vm407_vm0, %v1311_v8  ;;  %v2582_v8 = vrot.slane %v5445_v30, 1 }
 0x1d9   :  { %v6894_v17 = vpop.permute.xlu1 %2636 }
 0x1da   :  { %v2947_v24 = vpop.permute.xlu0 %2946  ;;  %v6959_v51 = vsel %vm2517_vm6, %v2581_v14, %v2582_v8 }
 0x1db   :  { %2491 = vrot.lane.b32.xlu1 %v2308_v25, %s5666_s16  ;;  %v3241_v25 = vsel %vm3219_vm13, %v3176_v23, %v6847_v10 }
 0x1dc   :  { %2888 = vrot.lane.b32.xlu0 %v6842_v28, %s5673_s20  ;;  %v3306_v5 = vsel %vm3284_vm14, %v3241_v25, %v6857_v57  ;;  %v1322_v57 = vshrl.u32 %v5036_v47, 16  ;;  %v5505_v25 = vld [vmem:[#allocation2 + $0x84] sm:$0xff]   ;;  %v2331_v47 = vrot.slane %v2329_v18, 1  ;;  %v5506_v18 = vld [vmem:[#allocation2 + $0x90] sm:$0xff]  }
 0x1dd   :  { %v6916_v46 = vpop.permute.xlu1 %2710  ;;  %v3371_v49 = vsel %vm3349_vm15, %v3306_v5, %v6873_v56  ;;  %v3178_v45 = vsel %vm3154_vm12, %v5505_v25, %v6394_v20  ;;  %v521_v20 = vld [vmem:[#allocation2 + $0x180] sm:$0x1] }
 0x1de   :  { %v3041_v60 = vpop.permute.xlu0 %3040  ;;  %v3436_v10 = vsel %vm3414_vm1, %v3371_v49, %v2873_v35  ;;  %v1324_v59 = vrot.slane %v1322_v57, 7  ;;  %v2579_v35 = vrot.slane %v6883_v55, 1  ;;  %v1677_v55 = vsel %vm5843_vm9, %v1319_v38, %v1676_v62 }
 0x1df   :  { %2652 = vrot.lane.b32.xlu1 %v6842_v28, %s5670_s3  ;;  %v3501_v22 = vsel %vm3479_vm2, %v3436_v10, %v2947_v24  ;;  %v2578_v28 = vrot.slane %v6877_v15, 1  ;;  %1678 = vst [vmem:[#allocation2 + $0x174] sm:$0xf] %v1677_v55  ;;  %v5263_v24 = vld [vmem:[#allocation3 + $0xe8] sm:$0xff]   ;;  %v3243_v42 = vsel %vm3219_vm13, %v3178_v45, %v6894_v17 }
 0x1e0   :  { %2962 = vrot.lane.b32.xlu0 %v6877_v15, %s5674_s22  ;;  %v3566_v56 = vsel %vm3544_vm3, %v3501_v22, %v3041_v60  ;;  %v1327_v58 = vor.u32 %v1325_v44, %v1324_v59  ;;  %v1329_v40 = vrot.slane %v1324_v59, 4  ;;  %v5225_v26 = vunpack.c.l.bf16 %v5263_v24 }
 0x1e1   :  { %v2805_v3 = vpop.permute.xlu1 %2804  ;;  %v2580_v43 = vsel %vm2517_vm6, %v2578_v28, %v2579_v35  ;;  %v5226_v31 = vunpack.c.h.bf16 %v5263_v24  ;;  %v2327_v60 = vor.u32 %v2326_v63, %v2322_v0  ;;  %v3308_v50 = vsel %vm3284_vm14, %v3243_v42, %v6916_v46  ;;  %v6999_v24 = vld [vmem:[#allocation2 + $0x128] ss:$0 sps:$4 sm:$0x11]  }
 0x1e2   :  { %v3111_v21 = vpop.permute.xlu0 %3110  ;;  %v1328_v29 = vsel %vm5850_vm10, %v1320_v11, %v1327_v58  ;;  %v267_v23 = vmul.f32 %v6844_v19, %v5225_v26  ;;  %v3373_v10 = vsel %vm3349_vm15, %v3308_v50, %v2805_v3  ;;  %v522_v22 = vsel %vm5791_vm4, 0, %v521_v20  ;;  %v6993_v11 = vld [vmem:[#allocation2 + $0x120] sm:$0xff]  }
 0x1e3   :  { %2726 = vrot.lane.b32.xlu1 %v6877_v15, %s5671_s18  ;;  %v3631_v53 = vsel %vm3609_vm7, %v3566_v56, %v3111_v21  ;;  %v1680_v15 = vld [vmem:[#allocation2 + $0x17c] sm:$0x1]  ;;  %1679 = vst.msk [vmem:[#allocation2 + $0x178] sm:$0xf] %vm407_vm0, %v1328_v29  ;;  %v268_v37 = vmul.f32 %v6844_v19, %v5226_v31  ;;  %v631_v56 = vld [vmem:[#allocation2 + $0x188] sm:$0x1]  ;;  %v2332_v28 = vsel %vm2068_vm8, %v2327_v60, %v2331_v47  ;;  %v5229_v29 = vunpack.c.l.bf16 %v5264_v32 }
 0x1e4   :  { %3056 = vrot.lane.b32.xlu0 %v6935_v7, %s5675_s23  ;;  %5327 = vmatprep.mubr.msk.bf16.mxu0 %vm3694_vm11, %v3631_v53  ;;  %v1681_v34 = vsel %vm5791_vm4, %v1329_v40, %v1680_v15  ;;  %v337_v5 = vadd.f32 %v6780_v52, %v267_v23  ;;  %523 = vst [vmem:[#allocation2 + $0x180] sm:$0x1] %v522_v22  ;;  %v632_v21 = vsel %vm5797_vm5, 0, %v631_v56  ;;  %v2336_v26 = vshll.u32 %v6993_v11, 16  ;;  %v524_v60 = vld [vmem:[#allocation2 + $0x18c] sm:$0x1] }
 0x1e5   :  { %v2875_v33 = vpop.permute.xlu1 %2874  ;;  %1682 = vst [vmem:[#allocation2 + $0x17c] sm:$0x1] %v1681_v34  ;;  %v338_v49 = vadd.f32 %v6780_v52, %v268_v37  ;;  %633 = vst [vmem:[#allocation2 + $0x188] sm:$0x1] %v632_v21  ;;  %v2341_v50 = vshll.u32 %v6999_v24, 16  ;;  %v2334_v20 = vshrl.u32 %v6993_v11, 16 }
 0x1e6   :  { %v6946_v41 = vpop.permute.xlu0 %2638  ;;  %v401_v4 = vmax.f32 %v337_v5, 0.0  ;;  %v3438_v17 = vsel %vm3414_vm1, %v3373_v10, %v2875_v33  ;;  %v2338_v10 = vrot.slane %v2336_v26, 1 }
 0x1e7   :  { %2820 = vrot.lane.b32.xlu1 %v6935_v7, %s5672_s19  ;;  %v402_v44 = vmax.f32 %v338_v49, 0.0 }
 0x1e8   :  { %3126 = vrot.lane.b32.xlu0 %v2580_v43, %s5676_s24  ;;  %v5037_v6 = vpack.c.bf16 %v401_v4, %v401_v4 }
 0x1e9   :  { %v2949_v36 = vpop.permute.xlu1 %2948  ;;  %v5038_v3 = vpack.c.bf16 %v402_v44, %v402_v44  ;;  %v634_v44 = vld [vmem:[#allocation2 + $0x194] sm:$0x1] }
 0x1ea   :  { %v6962_v54 = vpop.permute.xlu0 %2712  ;;  %v3503_v46 = vsel %vm3479_vm2, %v3438_v17, %v2949_v36  ;;  %v1331_v35 = vshrl.u32 %v5037_v6, 16  ;;  %v1334_v40 = vshll.u32 %v5037_v6, 16  ;;  %v3180_v36 = vsel %vm3154_vm12, %v5506_v18, %v6372_v61 }
 0x1eb   :  { %2890 = vrot.lane.b32.xlu1 %v2580_v43, %s5673_s20  ;;  %v1339_v38 = vshrl.u32 %v5038_v3, 16  ;;  %v1342_v55 = vshll.u32 %v5038_v3, 16  ;;  %v1683_v0 = vld [vmem:[#allocation2 + $0x180] sm:$0xf]  ;;  %v635_v6 = vsel %vm5797_vm5, 0, %v634_v44  ;;  %v2343_v3 = vrot.slane %v2341_v50, 1 }
 0x1ec   :  { %3128 = vrot.lane.b32.xlu0 %v6959_v51, %s5676_s24  ;;  %v1333_v58 = vrot.slane %v1331_v35, 7  ;;  %v1687_v37 = vld [vmem:[#allocation2 + $0x188] sm:$0x1]  ;;  %636 = vst [vmem:[#allocation2 + $0x194] sm:$0x1] %v635_v6 }
 0x1ed   :  { %v3043_v27 = vpop.permute.xlu1 %3042  ;;  %v1341_v15 = vrot.slane %v1339_v38, 7  ;;  %v7044_v38 = vld [vmem:[#allocation2 + $0x12c] sm:$0xff]  }
 0x1ee   :  { %v6977_v57 = vpop.permute.xlu0 %2806  ;;  %v3568_v59 = vsel %vm3544_vm3, %v3503_v46, %v3043_v27  ;;  %v1336_v14 = vor.u32 %v1334_v40, %v1333_v58  ;;  %v1337_v8 = vrot.slane %v1333_v58, 4  ;;  %v525_v27 = vsel %vm5791_vm4, 0, %v524_v60 }
 0x1ef   :  { %2964 = vrot.lane.b32.xlu1 %v6927_v13, %s5674_s22  ;;  %v1344_v31 = vor.u32 %v1342_v55, %v1341_v15  ;;  %v1346_v63 = vrot.slane %v1341_v15, 4  ;;  %526 = vst [vmem:[#allocation2 + $0x18c] sm:$0x1] %v525_v27 }
 0x1f0   :  { %2654 = vrot.lane.b32.xlu0 %v2580_v43, %s5670_s3  ;;  %v5230_v43 = vunpack.c.h.bf16 %v5264_v32  ;;  %v1684_v23 = vsel %vm5843_vm9, %v1336_v14, %v1683_v0 }
 0x1f1   :  { %v3113_v62 = vpop.permute.xlu1 %3112  ;;  %v1345_v5 = vsel %vm5850_vm10, %v1337_v8, %v1344_v31  ;;  %1685 = vst [vmem:[#allocation2 + $0x180] sm:$0xf] %v1684_v23  ;;  %v1688_v61 = vsel %vm5791_vm4, %v1346_v63, %v1687_v37  ;;  %v2348_v31 = vshll.u32 %v7044_v38, 16  ;;  %v2587_v23 = vrot.slane %v7044_v38, 1 }
 0x1f2   :  { %v3633_v53 = vsel %vm3609_vm7, %v3568_v59, %v3113_v62  ;;  %v2877_v30 = vpop.permute.xlu0 %2876  ;;  %v270_v25 = vmul.f32 %v6844_v19, %v5230_v43  ;;  %1686 = vst.msk [vmem:[#allocation2 + $0x184] sm:$0xf] %vm407_vm0, %v1345_v5  ;;  %1689 = vst [vmem:[#allocation2 + $0x188] sm:$0x1] %v1688_v61  ;;  %v2339_v62 = vor.u32 %v2338_v10, %v2334_v20  ;;  %v5265_v5 = vld [vmem:[#allocation3 + $0xf8] sm:$0xff]   ;;  %v5507_v61 = vld [vmem:[#allocation2 + $0x9c] sm:$0xff]  }
 0x1f3   :  { %3058 = vrot.lane.b32.xlu1 %v2332_v28, %s5675_s23  ;;  %5328 = vmatmul.mubr.msk.bf16.gmra.mrb[20].mxu0 %vm3694_vm11, %v3633_v53  ;;  %v5449_v43 = vld [vmem:[#allocation2 + $0x134] ss:$0 sps:$4 sm:$0x11]   ;;  %v2350_v27 = vrot.slane %v2348_v31, 1  ;;  %v5508_v31 = vld [vmem:[#allocation2 + $0xa8] sm:$0xff]  }
 0x1f4   :  { %2728 = vrot.lane.b32.xlu0 %v6927_v13, %s5671_s18  ;;  %v269_v13 = vmul.f32 %v6844_v19, %v5229_v29  ;;  %v7051_v55 = vsel %vm2068_vm8, %v2339_v62, %v2343_v3  ;;  %v2584_v29 = vrot.slane %v6993_v11, 1  ;;  %v1694_v18 = vld [vmem:[#allocation2 + $0x194] sm:$0x1]  ;;  %v2588_v37 = vrot.slane %v5449_v43, 1 }
 0x1f5   :  { %v6997_v33 = vpop.permute.xlu1 %2640 }
 0x1f6   :  { %v2951_v34 = vpop.permute.xlu0 %2950  ;;  %v339_v42 = vadd.f32 %v6780_v52, %v269_v13  ;;  %v7080_v10 = vsel %vm2517_vm6, %v2587_v23, %v2588_v37 }
 0x1f7   :  { %2493 = vrot.lane.b32.xlu1 %v6935_v7, %s5666_s16  ;;  %v3245_v7 = vsel %vm3219_vm13, %v3180_v36, %v6946_v41  ;;  %v340_v41 = vadd.f32 %v6780_v52, %v270_v25 }
 0x1f8   :  { %2822 = vrot.lane.b32.xlu0 %v2332_v28, %s5672_s19  ;;  %v3310_v47 = vsel %vm3284_vm14, %v3245_v7, %v6962_v54  ;;  %v403_v54 = vmax.f32 %v339_v42, 0.0  ;;  %v3182_v42 = vsel %vm3154_vm12, %v5507_v61, %v6406_v12 }
 0x1f9   :  { %v7013_v45 = vpop.permute.xlu1 %2714  ;;  %v3375_v4 = vsel %vm3349_vm15, %v3310_v47, %v6977_v57  ;;  %v404_v22 = vmax.f32 %v340_v41, 0.0  ;;  %v5233_v47 = vunpack.c.l.bf16 %v5265_v5  ;;  %v3247_v50 = vsel %vm3219_vm13, %v3182_v42, %v6997_v33 }
 0x1fa   :  { %v3045_v49 = vpop.permute.xlu0 %3044  ;;  %v3440_v17 = vsel %vm3414_vm1, %v3375_v4, %v2877_v30  ;;  %v5039_v46 = vpack.c.bf16 %v403_v54, %v403_v54  ;;  %v2346_v41 = vshrl.u32 %v7044_v38, 16  ;;  %v2353_v4 = vshll.u32 %v5449_v43, 16 }
 0x1fb   :  { %2495 = vrot.lane.b32.xlu1 %v2332_v28, %s5666_s16  ;;  %v3505_v57 = vsel %vm3479_vm2, %v3440_v17, %v2951_v34  ;;  %v5040_v59 = vpack.c.bf16 %v404_v22, %v404_v22  ;;  %v2585_v34 = vrot.slane %v6999_v24, 1  ;;  %v3312_v12 = vsel %vm3284_vm14, %v3247_v50, %v7013_v45 }
 0x1fc   :  { %2892 = vrot.lane.b32.xlu0 %v6959_v51, %s5673_s20  ;;  %v3570_v28 = vsel %vm3544_vm3, %v3505_v57, %v3045_v49  ;;  %v1348_v53 = vshrl.u32 %v5039_v46, 16  ;;  %v1351_v30 = vshll.u32 %v5039_v46, 16  ;;  %v5234_v49 = vunpack.c.h.bf16 %v5265_v5 }
 0x1fd   :  { %v2809_v56 = vpop.permute.xlu1 %2808  ;;  %v1356_v32 = vshrl.u32 %v5040_v59, 16  ;;  %v1359_v58 = vshll.u32 %v5040_v59, 16  ;;  %v2586_v60 = vsel %vm2517_vm6, %v2584_v29, %v2585_v34  ;;  %v271_v54 = vmul.f32 %v6844_v19, %v5233_v47  ;;  %v7104_v34 = vld [vmem:[#allocation2 + $0x138] sm:$0xff]  }
 0x1fe   :  { %v3115_v21 = vpop.permute.xlu0 %3114  ;;  %v1350_v15 = vrot.slane %v1348_v53, 7  ;;  %v3377_v44 = vsel %vm3349_vm15, %v3312_v12, %v2809_v56  ;;  %v272_v33 = vmul.f32 %v6844_v19, %v5234_v49  ;;  %v2351_v45 = vor.u32 %v2350_v27, %v2346_v41  ;;  %v527_v19 = vld [vmem:[#allocation2 + $0x198] sm:$0x1] }
 0x1ff   :  { %2656 = vrot.lane.b32.xlu1 %v6959_v51, %s5670_s3  ;;  %v3635_v35 = vsel %vm3609_vm7, %v3570_v28, %v3115_v21  ;;  %v1358_v8 = vrot.slane %v1356_v32, 7  ;;  %v1690_v51 = vld [vmem:[#allocation2 + $0x18c] sm:$0xf]  ;;  %v341_v6 = vadd.f32 %v6780_v52, %v271_v54  ;;  %v2355_v46 = vrot.slane %v2353_v4, 1  ;;  %v637_v32 = vld [vmem:[#allocation2 + $0x1a0] sm:$0x1] }
 0x200   :  { %2966 = vrot.lane.b32.xlu0 %v6993_v11, %s5674_s22  ;;  %5331 = vmatprep.mubr.msk.bf16.mxu0 %vm3694_vm11, %v3635_v35  ;;  %v1353_v26 = vor.u32 %v1351_v30, %v1350_v15  ;;  %v1354_v0 = vrot.slane %v1350_v15, 4  ;;  %v342_v28 = vadd.f32 %v6780_v52, %v272_v33  ;;  %v528_v53 = vsel %vm5791_vm4, 0, %v527_v19  ;;  %v5509_v33 = vld [vmem:[#allocation2 + $0xb4] sm:$0xff]   ;;  %v5453_v19 = vld [vmem:[#allocation2 + $0x14c] ss:$0 sps:$4 sm:$0x11]  }
 0x201   :  { %v2879_v40 = vpop.permute.xlu1 %2878  ;;  %v1361_v63 = vor.u32 %v1359_v58, %v1358_v8  ;;  %v1363_v13 = vrot.slane %v1358_v8, 4  ;;  %v405_v21 = vmax.f32 %v341_v6, 0.0  ;;  %v2356_v52 = vsel %vm2068_vm8, %v2351_v45, %v2355_v46  ;;  %529 = vst [vmem:[#allocation2 + $0x198] sm:$0x1] %v528_v53  ;;  %v5452_v6 = vld [vmem:[#allocation2 + $0x144] sm:$0xff]  }
 0x202   :  { %v7046_v14 = vpop.permute.xlu0 %2642  ;;  %v3442_v22 = vsel %vm3414_vm1, %v3377_v44, %v2879_v40  ;;  %v406_v35 = vmax.f32 %v342_v28, 0.0  ;;  %v638_v40 = vsel %vm5797_vm5, 0, %v637_v32  ;;  %v2358_v4 = vshrl.u32 %v7104_v34, 16  ;;  %v640_v53 = vld [vmem:[#allocation2 + $0x1ac] sm:$0x1] }
 0x203   :  { %2730 = vrot.lane.b32.xlu1 %v6993_v11, %s5671_s18  ;;  %v1691_v11 = vsel %vm5843_vm9, %v1353_v26, %v1690_v51  ;;  %v1362_v24 = vsel %vm5850_vm10, %v1354_v0, %v1361_v63  ;;  %v1695_v7 = vsel %vm5791_vm4, %v1363_v13, %v1694_v18  ;;  %v5041_v30 = vpack.c.bf16 %v405_v21, %v405_v21 }
 0x204   :  { %3060 = vrot.lane.b32.xlu0 %v7051_v55, %s5675_s23  ;;  %1692 = vst [vmem:[#allocation2 + $0x18c] sm:$0xf] %v1691_v11  ;;  %1693 = vst.msk [vmem:[#allocation2 + $0x190] sm:$0xf] %vm407_vm0, %v1362_v24  ;;  %v5042_v58 = vpack.c.bf16 %v406_v35, %v406_v35  ;;  %v3184_v0 = vsel %vm3154_vm12, %v5508_v31, %v6387_v48  ;;  %v2360_v48 = vshll.u32 %v7104_v34, 16  ;;  %v2590_v28 = vrot.slane %v7104_v34, 1 }
 0x205   :  { %v2953_v36 = vpop.permute.xlu1 %2952  ;;  %1696 = vst [vmem:[#allocation2 + $0x194] sm:$0x1] %v1695_v7  ;;  %v1365_v8 = vshrl.u32 %v5041_v30, 16  ;;  %639 = vst [vmem:[#allocation2 + $0x1a0] sm:$0x1] %v638_v40  ;;  %v1368_v26 = vshll.u32 %v5041_v30, 16  ;;  %v3249_v13 = vsel %vm3219_vm13, %v3184_v0, %v7046_v14 }
 0x206   :  { %v7061_v25 = vpop.permute.xlu0 %2716  ;;  %v3507_v57 = vsel %vm3479_vm2, %v3442_v22, %v2953_v36  ;;  %v1373_v29 = vshrl.u32 %v5042_v58, 16  ;;  %v1376_v37 = vshll.u32 %v5042_v58, 16  ;;  %v7114_v7 = vld [vmem:[#allocation2 + $0x140] ss:$0 sps:$4 sm:$0x11]   ;;  %v2362_v12 = vrot.slane %v2360_v48, 1 }
 0x207   :  { %2824 = vrot.lane.b32.xlu1 %v7051_v55, %s5672_s19  ;;  %v1367_v43 = vrot.slane %v1365_v8, 7  ;;  %v3314_v11 = vsel %vm3284_vm14, %v3249_v13, %v7061_v25  ;;  %v2365_v16 = vshll.u32 %v7114_v7, 16  ;;  %v3186_v22 = vsel %vm3154_vm12, %v5509_v33, %v6424_v39 }
 0x208   :  { %3130 = vrot.lane.b32.xlu0 %v2586_v60, %s5676_s24  ;;  %v1375_v63 = vrot.slane %v1373_v29, 7  ;;  %v1697_v61 = vld [vmem:[#allocation2 + $0x198] sm:$0xf]  ;;  %v2363_v44 = vor.u32 %v2362_v12, %v2358_v4  ;;  %v2591_v21 = vrot.slane %v7114_v7, 1  ;;  %v2372_v35 = vshll.u32 %v5452_v6, 16 }
 0x209   :  { %v3047_v20 = vpop.permute.xlu1 %3046  ;;  %v1370_v36 = vor.u32 %v1368_v26, %v1367_v43  ;;  %v1371_v23 = vrot.slane %v1367_v43, 4  ;;  %v2594_v58 = vrot.slane %v5453_v19, 1  ;;  %v641_v40 = vsel %vm5797_vm5, 0, %v640_v53 }
 0x20a   :  { %v2811_v17 = vpop.permute.xlu0 %2810  ;;  %v3572_v56 = vsel %vm3544_vm3, %v3507_v57, %v3047_v20  ;;  %v1380_v14 = vrot.slane %v1375_v63, 4  ;;  %642 = vst [vmem:[#allocation2 + $0x1ac] sm:$0x1] %v641_v40  ;;  %v2370_v29 = vshrl.u32 %v5452_v6, 16  ;;  %v2377_v43 = vshll.u32 %v5453_v19, 16 }
 0x20b   :  { %2894 = vrot.lane.b32.xlu1 %v2586_v60, %s5673_s20  ;;  %v3379_v5 = vsel %vm3349_vm15, %v3314_v11, %v2811_v17  ;;  %v1698_v25 = vsel %vm5843_vm9, %v1370_v36, %v1697_v61  ;;  %v2367_v17 = vrot.slane %v2365_v16, 1 }
 0x20c   :  { %3132 = vrot.lane.b32.xlu0 %v7080_v10, %s5676_s24  ;;  %1699 = vst [vmem:[#allocation2 + $0x198] sm:$0xf] %v1698_v25 }
 0x20d   :  { %v3117_v3 = vpop.permute.xlu1 %3116  ;;  %v2368_v39 = vsel %vm2068_vm8, %v2363_v44, %v2367_v17 }
 0x20e   :  { %v3637_v59 = vsel %vm3609_vm7, %v3572_v56, %v3117_v3  ;;  %v2881_v62 = vpop.permute.xlu0 %2880  ;;  %v530_v3 = vld [vmem:[#allocation2 + $0x1a4] sm:$0x1] }
 0x20f   :  { %2968 = vrot.lane.b32.xlu1 %v7044_v38, %s5674_s22  ;;  %5332 = vmatmul.mubr.msk.bf16.gmra.mrb[24].mxu0 %vm3694_vm11, %v3637_v59  ;;  %v3444_v42 = vsel %vm3414_vm1, %v3379_v5, %v2881_v62  ;;  %v531_v59 = vsel %vm5791_vm4, 0, %v530_v3  ;;  %v7176_v5 = vld [vmem:[#allocation2 + $0x158] ss:$0 sps:$4 sm:$0x11]  }
 0x210   :  { %2658 = vrot.lane.b32.xlu0 %v2586_v60, %s5670_s3  ;;  %v1701_v60 = vld [vmem:[#allocation2 + $0x1a0] sm:$0x1]  ;;  %532 = vst [vmem:[#allocation2 + $0x1a4] sm:$0x1] %v531_v59 }
 0x211   :  { %v2645_v15 = vpop.permute.xlu1 %2644 }
 0x212   :  { %v2955_v51 = vpop.permute.xlu0 %2954  ;;  %v3251_v57 = vsel %vm3219_vm13, %v3186_v22, %v2645_v15 }
 0x213   :  { %3062 = vrot.lane.b32.xlu1 %v2356_v52, %s5675_s23  ;;  %v3509_v49 = vsel %vm3479_vm2, %v3444_v42, %v2955_v51  ;;  %v2592_v51 = vsel %vm2517_vm6, %v2590_v28, %v2591_v21 }
 0x214   :  { %2732 = vrot.lane.b32.xlu0 %v7044_v38, %s5671_s18  ;;  %v1378_v38 = vor.u32 %v1376_v37, %v1375_v63  ;;  %v2379_v63 = vrot.slane %v2377_v43, 1 }
 0x215   :  { %v2719_v18 = vpop.permute.xlu1 %2718 }
 0x216   :  { %v3049_v24 = vpop.permute.xlu0 %3048  ;;  %v1379_v50 = vsel %vm5850_vm10, %v1371_v23, %v1378_v38  ;;  %v3316_v46 = vsel %vm3284_vm14, %v3251_v57, %v2719_v18  ;;  %v7171_v23 = vld [vmem:[#allocation2 + $0x150] sm:$0xff]  }
 0x217   :  { %2497 = vrot.lane.b32.xlu1 %v7051_v55, %s5666_s16  ;;  %v1702_v55 = vsel %vm5791_vm4, %v1380_v14, %v1701_v60  ;;  %v3574_v41 = vsel %vm3544_vm3, %v3509_v49, %v3049_v24  ;;  %1700 = vst.msk [vmem:[#allocation2 + $0x19c] sm:$0xf] %vm407_vm0, %v1379_v50  ;;  %v5510_v24 = vld [vmem:[#allocation2 + $0xd8] sm:$0xff]   ;;  %v2384_v48 = vshll.u32 %v7171_v23, 16  ;;  %v2389_v50 = vshll.u32 %v7176_v5, 16 }
 0x218   :  { %2826 = vrot.lane.b32.xlu0 %v2356_v52, %s5672_s19  ;;  %1703 = vst [vmem:[#allocation2 + $0x1a0] sm:$0x1] %v1702_v55 }
 0x219   :  { %v2813_v47 = vpop.permute.xlu1 %2812  ;;  %v2386_v49 = vrot.slane %v2384_v48, 1  ;;  %v2391_v33 = vrot.slane %v2389_v50, 1 }
 0x21a   :  { %v3119_v27 = vpop.permute.xlu0 %3118 }
 0x21b   :  { %2499 = vrot.lane.b32.xlu1 %v2356_v52, %s5666_s16  ;;  %v3639_v9 = vsel %vm3609_vm7, %v3574_v41, %v3119_v27  ;;  %v2593_v52 = vrot.slane %v5452_v6, 1 }
 0x21c   :  { %2896 = vrot.lane.b32.xlu0 %v7080_v10, %s5673_s20  ;;  %5335 = vmatprep.mubr.msk.bf16.mxu0 %vm3694_vm11, %v3639_v9 }
 0x21d   :  { %v2883_v20 = vpop.permute.xlu1 %2882  ;;  %v2595_v2 = vsel %vm2517_vm6, %v2593_v52, %v2594_v58 }
 0x21e   :  { %v3121_v54 = vpop.permute.xlu0 %3120 }
 0x21f   :  { %2660 = vrot.lane.b32.xlu1 %v7080_v10, %s5670_s3  ;;  %v3381_v10 = vsel %vm3349_vm15, %v3316_v46, %v2813_v47  ;;  %v2382_v47 = vshrl.u32 %v7171_v23, 16 }
 0x220   :  { %2970 = vrot.lane.b32.xlu0 %v7104_v34, %s5674_s22  ;;  %v3446_v62 = vsel %vm3414_vm1, %v3381_v10, %v2883_v20  ;;  %v5511_v10 = vld [vmem:[#allocation2 + $0xe4] sm:$0xff]  }
 0x221   :  { %v2957_v45 = vpop.permute.xlu1 %2956  ;;  %v2387_v17 = vor.u32 %v2386_v49, %v2382_v47 }
 0x222   :  { %v2647_v56 = vpop.permute.xlu0 %2646  ;;  %v3511_v30 = vsel %vm3479_vm2, %v3446_v62, %v2957_v45 }
 0x223   :  { %2734 = vrot.lane.b32.xlu1 %v7104_v34, %s5671_s18  ;;  %v2374_v34 = vrot.slane %v2372_v35, 1  ;;  %v7204_v53 = vsel %vm2068_vm8, %v2387_v17, %v2391_v33 }
 0x224   :  { %3064 = vrot.lane.b32.xlu0 %v2368_v39, %s5675_s23 }
 0x225   :  { %v3051_v32 = vpop.permute.xlu1 %3050  ;;  %v2375_v0 = vor.u32 %v2374_v34, %v2370_v29  ;;  %v2596_v29 = vrot.slane %v7171_v23, 1 }
 0x226   :  { %v3576_v15 = vsel %vm3544_vm3, %v3511_v30, %v3051_v32  ;;  %v2721_v8 = vpop.permute.xlu0 %2720  ;;  %v7208_v30 = vld [vmem:[#allocation2 + $0x15c] sm:$0xff]  }
 0x227   :  { %2828 = vrot.lane.b32.xlu1 %v2368_v39, %s5672_s19  ;;  %v3641_v1 = vsel %vm3609_vm7, %v3576_v15, %v3121_v54  ;;  %v2380_v36 = vsel %vm2068_vm8, %v2375_v0, %v2379_v63 }
 0x228   :  { %5336 = vmatmul.mubr.msk.bf16.gmra.mrb[28].mxu0 %vm3694_vm11, %v3641_v1  ;;  %3134 = vrot.lane.b32.xlu0 %v2592_v51, %s5676_s24 }
 0x229   :  { %v2486_v26 = vpop.permute.xlu1 %2485 }
 0x22a   :  { %v2815_v31 = vpop.permute.xlu0 %2814  ;;  %v3188_v7 = vsel %vm3154_vm12, %v5510_v24, %v2486_v26  ;;  %v2599_v24 = vrot.slane %v7208_v30, 1 }
 0x22b   :  { %2898 = vrot.lane.b32.xlu1 %v2592_v51, %s5673_s20  ;;  %v3253_v38 = vsel %vm3219_vm13, %v3188_v7, %v2647_v56 }
 0x22c   :  { %3136 = vrot.lane.b32.xlu0 %v2595_v2, %s5676_s24  ;;  %v3318_v14 = vsel %vm3284_vm14, %v3253_v38, %v2721_v8 }
 0x22d   :  { %v2488_v13 = vpop.permute.xlu1 %2487  ;;  %v3383_v25 = vsel %vm3349_vm15, %v3318_v14, %v2815_v31  ;;  %v5457_v31 = vld [vmem:[#allocation2 + $0x164] ss:$0 sps:$4 sm:$0x11]   ;;  %v2394_v14 = vshrl.u32 %v7208_v30, 16 }
 0x22e   :  { %v2885_v18 = vpop.permute.xlu0 %2884 }
 0x22f   :  { %2972 = vrot.lane.b32.xlu1 %v5452_v6, %s5674_s22  ;;  %v3448_v60 = vsel %vm3414_vm1, %v3383_v25, %v2885_v18  ;;  %v2396_v18 = vshll.u32 %v7208_v30, 16  ;;  %v2401_v25 = vshll.u32 %v5457_v31, 16 }
 0x230   :  { %2662 = vrot.lane.b32.xlu0 %v2592_v51, %s5670_s3 }
 0x231   :  { %v2649_v37 = vpop.permute.xlu1 %2648 }
 0x232   :  { %v2959_v11 = vpop.permute.xlu0 %2958 }
 0x233   :  { %3066 = vrot.lane.b32.xlu1 %v2380_v36, %s5675_s23  ;;  %v3513_v41 = vsel %vm3479_vm2, %v3448_v60, %v2959_v11 }
 0x234   :  { %2736 = vrot.lane.b32.xlu0 %v5452_v6, %s5671_s18 }
 0x235   :  { %v2723_v61 = vpop.permute.xlu1 %2722 }
 0x236   :  { %v3053_v42 = vpop.permute.xlu0 %3052 }
 0x237   :  { %2501 = vrot.lane.b32.xlu1 %v2368_v39, %s5666_s16  ;;  %v3578_v9 = vsel %vm3544_vm3, %v3513_v41, %v3053_v42  ;;  %v3190_v39 = vsel %vm3154_vm12, %v5511_v10, %v2488_v13  ;;  %v2398_v42 = vrot.slane %v2396_v18, 1 }
 0x238   :  { %2830 = vrot.lane.b32.xlu0 %v2380_v36, %s5672_s19  ;;  %v3255_v62 = vsel %vm3219_vm13, %v3190_v39, %v2649_v37 }
 0x239   :  { %v2817_v55 = vpop.permute.xlu1 %2816  ;;  %v3320_v8 = vsel %vm3284_vm14, %v3255_v62, %v2723_v61  ;;  %v2399_v50 = vor.u32 %v2398_v42, %v2394_v14  ;;  %v7291_v14 = vld [vmem:[#allocation2 + $0x174] sm:$0xff]  }
 0x23a   :  { %v5309_v27 = vpop.f32.mrb[0].mxu0  ;;  %v3123_v4 = vpop.permute.xlu0 %3122  ;;  %v3385_v43 = vsel %vm3349_vm15, %v3320_v8, %v2817_v55  ;;  %v2403_v55 = vrot.slane %v2401_v25, 1 }
 0x23b   :  { %v5045_v12 = vpack.c.bf16 %v5309_v27, %v5309_v27  ;;  %2503 = vrot.lane.b32.xlu1 %v2380_v36, %s5666_s16  ;;  %v3797_v16 = vpop.f32.mrb[1].mxu0  ;;  %v3643_v20 = vsel %vm3609_vm7, %v3578_v9, %v3123_v4  ;;  %v4507_v21 = vmul.f32 %v5309_v27, %v5309_v27  ;;  %v4375_v35 = vsel %vm3154_vm12, %v5309_v27, 0.0 }
 0x23c   :  { %v5043_v54 = vpack.c.bf16 %v3797_v16, %v3797_v16  ;;  %v5310_v44 = vpop.f32.mrb[2].mxu0  ;;  %2900 = vrot.lane.b32.xlu0 %v2595_v2, %s5673_s20  ;;  %5339 = vmatprep.mubr.msk.bf16.mxu1 %vm3694_vm11, %v3643_v20  ;;  %v4505_v22 = vmul.f32 %v3797_v16, %v3797_v16  ;;  %v4372_v46 = vsel %vm3154_vm12, %v3797_v16, 0.0  ;;  %v2404_v9 = vsel %vm2068_vm8, %v2399_v50, %v2403_v55  ;;  %v7252_v20 = vld [vmem:[#allocation2 + $0x170] ss:$0 sps:$4 sm:$0x11]  }
 0x23d   :  { %4310 = vst.msk [vmem:[#allocation11 + $0x8] sm:$0xf] %vm407_vm0, %v5045_v12  ;;  %v5046_v6 = vpack.c.bf16 %v5310_v44, %v5310_v44  ;;  %v2887_v57 = vpop.permute.xlu1 %2886  ;;  %v3800_v45 = vpop.f32.mrb[3].mxu0  ;;  %v4508_v52 = vmul.f32 %v5310_v44, %v5310_v44  ;;  %v4377_v1 = vsel %vm3154_vm12, %v5310_v44, 0.0  ;;  %v4572_v26 = vsel %vm3154_vm12, %v4507_v21, 0.0  ;;  %v7249_v12 = vld [vmem:[#allocation2 + $0x168] sm:$0xff]  }
 0x23e   :  { %4308 = vst.msk [vmem:[#allocation11] sm:$0xf] %vm407_vm0, %v5043_v54  ;;  %v5044_v28 = vpack.c.bf16 %v3800_v45, %v3800_v45  ;;  %v4373_v56 = vsel %vm3154_vm12, %v3800_v45, 0.0  ;;  %v3125_v3 = vpop.permute.xlu0 %3124  ;;  %v4506_v59 = vmul.f32 %v3800_v45, %v3800_v45  ;;  %v4569_v32 = vsel %vm3154_vm12, %v4505_v22, 0.0  ;;  %v5512_v54 = vld [vmem:[#allocation2 + $0xf0] sm:$0xff]  }
 0x23f   :  { %4311 = vst.msk [vmem:[#allocation11 + $0xc] sm:$0xf] %vm407_vm0, %v5046_v6  ;;  %v4374_v19 = vadd.f32 %v4373_v56, %v4372_v46  ;;  %2664 = vrot.lane.b32.xlu1 %v2595_v2, %s5670_s3  ;;  %v2597_v2 = vrot.slane %v7176_v5, 1  ;;  %v3450_v63 = vsel %vm3414_vm1, %v3385_v43, %v2887_v57  ;;  %v4574_v36 = vsel %vm3154_vm12, %v4508_v52, 0.0 }
 0x240   :  { %4309 = vst.msk [vmem:[#allocation11 + $0x4] sm:$0xf] %vm407_vm0, %v5044_v28  ;;  %2974 = vrot.lane.b32.xlu0 %v7171_v23, %s5674_s22  ;;  %v4570_v40 = vsel %vm3154_vm12, %v4506_v59, 0.0  ;;  %v2408_v22 = vshll.u32 %v7249_v12, 16  ;;  %v2413_v10 = vshll.u32 %v7252_v20, 16 }
 0x241   :  { %v4376_v58 = vadd.f32 %v4375_v35, %v4374_v19  ;;  %v2961_v15 = vpop.permute.xlu1 %2960  ;;  %v4571_v51 = vadd.f32 %v4570_v40, %v4569_v32  ;;  %v2598_v61 = vsel %vm2517_vm6, %v2596_v29, %v2597_v2 }
 0x242   :  { %v2651_v34 = vpop.permute.xlu0 %2650  ;;  %v3515_v37 = vsel %vm3479_vm2, %v3450_v63, %v2961_v15  ;;  %v2410_v40 = vrot.slane %v2408_v22, 1  ;;  %v2605_v22 = vrot.slane %v7291_v14, 1 }
 0x243   :  { %2738 = vrot.lane.b32.xlu1 %v7171_v23, %s5671_s18  ;;  %v4378_v0 = vadd.f32 %v4377_v1, %v4376_v58  ;;  %v4573_v13 = vadd.f32 %v4572_v26, %v4571_v51  ;;  %v2600_v23 = vrot.slane %v5457_v31, 1 }
 0x244   :  { %3068 = vrot.lane.b32.xlu0 %v7204_v53, %s5675_s23 }
 0x245   :  { %v3055_v11 = vpop.permute.xlu1 %3054  ;;  %v4575_v48 = vadd.f32 %v4574_v36, %v4573_v13  ;;  %v7236_v47 = vsel %vm2517_vm6, %v2599_v24, %v2600_v23 }
 0x246   :  { %v3580_v7 = vsel %vm3544_vm3, %v3515_v37, %v3055_v11  ;;  %v2725_v5 = vpop.permute.xlu0 %2724 }
 0x247   :  { %2832 = vrot.lane.b32.xlu1 %v7204_v53, %s5672_s19  ;;  %v3645_v38 = vsel %vm3609_vm7, %v3580_v7, %v3125_v3  ;;  %v2406_v3 = vshrl.u32 %v7249_v12, 16 }
 0x248   :  { %5340 = vmatmul.mubr.msk.bf16.vlgmr.msra.gmra.mrb[0].mxu1 %vm3694_vm11, %v3645_v38  ;;  %3138 = vrot.lane.b32.xlu0 %v2598_v61, %s5676_s24 }
 0x249   :  { %v2490_v60 = vpop.permute.xlu1 %2489  ;;  %v2411_v7 = vor.u32 %v2410_v40, %v2406_v3  ;;  %v7335_v40 = vld [vmem:[#allocation2 + $0x180] sm:$0xff]  }
 0x24a   :  { %v2819_v49 = vpop.permute.xlu0 %2818  ;;  %v3192_v44 = vsel %vm3154_vm12, %v5512_v54, %v2490_v60 }
 0x24b   :  { %2902 = vrot.lane.b32.xlu1 %v2598_v61, %s5673_s20  ;;  %v3257_v17 = vsel %vm3219_vm13, %v3192_v44, %v2651_v34  ;;  %v2420_v44 = vshll.u32 %v7291_v14, 16 }
 0x24c   :  { %3140 = vrot.lane.b32.xlu0 %v7236_v47, %s5676_s24  ;;  %v3322_v6 = vsel %vm3284_vm14, %v3257_v17, %v2725_v5  ;;  %v2415_v5 = vrot.slane %v2413_v10, 1 }
 0x24d   :  { %v7241_v41 = vpop.permute.xlu1 %2491  ;;  %v3387_v46 = vsel %vm3349_vm15, %v3322_v6, %v2819_v49 }
 0x24e   :  { %v2889_v27 = vpop.permute.xlu0 %2888 }
 0x24f   :  { %2976 = vrot.lane.b32.xlu1 %v7208_v30, %s5674_s22  ;;  %v3452_v62 = vsel %vm3414_vm1, %v3387_v46, %v2889_v27  ;;  %v7303_v27 = vsel %vm2068_vm8, %v2411_v7, %v2415_v5  ;;  %v2432_v7 = vshll.u32 %v7335_v40, 16 }
 0x250   :  { %2666 = vrot.lane.b32.xlu0 %v2598_v61, %s5670_s3 }
 0x251   :  { %v7247_v4 = vpop.permute.xlu1 %2652 }
 0x252   :  { %v2963_v16 = vpop.permute.xlu0 %2962 }
 0x253   :  { %3070 = vrot.lane.b32.xlu1 %v2404_v9, %s5675_s23  ;;  %v3517_v58 = vsel %vm3479_vm2, %v3452_v62, %v2963_v16  ;;  %v5461_v16 = vld [vmem:[#allocation2 + $0x17c] ss:$0 sps:$4 sm:$0x11]  }
 0x254   :  { %2740 = vrot.lane.b32.xlu0 %v7208_v30, %s5671_s18  ;;  %v2606_v6 = vrot.slane %v5461_v16, 1  ;;  %v2425_v3 = vshll.u32 %v5461_v16, 16 }
 0x255   :  { %v2727_v33 = vpop.permute.xlu1 %2726 }
 0x256   :  { %v5313_v57 = vpop.f32.mrb[4].mxu0  ;;  %v3057_v45 = vpop.permute.xlu0 %3056 }
 0x257   :  { %v5049_v28 = vpack.c.bf16 %v5313_v57, %v5313_v57  ;;  %2505 = vrot.lane.b32.xlu1 %v7204_v53, %s5666_s16  ;;  %v3813_v56 = vpop.f32.mrb[5].mxu0  ;;  %v4511_v15 = vmul.f32 %v5313_v57, %v5313_v57  ;;  %v3582_v51 = vsel %vm3544_vm3, %v3517_v58, %v3057_v45 }
 0x258   :  { %v5047_v39 = vpack.c.bf16 %v3813_v56, %v3813_v56  ;;  %v4379_v21 = vsel %vm3154_vm12, %v3813_v56, 0.0  ;;  %v4509_v19 = vmul.f32 %v3813_v56, %v3813_v56  ;;  %v5314_v59 = vpop.f32.mrb[6].mxu0  ;;  %2834 = vrot.lane.b32.xlu0 %v2404_v9, %s5672_s19  ;;  %v2422_v56 = vrot.slane %v2420_v44, 1 }
 0x259   :  { %4314 = vst.msk [vmem:[#allocation11 + $0x18] sm:$0xf] %vm407_vm0, %v5049_v28  ;;  %v4380_v35 = vadd.f32 %v4379_v21, %v4378_v0  ;;  %v5050_v32 = vpack.c.bf16 %v5314_v59, %v5314_v59  ;;  %v2821_v52 = vpop.permute.xlu1 %2820  ;;  %v3816_v53 = vpop.f32.mrb[7].mxu0  ;;  %v4383_v0 = vsel %vm3154_vm12, %v5313_v57, 0.0  ;;  %v4512_v63 = vmul.f32 %v5314_v59, %v5314_v59 }
 0x25a   :  { %4312 = vst.msk [vmem:[#allocation11 + $0x10] sm:$0xf] %vm407_vm0, %v5047_v39  ;;  %v4576_v8 = vsel %vm3154_vm12, %v4509_v19, 0.0  ;;  %v5048_v1 = vpack.c.bf16 %v3816_v53, %v3816_v53  ;;  %v3127_v29 = vpop.permute.xlu0 %3126  ;;  %v4381_v43 = vsel %vm3154_vm12, %v3816_v53, 0.0  ;;  %v4510_v26 = vmul.f32 %v3816_v53, %v3816_v53 }
 0x25b   :  { %v4577_v34 = vadd.f32 %v4576_v8, %v4575_v48  ;;  %4315 = vst.msk [vmem:[#allocation11 + $0x1c] sm:$0xf] %vm407_vm0, %v5050_v32  ;;  %2507 = vrot.lane.b32.xlu1 %v2404_v9, %s5666_s16  ;;  %v3647_v2 = vsel %vm3609_vm7, %v3582_v51, %v3127_v29  ;;  %v4382_v31 = vadd.f32 %v4381_v43, %v4380_v35  ;;  %v4580_v24 = vsel %vm3154_vm12, %v4511_v15, 0.0  ;;  %v5513_v48 = vld [vmem:[#allocation2 + $0xfc] sm:$0xff]   ;;  %v5514_v15 = vld [vmem:[#allocation2 + $0x108] sm:$0xff]  }
 0x25c   :  { %4313 = vst.msk [vmem:[#allocation11 + $0x14] sm:$0xf] %vm407_vm0, %v5048_v1  ;;  %2904 = vrot.lane.b32.xlu0 %v7236_v47, %s5673_s20  ;;  %5343 = vmatprep.mubr.msk.bf16.mxu1 %vm3694_vm11, %v3647_v2  ;;  %v4578_v13 = vsel %vm3154_vm12, %v4510_v26, 0.0  ;;  %v4385_v23 = vsel %vm3154_vm12, %v5314_v59, 0.0  ;;  %v3194_v38 = vsel %vm3154_vm12, %v5513_v48, %v7241_v41  ;;  %v4582_v60 = vsel %vm3154_vm12, %v4512_v63, 0.0 }
 0x25d   :  { %v2891_v18 = vpop.permute.xlu1 %2890  ;;  %v4384_v36 = vadd.f32 %v4383_v0, %v4382_v31  ;;  %v4579_v37 = vadd.f32 %v4578_v13, %v4577_v34  ;;  %v3259_v25 = vsel %vm3219_vm13, %v3194_v38, %v7247_v4  ;;  %v2602_v9 = vrot.slane %v7249_v12, 1 }
 0x25e   :  { %v3129_v11 = vpop.permute.xlu0 %3128  ;;  %v2603_v4 = vrot.slane %v7252_v20, 1  ;;  %v2418_v28 = vshrl.u32 %v7291_v14, 16  ;;  %v7322_v39 = vsel %vm2517_vm6, %v2605_v22, %v2606_v6  ;;  %v2427_v59 = vrot.slane %v2425_v3, 1 }
 0x25f   :  { %2668 = vrot.lane.b32.xlu1 %v7236_v47, %s5670_s3  ;;  %v4581_v61 = vadd.f32 %v4580_v24, %v4579_v37  ;;  %v4386_v42 = vadd.f32 %v4385_v23, %v4384_v36  ;;  %v3324_v47 = vsel %vm3284_vm14, %v3259_v25, %v2727_v33  ;;  %v7348_v23 = vld [vmem:[#allocation2 + $0x188] ss:$0 sps:$4 sm:$0x11]   ;;  %v2434_v22 = vrot.slane %v2432_v7, 1 }
 0x260   :  { %2978 = vrot.lane.b32.xlu0 %v7249_v12, %s5674_s22  ;;  %v3389_v41 = vsel %vm3349_vm15, %v3324_v47, %v2821_v52  ;;  %v2604_v46 = vsel %vm2517_vm6, %v2602_v9, %v2603_v4  ;;  %v2423_v19 = vor.u32 %v2422_v56, %v2418_v28 }
 0x261   :  { %v2965_v49 = vpop.permute.xlu1 %2964  ;;  %v7297_v55 = vadd.f32 %v4582_v60, %v4581_v61  ;;  %v3454_v54 = vsel %vm3414_vm1, %v3389_v41, %v2891_v18  ;;  %v2430_v60 = vshrl.u32 %v7335_v40, 16 }
 0x262   :  { %v2655_v50 = vpop.permute.xlu0 %2654  ;;  %v3519_v17 = vsel %vm3479_vm2, %v3454_v54, %v2965_v49  ;;  %v2428_v32 = vsel %vm2068_vm8, %v2423_v19, %v2427_v59  ;;  %v2437_v54 = vshll.u32 %v7348_v23, 16  ;;  %v7381_v19 = vld [vmem:[#allocation2 + $0x18c] sm:$0xff]  }
 0x263   :  { %2742 = vrot.lane.b32.xlu1 %v7249_v12, %s5671_s18  ;;  %v2435_v56 = vor.u32 %v2434_v22, %v2430_v60 }
 0x264   :  { %3072 = vrot.lane.b32.xlu0 %v7303_v27, %s5675_s23  ;;  %v2439_v3 = vrot.slane %v2437_v54, 1  ;;  %v7426_v54 = vld [vmem:[#allocation2 + $0x198] sm:$0xff]  }
 0x265   :  { %v3059_v33 = vpop.permute.xlu1 %3058 }
 0x266   :  { %v3584_v57 = vsel %vm3544_vm3, %v3519_v17, %v3059_v33  ;;  %v2729_v45 = vpop.permute.xlu0 %2728 }
 0x267   :  { %2836 = vrot.lane.b32.xlu1 %v7303_v27, %s5672_s19  ;;  %v3649_v20 = vsel %vm3609_vm7, %v3584_v57, %v3129_v11 }
 0x268   :  { %5344 = vmatmul.mubr.msk.bf16.gmra.mrb[4].mxu1 %vm3694_vm11, %v3649_v20  ;;  %3142 = vrot.lane.b32.xlu0 %v2604_v46, %s5676_s24 }
 0x269   :  { %v2494_v10 = vpop.permute.xlu1 %2493 }
 0x26a   :  { %v2823_v21 = vpop.permute.xlu0 %2822  ;;  %v3196_v8 = vsel %vm3154_vm12, %v5514_v15, %v2494_v10  ;;  %v5515_v10 = vld [vmem:[#allocation2 + $0x114] sm:$0xff]   ;;  %v2609_v15 = vrot.slane %v7348_v23, 1 }
 0x26b   :  { %2906 = vrot.lane.b32.xlu1 %v2604_v46, %s5673_s20  ;;  %v3261_v29 = vsel %vm3219_vm13, %v3196_v8, %v2655_v50  ;;  %v5465_v8 = vld [vmem:[#allocation2 + $0x194] ss:$0 sps:$4 sm:$0x11]  }
 0x26c   :  { %3144 = vrot.lane.b32.xlu0 %v7322_v39, %s5676_s24  ;;  %v3326_v31 = vsel %vm3284_vm14, %v3261_v29, %v2729_v45 }
 0x26d   :  { %v7327_v62 = vpop.permute.xlu1 %2495  ;;  %v3391_v37 = vsel %vm3349_vm15, %v3326_v31, %v2823_v21 }
 0x26e   :  { %v2893_v35 = vpop.permute.xlu0 %2892  ;;  %v3198_v21 = vsel %vm3154_vm12, %v5515_v10, %v7327_v62  ;;  %v7392_v62 = vsel %vm2068_vm8, %v2435_v56, %v2439_v3 }
 0x26f   :  { %2980 = vrot.lane.b32.xlu1 %v7291_v14, %s5674_s22  ;;  %v3456_v25 = vsel %vm3414_vm1, %v3391_v37, %v2893_v35 }
 0x270   :  { %2670 = vrot.lane.b32.xlu0 %v2604_v46, %s5670_s3 }
 0x271   :  { %v7333_v52 = vpop.permute.xlu1 %2656 }
 0x272   :  { %v5317_v53 = vpop.f32.mrb[8].mxu0  ;;  %v2967_v58 = vpop.permute.xlu0 %2966  ;;  %v3263_v59 = vsel %vm3219_vm13, %v3198_v21, %v7333_v52 }
 0x273   :  { %v5053_v1 = vpack.c.bf16 %v5317_v53, %v5317_v53  ;;  %3074 = vrot.lane.b32.xlu1 %v2428_v32, %s5675_s23  ;;  %v3829_v51 = vpop.f32.mrb[9].mxu0  ;;  %v4515_v5 = vmul.f32 %v5317_v53, %v5317_v53  ;;  %v4391_v49 = vsel %vm3154_vm12, %v5317_v53, 0.0  ;;  %v3521_v41 = vsel %vm3479_vm2, %v3456_v25, %v2967_v58 }
 0x274   :  { %v5051_v34 = vpack.c.bf16 %v3829_v51, %v3829_v51  ;;  %v4387_v43 = vsel %vm3154_vm12, %v3829_v51, 0.0  ;;  %v4513_v26 = vmul.f32 %v3829_v51, %v3829_v51  ;;  %v5318_v2 = vpop.f32.mrb[10].mxu0  ;;  %2744 = vrot.lane.b32.xlu0 %v7291_v14, %s5671_s18  ;;  %v2608_v58 = vrot.slane %v7335_v40, 1 }
 0x275   :  { %4318 = vst.msk [vmem:[#allocation11 + $0x28] sm:$0xf] %vm407_vm0, %v5053_v1  ;;  %v4388_v0 = vadd.f32 %v4387_v43, %v4386_v42  ;;  %v5054_v63 = vpack.c.bf16 %v5318_v2, %v5318_v2  ;;  %v2731_v13 = vpop.permute.xlu1 %2730  ;;  %v3832_v18 = vpop.f32.mrb[11].mxu0  ;;  %v4516_v47 = vmul.f32 %v5318_v2, %v5318_v2  ;;  %v4588_v44 = vsel %vm3154_vm12, %v4515_v5, 0.0 }
 0x276   :  { %4316 = vst.msk [vmem:[#allocation11 + $0x20] sm:$0xf] %vm407_vm0, %v5051_v34  ;;  %v4584_v36 = vsel %vm3154_vm12, %v4513_v26, 0.0  ;;  %v5052_v11 = vpack.c.bf16 %v3832_v18, %v3832_v18  ;;  %v3061_v24 = vpop.permute.xlu0 %3060  ;;  %v4389_v38 = vsel %vm3154_vm12, %v3832_v18, 0.0  ;;  %v4514_v61 = vmul.f32 %v3832_v18, %v3832_v18 }
 0x277   :  { %v4585_v48 = vadd.f32 %v4584_v36, %v7297_v55  ;;  %4319 = vst.msk [vmem:[#allocation11 + $0x2c] sm:$0xf] %vm407_vm0, %v5054_v63  ;;  %2509 = vrot.lane.b32.xlu1 %v7303_v27, %s5666_s16  ;;  %v4390_v42 = vadd.f32 %v4389_v38, %v4388_v0  ;;  %v3586_v27 = vsel %vm3544_vm3, %v3521_v41, %v3061_v24  ;;  %v4393_v17 = vsel %vm3154_vm12, %v5318_v2, 0.0 }
 0x278   :  { %4317 = vst.msk [vmem:[#allocation11 + $0x24] sm:$0xf] %vm407_vm0, %v5052_v11  ;;  %2838 = vrot.lane.b32.xlu0 %v2428_v32, %s5672_s19  ;;  %v4586_v50 = vsel %vm3154_vm12, %v4514_v61, 0.0  ;;  %v4590_v45 = vsel %vm3154_vm12, %v4516_v47, 0.0  ;;  %v2444_v1 = vshll.u32 %v7381_v19, 16  ;;  %v2611_v34 = vrot.slane %v7381_v19, 1 }
 0x279   :  { %v2825_v55 = vpop.permute.xlu1 %2824  ;;  %v4392_v9 = vadd.f32 %v4391_v49, %v4390_v42  ;;  %v4587_v4 = vadd.f32 %v4586_v50, %v4585_v48  ;;  %v2612_v43 = vrot.slane %v5465_v8, 1  ;;  %v2610_v0 = vsel %vm2517_vm6, %v2608_v58, %v2609_v15 }
 0x27a   :  { %v3131_v16 = vpop.permute.xlu0 %3130  ;;  %v2442_v63 = vshrl.u32 %v7381_v19, 16  ;;  %v2449_v18 = vshll.u32 %v5465_v8, 16 }
 0x27b   :  { %2511 = vrot.lane.b32.xlu1 %v2428_v32, %s5666_s16  ;;  %v3651_v33 = vsel %vm3609_vm7, %v3586_v27, %v3131_v16  ;;  %v4589_v6 = vadd.f32 %v4588_v44, %v4587_v4  ;;  %v4394_v57 = vadd.f32 %v4393_v17, %v4392_v9  ;;  %v3328_v32 = vsel %vm3284_vm14, %v3263_v59, %v2731_v13 }
 0x27c   :  { %2908 = vrot.lane.b32.xlu0 %v7322_v39, %s5673_s20  ;;  %5347 = vmatprep.mubr.msk.bf16.mxu1 %vm3694_vm11, %v3651_v33  ;;  %v2446_v13 = vrot.slane %v2444_v1, 1  ;;  %v7411_v37 = vsel %vm2517_vm6, %v2611_v34, %v2612_v43  ;;  %v2451_v23 = vrot.slane %v2449_v18, 1  ;;  %v2771_v43 = vshrl.u32 %v7426_v54, 16 }
 0x27d   :  { %v2895_v20 = vpop.permute.xlu1 %2894  ;;  %v7373_v28 = vadd.f32 %v4590_v45, %v4589_v6  ;;  %v5516_v6 = vld [vmem:[#allocation2 + $0x120] sm:$0xff]  }
 0x27e   :  { %v3133_v46 = vpop.permute.xlu0 %3132  ;;  %v2447_v24 = vor.u32 %v2446_v13, %v2442_v63 }
 0x27f   :  { %2672 = vrot.lane.b32.xlu1 %v7322_v39, %s5670_s3  ;;  %v3393_v39 = vsel %vm3349_vm15, %v3328_v32, %v2825_v55  ;;  %v5467_v32 = vld [vmem:[#allocation2 + $0x1a0] ss:$0 sps:$4 sm:$0x11]  }
 0x280   :  { %2982 = vrot.lane.b32.xlu0 %v7335_v40, %s5674_s22  ;;  %v3458_v52 = vsel %vm3414_vm1, %v3393_v39, %v2895_v20  ;;  %v2452_v47 = vsel %vm2068_vm8, %v2447_v24, %v2451_v23  ;;  %v2773_v39 = vshll.u32 %v7426_v54, 16  ;;  %v7460_v24 = vld [vmem:[#allocation2 + $0x1a4] sm:$0xff]   ;;  %v5517_v23 = vld [vmem:[#allocation2 + $0x12c] sm:$0xff]  }
 0x281   :  { %v2969_v35 = vpop.permute.xlu1 %2968 }
 0x282   :  { %v7386_v53 = vpop.permute.xlu0 %2658  ;;  %v3523_v51 = vsel %vm3479_vm2, %v3458_v52, %v2969_v35 }
 0x283   :  { %2746 = vrot.lane.b32.xlu1 %v7335_v40, %s5671_s18 }
 0x284   :  { %3076 = vrot.lane.b32.xlu0 %v7392_v62, %s5675_s23 }
 0x285   :  { %v3063_v29 = vpop.permute.xlu1 %3062 }
 0x286   :  { %v3588_v26 = vsel %vm3544_vm3, %v3523_v51, %v3063_v29  ;;  %v2733_v2 = vpop.permute.xlu0 %2732 }
 0x287   :  { %2840 = vrot.lane.b32.xlu1 %v7392_v62, %s5672_s19  ;;  %v3653_v31 = vsel %vm3609_vm7, %v3588_v26, %v3133_v46 }
 0x288   :  { %5348 = vmatmul.mubr.msk.bf16.gmra.mrb[8].mxu1 %vm3694_vm11, %v3653_v31  ;;  %3146 = vrot.lane.b32.xlu0 %v2610_v0, %s5676_s24  ;;  %v2775_v31 = vrot.slane %v2773_v39, 1 }
 0x289   :  { %v2498_v36 = vpop.permute.xlu1 %2497 }
 0x28a   :  { %v2827_v11 = vpop.permute.xlu0 %2826  ;;  %v2776_v18 = vor.u32 %v2775_v31, %v2771_v43 }
 0x28b   :  { %2910 = vrot.lane.b32.xlu1 %v2610_v0, %s5673_s20 }
 0x28c   :  { %3148 = vrot.lane.b32.xlu0 %v7411_v37, %s5676_s24 }
 0x28d   :  { %v7416_v7 = vpop.permute.xlu1 %2499 }
 0x28e   :  { %v5321_v5 = vpop.f32.mrb[12].mxu0  ;;  %v2897_v48 = vpop.permute.xlu0 %2896 }
 0x28f   :  { %v5057_v38 = vpack.c.bf16 %v5321_v5, %v5321_v5  ;;  %2984 = vrot.lane.b32.xlu1 %v7381_v19, %s5674_s22  ;;  %v3845_v61 = vpop.f32.mrb[13].mxu0  ;;  %v4519_v44 = vmul.f32 %v5321_v5, %v5321_v5  ;;  %v4399_v46 = vsel %vm3154_vm12, %v5321_v5, 0.0  ;;  %v3202_v5 = vsel %vm3154_vm12, %v5517_v23, %v7416_v7 }
 0x290   :  { %v5055_v42 = vpack.c.bf16 %v3845_v61, %v3845_v61  ;;  %v4395_v25 = vsel %vm3154_vm12, %v3845_v61, 0.0  ;;  %v4517_v60 = vmul.f32 %v3845_v61, %v3845_v61  ;;  %v5322_v49 = vpop.f32.mrb[14].mxu0  ;;  %2674 = vrot.lane.b32.xlu0 %v2610_v0, %s5670_s3  ;;  %v2778_v0 = vshll.u32 %v5467_v32, 16 }
 0x291   :  { %4322 = vst.msk [vmem:[#allocation11 + $0x38] sm:$0xf] %vm407_vm0, %v5057_v38  ;;  %v4396_v50 = vadd.f32 %v4395_v25, %v4394_v57  ;;  %v5058_v55 = vpack.c.bf16 %v5322_v49, %v5322_v49  ;;  %v2661_v41 = vpop.permute.xlu1 %2660  ;;  %v3848_v9 = vpop.f32.mrb[15].mxu0  ;;  %v3200_v57 = vsel %vm3154_vm12, %v5516_v6, %v2498_v36  ;;  %v4596_v58 = vsel %vm3154_vm12, %v4519_v44, 0.0 }
 0x292   :  { %4320 = vst.msk [vmem:[#allocation11 + $0x30] sm:$0xf] %vm407_vm0, %v5055_v42  ;;  %v4592_v4 = vsel %vm3154_vm12, %v4517_v60, 0.0  ;;  %v5056_v27 = vpack.c.bf16 %v3848_v9, %v3848_v9  ;;  %v2971_v16 = vpop.permute.xlu0 %2970  ;;  %v4397_v33 = vsel %vm3154_vm12, %v3848_v9, 0.0  ;;  %v4518_v22 = vmul.f32 %v3848_v9, %v3848_v9 }
 0x293   :  { %v4593_v17 = vadd.f32 %v4592_v4, %v7373_v28  ;;  %4323 = vst.msk [vmem:[#allocation11 + $0x3c] sm:$0xf] %vm407_vm0, %v5058_v55  ;;  %3078 = vrot.lane.b32.xlu1 %v2452_v47, %s5675_s23  ;;  %v4398_v45 = vadd.f32 %v4397_v33, %v4396_v50  ;;  %v3265_v20 = vsel %vm3219_vm13, %v3200_v57, %v7386_v53  ;;  %v4401_v15 = vsel %vm3154_vm12, %v5322_v49, 0.0  ;;  %v5469_v50 = vld [vmem:[#allocation2 + $0x1ac] ss:$0 sps:$4 sm:$0x11]  }
 0x294   :  { %4321 = vst.msk [vmem:[#allocation11 + $0x34] sm:$0xf] %vm407_vm0, %v5056_v27  ;;  %2748 = vrot.lane.b32.xlu0 %v7381_v19, %s5671_s18  ;;  %v4520_v28 = vmul.f32 %v5322_v49, %v5322_v49  ;;  %v4594_v56 = vsel %vm3154_vm12, %v4518_v22, 0.0  ;;  %v3330_v10 = vsel %vm3284_vm14, %v3265_v20, %v2733_v2  ;;  %v2780_v36 = vrot.slane %v2778_v0, 1 }
 0x295   :  { %v2735_v3 = vpop.permute.xlu1 %2734  ;;  %v4400_v21 = vadd.f32 %v4399_v46, %v4398_v45  ;;  %v4595_v59 = vadd.f32 %v4594_v56, %v4593_v17  ;;  %v3395_v53 = vsel %vm3349_vm15, %v3330_v10, %v2827_v11  ;;  %v2849_v60 = vrot.slane %v7426_v54, 1 }
 0x296   :  { %v3065_v35 = vpop.permute.xlu0 %3064  ;;  %v3460_v52 = vsel %vm3414_vm1, %v3395_v53, %v2897_v48  ;;  %v4598_v51 = vsel %vm3154_vm12, %v4520_v28, 0.0  ;;  %v3267_v48 = vsel %vm3219_vm13, %v3202_v5, %v2661_v41  ;;  %v2781_v42 = vsel %vm2068_vm8, %v2776_v18, %v2780_v36 }
 0x297   :  { %2513 = vrot.lane.b32.xlu1 %v7392_v62, %s5666_s16  ;;  %v4597_v8 = vadd.f32 %v4596_v58, %v4595_v59  ;;  %v4402_v1 = vadd.f32 %v4401_v15, %v4400_v21  ;;  %v3525_v34 = vsel %vm3479_vm2, %v3460_v52, %v2971_v16  ;;  %v3332_v61 = vsel %vm3284_vm14, %v3267_v48, %v2735_v3 }
 0x298   :  { %2842 = vrot.lane.b32.xlu0 %v2452_v47, %s5672_s19  ;;  %v3590_v26 = vsel %vm3544_vm3, %v3525_v34, %v3065_v35  ;;  %v2850_v7 = vrot.slane %v5467_v32, 1  ;;  %v3011_v49 = vshll.u32 %v7460_v24, 16  ;;  %v3016_v17 = vshll.u32 %v5469_v50, 16 }
 0x299   :  { %v2829_v29 = vpop.permute.xlu1 %2828  ;;  %v4599_v63 = vadd.f32 %v4598_v51, %v4597_v8  ;;  %v3087_v34 = vrot.slane %v7460_v24, 1  ;;  %v3088_v43 = vrot.slane %v5469_v50, 1 }
 0x29a   :  { %v3135_v2 = vpop.permute.xlu0 %3134  ;;  %v2851_v16 = vsel %vm2517_vm6, %v2849_v60, %v2850_v7  ;;  %v3013_v44 = vrot.slane %v3011_v49, 1  ;;  %v3018_v10 = vrot.slane %v3016_v17, 1 }
 0x29b   :  { %2515 = vrot.lane.b32.xlu1 %v2452_v47, %s5666_s16  ;;  %v3655_v62 = vsel %vm3609_vm7, %v3590_v26, %v3135_v2  ;;  %v3089_v5 = vsel %vm2517_vm6, %v3087_v34, %v3088_v43 }
 0x29c   :  { %2912 = vrot.lane.b32.xlu0 %v7411_v37, %s5673_s20  ;;  %5351 = vmatprep.mubr.msk.bf16.mxu1 %vm3694_vm11, %v3655_v62 }
 0x29d   :  { %v2899_v13 = vpop.permute.xlu1 %2898 }
 0x29e   :  { %v3137_v11 = vpop.permute.xlu0 %3136 }
 0x29f   :  { %2676 = vrot.lane.b32.xlu1 %v7411_v37, %s5670_s3  ;;  %v3397_v37 = vsel %vm3349_vm15, %v3332_v61, %v2829_v29 }
 0x2a0   :  { %2986 = vrot.lane.b32.xlu0 %v7426_v54, %s5674_s22  ;;  %v3462_v47 = vsel %vm3414_vm1, %v3397_v37, %v2899_v13 }
 0x2a1   :  { %v2973_v38 = vpop.permute.xlu1 %2972 }
 0x2a2   :  { %v7469_v25 = vpop.permute.xlu0 %2662  ;;  %v3527_v55 = vsel %vm3479_vm2, %v3462_v47, %v2973_v38 }
 0x2a3   :  { %2750 = vrot.lane.b32.xlu1 %v7426_v54, %s5671_s18  ;;  %v3009_v54 = vshrl.u32 %v7460_v24, 16 }
 0x2a4   :  { %3080 = vrot.lane.b32.xlu0 %v2781_v42, %s5675_s23 }
 0x2a5   :  { %v3067_v41 = vpop.permute.xlu1 %3066  ;;  %v3014_v20 = vor.u32 %v3013_v44, %v3009_v54 }
 0x2a6   :  { %v3592_v9 = vsel %vm3544_vm3, %v3527_v55, %v3067_v41  ;;  %v2737_v4 = vpop.permute.xlu0 %2736 }
 0x2a7   :  { %2844 = vrot.lane.b32.xlu1 %v2781_v42, %s5672_s19  ;;  %v3657_v27 = vsel %vm3609_vm7, %v3592_v9, %v3137_v11  ;;  %v3019_v29 = vsel %vm2068_vm8, %v3014_v20, %v3018_v10  ;;  %v5518_v11 = vld [vmem:[#allocation2 + $0x138] sm:$0xff]  }
 0x2a8   :  { %5352 = vmatmul.mubr.msk.bf16.gmra.mrb[12].mxu1 %vm3694_vm11, %v3657_v27  ;;  %3150 = vrot.lane.b32.xlu0 %v2851_v16, %s5676_s24 }
 0x2a9   :  { %v2502_v33 = vpop.permute.xlu1 %2501 }
 0x2aa   :  { %v5325_v22 = vpop.f32.mrb[16].mxu0  ;;  %v2831_v6 = vpop.permute.xlu0 %2830  ;;  %v3204_v23 = vsel %vm3154_vm12, %v5518_v11, %v2502_v33 }
 0x2ab   :  { %v5061_v57 = vpack.c.bf16 %v5325_v22, %v5325_v22  ;;  %2914 = vrot.lane.b32.xlu1 %v2851_v16, %s5673_s20  ;;  %v3861_v45 = vpop.f32.mrb[17].mxu0  ;;  %v4523_v53 = vmul.f32 %v5325_v22, %v5325_v22  ;;  %v4407_v26 = vsel %vm3154_vm12, %v5325_v22, 0.0  ;;  %v3269_v61 = vsel %vm3219_vm13, %v3204_v23, %v7469_v25  ;;  %v5519_v16 = vld [vmem:[#allocation2 + $0x144] sm:$0xff]  }
 0x2ac   :  { %v5059_v46 = vpack.c.bf16 %v3861_v45, %v3861_v45  ;;  %v4403_v28 = vsel %vm3154_vm12, %v3861_v45, 0.0  ;;  %v4521_v56 = vmul.f32 %v3861_v45, %v3861_v45  ;;  %v5326_v3 = vpop.f32.mrb[18].mxu0  ;;  %v3334_v37 = vsel %vm3284_vm14, %v3269_v61, %v2737_v4 }
 0x2ad   :  { %4326 = vst.msk [vmem:[#allocation11 + $0x48] sm:$0xf] %vm407_vm0, %v5061_v57  ;;  %v4404_v21 = vadd.f32 %v4403_v28, %v4402_v1  ;;  %v5062_v59 = vpack.c.bf16 %v5326_v3, %v5326_v3  ;;  %v2504_v35 = vpop.permute.xlu1 %2503  ;;  %v3864_v32 = vpop.f32.mrb[19].mxu0  ;;  %v4524_v2 = vmul.f32 %v5326_v3, %v5326_v3  ;;  %v4604_v18 = vsel %vm3154_vm12, %v4523_v53, 0.0 }
 0x2ae   :  { %4324 = vst.msk [vmem:[#allocation11 + $0x40] sm:$0xf] %vm407_vm0, %v5059_v46  ;;  %v4600_v39 = vsel %vm3154_vm12, %v4521_v56, 0.0  ;;  %v5060_v58 = vpack.c.bf16 %v3864_v32, %v3864_v32  ;;  %v2901_v15 = vpop.permute.xlu0 %2900  ;;  %v4405_v52 = vsel %vm3154_vm12, %v3864_v32, 0.0  ;;  %v4522_v51 = vmul.f32 %v3864_v32, %v3864_v32 }
 0x2af   :  { %v4601_v8 = vadd.f32 %v4600_v39, %v4599_v63  ;;  %4327 = vst.msk [vmem:[#allocation11 + $0x4c] sm:$0xf] %vm407_vm0, %v5062_v59  ;;  %2988 = vrot.lane.b32.xlu1 %v7460_v24, %s5674_s22  ;;  %v4406_v1 = vadd.f32 %v4405_v52, %v4404_v21  ;;  %v4409_v36 = vsel %vm3154_vm12, %v5326_v3, 0.0  ;;  %v4606_v38 = vsel %vm3154_vm12, %v4524_v2, 0.0 }
 0x2b0   :  { %4325 = vst.msk [vmem:[#allocation11 + $0x44] sm:$0xf] %vm407_vm0, %v5060_v58  ;;  %v4602_v31 = vsel %vm3154_vm12, %v4522_v51, 0.0  ;;  %v3399_v49 = vsel %vm3349_vm15, %v3334_v37, %v2831_v6  ;;  %v3206_v54 = vsel %vm3154_vm12, %v5519_v16, %v2504_v35  ;;  %v5520_v37 = vld [vmem:[#allocation2 + $0x150] sm:$0xff]  }
 0x2b1   :  { %v2665_v0 = vpop.permute.xlu1 %2664  ;;  %v4408_v63 = vadd.f32 %v4407_v26, %v4406_v1  ;;  %v4603_v62 = vadd.f32 %v4602_v31, %v4601_v8  ;;  %v3464_v47 = vsel %vm3414_vm1, %v3399_v49, %v2901_v15 }
 0x2b2   :  { %v2975_v13 = vpop.permute.xlu0 %2974  ;;  %v3271_v44 = vsel %vm3219_vm13, %v3206_v54, %v2665_v0 }
 0x2b3   :  { %3082 = vrot.lane.b32.xlu1 %v3019_v29, %s5675_s23  ;;  %v4605_v24 = vadd.f32 %v4604_v18, %v4603_v62  ;;  %v4410_v48 = vadd.f32 %v4409_v36, %v4408_v63  ;;  %v3529_v55 = vsel %vm3479_vm2, %v3464_v47, %v2975_v13 }
 0x2b5   :  { %v2739_v42 = vpop.permute.xlu1 %2738  ;;  %v4607_v7 = vadd.f32 %v4606_v38, %v4605_v24 }
 0x2b6   :  { %v3069_v60 = vpop.permute.xlu0 %3068  ;;  %v3336_v33 = vsel %vm3284_vm14, %v3271_v44, %v2739_v42 }
 0x2b7   :  { %3152 = vrot.lane.b32.xlu1 %v3089_v5, %s5676_s24  ;;  %v3594_v41 = vsel %vm3544_vm3, %v3529_v55, %v3069_v60 }
 0x2b9   :  { %v2833_v50 = vpop.permute.xlu1 %2832 }
 0x2ba   :  { %v3139_v9 = vpop.permute.xlu0 %3138  ;;  %v3401_v6 = vsel %vm3349_vm15, %v3336_v33, %v2833_v50 }
 0x2bb   :  { %v3659_v27 = vsel %vm3609_vm7, %v3594_v41, %v3139_v9 }
 0x2bc   :  { %5355 = vmatprep.mubr.msk.bf16.mxu1 %vm3694_vm11, %v3659_v27 }
 0x2bd   :  { %v2903_v25 = vpop.permute.xlu1 %2902 }
 0x2be   :  { %v3141_v4 = vpop.permute.xlu0 %3140  ;;  %v3466_v57 = vsel %vm3414_vm1, %v3401_v6, %v2903_v25 }
 0x2c1   :  { %v2977_v17 = vpop.permute.xlu1 %2976 }
 0x2c2   :  { %v2667_v22 = vpop.permute.xlu0 %2666  ;;  %v3531_v45 = vsel %vm3479_vm2, %v3466_v57, %v2977_v17 }
 0x2c5   :  { %v3071_v20 = vpop.permute.xlu1 %3070 }
 0x2c6   :  { %v3596_v46 = vsel %vm3544_vm3, %v3531_v45, %v3071_v20  ;;  %v5329_v28 = vpop.f32.mrb[20].mxu0  ;;  %v2741_v56 = vpop.permute.xlu0 %2740 }
 0x2c7   :  { %v5065_v3 = vpack.c.bf16 %v5329_v28, %v5329_v28  ;;  %v3877_v10 = vpop.f32.mrb[21].mxu0  ;;  %v3661_v21 = vsel %vm3609_vm7, %v3596_v46, %v3141_v4  ;;  %v4527_v29 = vmul.f32 %v5329_v28, %v5329_v28  ;;  %v4415_v31 = vsel %vm3154_vm12, %v5329_v28, 0.0 }
 0x2c8   :  { %v5063_v59 = vpack.c.bf16 %v3877_v10, %v3877_v10  ;;  %v4411_v35 = vsel %vm3154_vm12, %v3877_v10, 0.0  ;;  %v4525_v32 = vmul.f32 %v3877_v10, %v3877_v10  ;;  %v5330_v39 = vpop.f32.mrb[22].mxu0  ;;  %5356 = vmatmul.mubr.msk.bf16.gmra.mrb[16].mxu1 %vm3694_vm11, %v3661_v21 }
 0x2c9   :  { %4330 = vst.msk [vmem:[#allocation11 + $0x58] sm:$0xf] %vm407_vm0, %v5065_v3  ;;  %v4412_v58 = vadd.f32 %v4411_v35, %v4410_v48  ;;  %v5066_v15 = vpack.c.bf16 %v5330_v39, %v5330_v39  ;;  %v2506_v53 = vpop.permute.xlu1 %2505  ;;  %v3880_v8 = vpop.f32.mrb[23].mxu0  ;;  %v4528_v0 = vmul.f32 %v5330_v39, %v5330_v39  ;;  %v4612_v11 = vsel %vm3154_vm12, %v4527_v29, 0.0 }
 0x2ca   :  { %4328 = vst.msk [vmem:[#allocation11 + $0x50] sm:$0xf] %vm407_vm0, %v5063_v59  ;;  %v4608_v52 = vsel %vm3154_vm12, %v4525_v32, 0.0  ;;  %v5064_v51 = vpack.c.bf16 %v3880_v8, %v3880_v8  ;;  %v2835_v1 = vpop.permute.xlu0 %2834  ;;  %v4413_v43 = vsel %vm3154_vm12, %v3880_v8, 0.0  ;;  %v4526_v26 = vmul.f32 %v3880_v8, %v3880_v8 }
 0x2cb   :  { %v4609_v34 = vadd.f32 %v4608_v52, %v4607_v7  ;;  %4331 = vst.msk [vmem:[#allocation11 + $0x5c] sm:$0xf] %vm407_vm0, %v5066_v15  ;;  %v4414_v2 = vadd.f32 %v4413_v43, %v4412_v58  ;;  %v4417_v23 = vsel %vm3154_vm12, %v5330_v39, 0.0  ;;  %v4614_v48 = vsel %vm3154_vm12, %v4528_v0, 0.0 }
 0x2cc   :  { %4329 = vst.msk [vmem:[#allocation11 + $0x54] sm:$0xf] %vm407_vm0, %v5064_v51  ;;  %v4610_v63 = vsel %vm3154_vm12, %v4526_v26, 0.0  ;;  %v3208_v60 = vsel %vm3154_vm12, %v5520_v37, %v2506_v53 }
 0x2cd   :  { %v2508_v62 = vpop.permute.xlu1 %2507  ;;  %v4416_v13 = vadd.f32 %v4415_v31, %v4414_v2  ;;  %v4611_v18 = vadd.f32 %v4610_v63, %v4609_v34  ;;  %v3273_v7 = vsel %vm3219_vm13, %v3208_v60, %v2667_v22 }
 0x2ce   :  { %v2905_v36 = vpop.permute.xlu0 %2904  ;;  %v3338_v47 = vsel %vm3284_vm14, %v3273_v7, %v2741_v56  ;;  %v3210_v17 = vsel %vm3154_vm12, %v7208_v30, %v2508_v62 }
 0x2cf   :  { %v4613_v24 = vadd.f32 %v4612_v11, %v4611_v18  ;;  %v4418_v5 = vadd.f32 %v4417_v23, %v4416_v13  ;;  %v3403_v55 = vsel %vm3349_vm15, %v3338_v47, %v2835_v1 }
 0x2d0   :  { %v3468_v41 = vsel %vm3414_vm1, %v3403_v55, %v2905_v36 }
 0x2d1   :  { %v2669_v38 = vpop.permute.xlu1 %2668  ;;  %v4615_v42 = vadd.f32 %v4614_v48, %v4613_v24 }
 0x2d2   :  { %v2979_v61 = vpop.permute.xlu0 %2978  ;;  %v3275_v33 = vsel %vm3219_vm13, %v3210_v17, %v2669_v38 }
 0x2d3   :  { %v3533_v27 = vsel %vm3479_vm2, %v3468_v41, %v2979_v61 }
 0x2d5   :  { %v2743_v49 = vpop.permute.xlu1 %2742 }
 0x2d6   :  { %v3073_v50 = vpop.permute.xlu0 %3072  ;;  %v3340_v6 = vsel %vm3284_vm14, %v3275_v33, %v2743_v49 }
 0x2d7   :  { %v3598_v25 = vsel %vm3544_vm3, %v3533_v27, %v3073_v50 }
 0x2d9   :  { %v2837_v9 = vpop.permute.xlu1 %2836 }
 0x2da   :  { %v3143_v4 = vpop.permute.xlu0 %3142  ;;  %v3405_v20 = vsel %vm3349_vm15, %v3340_v6, %v2837_v9 }
 0x2db   :  { %v3663_v16 = vsel %vm3609_vm7, %v3598_v25, %v3143_v4 }
 0x2dc   :  { %5359 = vmatprep.mubr.msk.bf16.mxu1 %vm3694_vm11, %v3663_v16 }
 0x2dd   :  { %v2907_v54 = vpop.permute.xlu1 %2906 }
 0x2de   :  { %v3145_v44 = vpop.permute.xlu0 %3144  ;;  %v3470_v56 = vsel %vm3414_vm1, %v3405_v20, %v2907_v54 }
 0x2e1   :  { %v2981_v22 = vpop.permute.xlu1 %2980 }
 0x2e2   :  { %v5333_v57 = vpop.f32.mrb[24].mxu0  ;;  %v2671_v45 = vpop.permute.xlu0 %2670  ;;  %v3535_v30 = vsel %vm3479_vm2, %v3470_v56, %v2981_v22 }
 0x2e3   :  { %v5069_v46 = vpack.c.bf16 %v5333_v57, %v5333_v57  ;;  %v3893_v28 = vpop.f32.mrb[25].mxu0  ;;  %v4531_v15 = vmul.f32 %v5333_v57, %v5333_v57  ;;  %v4423_v2 = vsel %vm3154_vm12, %v5333_v57, 0.0 }
 0x2e4   :  { %v5067_v3 = vpack.c.bf16 %v3893_v28, %v3893_v28  ;;  %v4419_v10 = vsel %vm3154_vm12, %v3893_v28, 0.0  ;;  %v4529_v21 = vmul.f32 %v3893_v28, %v3893_v28  ;;  %v5334_v59 = vpop.f32.mrb[26].mxu0 }
 0x2e5   :  { %4334 = vst.msk [vmem:[#allocation11 + $0x68] sm:$0xf] %vm407_vm0, %v5069_v46  ;;  %v4420_v35 = vadd.f32 %v4419_v10, %v4418_v5  ;;  %v5070_v32 = vpack.c.bf16 %v5334_v59, %v5334_v59  ;;  %v3075_v39 = vpop.permute.xlu1 %3074  ;;  %v3896_v58 = vpop.f32.mrb[27].mxu0  ;;  %v4532_v31 = vmul.f32 %v5334_v59, %v5334_v59  ;;  %v4620_v36 = vsel %vm3154_vm12, %v4531_v15, 0.0 }
 0x2e6   :  { %4332 = vst.msk [vmem:[#allocation11 + $0x60] sm:$0xf] %vm407_vm0, %v5067_v3  ;;  %v4616_v53 = vsel %vm3154_vm12, %v4529_v21, 0.0  ;;  %v3600_v8 = vsel %vm3544_vm3, %v3535_v30, %v3075_v39  ;;  %v5068_v52 = vpack.c.bf16 %v3896_v58, %v3896_v58  ;;  %v2745_v51 = vpop.permute.xlu0 %2744  ;;  %v4421_v29 = vsel %vm3154_vm12, %v3896_v58, 0.0 }
 0x2e7   :  { %v4617_v1 = vadd.f32 %v4616_v53, %v4615_v42  ;;  %4335 = vst.msk [vmem:[#allocation11 + $0x6c] sm:$0xf] %vm407_vm0, %v5070_v32  ;;  %v4530_v34 = vmul.f32 %v3896_v58, %v3896_v58  ;;  %v3665_v43 = vsel %vm3609_vm7, %v3600_v8, %v3145_v44  ;;  %v4422_v26 = vadd.f32 %v4421_v29, %v4420_v35 }
 0x2e8   :  { %4333 = vst.msk [vmem:[#allocation11 + $0x64] sm:$0xf] %vm407_vm0, %v5068_v52  ;;  %5360 = vmatmul.mubr.msk.bf16.gmra.mrb[20].mxu1 %vm3694_vm11, %v3665_v43  ;;  %v4425_v11 = vsel %vm3154_vm12, %v5334_v59, 0.0  ;;  %v4622_v5 = vsel %vm3154_vm12, %v4532_v31, 0.0 }
 0x2e9   :  { %v4618_v0 = vsel %vm3154_vm12, %v4530_v34, 0.0  ;;  %v2510_v63 = vpop.permute.xlu1 %2509  ;;  %v4424_v62 = vadd.f32 %v4423_v2, %v4422_v26 }
 0x2ea   :  { %v4619_v13 = vadd.f32 %v4618_v0, %v4617_v1  ;;  %v2839_v18 = vpop.permute.xlu0 %2838  ;;  %v3212_v60 = vsel %vm3154_vm12, %v7249_v12, %v2510_v63 }
 0x2eb   :  { %v4426_v24 = vadd.f32 %v4425_v11, %v4424_v62  ;;  %v3277_v7 = vsel %vm3219_vm13, %v3212_v60, %v2671_v45 }
 0x2ec   :  { %v4621_v23 = vadd.f32 %v4620_v36, %v4619_v13  ;;  %v3342_v47 = vsel %vm3284_vm14, %v3277_v7, %v2745_v51 }
 0x2ed   :  { %v2512_v48 = vpop.permute.xlu1 %2511  ;;  %v3407_v55 = vsel %vm3349_vm15, %v3342_v47, %v2839_v18 }
 0x2ee   :  { %v2909_v38 = vpop.permute.xlu0 %2908  ;;  %v4623_v61 = vadd.f32 %v4622_v5, %v4621_v23  ;;  %v3214_v56 = vsel %vm3154_vm12, %v7291_v14, %v2512_v48 }
 0x2ef   :  { %v3472_v41 = vsel %vm3414_vm1, %v3407_v55, %v2909_v38 }
 0x2f1   :  { %v2673_v42 = vpop.permute.xlu1 %2672 }
 0x2f2   :  { %v2983_v37 = vpop.permute.xlu0 %2982  ;;  %v3279_v32 = vsel %vm3219_vm13, %v3214_v56, %v2673_v42 }
 0x2f3   :  { %v3537_v27 = vsel %vm3479_vm2, %v3472_v41, %v2983_v37 }
 0x2f5   :  { %v2747_v49 = vpop.permute.xlu1 %2746 }
 0x2f6   :  { %v3077_v50 = vpop.permute.xlu0 %3076  ;;  %v3344_v14 = vsel %vm3284_vm14, %v3279_v32, %v2747_v49 }
 0x2f7   :  { %v3602_v25 = vsel %vm3544_vm3, %v3537_v27, %v3077_v50 }
 0x2f9   :  { %v2841_v9 = vpop.permute.xlu1 %2840 }
 0x2fa   :  { %v3147_v4 = vpop.permute.xlu0 %3146  ;;  %v3409_v51 = vsel %vm3349_vm15, %v3344_v14, %v2841_v9 }
 0x2fb   :  { %v5337_v16 = vpop.f32.mrb[28].mxu0  ;;  %v3667_v54 = vsel %vm3609_vm7, %v3602_v25, %v3147_v4 }
 0x2fc   :  { %v5073_v12 = vpack.c.bf16 %v5337_v16, %v5337_v16  ;;  %v3909_v44 = vpop.f32.mrb[29].mxu0  ;;  %5363 = vmatprep.mubr.msk.bf16.mxu1 %vm3694_vm11, %v3667_v54  ;;  %v4535_v21 = vmul.f32 %v5337_v16, %v5337_v16  ;;  %v4431_v15 = vsel %vm3154_vm12, %v5337_v16, 0.0 }
 0x2fd   :  { %v2911_v17 = vpop.permute.xlu1 %2910  ;;  %v5071_v33 = vpack.c.bf16 %v3909_v44, %v3909_v44  ;;  %v4427_v22 = vsel %vm3154_vm12, %v3909_v44, 0.0  ;;  %v4533_v6 = vmul.f32 %v3909_v44, %v3909_v44  ;;  %v5338_v57 = vpop.f32.mrb[30].mxu0 }
 0x2fe   :  { %4338 = vst.msk [vmem:[#allocation11 + $0x78] sm:$0xf] %vm407_vm0, %v5073_v12  ;;  %v4428_v45 = vadd.f32 %v4427_v22, %v4426_v24  ;;  %v5074_v20 = vpack.c.bf16 %v5338_v57, %v5338_v57  ;;  %v3912_v46 = vpop.f32.mrb[31].mxu0  ;;  %v3149_v28 = vpop.permute.xlu0 %3148  ;;  %v4536_v53 = vmul.f32 %v5338_v57, %v5338_v57  ;;  %v3474_v34 = vsel %vm3414_vm1, %v3409_v51, %v2911_v17 }
 0x2ff   :  { %4336 = vst.msk [vmem:[#allocation11 + $0x70] sm:$0xf] %vm407_vm0, %v5071_v33  ;;  %v4624_v3 = vsel %vm3154_vm12, %v4533_v6, 0.0  ;;  %v5072_v10 = vpack.c.bf16 %v3912_v46, %v3912_v46  ;;  %v4429_v30 = vsel %vm3154_vm12, %v3912_v46, 0.0  ;;  %v4534_v35 = vmul.f32 %v3912_v46, %v3912_v46 }
 0x300   :  { %v4625_v59 = vadd.f32 %v4624_v3, %v4623_v61  ;;  %4339 = vst.msk [vmem:[#allocation11 + $0x7c] sm:$0xf] %vm407_vm0, %v5074_v20  ;;  %v4430_v39 = vadd.f32 %v4429_v30, %v4428_v45  ;;  %v4628_v43 = vsel %vm3154_vm12, %v4535_v21, 0.0  ;;  %v4433_v26 = vsel %vm3154_vm12, %v5338_v57, 0.0 }
 0x301   :  { %4337 = vst.msk [vmem:[#allocation11 + $0x74] sm:$0xf] %vm407_vm0, %v5072_v10  ;;  %v2985_v58 = vpop.permute.xlu1 %2984  ;;  %v4626_v8 = vsel %vm3154_vm12, %v4534_v35, 0.0  ;;  %v4630_v62 = vsel %vm3154_vm12, %v4536_v53, 0.0 }
 0x302   :  { %v2675_v52 = vpop.permute.xlu0 %2674  ;;  %v4432_v1 = vadd.f32 %v4431_v15, %v4430_v39  ;;  %v4627_v29 = vadd.f32 %v4626_v8, %v4625_v59  ;;  %v3539_v31 = vsel %vm3479_vm2, %v3474_v34, %v2985_v58 }
 0x304   :  { %v4629_v2 = vadd.f32 %v4628_v43, %v4627_v29  ;;  %v4434_v63 = vadd.f32 %v4433_v26, %v4432_v1 }
 0x305   :  { %v3079_v0 = vpop.permute.xlu1 %3078 }
 0x306   :  { %v3604_v13 = vsel %vm3544_vm3, %v3539_v31, %v3079_v0  ;;  %v2749_v18 = vpop.permute.xlu0 %2748  ;;  %v4631_v11 = vadd.f32 %v4630_v62, %v4629_v2 }
 0x307   :  { %v3669_v36 = vsel %vm3609_vm7, %v3604_v13, %v3149_v28 }
 0x308   :  { %5364 = vmatmul.mubr.msk.bf16.gmra.mrb[24].mxu1 %vm3694_vm11, %v3669_v36 }
 0x309   :  { %v2514_v23 = vpop.permute.xlu1 %2513 }
 0x30a   :  { %v2843_v24 = vpop.permute.xlu0 %2842  ;;  %v3216_v42 = vsel %vm3154_vm12, %v7335_v40, %v2514_v23 }
 0x30b   :  { %v3281_v37 = vsel %vm3219_vm13, %v3216_v42, %v2675_v52 }
 0x30c   :  { %v3346_v7 = vsel %vm3284_vm14, %v3281_v37, %v2749_v18 }
 0x30d   :  { %v2516_v5 = vpop.permute.xlu1 %2515  ;;  %v3411_v47 = vsel %vm3349_vm15, %v3346_v7, %v2843_v24 }
 0x30e   :  { %v2913_v48 = vpop.permute.xlu0 %2912  ;;  %v3218_v32 = vsel %vm3154_vm12, %v7381_v19, %v2516_v5 }
 0x30f   :  { %v3476_v50 = vsel %vm3414_vm1, %v3411_v47, %v2913_v48 }
 0x311   :  { %v2677_v38 = vpop.permute.xlu1 %2676 }
 0x312   :  { %v2987_v61 = vpop.permute.xlu0 %2986  ;;  %v3283_v14 = vsel %vm3219_vm13, %v3218_v32, %v2677_v38 }
 0x313   :  { %v3541_v41 = vsel %vm3479_vm2, %v3476_v50, %v2987_v61 }
 0x315   :  { %v2751_v60 = vpop.permute.xlu1 %2750 }
 0x316   :  { %v3081_v49 = vpop.permute.xlu0 %3080  ;;  %v3348_v8 = vsel %vm3284_vm14, %v3283_v14, %v2751_v60 }
 0x317   :  { %v3606_v9 = vsel %vm3544_vm3, %v3541_v41, %v3081_v49 }
 0x319   :  { %v2845_v55 = vpop.permute.xlu1 %2844 }
 0x31a   :  { %v3151_v27 = vpop.permute.xlu0 %3150  ;;  %v3413_v29 = vsel %vm3349_vm15, %v3348_v8, %v2845_v55 }
 0x31b   :  { %v5341_v25 = vpop.f32.mrb[0].mxu1  ;;  %v3671_v4 = vsel %vm3609_vm7, %v3606_v9, %v3151_v27 }
 0x31c   :  { %v5077_v40 = vpack.c.bf16 %v5341_v25, %v5341_v25  ;;  %v3925_v16 = vpop.f32.mrb[1].mxu1  ;;  %5367 = vmatprep.mubr.msk.bf16.mxu1 %vm3694_vm11, %v3671_v4  ;;  %v4539_v46 = vmul.f32 %v5341_v25, %v5341_v25  ;;  %v4439_v59 = vsel %vm3154_vm12, %v5341_v25, 0.0 }
 0x31d   :  { %v2915_v54 = vpop.permute.xlu1 %2914  ;;  %v5075_v12 = vpack.c.bf16 %v3925_v16, %v3925_v16  ;;  %v4435_v44 = vsel %vm3154_vm12, %v3925_v16, 0.0  ;;  %v4537_v17 = vmul.f32 %v3925_v16, %v3925_v16  ;;  %v5342_v33 = vpop.f32.mrb[2].mxu1 }
 0x31e   :  { %4342 = vst.msk [vmem:[#allocation11 + $0x88] sm:$0xf] %vm407_vm0, %v5077_v40  ;;  %v4436_v22 = vadd.f32 %v4435_v44, %v4434_v63  ;;  %v5078_v6 = vpack.c.bf16 %v5342_v33, %v5342_v33  ;;  %v3928_v57 = vpop.f32.mrb[3].mxu1  ;;  %v4540_v30 = vmul.f32 %v5342_v33, %v5342_v33  ;;  %v4636_v15 = vsel %vm3154_vm12, %v4539_v46, 0.0 }
 0x31f   :  { %4340 = vst.msk [vmem:[#allocation11 + $0x80] sm:$0xf] %vm407_vm0, %v5075_v12  ;;  %v4632_v45 = vsel %vm3154_vm12, %v4537_v17, 0.0  ;;  %v5076_v20 = vpack.c.bf16 %v3928_v57, %v3928_v57  ;;  %v4437_v56 = vsel %vm3154_vm12, %v3928_v57, 0.0  ;;  %v4538_v3 = vmul.f32 %v3928_v57, %v3928_v57 }
 0x320   :  { %v4633_v28 = vadd.f32 %v4632_v45, %v4631_v11  ;;  %4343 = vst.msk [vmem:[#allocation11 + $0x8c] sm:$0xf] %vm407_vm0, %v5078_v6  ;;  %v4438_v10 = vadd.f32 %v4437_v56, %v4436_v22  ;;  %v4441_v53 = vsel %vm3154_vm12, %v5342_v33, 0.0  ;;  %v4638_v34 = vsel %vm3154_vm12, %v4540_v30, 0.0 }
 0x321   :  { %4341 = vst.msk [vmem:[#allocation11 + $0x84] sm:$0xf] %vm407_vm0, %v5076_v20  ;;  %v2989_v21 = vpop.permute.xlu1 %2988  ;;  %v4634_v35 = vsel %vm3154_vm12, %v4538_v3, 0.0  ;;  %v3478_v43 = vsel %vm3414_vm1, %v3413_v29, %v2915_v54 }
 0x322   :  { %v4440_v39 = vadd.f32 %v4439_v59, %v4438_v10  ;;  %v4635_v58 = vadd.f32 %v4634_v35, %v4633_v28  ;;  %v3543_v26 = vsel %vm3479_vm2, %v3478_v43, %v2989_v21 }
 0x324   :  { %v4637_v52 = vadd.f32 %v4636_v15, %v4635_v58  ;;  %v4442_v1 = vadd.f32 %v4441_v53, %v4440_v39 }
 0x325   :  { %v3083_v51 = vpop.permute.xlu1 %3082 }
 0x326   :  { %v4639_v19 = vadd.f32 %v4638_v34, %v4637_v52  ;;  %v3608_v2 = vsel %vm3544_vm3, %v3543_v26, %v3083_v51 }
 0x329   :  { %v3153_v31 = vpop.permute.xlu1 %3152 }
 0x32a   :  { %v3673_v0 = vsel %vm3609_vm7, %v3608_v2, %v3153_v31 }
 0x32b   :  { %5368 = vmatmul.mubr.msk.bf16.gmra.mrb[28].mxu1 %vm3694_vm11, %v3673_v0 }
 0x33b   :  { %v5345_v63 = vpop.f32.mrb[4].mxu1 }
 0x33c   :  { %v5081_v62 = vpack.c.bf16 %v5345_v63, %v5345_v63  ;;  %v3941_v13 = vpop.f32.mrb[5].mxu1  ;;  %v4543_v37 = vmul.f32 %v5345_v63, %v5345_v63  ;;  %v4447_v47 = vsel %vm3154_vm12, %v5345_v63, 0.0 }
 0x33d   :  { %v5079_v18 = vpack.c.bf16 %v3941_v13, %v3941_v13  ;;  %v4443_v36 = vsel %vm3154_vm12, %v3941_v13, 0.0  ;;  %v4541_v11 = vmul.f32 %v3941_v13, %v3941_v13  ;;  %v5346_v23 = vpop.f32.mrb[6].mxu1 }
 0x33e   :  { %4346 = vst.msk [vmem:[#allocation11 + $0x98] sm:$0xf] %vm407_vm0, %v5081_v62  ;;  %v4444_v24 = vadd.f32 %v4443_v36, %v4442_v1  ;;  %v5082_v5 = vpack.c.bf16 %v5346_v23, %v5346_v23  ;;  %v3944_v48 = vpop.f32.mrb[7].mxu1  ;;  %v4544_v50 = vmul.f32 %v5346_v23, %v5346_v23  ;;  %v4449_v9 = vsel %vm3154_vm12, %v5346_v23, 0.0 }
 0x33f   :  { %4344 = vst.msk [vmem:[#allocation11 + $0x90] sm:$0xf] %vm407_vm0, %v5079_v18  ;;  %v4640_v38 = vsel %vm3154_vm12, %v4541_v11, 0.0  ;;  %v5080_v61 = vpack.c.bf16 %v3944_v48, %v3944_v48  ;;  %v4445_v42 = vsel %vm3154_vm12, %v3944_v48, 0.0  ;;  %v4542_v49 = vmul.f32 %v3944_v48, %v3944_v48 }
 0x340   :  { %v4641_v60 = vadd.f32 %v4640_v38, %v4639_v19  ;;  %4347 = vst.msk [vmem:[#allocation11 + $0x9c] sm:$0xf] %vm407_vm0, %v5082_v5  ;;  %v4446_v7 = vadd.f32 %v4445_v42, %v4444_v24  ;;  %v4644_v25 = vsel %vm3154_vm12, %v4543_v37, 0.0  ;;  %v4646_v16 = vsel %vm3154_vm12, %v4544_v50, 0.0 }
 0x341   :  { %4345 = vst.msk [vmem:[#allocation11 + $0x94] sm:$0xf] %vm407_vm0, %v5080_v61  ;;  %v4642_v41 = vsel %vm3154_vm12, %v4542_v49, 0.0 }
 0x342   :  { %v4448_v55 = vadd.f32 %v4447_v47, %v4446_v7  ;;  %v4643_v27 = vadd.f32 %v4642_v41, %v4641_v60 }
 0x344   :  { %v4450_v4 = vadd.f32 %v4449_v9, %v4448_v55  ;;  %v4645_v40 = vadd.f32 %v4644_v25, %v4643_v27 }
 0x346   :  { %v4647_v54 = vadd.f32 %v4646_v16, %v4645_v40 }
 0x35b   :  { %v5349_v12 = vpop.f32.mrb[8].mxu1 }
 0x35c   :  { %v5085_v44 = vpack.c.bf16 %v5349_v12, %v5349_v12  ;;  %v3957_v17 = vpop.f32.mrb[9].mxu1  ;;  %v4547_v10 = vmul.f32 %v5349_v12, %v5349_v12  ;;  %v4455_v35 = vsel %vm3154_vm12, %v5349_v12, 0.0 }
 0x35d   :  { %v5083_v33 = vpack.c.bf16 %v3957_v17, %v3957_v17  ;;  %v4451_v22 = vsel %vm3154_vm12, %v3957_v17, 0.0  ;;  %v4545_v6 = vmul.f32 %v3957_v17, %v3957_v17  ;;  %v5350_v57 = vpop.f32.mrb[10].mxu1 }
 0x35e   :  { %4350 = vst.msk [vmem:[#allocation11 + $0xa8] sm:$0xf] %vm407_vm0, %v5085_v44  ;;  %v4452_v45 = vadd.f32 %v4451_v22, %v4450_v4  ;;  %v5086_v20 = vpack.c.bf16 %v5350_v57, %v5350_v57  ;;  %v3960_v46 = vpop.f32.mrb[11].mxu1  ;;  %v4548_v32 = vmul.f32 %v5350_v57, %v5350_v57  ;;  %v4457_v14 = vsel %vm3154_vm12, %v5350_v57, 0.0 }
 0x35f   :  { %4348 = vst.msk [vmem:[#allocation11 + $0xa0] sm:$0xf] %vm407_vm0, %v5083_v33  ;;  %v4648_v28 = vsel %vm3154_vm12, %v4545_v6, 0.0  ;;  %v5084_v56 = vpack.c.bf16 %v3960_v46, %v3960_v46  ;;  %v4453_v3 = vsel %vm3154_vm12, %v3960_v46, 0.0  ;;  %v4546_v30 = vmul.f32 %v3960_v46, %v3960_v46 }
 0x360   :  { %v4649_v21 = vadd.f32 %v4648_v28, %v4647_v54  ;;  %4351 = vst.msk [vmem:[#allocation11 + $0xac] sm:$0xf] %vm407_vm0, %v5086_v20  ;;  %v4454_v59 = vadd.f32 %v4453_v3, %v4452_v45  ;;  %v4652_v53 = vsel %vm3154_vm12, %v4547_v10, 0.0  ;;  %v4654_v51 = vsel %vm3154_vm12, %v4548_v32, 0.0 }
 0x361   :  { %4349 = vst.msk [vmem:[#allocation11 + $0xa4] sm:$0xf] %vm407_vm0, %v5084_v56  ;;  %v4650_v58 = vsel %vm3154_vm12, %v4546_v30, 0.0 }
 0x362   :  { %v4456_v39 = vadd.f32 %v4455_v35, %v4454_v59  ;;  %v4651_v15 = vadd.f32 %v4650_v58, %v4649_v21 }
 0x364   :  { %v4458_v8 = vadd.f32 %v4457_v14, %v4456_v39  ;;  %v4653_v52 = vadd.f32 %v4652_v53, %v4651_v15 }
 0x366   :  { %v4655_v1 = vadd.f32 %v4654_v51, %v4653_v52 }
 0x37b   :  { %v5353_v29 = vpop.f32.mrb[12].mxu1 }
 0x37c   :  { %v5089_v34 = vpack.c.bf16 %v5353_v29, %v5353_v29  ;;  %v3973_v43 = vpop.f32.mrb[13].mxu1  ;;  %v4551_v11 = vmul.f32 %v5353_v29, %v5353_v29  ;;  %v4463_v48 = vsel %vm3154_vm12, %v5353_v29, 0.0 }
 0x37d   :  { %v5087_v19 = vpack.c.bf16 %v3973_v43, %v3973_v43  ;;  %v4459_v26 = vsel %vm3154_vm12, %v3973_v43, 0.0  ;;  %v4549_v2 = vmul.f32 %v3973_v43, %v3973_v43  ;;  %v5354_v31 = vpop.f32.mrb[14].mxu1 }
 0x37e   :  { %4354 = vst.msk [vmem:[#allocation11 + $0xb8] sm:$0xf] %vm407_vm0, %v5089_v34  ;;  %v4460_v0 = vadd.f32 %v4459_v26, %v4458_v8  ;;  %v5090_v63 = vpack.c.bf16 %v5354_v31, %v5354_v31  ;;  %v3976_v62 = vpop.f32.mrb[15].mxu1  ;;  %v4552_v38 = vmul.f32 %v5354_v31, %v5354_v31  ;;  %v4465_v37 = vsel %vm3154_vm12, %v5354_v31, 0.0 }
 0x37f   :  { %4352 = vst.msk [vmem:[#allocation11 + $0xb0] sm:$0xf] %vm407_vm0, %v5087_v19  ;;  %v4656_v13 = vsel %vm3154_vm12, %v4549_v2, 0.0  ;;  %v5088_v18 = vpack.c.bf16 %v3976_v62, %v3976_v62  ;;  %v4461_v36 = vsel %vm3154_vm12, %v3976_v62, 0.0  ;;  %v4550_v5 = vmul.f32 %v3976_v62, %v3976_v62 }
 0x380   :  { %v4657_v23 = vadd.f32 %v4656_v13, %v4655_v1  ;;  %4355 = vst.msk [vmem:[#allocation11 + $0xbc] sm:$0xf] %vm407_vm0, %v5090_v63  ;;  %v4462_v24 = vadd.f32 %v4461_v36, %v4460_v0  ;;  %v4660_v7 = vsel %vm3154_vm12, %v4551_v11, 0.0  ;;  %v4662_v50 = vsel %vm3154_vm12, %v4552_v38, 0.0 }
 0x381   :  { %4353 = vst.msk [vmem:[#allocation11 + $0xb4] sm:$0xf] %vm407_vm0, %v5088_v18  ;;  %v4658_v42 = vsel %vm3154_vm12, %v4550_v5, 0.0 }
 0x382   :  { %v4464_v61 = vadd.f32 %v4463_v48, %v4462_v24  ;;  %v4659_v60 = vadd.f32 %v4658_v42, %v4657_v23 }
 0x384   :  { %v4466_v49 = vadd.f32 %v4465_v37, %v4464_v61  ;;  %v4661_v47 = vadd.f32 %v4660_v7, %v4659_v60 }
 0x386   :  { %v4663_v55 = vadd.f32 %v4662_v50, %v4661_v47 }
 0x39b   :  { %v5357_v41 = vpop.f32.mrb[16].mxu1 }
 0x39c   :  { %v5093_v9 = vpack.c.bf16 %v5357_v41, %v5357_v41  ;;  %v3989_v27 = vpop.f32.mrb[17].mxu1  ;;  %v4555_v6 = vmul.f32 %v5357_v41, %v5357_v41  ;;  %v4471_v46 = vsel %vm3154_vm12, %v5357_v41, 0.0 }
 0x39d   :  { %v5091_v25 = vpack.c.bf16 %v3989_v27, %v3989_v27  ;;  %v4467_v4 = vsel %vm3154_vm12, %v3989_v27, 0.0  ;;  %v4553_v40 = vmul.f32 %v3989_v27, %v3989_v27  ;;  %v5358_v16 = vpop.f32.mrb[18].mxu1 }
 0x39e   :  { %4358 = vst.msk [vmem:[#allocation11 + $0xc8] sm:$0xf] %vm407_vm0, %v5093_v9  ;;  %v4468_v54 = vadd.f32 %v4467_v4, %v4466_v49  ;;  %v5094_v12 = vpack.c.bf16 %v5358_v16, %v5358_v16  ;;  %v3992_v44 = vpop.f32.mrb[19].mxu1  ;;  %v4556_v28 = vmul.f32 %v5358_v16, %v5358_v16  ;;  %v4473_v10 = vsel %vm3154_vm12, %v5358_v16, 0.0 }
 0x39f   :  { %4356 = vst.msk [vmem:[#allocation11 + $0xc0] sm:$0xf] %vm407_vm0, %v5091_v25  ;;  %v4664_v17 = vsel %vm3154_vm12, %v4553_v40, 0.0  ;;  %v5092_v33 = vpack.c.bf16 %v3992_v44, %v3992_v44  ;;  %v4469_v22 = vsel %vm3154_vm12, %v3992_v44, 0.0  ;;  %v4554_v20 = vmul.f32 %v3992_v44, %v3992_v44 }
 0x3a0   :  { %v4665_v57 = vadd.f32 %v4664_v17, %v4663_v55  ;;  %4359 = vst.msk [vmem:[#allocation11 + $0xcc] sm:$0xf] %vm407_vm0, %v5094_v12  ;;  %v4470_v45 = vadd.f32 %v4469_v22, %v4468_v54  ;;  %v4668_v59 = vsel %vm3154_vm12, %v4555_v6, 0.0  ;;  %v4670_v32 = vsel %vm3154_vm12, %v4556_v28, 0.0 }
 0x3a1   :  { %4357 = vst.msk [vmem:[#allocation11 + $0xc4] sm:$0xf] %vm407_vm0, %v5092_v33  ;;  %v4666_v3 = vsel %vm3154_vm12, %v4554_v20, 0.0 }
 0x3a2   :  { %v4472_v56 = vadd.f32 %v4471_v46, %v4470_v45  ;;  %v4667_v21 = vadd.f32 %v4666_v3, %v4665_v57 }
 0x3a4   :  { %v4474_v30 = vadd.f32 %v4473_v10, %v4472_v56  ;;  %v4669_v35 = vadd.f32 %v4668_v59, %v4667_v21 }
 0x3a6   :  { %v4671_v39 = vadd.f32 %v4670_v32, %v4669_v35 }
 0x3bb   :  { %v5361_v58 = vpop.f32.mrb[20].mxu1 }
 0x3bc   :  { %v5097_v14 = vpack.c.bf16 %v5361_v58, %v5361_v58  ;;  %v4005_v15 = vpop.f32.mrb[21].mxu1  ;;  %v4559_v2 = vmul.f32 %v5361_v58, %v5361_v58  ;;  %v4479_v62 = vsel %vm3154_vm12, %v5361_v58, 0.0 }
 0x3bd   :  { %v5095_v53 = vpack.c.bf16 %v4005_v15, %v4005_v15  ;;  %v4475_v8 = vsel %vm3154_vm12, %v4005_v15, 0.0  ;;  %v4557_v52 = vmul.f32 %v4005_v15, %v4005_v15  ;;  %v5362_v51 = vpop.f32.mrb[22].mxu1 }
 0x3be   :  { %4362 = vst.msk [vmem:[#allocation11 + $0xd8] sm:$0xf] %vm407_vm0, %v5097_v14  ;;  %v4476_v1 = vadd.f32 %v4475_v8, %v4474_v30  ;;  %v5098_v29 = vpack.c.bf16 %v5362_v51, %v5362_v51  ;;  %v4008_v34 = vpop.f32.mrb[23].mxu1  ;;  %v4560_v13 = vmul.f32 %v5362_v51, %v5362_v51  ;;  %v4481_v11 = vsel %vm3154_vm12, %v5362_v51, 0.0 }
 0x3bf   :  { %4360 = vst.msk [vmem:[#allocation11 + $0xd0] sm:$0xf] %vm407_vm0, %v5095_v53  ;;  %v4672_v43 = vsel %vm3154_vm12, %v4557_v52, 0.0  ;;  %v5096_v19 = vpack.c.bf16 %v4008_v34, %v4008_v34  ;;  %v4477_v26 = vsel %vm3154_vm12, %v4008_v34, 0.0  ;;  %v4558_v63 = vmul.f32 %v4008_v34, %v4008_v34 }
 0x3c0   :  { %v4673_v31 = vadd.f32 %v4672_v43, %v4671_v39  ;;  %4363 = vst.msk [vmem:[#allocation11 + $0xdc] sm:$0xf] %vm407_vm0, %v5098_v29  ;;  %v4478_v0 = vadd.f32 %v4477_v26, %v4476_v1  ;;  %v4676_v24 = vsel %vm3154_vm12, %v4559_v2, 0.0  ;;  %v4678_v38 = vsel %vm3154_vm12, %v4560_v13, 0.0 }
 0x3c1   :  { %4361 = vst.msk [vmem:[#allocation11 + $0xd4] sm:$0xf] %vm407_vm0, %v5096_v19  ;;  %v4674_v36 = vsel %vm3154_vm12, %v4558_v63, 0.0 }
 0x3c2   :  { %v4480_v18 = vadd.f32 %v4479_v62, %v4478_v0  ;;  %v4675_v23 = vadd.f32 %v4674_v36, %v4673_v31 }
 0x3c4   :  { %v4482_v5 = vadd.f32 %v4481_v11, %v4480_v18  ;;  %v4677_v48 = vadd.f32 %v4676_v24, %v4675_v23 }
 0x3c6   :  { %v4679_v61 = vadd.f32 %v4678_v38, %v4677_v48 }
 0x3db   :  { %v5365_v42 = vpop.f32.mrb[24].mxu1 }
 0x3dc   :  { %v5101_v37 = vpack.c.bf16 %v5365_v42, %v5365_v42  ;;  %v4021_v60 = vpop.f32.mrb[25].mxu1  ;;  %v4563_v40 = vmul.f32 %v5365_v42, %v5365_v42  ;;  %v4487_v44 = vsel %vm3154_vm12, %v5365_v42, 0.0 }
 0x3dd   :  { %v5099_v7 = vpack.c.bf16 %v4021_v60, %v4021_v60  ;;  %v4483_v49 = vsel %vm3154_vm12, %v4021_v60, 0.0  ;;  %v4561_v47 = vmul.f32 %v4021_v60, %v4021_v60  ;;  %v5366_v50 = vpop.f32.mrb[26].mxu1 }
 0x3de   :  { %4366 = vst.msk [vmem:[#allocation11 + $0xe8] sm:$0xf] %vm407_vm0, %v5101_v37  ;;  %v4484_v55 = vadd.f32 %v4483_v49, %v4482_v5  ;;  %v5102_v41 = vpack.c.bf16 %v5366_v50, %v5366_v50  ;;  %v4024_v9 = vpop.f32.mrb[27].mxu1  ;;  %v4564_v17 = vmul.f32 %v5366_v50, %v5366_v50  ;;  %v4489_v6 = vsel %vm3154_vm12, %v5366_v50, 0.0 }
 0x3df   :  { %4364 = vst.msk [vmem:[#allocation11 + $0xe0] sm:$0xf] %vm407_vm0, %v5099_v7  ;;  %v4680_v27 = vsel %vm3154_vm12, %v4561_v47, 0.0  ;;  %v5100_v25 = vpack.c.bf16 %v4024_v9, %v4024_v9  ;;  %v4485_v4 = vsel %vm3154_vm12, %v4024_v9, 0.0  ;;  %v4562_v12 = vmul.f32 %v4024_v9, %v4024_v9 }
 0x3e0   :  { %v4681_v16 = vadd.f32 %v4680_v27, %v4679_v61  ;;  %4367 = vst.msk [vmem:[#allocation11 + $0xec] sm:$0xf] %vm407_vm0, %v5102_v41  ;;  %v4486_v54 = vadd.f32 %v4485_v4, %v4484_v55  ;;  %v4684_v45 = vsel %vm3154_vm12, %v4563_v40, 0.0  ;;  %v4686_v28 = vsel %vm3154_vm12, %v4564_v17, 0.0 }
 0x3e1   :  { %4365 = vst.msk [vmem:[#allocation11 + $0xe4] sm:$0xf] %vm407_vm0, %v5100_v25  ;;  %v4682_v22 = vsel %vm3154_vm12, %v4562_v12, 0.0 }
 0x3e2   :  { %v4488_v33 = vadd.f32 %v4487_v44, %v4486_v54  ;;  %v4683_v57 = vadd.f32 %v4682_v22, %v4681_v16 }
 0x3e4   :  { %v4490_v20 = vadd.f32 %v4489_v6, %v4488_v33  ;;  %v4685_v46 = vadd.f32 %v4684_v45, %v4683_v57 }
 0x3e6   :  { %v4687_v56 = vadd.f32 %v4686_v28, %v4685_v46 }
 0x3fe   :  { %v5369_v3 = vpop.f32.mrb[28].mxu1 }
 0x3ff   :  { %v5105_v10 = vpack.c.bf16 %v5369_v3, %v5369_v3  ;;  %v4037_v21 = vpop.f32.mrb[29].mxu1  ;;  %v4567_v52 = vmul.f32 %v5369_v3, %v5369_v3  ;;  %v4495_v34 = vsel %vm3154_vm12, %v5369_v3, 0.0 }
 0x400   :  { %v5103_v59 = vpack.c.bf16 %v4037_v21, %v4037_v21  ;;  %v4491_v30 = vsel %vm3154_vm12, %v4037_v21, 0.0  ;;  %v4565_v35 = vmul.f32 %v4037_v21, %v4037_v21  ;;  %v5370_v32 = vpop.f32.mrb[30].mxu1 }
 0x401   :  { %4370 = vst.msk [vmem:[#allocation11 + $0xf8] sm:$0xf] %vm407_vm0, %v5105_v10  ;;  %v4492_v39 = vadd.f32 %v4491_v30, %v4490_v20  ;;  %v5106_v58 = vpack.c.bf16 %v5370_v32, %v5370_v32  ;;  %v4040_v14 = vpop.f32.mrb[31].mxu1  ;;  %v4568_v43 = vmul.f32 %v5370_v32, %v5370_v32  ;;  %v4497_v2 = vsel %vm3154_vm12, %v5370_v32, 0.0 }
 0x402   :  { %4368 = vst.msk [vmem:[#allocation11 + $0xf0] sm:$0xf] %vm407_vm0, %v5103_v59  ;;  %v4688_v15 = vsel %vm3154_vm12, %v4565_v35, 0.0  ;;  %v5104_v53 = vpack.c.bf16 %v4040_v14, %v4040_v14  ;;  %v4493_v8 = vsel %vm3154_vm12, %v4040_v14, 0.0  ;;  %v4566_v29 = vmul.f32 %v4040_v14, %v4040_v14 }
 0x403   :  { %v4689_v51 = vadd.f32 %v4688_v15, %v4687_v56  ;;  %4371 = vst.msk [vmem:[#allocation11 + $0xfc] sm:$0xf] %vm407_vm0, %v5106_v58  ;;  %v4494_v1 = vadd.f32 %v4493_v8, %v4492_v39  ;;  %v4692_v0 = vsel %vm3154_vm12, %v4567_v52, 0.0  ;;  %v4694_v13 = vsel %vm3154_vm12, %v4568_v43, 0.0 }
 0x404   :  { %4369 = vst.msk [vmem:[#allocation11 + $0xf4] sm:$0xf] %vm407_vm0, %v5104_v53  ;;  %v4690_v26 = vsel %vm3154_vm12, %v4566_v29, 0.0 }
 0x405   :  { %v4496_v19 = vadd.f32 %v4495_v34, %v4494_v1  ;;  %v4691_v31 = vadd.f32 %v4690_v26, %v4689_v51 }
 0x407   :  { %v4498_v63 = vadd.f32 %v4497_v2, %v4496_v19  ;;  %v4693_v62 = vadd.f32 %v4692_v0, %v4691_v31 }
 0x409   :  { %v4695_v18 = vadd.f32 %v4694_v13, %v4693_v62 }
 0x40b   :  { %v4696_v36 = vrot.slane %v4695_v18, 4 }
 0x40c   :  { %5620 = shalt.err (!%p5617_p8)
}
 0x40d   :  { %s5621_s30 = scalar_lea.hbm %s7749_s4, 4096 }
 0x40e   :  { %p5622_p9 = scmp.ne.s32.totalorder %s7749_s4, %s5621_s30  ;;  %p5625_p10 = scmp.lt.u32.totalorder %s5621_s30, %s7749_s4 }
 0x410   :  { %p5627_p11 = pnand %p5625_p10, %p5622_p9 }
 0x412   :  { %5630 = shalt.err (!%p5627_p11)
}
 0x413   :  { %4720 = dma.vmem_to_hbm [thread:$0]  %s4715_s26, 4096, %s7749_s4, [#allocation5], %s5665_s1, %s5665_s1, %s5666_s16   ;;  %v4697_v11 = vadd.f32 %v4696_v36, %v4695_v18  ;;  %v4499_v38 = vrot.slane %v4498_v63, 4  ;;  %vm4707_vm0 = vcmask 57344  }
 0x414   :  { %s5678_s10 = smov [#allocation12]  }
 0x415   :  { %v4698_v23 = vrot.slane %v4697_v11, 2  ;;  %v4500_v61 = vadd.f32 %v4499_v38, %v4498_v63  ;;  %s4727_s11 = sshll.u32 %s5678_s10, 4  ;;  %s4728_s11 = int_to_ptr.vmem [resolvable:$true] %s4727_s11 }
 0x416   :  { %s5631_s4 = scalar_lea.vmem %s4728_s11, 16  ;;  %s5635_s1 = scalar_lea.vmem %s4728_s11, 32 }
 0x417   :  { %v4699_v24 = vadd.f32 %v4698_v23, %v4697_v11  ;;  %v4501_v42 = vrot.slane %v4500_v61, 2  ;;  %p5632_p12 = scmp.ne.s32.totalorder %s4728_s11, %s5631_s4  ;;  %p5636_p13 = scmp.lt.s32.totalorder %s4728_s11, %s4728_s11 }
 0x418   :  { %p5637_p0 = scmp.lt.s32.totalorder %s5635_s1, %s5631_s4 }
 0x419   :  { %v4700_v5 = vrot.slane %v4699_v24, 1  ;;  %v4502_v37 = vadd.f32 %v4501_v42, %v4500_v61 }
 0x41a   :  { %p5638_p1 = por %p5637_p0, %p5636_p13 }
 0x41b   :  { %v4701_v48 = vadd.f32 %v4700_v5, %v4699_v24  ;;  %v4503_v60 = vrot.slane %v4502_v37, 1 }
 0x41c   :  { %p5639_p2 = pnand %p5638_p1, %p5632_p12 }
 0x41d   :  { %4703 = vrot.lane.b32.xlu0 %v4701_v48, %s5666_s16  ;;  %v4504_v7 = vadd.f32 %v4503_v60, %v4502_v37 }
 0x48f   :  { %v4704_v49 = vpop.permute.xlu0 %4703 }
 0x490   :  { %v4706_v47 = vsel %vm3154_vm12, %v4504_v7, %v4704_v49 }
 0x491   :  { %4708 = vst.msk [vmem:[#allocation12] sm:$0x1] %vm4707_vm0, %v4706_v47 }
 0x492   :  { %5642 = shalt.err (!%p5639_p2)
}
 0x493   :  { %s5643_s13 = scalar_lea.hbm %s7750_s5, 16 }
 0x494   :  { %p5644_p3 = scmp.ne.s32.totalorder %s7750_s5, %s5643_s13  ;;  %p5647_p4 = scmp.lt.u32.totalorder %s5643_s13, %s7750_s5 }
 0x496   :  { %p5649_p5 = pnand %p5647_p4, %p5644_p3 }
 0x498   :  { %5652 = shalt.err (!%p5649_p5)
}
 0x499   :  { %4730 = dma.vmem_to_hbm [thread:$0]  %s4728_s11, 16, %s7750_s5, [#allocation13]  }
 0x49a   :  { %5659 = dma.done.wait [#allocation5], 4096  }
 0x49b   :  { %5660 = vsyncadd [#allocation5], 4294963200 }
 0x49c   :  { %5661 = dma.done.wait [#allocation13], 16  }
 0x49d   :  { %5662 = vsyncadd [#allocation13], 4294967280 }
 0x49e   :  { %4737 = vsyncpa [#allocation4], 1 }
 0x49f   :  { %4738 = vsyncpa [#allocation7], 1 }
 0x4a0   :  { %4739 = vsyncpa [#allocation10], 1 }
 0x4a1   :  { %4740 = vsyncpa [#allocation5], 1 }
 0x4a2   :  { %4741 = vsyncpa [#allocation13], 1 }

</bundles_post_ra>
